<compile_context>
chip_gen: v7x
topology: tpu7x:2x2x1
jax: 0.10.0
libtpu: 0.0.40
codegen_flags: <defaults>
</compile_context>

<pallas_src>
import jax
import jax.numpy as jnp
from jax.experimental import pallas as pl
from jax.experimental.pallas import tpu as pltpu

HIDDEN = 256


def _disc_kernel(x_ref, w1_ref, b1_ref, w2_ref, b2_ref, w3_ref, b3_ref, o_ref):
    # x tile: (TILE_B, inp) f32.  Cast to bf16 only at the MXU inputs.
    x = x_ref[...]

    # Layer 1: Linear(inp, 256) + LeakyReLU(0.2)   (MXU, bf16 in / f32 acc)
    h = jnp.dot(x.astype(jnp.bfloat16), w1_ref[...],
                preferred_element_type=jnp.float32)
    h = h + b1_ref[...]                      # (1,256) broadcasts over batch
    h = jnp.where(h > 0, h, 0.2 * h)

    # Layer 2: Linear(256, 256) + LeakyReLU(0.2)   (dominant matmul)
    h = jnp.dot(h.astype(jnp.bfloat16), w2_ref[...],
                preferred_element_type=jnp.float32)
    h = h + b2_ref[...]
    h = jnp.where(h > 0, h, 0.2 * h)

    # Layer 3: Linear(256, 1) + Sigmoid.
    # N=1 would waste 255/256 MXU columns -> do it on VPU (mul) + XLU (lane
    # reduce) instead; b3 comes from SMEM as a scalar.
    y = jnp.sum(h * w3_ref[...], axis=-1, keepdims=True) + b3_ref[0, 0]

    # sigmoid = 1 / (1 + exp(-y)); exp and reciprocal both live on the EUP.
    o_ref[...] = pl.reciprocal(1.0 + jnp.exp(-y), approx=False)


def discriminator_forward(x, params, *, tile_b=1024):
    """x: (batch, inp) float32. params: dict of (w1,b1,w2,b2,w3,b3)."""
    batch, inp = x.shape

    # Pad the batch to a multiple of the tile so the grid divides evenly.
    n_tiles = pl.cdiv(batch, tile_b)
    padded = n_tiles * tile_b
    if padded != batch:
        x = jnp.pad(x, ((0, padded - batch), (0, 0)))

    w1 = params["w1"].astype(jnp.bfloat16)            # (inp, 256)
    w2 = params["w2"].astype(jnp.bfloat16)            # (256, 256)
    w3 = params["w3"].reshape(1, HIDDEN).astype(jnp.float32)  # (1, 256)
    b1 = params["b1"].astype(jnp.float32)              # (1, 256)
    b2 = params["b2"].astype(jnp.float32)              # (1, 256)
    b3 = params["b3"].astype(jnp.float32)              # (1, 1) -> SMEM scalar

    out = pl.pallas_call(
        _disc_kernel,
        out_shape=jax.ShapeDtypeStruct((padded, 1), jnp.float32),
        grid_spec=pltpu.PrefetchScalarGridSpec(
            num_scalar_prefetch=0,
            grid=(n_tiles,),
            in_specs=[
                # x: one batch tile per grid step.
                pl.BlockSpec((tile_b, inp), lambda i: (i, 0)),
                # weights / biases: same block every step -> VMEM resident.
                pl.BlockSpec((inp, HIDDEN), lambda i: (0, 0)),
                pl.BlockSpec((1, HIDDEN), lambda i: (0, 0)),
                pl.BlockSpec((HIDDEN, HIDDEN), lambda i: (0, 0)),
                pl.BlockSpec((1, HIDDEN), lambda i: (0, 0)),
                pl.BlockSpec((1, HIDDEN), lambda i: (0, 0)),
                # b3 as an SMEM scalar (avoids a padded (8,128) VMEM tile).
                pl.BlockSpec(memory_space=pltpu.MemorySpace.SMEM),
            ],
            out_specs=pl.BlockSpec((tile_b, 1), lambda i: (i, 0)),
        ),
        compiler_params=pltpu.CompilerParams(
            dimension_semantics=("parallel",),  # megacore-shard batch on v7x
        ),
    )(x, w1, b1, w2, b2, w3, b3)

    return out[:batch]


def init_params(key, inp, out=1, hidden=HIDDEN):
    """Deterministic init mimicking PyTorch nn.Linear (uniform +/- 1/sqrt(fan_in)).
    Weights stored as (in_features, out_features)."""
    ks = jax.random.split(key, 6)

    def lin(kw, kb, fan_in, fan_out):
        bound = 1.0 / jnp.sqrt(jnp.float32(fan_in))
        w = jax.random.uniform(kw, (fan_in, fan_out), jnp.float32, -bound, bound)
        b = jax.random.uniform(kb, (1, fan_out), jnp.float32, -bound, bound)
        return w, b

    w1, b1 = lin(ks[0], ks[1], inp, hidden)
    w2, b2 = lin(ks[2], ks[3], hidden, hidden)
    w3, b3 = lin(ks[4], ks[5], hidden, out)
    return {"w1": w1, "b1": b1, "w2": w2, "b2": b2, "w3": w3, "b3": b3}


def reference_forward(x, p):
    """Pure-JAX reference using the same bf16-matmul / f32-accumulate scheme."""
    h = jnp.dot(x.astype(jnp.bfloat16), p["w1"].astype(jnp.bfloat16),
                preferred_element_type=jnp.float32) + p["b1"]
    h = jnp.where(h > 0, h, 0.2 * h)
    h = jnp.dot(h.astype(jnp.bfloat16), p["w2"].astype(jnp.bfloat16),
                preferred_element_type=jnp.float32) + p["b2"]
    h = jnp.where(h > 0, h, 0.2 * h)
    y = h @ p["w3"] + p["b3"]
    return jax.nn.sigmoid(y)


if __name__ == "__main__":
    key = jax.random.PRNGKey(0)
    k_x, k_p = jax.random.split(key)

    batch, inp = 8, 32
    x = jax.random.normal(k_x, (batch, inp), jnp.float32)
    params = init_params(k_p, inp)

    out = discriminator_forward(x, params)
    out = jax.block_until_ready(out)

    ref = reference_forward(x, params)
    assert out.shape == (batch, 1), out.shape
    assert jnp.allclose(out, ref, atol=2e-3, rtol=2e-3), (out, ref)

    print("KERNEL_OK")
</pallas_src>

<mosaic_0001>
module attributes {stable_mosaic.version = 11 : i64} {
  func.func @_disc_kernel(%arg0: i32, %arg1: memref<1024x32xf32, #tpu.memory_space<vmem>>, %arg2: memref<32x256xbf16, #tpu.memory_space<vmem>>, %arg3: memref<1x256xf32, #tpu.memory_space<vmem>>, %arg4: memref<256x256xbf16, #tpu.memory_space<vmem>>, %arg5: memref<1x256xf32, #tpu.memory_space<vmem>>, %arg6: memref<1x256xf32, #tpu.memory_space<vmem>>, %arg7: memref<1x1xf32, #tpu.memory_space<smem>>, %arg8: memref<1024x1xf32, #tpu.memory_space<vmem>>) attributes {dimension_semantics = [#tpu.dimension_semantics<parallel>], iteration_bounds = array<i64: 1>, scalar_prefetch = 0 : i64, scratch_operands = 0 : i64, tpu.core_type = #tpu.core_type<tc>, window_params = [{transform_indices = @transform_0, window_bounds = array<i64: 1024, 32>}, {pipeline_mode = #tpu.pipeline_mode<synchronous>, transform_indices = @transform_1, window_bounds = array<i64: 32, 256>}, {pipeline_mode = #tpu.pipeline_mode<synchronous>, transform_indices = @transform_2, window_bounds = array<i64: 1, 256>}, {pipeline_mode = #tpu.pipeline_mode<synchronous>, transform_indices = @transform_3, window_bounds = array<i64: 256, 256>}, {pipeline_mode = #tpu.pipeline_mode<synchronous>, transform_indices = @transform_4, window_bounds = array<i64: 1, 256>}, {pipeline_mode = #tpu.pipeline_mode<synchronous>, transform_indices = @transform_5, window_bounds = array<i64: 1, 256>}, {transform_indices = @transform_6, window_bounds = array<i64: 1, 1>}, {transform_indices = @transform_7, window_bounds = array<i64: 1024, 1>}]} {
    %c0 = arith.constant 0 : index
    %c0_0 = arith.constant 0 : index
    %0 = vector.load %arg1[%c0, %c0_0] : memref<1024x32xf32, #tpu.memory_space<vmem>>, vector<1024x32xf32>
    %1 = arith.truncf %0 : vector<1024x32xf32> to vector<1024x32xbf16>
    %c0_1 = arith.constant 0 : index
    %c0_2 = arith.constant 0 : index
    %2 = vector.load %arg2[%c0_1, %c0_2] : memref<32x256xbf16, #tpu.memory_space<vmem>>, vector<32x256xbf16>
    %cst = arith.constant dense<0.000000e+00> : vector<1024x256xf32>
    %3 = tpu.matmul %1, %2, %cst {dimension_numbers = #tpu.dot_dimension_numbers<[1], [0], [0], [1], [0, 0, 1, 1], [], []>} : vector<1024x32xbf16>, vector<32x256xbf16>, vector<1024x256xf32> -> vector<1024x256xf32>
    %c0_3 = arith.constant 0 : index
    %c0_4 = arith.constant 0 : index
    %4 = vector.load %arg3[%c0_3, %c0_4] : memref<1x256xf32, #tpu.memory_space<vmem>>, vector<1x256xf32>
    %5 = vector.broadcast %4 : vector<1x256xf32> to vector<1024x256xf32>
    %6 = arith.addf %3, %5 : vector<1024x256xf32>
    %cst_5 = arith.constant 0.000000e+00 : f32
    %7 = vector.broadcast %cst_5 : f32 to vector<1024x256xf32>
    %8 = arith.cmpf ogt, %6, %7 : vector<1024x256xf32>
    %cst_6 = arith.constant 2.000000e-01 : f32
    %9 = vector.broadcast %cst_6 : f32 to vector<1024x256xf32>
    %10 = arith.mulf %9, %6 : vector<1024x256xf32>
    %11 = arith.select %8, %6, %10 : vector<1024x256xi1>, vector<1024x256xf32>
    %12 = arith.truncf %11 : vector<1024x256xf32> to vector<1024x256xbf16>
    %c0_7 = arith.constant 0 : index
    %c0_8 = arith.constant 0 : index
    %13 = vector.load %arg4[%c0_7, %c0_8] : memref<256x256xbf16, #tpu.memory_space<vmem>>, vector<256x256xbf16>
    %cst_9 = arith.constant dense<0.000000e+00> : vector<1024x256xf32>
    %14 = tpu.matmul %12, %13, %cst_9 {dimension_numbers = #tpu.dot_dimension_numbers<[1], [0], [0], [1], [0, 0, 1, 1], [], []>} : vector<1024x256xbf16>, vector<256x256xbf16>, vector<1024x256xf32> -> vector<1024x256xf32>
    %c0_10 = arith.constant 0 : index
    %c0_11 = arith.constant 0 : index
    %15 = vector.load %arg5[%c0_10, %c0_11] : memref<1x256xf32, #tpu.memory_space<vmem>>, vector<1x256xf32>
    %16 = vector.broadcast %15 : vector<1x256xf32> to vector<1024x256xf32>
    %17 = arith.addf %14, %16 : vector<1024x256xf32>
    %cst_12 = arith.constant 0.000000e+00 : f32
    %18 = vector.broadcast %cst_12 : f32 to vector<1024x256xf32>
    %19 = arith.cmpf ogt, %17, %18 : vector<1024x256xf32>
    %cst_13 = arith.constant 2.000000e-01 : f32
    %20 = vector.broadcast %cst_13 : f32 to vector<1024x256xf32>
    %21 = arith.mulf %20, %17 : vector<1024x256xf32>
    %22 = arith.select %19, %17, %21 : vector<1024x256xi1>, vector<1024x256xf32>
    %c0_14 = arith.constant 0 : index
    %c0_15 = arith.constant 0 : index
    %23 = vector.load %arg6[%c0_14, %c0_15] : memref<1x256xf32, #tpu.memory_space<vmem>>, vector<1x256xf32>
    %24 = vector.broadcast %23 : vector<1x256xf32> to vector<1024x256xf32>
    %25 = arith.mulf %22, %24 : vector<1024x256xf32>
    %cst_16 = arith.constant dense<0.000000e+00> : vector<1024xf32>
    %26 = vector.multi_reduction <add>, %25, %cst_16 [1] : vector<1024x256xf32> to vector<1024xf32>
    %27 = vector.shape_cast %26 : vector<1024xf32> to vector<1024x1xf32>
    %c0_17 = arith.constant 0 : index
    %c0_18 = arith.constant 0 : index
    %28 = memref.load %arg7[%c0_17, %c0_18] : memref<1x1xf32, #tpu.memory_space<smem>>
    %29 = vector.broadcast %28 : f32 to vector<1024x1xf32>
    %30 = arith.addf %27, %29 : vector<1024x1xf32>
    %cst_19 = arith.constant 0.000000e+00 : f32
    %31 = vector.broadcast %cst_19 : f32 to vector<1024x1xf32>
    %32 = arith.subf %31, %30 : vector<1024x1xf32>
    %33 = math.exp %32 : vector<1024x1xf32>
    %cst_20 = arith.constant 1.000000e+00 : f32
    %34 = vector.broadcast %cst_20 : f32 to vector<1024x1xf32>
    %35 = arith.addf %34, %33 : vector<1024x1xf32>
    %36 = tpu.reciprocal %35 : vector<1024x1xf32> -> vector<1024x1xf32>
    %c0_21 = arith.constant 0 : index
    %c0_22 = arith.constant 0 : index
    %37 = vector.load %arg8[%c0_21, %c0_22] : memref<1024x1xf32, #tpu.memory_space<vmem>>, vector<1024x1xf32>
    tpu.vector_store %arg8[%c0_21, %c0_22], %36 {strides = array<i32>} : memref<1024x1xf32, #tpu.memory_space<vmem>>, vector<1024x1xf32>,
    return
  }
  func.func @transform_0(%arg0: i32) -> (i32, i32) {
    %c0_i32 = arith.constant 0 : i32
    %c0_i32_0 = arith.constant 0 : i32
    return %arg0, %c0_i32 : i32, i32
  }
  func.func @transform_1(%arg0: i32) -> (i32, i32) {
    %c0_i32 = arith.constant 0 : i32
    %c0_i32_0 = arith.constant 0 : i32
    %c0_i32_1 = arith.constant 0 : i32
    return %c0_i32, %c0_i32_0 : i32, i32
  }
  func.func @transform_2(%arg0: i32) -> (i32, i32) {
    %c0_i32 = arith.constant 0 : i32
    %c0_i32_0 = arith.constant 0 : i32
    %c0_i32_1 = arith.constant 0 : i32
    return %c0_i32, %c0_i32_0 : i32, i32
  }
  func.func @transform_3(%arg0: i32) -> (i32, i32) {
    %c0_i32 = arith.constant 0 : i32
    %c0_i32_0 = arith.constant 0 : i32
    %c0_i32_1 = arith.constant 0 : i32
    return %c0_i32, %c0_i32_0 : i32, i32
  }
  func.func @transform_4(%arg0: i32) -> (i32, i32) {
    %c0_i32 = arith.constant 0 : i32
    %c0_i32_0 = arith.constant 0 : i32
    %c0_i32_1 = arith.constant 0 : i32
    return %c0_i32, %c0_i32_0 : i32, i32
  }
  func.func @transform_5(%arg0: i32) -> (i32, i32) {
    %c0_i32 = arith.constant 0 : i32
    %c0_i32_0 = arith.constant 0 : i32
    %c0_i32_1 = arith.constant 0 : i32
    return %c0_i32, %c0_i32_0 : i32, i32
  }
  func.func @transform_6(%arg0: i32) -> (i32, i32) {
    %c0_i32 = arith.constant 0 : i32
    %c0_i32_0 = arith.constant 0 : i32
    %c0_i32_1 = arith.constant 0 : i32
    return %c0_i32, %c0_i32_0 : i32, i32
  }
  func.func @transform_7(%arg0: i32) -> (i32, i32) {
    %c0_i32 = arith.constant 0 : i32
    %c0_i32_0 = arith.constant 0 : i32
    return %arg0, %c0_i32 : i32, i32
  }
}

</mosaic_0001>

<bundles_post_ra>
// kernel: tpu_custom_call.1
= control target key start
LH: loop header
LB: loop body
LE: loop exit
PB: predicated region body
PF: predicated region fallthrough
CT: control target
= control target key end

     0   :  { %v5917_v1 = vmov 0   ;;  %vm256_vm0 = vcmask 261120   ;;  %s10801_s1 = inlined_call_operand.vmem [shape: bf16[32,256], index: 1, kind: input, shape index: {}]   ;;  %s10802_s0 = inlined_call_operand.vmem [shape: f32[1024,32], index: 0, kind: input, shape index: {}]   ;;  %s10803_s3 = inlined_call_operand.vmem [shape: bf16[256,256], index: 3, kind: input, shape index: {}]   ;;  %s10804_s2 = inlined_call_operand.vmem [shape: f32[1,256], index: 2, kind: input, shape index: {}]   ;;  %s10805_s4 = inlined_call_operand.vmem [shape: f32[1,256], index: 4, kind: input, shape index: {}]   ;;  %s10806_s5 = inlined_call_operand.vmem [shape: f32[1,256], index: 5, kind: input, shape index: {}]   ;;  %s10807_s6 = inlined_call_operand.<no memory space> [shape: f32[1,1], index: 6, kind: input, shape index: {}]   ;;  %s10808_s7 = inlined_call_operand.vmem [shape: f32[1024,1], index: 7, kind: output, shape index: {}]  }
   0x1   :  { %v5351_v0 = vld [vmem:[%s10801_s1 + $0x4] ss:$8 sps:$4 sm:$0xff]   ;;  %481 = vmatprep.mubr.bf16.mxu0 %v5917_v1  ;;  %v5353_v2 = vld [vmem:[%s10801_s1] ss:$8 sps:$4 sm:$0xff]   ;;  %v5354_v3 = vld [vmem:[%s10801_s1 + $0x14] ss:$8 sps:$4 sm:$0xff]  }
   0x2   :  { %449 = vmatprep.subr.bf16.mxu0 %v5351_v0  ;;  %v5356_v4 = vld [vmem:[%s10801_s1 + $0x10] ss:$8 sps:$4 sm:$0xff]   ;;  %v28_v5 = vld [vmem:[%s10802_s0] sm:$0xff]  ;;  %v29_v6 = vld [vmem:[%s10802_s0 + $0x8] sm:$0xff] }
   0x3   :  { %450 = vmatpush1.bf16.msra.mxu0 %v5353_v2  ;;  %v156_v7 = vpack.c.bf16 %v29_v6, %v28_v5  ;;  %v30_v8 = vld [vmem:[%s10802_s0 + $0x10] sm:$0xff]  ;;  %v31_v9 = vld [vmem:[%s10802_s0 + $0x18] sm:$0xff]  ;;  %v5357_v10 = vld [vmem:[%s10803_s3] ss:$8 sps:$4 sm:$0xff]  }
   0x4   :  { %451 = vmatprep.subr.bf16.mxu0 %v5354_v3  ;;  %v5359_v11 = vld [vmem:[%s10803_s3 + $0x4] ss:$8 sps:$4 sm:$0xff]   ;;  %v157_v12 = vpack.c.bf16 %v31_v9, %v30_v8  ;;  %v5360_v13 = vld [vmem:[%s10803_s3 + $0x10] ss:$8 sps:$4 sm:$0xff]   ;;  %v5362_v14 = vld [vmem:[%s10803_s3 + $0x14] ss:$8 sps:$4 sm:$0xff]  }
   0x5   :  { %5318 = vmatprep.subr.bf16.mxu1 %v5359_v11  ;;  %v32_v15 = vld [vmem:[%s10802_s0 + $0x20] sm:$0xff]  ;;  %v33_v16 = vld [vmem:[%s10802_s0 + $0x28] sm:$0xff]  ;;  %v34_v18 = vld [vmem:[%s10802_s0 + $0x30] sm:$0xff] }
   0x6   :  { %5334 = vmatpush1.bf16.msra.mxu1 %v5357_v10  ;;  %v158_v17 = vpack.c.bf16 %v33_v16, %v32_v15  ;;  %v35_v19 = vld [vmem:[%s10802_s0 + $0x38] sm:$0xff]  ;;  %v5363_v21 = vld [vmem:[%s10803_s3 + $0x20] ss:$8 sps:$4 sm:$0xff]   ;;  %v5365_v22 = vld [vmem:[%s10803_s3 + $0x24] ss:$8 sps:$4 sm:$0xff]  }
   0x7   :  { %452 = vmatpush1.bf16.msra.mxu0 %v5356_v4  ;;  %5319 = vmatprep.subr.bf16.mxu1 %v5362_v14  ;;  %v159_v20 = vpack.c.bf16 %v35_v19, %v34_v18  ;;  %v36_v23 = vld [vmem:[%s10802_s0 + $0x40] sm:$0xff]  ;;  %v37_v24 = vld [vmem:[%s10802_s0 + $0x48] sm:$0xff]  ;;  %v38_v26 = vld [vmem:[%s10802_s0 + $0x50] sm:$0xff] }
   0x8   :  { %2222 = vmatprep.subr.bf16.mxu0 %v5359_v11  ;;  %v160_v25 = vpack.c.bf16 %v37_v24, %v36_v23  ;;  %v39_v27 = vld [vmem:[%s10802_s0 + $0x58] sm:$0xff]  ;;  %v40_v29 = vld [vmem:[%s10802_s0 + $0x60] sm:$0xff]  ;;  %v41_v30 = vld [vmem:[%s10802_s0 + $0x68] sm:$0xff] }
   0x9   :  { %v161_v28 = vpack.c.bf16 %v39_v27, %v38_v26  ;;  %v162_v31 = vpack.c.bf16 %v41_v30, %v40_v29  ;;  %v42_v32 = vld [vmem:[%s10802_s0 + $0x70] sm:$0xff]  ;;  %v43_v33 = vld [vmem:[%s10802_s0 + $0x78] sm:$0xff]  ;;  %v44_v37 = vld [vmem:[%s10802_s0 + $0x80] sm:$0xff] }
   0xa   :  { %5222 = vmatmul.mubr.msk.bf16.vlgmr.msra.gmra.mrb[0].mxu0 %vm256_vm0, %v156_v7  ;;  %5335 = vmatpush1.bf16.msra.mxu1 %v5360_v13  ;;  %v163_v34 = vpack.c.bf16 %v43_v33, %v42_v32  ;;  %v5366_v35 = vld [vmem:[%s10803_s3 + $0x30] ss:$8 sps:$4 sm:$0xff]   ;;  %v5368_v36 = vld [vmem:[%s10803_s3 + $0x34] ss:$8 sps:$4 sm:$0xff]   ;;  %v45_v38 = vld [vmem:[%s10802_s0 + $0x88] sm:$0xff] }
   0xb   :  { %491 = vmatprep.mubr.bf16.mxu0 %v5917_v1  ;;  %2223 = vmatpush1.bf16.msra.mxu0 %v5357_v10  ;;  %v164_v39 = vpack.c.bf16 %v45_v38, %v44_v37  ;;  %v46_v40 = vld [vmem:[%s10802_s0 + $0x90] sm:$0xff]  ;;  %v47_v41 = vld [vmem:[%s10802_s0 + $0x98] sm:$0xff]  ;;  %v5369_v42 = vld [vmem:[%s10803_s3 + $0x44] ss:$8 sps:$4 sm:$0xff]  }
   0xc   :  { %2224 = vmatprep.subr.bf16.mxu0 %v5362_v14  ;;  %5320 = vmatprep.subr.bf16.mxu1 %v5365_v22  ;;  %v165_v43 = vpack.c.bf16 %v47_v41, %v46_v40  ;;  %v5371_v44 = vld [vmem:[%s10803_s3 + $0x40] ss:$8 sps:$4 sm:$0xff]   ;;  %v5372_v45 = vld [vmem:[%s10803_s3 + $0x54] ss:$8 sps:$4 sm:$0xff]   ;;  %v5374_v46 = vld [vmem:[%s10803_s3 + $0x50] ss:$8 sps:$4 sm:$0xff]  }
   0xd   :  { %v48_v47 = vld [vmem:[%s10802_s0 + $0xa0] sm:$0xff]  ;;  %v49_v48 = vld [vmem:[%s10802_s0 + $0xa8] sm:$0xff]  ;;  %v50_v52 = vld [vmem:[%s10802_s0 + $0xb0] sm:$0xff] }
   0xe   :  { %5336 = vmatpush1.bf16.msra.mxu1 %v5363_v21  ;;  %v5375_v49 = vld [vmem:[%s10803_s3 + $0x64] ss:$8 sps:$4 sm:$0xff]   ;;  %v166_v50 = vpack.c.bf16 %v49_v48, %v48_v47  ;;  %v5377_v51 = vld [vmem:[%s10803_s3 + $0x60] ss:$8 sps:$4 sm:$0xff]   ;;  %v51_v53 = vld [vmem:[%s10802_s0 + $0xb8] sm:$0xff] }
   0xf   :  { %2225 = vmatpush1.bf16.msra.mxu0 %v5360_v13  ;;  %5321 = vmatprep.subr.bf16.mxu1 %v5368_v36  ;;  %v5378_v54 = vld [vmem:[%s10803_s3 + $0x74] ss:$8 sps:$4 sm:$0xff]   ;;  %v5380_v55 = vld [vmem:[%s10803_s3 + $0x70] ss:$8 sps:$4 sm:$0xff]   ;;  %v167_v56 = vpack.c.bf16 %v51_v53, %v50_v52  ;;  %v5381_v57 = vld [vmem:[%s10803_s3 + $0x84] ss:$8 sps:$4 sm:$0xff]   ;;  %v226_v52 = vlaneseq }
  0x10   :  { %2226 = vmatprep.subr.bf16.mxu0 %v5365_v22  ;;  %v5383_v58 = vld [vmem:[%s10803_s3 + $0x80] ss:$8 sps:$4 sm:$0xff]   ;;  %v5384_v61 = vld [vmem:[%s10803_s3 + $0x94] ss:$8 sps:$4 sm:$0xff]   ;;  %v5386_v62 = vld [vmem:[%s10803_s3 + $0x90] ss:$8 sps:$4 sm:$0xff]  }
  0x11   :  { %v52_v59 = vld [vmem:[%s10802_s0 + $0xc0] sm:$0xff]  ;;  %v53_v60 = vld [vmem:[%s10802_s0 + $0xc8] sm:$0xff]  ;;  %v54_v3 = vld [vmem:[%s10802_s0 + $0xd0] sm:$0xff]  ;;  %v227_v53 = vshrl.u32 %v226_v52, 7 }
  0x12   :  { %5223 = vmatmul.mubr.msk.bf16.gmra.mrb[4].mxu0 %vm256_vm0, %v157_v12  ;;  %5337 = vmatpush1.bf16.msra.mxu1 %v5366_v35  ;;  %v168_v63 = vpack.c.bf16 %v53_v60, %v52_v59  ;;  %v5387_v0 = vld [vmem:[%s10803_s3 + $0xa4] ss:$8 sps:$4 sm:$0xff]   ;;  %v5389_v2 = vld [vmem:[%s10803_s3 + $0xa0] ss:$8 sps:$4 sm:$0xff]   ;;  %v55_v4 = vld [vmem:[%s10802_s0 + $0xd8] sm:$0xff] }
  0x13   :  { %501 = vmatprep.mubr.bf16.mxu0 %v5917_v1  ;;  %2227 = vmatpush1.bf16.msra.mxu0 %v5363_v21  ;;  %v5390_v5 = vld [vmem:[%s10803_s3 + $0xb4] ss:$8 sps:$4 sm:$0xff]   ;;  %v5392_v6 = vld [vmem:[%s10803_s3 + $0xb0] ss:$8 sps:$4 sm:$0xff]   ;;  %v169_v7 = vpack.c.bf16 %v55_v4, %v54_v3  ;;  %v5393_v8 = vld [vmem:[%s10803_s3 + $0xc4] ss:$8 sps:$4 sm:$0xff]  }
  0x14   :  { %2228 = vmatprep.subr.bf16.mxu0 %v5368_v36  ;;  %5322 = vmatprep.subr.bf16.mxu1 %v5369_v42  ;;  %v5395_v9 = vld [vmem:[%s10803_s3 + $0xc0] ss:$8 sps:$4 sm:$0xff]   ;;  %v5396_v12 = vld [vmem:[%s10803_s3 + $0xd4] ss:$8 sps:$4 sm:$0xff]   ;;  %v5398_v13 = vld [vmem:[%s10803_s3 + $0xd0] ss:$8 sps:$4 sm:$0xff]  }
  0x15   :  { %v56_v10 = vld [vmem:[%s10802_s0 + $0xe0] sm:$0xff]  ;;  %v57_v11 = vld [vmem:[%s10802_s0 + $0xe8] sm:$0xff]  ;;  %v59_v18 = vld [vmem:[%s10802_s0 + $0xf8] sm:$0xff]  ;;  %v6286_v59 = vsub.s32 1, %v227_v53 }
  0x16   :  { %5338 = vmatpush1.bf16.msra.mxu1 %v5371_v44  ;;  %v170_v14 = vpack.c.bf16 %v57_v11, %v56_v10  ;;  %v5399_v15 = vld [vmem:[%s10803_s3 + $0xe4] ss:$8 sps:$4 sm:$0xff]   ;;  %v5401_v16 = vld [vmem:[%s10803_s3 + $0xe0] ss:$8 sps:$4 sm:$0xff]   ;;  %v5402_v19 = vld [vmem:[%s10803_s3 + $0xf4] ss:$8 sps:$4 sm:$0xff]  }
  0x17   :  { %2229 = vmatpush1.bf16.msra.mxu0 %v5366_v35  ;;  %5323 = vmatprep.subr.bf16.mxu1 %v5372_v45  ;;  %v60_v22 = vld [vmem:[%s10802_s0 + $0x100] sm:$0xff]  ;;  %v61_v23 = vld [vmem:[%s10802_s0 + $0x108] sm:$0xff]  ;;  %v63_v26 = vld [vmem:[%s10802_s0 + $0x118] sm:$0xff] }
  0x18   :  { %2230 = vmatprep.subr.bf16.mxu0 %v5369_v42  ;;  %v172_v24 = vpack.c.bf16 %v61_v23, %v60_v22  ;;  %v65_v29 = vld [vmem:[%s10802_s0 + $0x128] sm:$0xff]  ;;  %v67_v32 = vld [vmem:[%s10802_s0 + $0x138] sm:$0xff]  ;;  %v70_v37 = vld [vmem:[%s10802_s0 + $0x150] sm:$0xff] }
  0x19   :  { %v69_v35 = vld [vmem:[%s10802_s0 + $0x148] sm:$0xff]  ;;  %v71_v38 = vld [vmem:[%s10802_s0 + $0x158] sm:$0xff]  ;;  %v72_v40 = vld [vmem:[%s10802_s0 + $0x160] sm:$0xff] }
  0x1a   :  { %5224 = vmatmul.mubr.msk.bf16.gmra.mrb[8].mxu0 %vm256_vm0, %v158_v17  ;;  %5339 = vmatpush1.bf16.msra.mxu1 %v5374_v46  ;;  %v58_v17 = vld [vmem:[%s10802_s0 + $0xf0] sm:$0xff]  ;;  %v73_v41 = vld [vmem:[%s10802_s0 + $0x168] sm:$0xff] }
  0x1b   :  { %511 = vmatprep.mubr.bf16.mxu0 %v5917_v1  ;;  %2231 = vmatpush1.bf16.msra.mxu0 %v5371_v44  ;;  %v171_v21 = vpack.c.bf16 %v59_v18, %v58_v17  ;;  %v178_v42 = vpack.c.bf16 %v73_v41, %v72_v40  ;;  %v75_v44 = vld [vmem:[%s10802_s0 + $0x178] sm:$0xff]  ;;  %v77_v47 = vld [vmem:[%s10802_s0 + $0x188] sm:$0xff] }
  0x1c   :  { %2232 = vmatprep.subr.bf16.mxu0 %v5372_v45  ;;  %5324 = vmatprep.subr.bf16.mxu1 %v5375_v49 }
  0x1e   :  { %5340 = vmatpush1.bf16.msra.mxu1 %v5377_v51 }
  0x1f   :  { %2233 = vmatpush1.bf16.msra.mxu0 %v5374_v46  ;;  %5325 = vmatprep.subr.bf16.mxu1 %v5378_v54  ;;  %v76_v46 = vld [vmem:[%s10802_s0 + $0x180] sm:$0xff] }
  0x20   :  { %2234 = vmatprep.subr.bf16.mxu0 %v5375_v49  ;;  %v180_v48 = vpack.c.bf16 %v77_v47, %v76_v46  ;;  %v78_v49 = vld [vmem:[%s10802_s0 + $0x190] sm:$0xff] }
  0x22   :  { %5225 = vmatmul.mubr.msk.bf16.gmra.mrb[12].mxu0 %vm256_vm0, %v159_v20  ;;  %5341 = vmatpush1.bf16.msra.mxu1 %v5380_v55  ;;  %v5404_v20 = vld [vmem:[%s10803_s3 + $0xf0] ss:$8 sps:$4 sm:$0xff]  }
  0x23   :  { %521 = vmatprep.mubr.bf16.mxu0 %v5917_v1  ;;  %2235 = vmatpush1.bf16.msra.mxu0 %v5377_v51 }
  0x24   :  { %2236 = vmatprep.subr.bf16.mxu0 %v5378_v54  ;;  %5326 = vmatprep.subr.bf16.mxu1 %v5381_v57  ;;  %v80_v54 = vld [vmem:[%s10802_s0 + $0x1a0] sm:$0xff] }
  0x26   :  { %5342 = vmatpush1.bf16.msra.mxu1 %v5383_v58 }
  0x27   :  { %2237 = vmatpush1.bf16.msra.mxu0 %v5380_v55  ;;  %5327 = vmatprep.subr.bf16.mxu1 %v5384_v61  ;;  %v81_v55 = vld [vmem:[%s10802_s0 + $0x1a8] sm:$0xff] }
  0x28   :  { %2238 = vmatprep.subr.bf16.mxu0 %v5381_v57  ;;  %v6281_v57 = vsub.s32 0, %v227_v53 }
  0x2a   :  { %5226 = vmatmul.mubr.msk.bf16.gmra.mrb[16].mxu0 %vm256_vm0, %v160_v25  ;;  %5343 = vmatpush1.bf16.msra.mxu1 %v5386_v62  ;;  %v62_v25 = vld [vmem:[%s10802_s0 + $0x110] sm:$0xff] }
  0x2b   :  { %531 = vmatprep.mubr.bf16.mxu0 %v5917_v1  ;;  %2239 = vmatpush1.bf16.msra.mxu0 %v5383_v58  ;;  %v173_v27 = vpack.c.bf16 %v63_v26, %v62_v25  ;;  %v224_v58 = vld [vmem:[%s10804_s2] sm:$0x3] }
  0x2c   :  { %2240 = vmatprep.subr.bf16.mxu0 %v5384_v61  ;;  %5328 = vmatprep.subr.bf16.mxu1 %v5387_v0  ;;  %v6290_v60 = vrot.slane %v224_v58, %v6281_v57  ;;  %v6293_v61 = vrot.slane %v224_v58, %v6286_v59  ;;  %v89_v58 = vld [vmem:[%s10802_s0 + $0x1e8] sm:$0xff] }
  0x2e   :  { %5344 = vmatpush1.bf16.msra.mxu1 %v5389_v2 }
  0x2f   :  { %2241 = vmatpush1.bf16.msra.mxu0 %v5386_v62  ;;  %5329 = vmatprep.subr.bf16.mxu1 %v5390_v5  ;;  %v82_v62 = vld [vmem:[%s10802_s0 + $0x1b0] sm:$0xff] }
  0x30   :  { %2242 = vmatprep.subr.bf16.mxu0 %v5387_v0 }
  0x32   :  { %5227 = vmatmul.mubr.msk.bf16.gmra.mrb[20].mxu0 %vm256_vm0, %v161_v28  ;;  %5345 = vmatpush1.bf16.msra.mxu1 %v5392_v6  ;;  %v64_v28 = vld [vmem:[%s10802_s0 + $0x120] sm:$0xff] }
  0x33   :  { %541 = vmatprep.mubr.bf16.mxu0 %v5917_v1  ;;  %2243 = vmatpush1.bf16.msra.mxu0 %v5389_v2  ;;  %v174_v30 = vpack.c.bf16 %v65_v29, %v64_v28 }
  0x34   :  { %2244 = vmatprep.subr.bf16.mxu0 %v5390_v5  ;;  %5330 = vmatprep.subr.bf16.mxu1 %v5393_v8 }
  0x36   :  { %5346 = vmatpush1.bf16.msra.mxu1 %v5395_v9 }
  0x37   :  { %2245 = vmatpush1.bf16.msra.mxu0 %v5392_v6  ;;  %5331 = vmatprep.subr.bf16.mxu1 %v5396_v12 }
  0x38   :  { %2246 = vmatprep.subr.bf16.mxu0 %v5393_v8 }
  0x3a   :  { %5228 = vmatmul.mubr.msk.bf16.gmra.mrb[24].mxu0 %vm256_vm0, %v162_v31  ;;  %5347 = vmatpush1.bf16.msra.mxu1 %v5398_v13  ;;  %v66_v31 = vld [vmem:[%s10802_s0 + $0x130] sm:$0xff] }
  0x3b   :  { %551 = vmatprep.mubr.bf16.mxu0 %v5917_v1  ;;  %2247 = vmatpush1.bf16.msra.mxu0 %v5395_v9  ;;  %v175_v33 = vpack.c.bf16 %v67_v32, %v66_v31 }
  0x3c   :  { %2248 = vmatprep.subr.bf16.mxu0 %v5396_v12  ;;  %5332 = vmatprep.subr.bf16.mxu1 %v5399_v15 }
  0x3e   :  { %5348 = vmatpush1.bf16.msra.mxu1 %v5401_v16 }
  0x3f   :  { %2249 = vmatpush1.bf16.msra.mxu0 %v5398_v13  ;;  %5333 = vmatprep.subr.bf16.mxu1 %v5402_v19 }
  0x40   :  { %2250 = vmatprep.subr.bf16.mxu0 %v5399_v15  ;;  %v85_v15 = vld [vmem:[%s10802_s0 + $0x1c8] sm:$0xff] }
  0x42   :  { %5229 = vmatmul.mubr.msk.bf16.gmra.mrb[28].mxu0 %vm256_vm0, %v163_v34  ;;  %5349 = vmatpush1.bf16.msra.mxu1 %v5404_v20  ;;  %v68_v34 = vld [vmem:[%s10802_s0 + $0x140] sm:$0xff] }
  0x43   :  { %561 = vmatprep.mubr.bf16.mxu0 %v5917_v1  ;;  %2251 = vmatpush1.bf16.msra.mxu0 %v5401_v16  ;;  %v176_v36 = vpack.c.bf16 %v69_v35, %v68_v34  ;;  %v86_v35 = vld [vmem:[%s10802_s0 + $0x1d0] sm:$0xff] }
  0x44   :  { %2252 = vmatprep.subr.bf16.mxu0 %v5402_v19 }
  0x47   :  { %2253 = vmatpush1.bf16.msra.mxu0 %v5404_v20 }
  0x4a   :  { %5230 = vmatmul.mubr.msk.bf16.gmra.mrb[32].mxu0 %vm256_vm0, %v164_v39  ;;  %v177_v39 = vpack.c.bf16 %v71_v38, %v70_v37 }
  0x4b   :  { %571 = vmatprep.mubr.bf16.mxu0 %v5917_v1 }
  0x52   :  { %5231 = vmatmul.mubr.msk.bf16.gmra.mrb[36].mxu0 %vm256_vm0, %v165_v43  ;;  %v74_v43 = vld [vmem:[%s10802_s0 + $0x170] sm:$0xff] }
  0x53   :  { %581 = vmatprep.mubr.bf16.mxu0 %v5917_v1  ;;  %v179_v45 = vpack.c.bf16 %v75_v44, %v74_v43 }
  0x5a   :  { %5232 = vmatmul.mubr.msk.bf16.gmra.mrb[40].mxu0 %vm256_vm0, %v166_v50  ;;  %v79_v50 = vld [vmem:[%s10802_s0 + $0x198] sm:$0xff] }
  0x5b   :  { %591 = vmatprep.mubr.bf16.mxu0 %v5917_v1  ;;  %v181_v51 = vpack.c.bf16 %v79_v50, %v78_v49 }
  0x62   :  { %5233 = vmatmul.mubr.msk.bf16.gmra.mrb[44].mxu0 %vm256_vm0, %v167_v56  ;;  %v182_v56 = vpack.c.bf16 %v81_v55, %v80_v54 }
  0x63   :  { %601 = vmatprep.mubr.bf16.mxu0 %v5917_v1 }
  0x6a   :  { %5234 = vmatmul.mubr.msk.bf16.gmra.mrb[48].mxu0 %vm256_vm0, %v168_v63  ;;  %v83_v63 = vld [vmem:[%s10802_s0 + $0x1b8] sm:$0xff] }
  0x6b   :  { %611 = vmatprep.mubr.bf16.mxu0 %v5917_v1  ;;  %v183_v4 = vpack.c.bf16 %v83_v63, %v82_v62 }
  0x72   :  { %5235 = vmatmul.mubr.msk.bf16.gmra.mrb[52].mxu0 %vm256_vm0, %v169_v7 }
  0x73   :  { %621 = vmatprep.mubr.bf16.mxu0 %v5917_v1 }
  0x7a   :  { %5236 = vmatmul.mubr.msk.bf16.gmra.mrb[56].mxu0 %vm256_vm0, %v170_v14  ;;  %v84_v14 = vld [vmem:[%s10802_s0 + $0x1c0] sm:$0xff] }
  0x7b   :  { %631 = vmatprep.mubr.bf16.mxu0 %v5917_v1 }
  0x82   :  { %5237 = vmatmul.mubr.msk.bf16.gmra.mrb[60].mxu0 %vm256_vm0, %v171_v21 }
  0x83   :  { %641 = vmatprep.mubr.bf16.mxu0 %v5917_v1 }
  0x8a   :  { %5238 = vmatmul.mubr.msk.bf16.gmra.mrb[64].mxu0 %vm256_vm0, %v172_v24  ;;  %v184_v24 = vpack.c.bf16 %v85_v15, %v84_v14 }
  0x8b   :  { %651 = vmatprep.mubr.bf16.mxu0 %v5917_v1 }
  0x92   :  { %5239 = vmatmul.mubr.msk.bf16.gmra.mrb[68].mxu0 %vm256_vm0, %v173_v27 }
  0x93   :  { %661 = vmatprep.mubr.bf16.mxu0 %v5917_v1 }
  0x9a   :  { %5240 = vmatmul.mubr.msk.bf16.gmra.mrb[72].mxu0 %vm256_vm0, %v174_v30 }
  0x9b   :  { %671 = vmatprep.mubr.bf16.mxu0 %v5917_v1 }
  0xa2   :  { %5241 = vmatmul.mubr.msk.bf16.gmra.mrb[76].mxu0 %vm256_vm0, %v175_v33 }
  0xa3   :  { %681 = vmatprep.mubr.bf16.mxu0 %v5917_v1 }
  0xaa   :  { %5242 = vmatmul.mubr.msk.bf16.gmra.mrb[80].mxu0 %vm256_vm0, %v176_v36  ;;  %v87_v36 = vld [vmem:[%s10802_s0 + $0x1d8] sm:$0xff] }
  0xab   :  { %691 = vmatprep.mubr.bf16.mxu0 %v5917_v1 }
  0xb2   :  { %5243 = vmatmul.mubr.msk.bf16.gmra.mrb[84].mxu0 %vm256_vm0, %v177_v39 }
  0xb3   :  { %701 = vmatprep.mubr.bf16.mxu0 %v5917_v1 }
  0xba   :  { %5244 = vmatmul.mubr.msk.bf16.gmra.mrb[88].mxu0 %vm256_vm0, %v178_v42 }
  0xbb   :  { %711 = vmatprep.mubr.bf16.mxu0 %v5917_v1 }
  0xc2   :  { %5245 = vmatmul.mubr.msk.bf16.gmra.mrb[92].mxu0 %vm256_vm0, %v179_v45  ;;  %v185_v45 = vpack.c.bf16 %v87_v36, %v86_v35 }
  0xc3   :  { %721 = vmatprep.mubr.bf16.mxu0 %v5917_v1 }
  0xca   :  { %5246 = vmatmul.mubr.msk.bf16.gmra.mrb[96].mxu0 %vm256_vm0, %v180_v48 }
  0xcb   :  { %731 = vmatprep.mubr.bf16.mxu0 %v5917_v1 }
  0xd2   :  { %5247 = vmatmul.mubr.msk.bf16.gmra.mrb[100].mxu0 %vm256_vm0, %v181_v51 }
  0xd3   :  { %741 = vmatprep.mubr.bf16.mxu0 %v5917_v1 }
  0xda   :  { %5248 = vmatmul.mubr.msk.bf16.gmra.mrb[104].mxu0 %vm256_vm0, %v182_v56  ;;  %v88_v56 = vld [vmem:[%s10802_s0 + $0x1e0] sm:$0xff] }
  0xdb   :  { %751 = vmatprep.mubr.bf16.mxu0 %v5917_v1 }
  0xdd   :  { %v483_v0 = vpop.f32.mrb[0].mxu0 }
  0xde   :  { %v484_v2 = vadd.f32 %v483_v0, %v6290_v60  ;;  %v485_v3 = vpop.f32.mrb[1].mxu0 }
  0xdf   :  { %v486_v5 = vadd.f32 %v485_v3, %v6293_v61  ;;  %v487_v6 = vpop.f32.mrb[2].mxu0 }
  0xe0   :  { %v1378_v7 = vmul.f32 0.2, %v484_v2  ;;  %v488_v8 = vadd.f32 %v487_v6, %v6290_v60  ;;  %v489_v9 = vpop.f32.mrb[3].mxu0  ;;  %vm1122_vm1 = vcmp.gt.f32.partialorder %v484_v2, 0.0 }
  0xe1   :  { %v1379_v10 = vmul.f32 0.2, %v486_v5  ;;  %v490_v11 = vadd.f32 %v489_v9, %v6293_v61  ;;  %vm1123_vm3 = vcmp.gt.f32.partialorder %v486_v5, 0.0 }
  0xe2   :  { %vm1124_vm2 = vcmp.gt.f32.partialorder %v488_v8, 0.0  ;;  %v1380_v12 = vmul.f32 0.2, %v488_v8  ;;  %5249 = vmatmul.mubr.msk.bf16.gmra.mrb[108].mxu0 %vm256_vm0, %v183_v4  ;;  %v6314_v16 = vsel %vm1122_vm1, %v484_v2, %v1378_v7  ;;  %v186_v7 = vpack.c.bf16 %v89_v58, %v88_v56 }
  0xe3   :  { %v1381_v13 = vmul.f32 0.2, %v490_v11  ;;  %761 = vmatprep.mubr.bf16.mxu0 %v5917_v1  ;;  %vm1125_vm4 = vcmp.gt.f32.partialorder %v490_v11, 0.0  ;;  %v6320_v20 = vsel %vm1123_vm3, %v486_v5, %v1379_v10 }
  0xe4   :  { %v6316_v17 = vsel %vm1124_vm2, %v488_v8, %v1380_v12 }
  0xe5   :  { %v493_v19 = vpop.f32.mrb[4].mxu0  ;;  %v6322_v21 = vsel %vm1125_vm4, %v490_v11, %v1381_v13 }
  0xe6   :  { %v494_v22 = vadd.f32 %v493_v19, %v6290_v60  ;;  %v495_v23 = vpop.f32.mrb[5].mxu0  ;;  %v1891_v25 = vpack.c.bf16 %v6322_v21, %v6320_v20 }
  0xe7   :  { %v496_v26 = vadd.f32 %v495_v23, %v6293_v61  ;;  %v497_v27 = vpop.f32.mrb[6].mxu0  ;;  %v90_v23 = vld [vmem:[%s10802_s0 + $0x1f0] sm:$0xff] }
  0xe8   :  { %v1382_v28 = vmul.f32 0.2, %v494_v22  ;;  %v498_v29 = vadd.f32 %v497_v27, %v6290_v60  ;;  %v499_v30 = vpop.f32.mrb[7].mxu0  ;;  %vm1126_vm5 = vcmp.gt.f32.partialorder %v494_v22, 0.0 }
  0xe9   :  { %v1383_v31 = vmul.f32 0.2, %v496_v26  ;;  %v500_v32 = vadd.f32 %v499_v30, %v6293_v61  ;;  %vm1127_vm7 = vcmp.gt.f32.partialorder %v496_v26, 0.0 }
  0xea   :  { %vm1128_vm6 = vcmp.gt.f32.partialorder %v498_v29, 0.0  ;;  %v1384_v33 = vmul.f32 0.2, %v498_v29  ;;  %5250 = vmatmul.mubr.msk.bf16.gmra.mrb[112].mxu0 %vm256_vm0, %v184_v24  ;;  %v6338_v37 = vsel %vm1126_vm5, %v494_v22, %v1382_v28  ;;  %v91_v24 = vld [vmem:[%s10802_s0 + $0x1f8] sm:$0xff] }
  0xeb   :  { %v1385_v34 = vmul.f32 0.2, %v500_v32  ;;  %771 = vmatprep.mubr.bf16.mxu0 %v5917_v1  ;;  %vm1129_vm8 = vcmp.gt.f32.partialorder %v500_v32, 0.0  ;;  %v6344_v41 = vsel %vm1127_vm7, %v496_v26, %v1383_v31  ;;  %v187_v35 = vpack.c.bf16 %v91_v24, %v90_v23  ;;  %v94_v24 = vld [vmem:[%s10802_s0 + $0x210] sm:$0xff] }
  0xec   :  { %v6340_v38 = vsel %vm1128_vm6, %v498_v29, %v1384_v33 }
  0xed   :  { %v503_v40 = vpop.f32.mrb[8].mxu0  ;;  %v6346_v42 = vsel %vm1129_vm8, %v500_v32, %v1385_v34 }
  0xee   :  { %v504_v43 = vadd.f32 %v503_v40, %v6290_v60  ;;  %v505_v44 = vpop.f32.mrb[9].mxu0 }
  0xef   :  { %v506_v47 = vadd.f32 %v505_v44, %v6293_v61  ;;  %v507_v48 = vpop.f32.mrb[10].mxu0 }
  0xf0   :  { %v1386_v49 = vmul.f32 0.2, %v504_v43  ;;  %v508_v50 = vadd.f32 %v507_v48, %v6290_v60  ;;  %v509_v51 = vpop.f32.mrb[11].mxu0  ;;  %vm1130_vm9 = vcmp.gt.f32.partialorder %v504_v43, 0.0 }
  0xf1   :  { %v1387_v52 = vmul.f32 0.2, %v506_v47  ;;  %v510_v53 = vadd.f32 %v509_v51, %v6293_v61  ;;  %vm1131_vm11 = vcmp.gt.f32.partialorder %v506_v47, 0.0  ;;  %v92_v51 = vld [vmem:[%s10802_s0 + $0x200] sm:$0xff] }
  0xf2   :  { %vm1132_vm10 = vcmp.gt.f32.partialorder %v508_v50, 0.0  ;;  %v1388_v54 = vmul.f32 0.2, %v508_v50  ;;  %5251 = vmatmul.mubr.msk.bf16.gmra.mrb[116].mxu0 %vm256_vm0, %v185_v45  ;;  %v6362_v62 = vsel %vm1130_vm9, %v504_v43, %v1386_v49 }
  0xf3   :  { %v1389_v55 = vmul.f32 0.2, %v510_v53  ;;  %781 = vmatprep.mubr.bf16.mxu0 %v5917_v1  ;;  %vm1133_vm12 = vcmp.gt.f32.partialorder %v510_v53, 0.0  ;;  %v6368_v3 = vsel %vm1131_vm11, %v506_v47, %v1387_v52  ;;  %v93_v52 = vld [vmem:[%s10802_s0 + $0x208] sm:$0xff] }
  0xf4   :  { %v6364_v63 = vsel %vm1132_vm10, %v508_v50, %v1388_v54 }
  0xf5   :  { %v513_v2 = vpop.f32.mrb[12].mxu0  ;;  %v6370_v4 = vsel %vm1133_vm12, %v510_v53, %v1389_v55 }
  0xf6   :  { %v514_v5 = vadd.f32 %v513_v2, %v6290_v60  ;;  %v515_v6 = vpop.f32.mrb[13].mxu0 }
  0xf7   :  { %v516_v9 = vadd.f32 %v515_v6, %v6293_v61  ;;  %v517_v10 = vpop.f32.mrb[14].mxu0 }
  0xf8   :  { %v1390_v11 = vmul.f32 0.2, %v514_v5  ;;  %v518_v12 = vadd.f32 %v517_v10, %v6290_v60  ;;  %v519_v13 = vpop.f32.mrb[15].mxu0  ;;  %vm1134_vm13 = vcmp.gt.f32.partialorder %v514_v5, 0.0 }
  0xf9   :  { %v1391_v14 = vmul.f32 0.2, %v516_v9  ;;  %v520_v15 = vadd.f32 %v519_v13, %v6293_v61  ;;  %vm1135_vm15 = vcmp.gt.f32.partialorder %v516_v9, 0.0 }
  0xfa   :  { %vm1136_vm14 = vcmp.gt.f32.partialorder %v518_v12, 0.0  ;;  %v1392_v19 = vmul.f32 0.2, %v518_v12  ;;  %5252 = vmatmul.mubr.msk.bf16.gmra.mrb[120].mxu0 %vm256_vm0, %v186_v7  ;;  %v1646_v26 = vsel %vm1134_vm13, %v514_v5, %v1390_v11 }
  0xfb   :  { %v1393_v22 = vmul.f32 0.2, %v520_v15  ;;  %vm1137_vm1 = vcmp.gt.f32.partialorder %v520_v15, 0.0  ;;  %791 = vmatprep.mubr.bf16.mxu0 %v5917_v1  ;;  %v1647_v29 = vsel %vm1135_vm15, %v516_v9, %v1391_v14  ;;  %v188_v9 = vpack.c.bf16 %v93_v52, %v92_v51  ;;  %v96_v52 = vld [vmem:[%s10802_s0 + $0x220] sm:$0xff] }
  0xfc   :  { %v1648_v27 = vsel %vm1136_vm14, %v518_v12, %v1392_v19 }
  0xfd   :  { %v523_v28 = vpop.f32.mrb[16].mxu0  ;;  %v1649_v30 = vsel %vm1137_vm1, %v520_v15, %v1393_v22  ;;  %v1896_v31 = vpack.c.bf16 %v1648_v27, %v1646_v26  ;;  %v95_v26 = vld [vmem:[%s10802_s0 + $0x218] sm:$0xff] }
  0xfe   :  { %v524_v32 = vadd.f32 %v523_v28, %v6290_v60  ;;  %v525_v33 = vpop.f32.mrb[17].mxu0  ;;  %v1897_v34 = vpack.c.bf16 %v1649_v30, %v1647_v29 }
  0xff   :  { %v526_v36 = vadd.f32 %v525_v33, %v6293_v61  ;;  %v527_v40 = vpop.f32.mrb[18].mxu0 }
 0x100   :  { %v1394_v43 = vmul.f32 0.2, %v524_v32  ;;  %v528_v44 = vadd.f32 %v527_v40, %v6290_v60  ;;  %v529_v45 = vpop.f32.mrb[19].mxu0  ;;  %2284 = vmatprep.mubr.bf16.mxu1 %v1897_v34  ;;  %vm1138_vm2 = vcmp.gt.f32.partialorder %v524_v32, 0.0 }
 0x101   :  { %v1395_v47 = vmul.f32 0.2, %v526_v36  ;;  %v530_v48 = vadd.f32 %v529_v45, %v6293_v61  ;;  %2285 = vmatmul.mubr.bf16.vlgmr.msra.gmra.mrb[0].mxu1 %v1896_v31  ;;  %vm1139_vm3 = vcmp.gt.f32.partialorder %v526_v36, 0.0 }
 0x102   :  { %vm1140_vm4 = vcmp.gt.f32.partialorder %v528_v44, 0.0  ;;  %v1396_v49 = vmul.f32 0.2, %v528_v44  ;;  %5253 = vmatmul.mubr.msk.bf16.gmra.mrb[124].mxu0 %vm256_vm0, %v187_v35  ;;  %v1650_v53 = vsel %vm1138_vm2, %v524_v32, %v1394_v43 }
 0x103   :  { %vm1141_vm5 = vcmp.gt.f32.partialorder %v530_v48, 0.0  ;;  %v1397_v50 = vmul.f32 0.2, %v530_v48  ;;  %801 = vmatprep.mubr.bf16.mxu0 %v5917_v1  ;;  %v1651_v56 = vsel %vm1139_vm3, %v526_v36, %v1395_v47  ;;  %v189_v36 = vpack.c.bf16 %v95_v26, %v94_v24  ;;  %v98_v26 = vld [vmem:[%s10802_s0 + $0x230] sm:$0xff] }
 0x104   :  { %v1652_v54 = vsel %vm1140_vm4, %v528_v44, %v1396_v49 }
 0x105   :  { %v533_v55 = vpop.f32.mrb[20].mxu0  ;;  %v1653_v58 = vsel %vm1141_vm5, %v530_v48, %v1397_v50  ;;  %v1898_v2 = vpack.c.bf16 %v1652_v54, %v1650_v53  ;;  %v97_v53 = vld [vmem:[%s10802_s0 + $0x228] sm:$0xff] }
 0x106   :  { %v534_v5 = vadd.f32 %v533_v55, %v6290_v60  ;;  %v535_v6 = vpop.f32.mrb[21].mxu0  ;;  %v1899_v7 = vpack.c.bf16 %v1653_v58, %v1651_v56 }
 0x107   :  { %v536_v10 = vadd.f32 %v535_v6, %v6293_v61  ;;  %v537_v11 = vpop.f32.mrb[22].mxu0 }
 0x108   :  { %v1398_v12 = vmul.f32 0.2, %v534_v5  ;;  %v538_v13 = vadd.f32 %v537_v11, %v6290_v60  ;;  %v539_v14 = vpop.f32.mrb[23].mxu0  ;;  %2294 = vmatprep.mubr.bf16.mxu1 %v1899_v7  ;;  %vm1142_vm6 = vcmp.gt.f32.partialorder %v534_v5, 0.0 }
 0x109   :  { %v1399_v15 = vmul.f32 0.2, %v536_v10  ;;  %v540_v19 = vadd.f32 %v539_v14, %v6293_v61  ;;  %2295 = vmatmul.mubr.bf16.gmra.mrb[4].mxu1 %v1898_v2  ;;  %vm1143_vm7 = vcmp.gt.f32.partialorder %v536_v10, 0.0 }
 0x10a   :  { %vm1144_vm8 = vcmp.gt.f32.partialorder %v538_v13, 0.0  ;;  %v1400_v22 = vmul.f32 0.2, %v538_v13  ;;  %5254 = vmatmul.mubr.msk.bf16.gmra.mrb[128].mxu0 %vm256_vm0, %v188_v9  ;;  %v1654_v27 = vsel %vm1142_vm6, %v534_v5, %v1398_v12 }
 0x10b   :  { %vm1145_vm9 = vcmp.gt.f32.partialorder %v540_v19, 0.0  ;;  %v1401_v23 = vmul.f32 0.2, %v540_v19  ;;  %811 = vmatprep.mubr.bf16.mxu0 %v5917_v1  ;;  %v1655_v30 = vsel %vm1143_vm7, %v536_v10, %v1399_v15  ;;  %v190_v10 = vpack.c.bf16 %v97_v53, %v96_v52  ;;  %v100_v53 = vld [vmem:[%s10802_s0 + $0x240] sm:$0xff] }
 0x10c   :  { %v1656_v28 = vsel %vm1144_vm8, %v538_v13, %v1400_v22 }
 0x10d   :  { %v543_v29 = vpop.f32.mrb[24].mxu0  ;;  %v1657_v31 = vsel %vm1145_vm9, %v540_v19, %v1401_v23  ;;  %v1900_v32 = vpack.c.bf16 %v1656_v28, %v1654_v27  ;;  %v99_v27 = vld [vmem:[%s10802_s0 + $0x238] sm:$0xff] }
 0x10e   :  { %v544_v33 = vadd.f32 %v543_v29, %v6290_v60  ;;  %v545_v34 = vpop.f32.mrb[25].mxu0  ;;  %v1901_v35 = vpack.c.bf16 %v1657_v31, %v1655_v30 }
 0x10f   :  { %v546_v40 = vadd.f32 %v545_v34, %v6293_v61  ;;  %v547_v43 = vpop.f32.mrb[26].mxu0 }
 0x110   :  { %v1402_v44 = vmul.f32 0.2, %v544_v33  ;;  %v548_v45 = vadd.f32 %v547_v43, %v6290_v60  ;;  %v549_v47 = vpop.f32.mrb[27].mxu0  ;;  %2304 = vmatprep.mubr.bf16.mxu1 %v1901_v35  ;;  %vm1146_vm10 = vcmp.gt.f32.partialorder %v544_v33, 0.0 }
 0x111   :  { %v1403_v48 = vmul.f32 0.2, %v546_v40  ;;  %v550_v49 = vadd.f32 %v549_v47, %v6293_v61  ;;  %2305 = vmatmul.mubr.bf16.gmra.mrb[8].mxu1 %v1900_v32  ;;  %vm1147_vm11 = vcmp.gt.f32.partialorder %v546_v40, 0.0 }
 0x112   :  { %vm1148_vm12 = vcmp.gt.f32.partialorder %v548_v45, 0.0  ;;  %v1404_v50 = vmul.f32 0.2, %v548_v45  ;;  %5255 = vmatmul.mubr.msk.bf16.gmra.mrb[132].mxu0 %vm256_vm0, %v189_v36  ;;  %v1658_v54 = vsel %vm1146_vm10, %v544_v33, %v1402_v44 }
 0x113   :  { %vm1149_vm13 = vcmp.gt.f32.partialorder %v550_v49, 0.0  ;;  %v1405_v51 = vmul.f32 0.2, %v550_v49  ;;  %821 = vmatprep.mubr.bf16.mxu0 %v5917_v1  ;;  %v1659_v58 = vsel %vm1147_vm11, %v546_v40, %v1403_v48  ;;  %v191_v40 = vpack.c.bf16 %v99_v27, %v98_v26  ;;  %v102_v27 = vld [vmem:[%s10802_s0 + $0x250] sm:$0xff] }
 0x114   :  { %v1660_v55 = vsel %vm1148_vm12, %v548_v45, %v1404_v50 }
 0x115   :  { %v553_v56 = vpop.f32.mrb[28].mxu0  ;;  %v1661_v2 = vsel %vm1149_vm13, %v550_v49, %v1405_v51  ;;  %v1902_v5 = vpack.c.bf16 %v1660_v55, %v1658_v54  ;;  %v101_v54 = vld [vmem:[%s10802_s0 + $0x248] sm:$0xff] }
 0x116   :  { %v554_v6 = vadd.f32 %v553_v56, %v6290_v60  ;;  %v555_v7 = vpop.f32.mrb[29].mxu0  ;;  %v1903_v9 = vpack.c.bf16 %v1661_v2, %v1659_v58 }
 0x117   :  { %v556_v11 = vadd.f32 %v555_v7, %v6293_v61  ;;  %v557_v12 = vpop.f32.mrb[30].mxu0 }
 0x118   :  { %v1406_v13 = vmul.f32 0.2, %v554_v6  ;;  %v558_v14 = vadd.f32 %v557_v12, %v6290_v60  ;;  %v559_v15 = vpop.f32.mrb[31].mxu0  ;;  %2314 = vmatprep.mubr.bf16.mxu1 %v1903_v9  ;;  %vm1150_vm14 = vcmp.gt.f32.partialorder %v554_v6, 0.0 }
 0x119   :  { %v1407_v19 = vmul.f32 0.2, %v556_v11  ;;  %v560_v22 = vadd.f32 %v559_v15, %v6293_v61  ;;  %2315 = vmatmul.mubr.bf16.gmra.mrb[12].mxu1 %v1902_v5  ;;  %vm1151_vm15 = vcmp.gt.f32.partialorder %v556_v11, 0.0 }
 0x11a   :  { %vm1152_vm1 = vcmp.gt.f32.partialorder %v558_v14, 0.0  ;;  %v1408_v23 = vmul.f32 0.2, %v558_v14  ;;  %5256 = vmatmul.mubr.msk.bf16.gmra.mrb[136].mxu0 %vm256_vm0, %v190_v10  ;;  %v1662_v28 = vsel %vm1150_vm14, %v554_v6, %v1406_v13 }
 0x11b   :  { %vm1153_vm2 = vcmp.gt.f32.partialorder %v560_v22, 0.0  ;;  %v1409_v24 = vmul.f32 0.2, %v560_v22  ;;  %831 = vmatprep.mubr.bf16.mxu0 %v5917_v1  ;;  %v1663_v31 = vsel %vm1151_vm15, %v556_v11, %v1407_v19  ;;  %v192_v11 = vpack.c.bf16 %v101_v54, %v100_v53  ;;  %v104_v54 = vld [vmem:[%s10802_s0 + $0x260] sm:$0xff] }
 0x11c   :  { %v1664_v29 = vsel %vm1152_vm1, %v558_v14, %v1408_v23 }
 0x11d   :  { %v563_v30 = vpop.f32.mrb[32].mxu0  ;;  %v1665_v32 = vsel %vm1153_vm2, %v560_v22, %v1409_v24  ;;  %v1904_v33 = vpack.c.bf16 %v1664_v29, %v1662_v28  ;;  %v103_v28 = vld [vmem:[%s10802_s0 + $0x258] sm:$0xff] }
 0x11e   :  { %v564_v34 = vadd.f32 %v563_v30, %v6290_v60  ;;  %v565_v35 = vpop.f32.mrb[33].mxu0  ;;  %v1905_v36 = vpack.c.bf16 %v1665_v32, %v1663_v31 }
 0x11f   :  { %v566_v43 = vadd.f32 %v565_v35, %v6293_v61  ;;  %v567_v44 = vpop.f32.mrb[34].mxu0 }
 0x120   :  { %v1410_v45 = vmul.f32 0.2, %v564_v34  ;;  %v568_v47 = vadd.f32 %v567_v44, %v6290_v60  ;;  %v569_v48 = vpop.f32.mrb[35].mxu0  ;;  %2324 = vmatprep.mubr.bf16.mxu1 %v1905_v36  ;;  %vm1154_vm3 = vcmp.gt.f32.partialorder %v564_v34, 0.0 }
 0x121   :  { %v1411_v49 = vmul.f32 0.2, %v566_v43  ;;  %v570_v50 = vadd.f32 %v569_v48, %v6293_v61  ;;  %2325 = vmatmul.mubr.bf16.gmra.mrb[16].mxu1 %v1904_v33  ;;  %vm1155_vm4 = vcmp.gt.f32.partialorder %v566_v43, 0.0 }
 0x122   :  { %vm1156_vm5 = vcmp.gt.f32.partialorder %v568_v47, 0.0  ;;  %v1412_v51 = vmul.f32 0.2, %v568_v47  ;;  %5257 = vmatmul.mubr.msk.bf16.gmra.mrb[140].mxu0 %vm256_vm0, %v191_v40  ;;  %v1666_v55 = vsel %vm1154_vm3, %v564_v34, %v1410_v45 }
 0x123   :  { %vm1157_vm6 = vcmp.gt.f32.partialorder %v570_v50, 0.0  ;;  %v1413_v52 = vmul.f32 0.2, %v570_v50  ;;  %841 = vmatprep.mubr.bf16.mxu0 %v5917_v1  ;;  %v1667_v2 = vsel %vm1155_vm4, %v566_v43, %v1411_v49  ;;  %v193_v43 = vpack.c.bf16 %v103_v28, %v102_v27  ;;  %v106_v28 = vld [vmem:[%s10802_s0 + $0x270] sm:$0xff] }
 0x124   :  { %v1668_v56 = vsel %vm1156_vm5, %v568_v47, %v1412_v51 }
 0x125   :  { %v573_v58 = vpop.f32.mrb[36].mxu0  ;;  %v1669_v5 = vsel %vm1157_vm6, %v570_v50, %v1413_v52  ;;  %v1906_v6 = vpack.c.bf16 %v1668_v56, %v1666_v55  ;;  %v105_v55 = vld [vmem:[%s10802_s0 + $0x268] sm:$0xff] }
 0x126   :  { %v574_v7 = vadd.f32 %v573_v58, %v6290_v60  ;;  %v575_v9 = vpop.f32.mrb[37].mxu0  ;;  %v1907_v10 = vpack.c.bf16 %v1669_v5, %v1667_v2 }
 0x127   :  { %v576_v12 = vadd.f32 %v575_v9, %v6293_v61  ;;  %v577_v13 = vpop.f32.mrb[38].mxu0 }
 0x128   :  { %v1414_v14 = vmul.f32 0.2, %v574_v7  ;;  %v578_v15 = vadd.f32 %v577_v13, %v6290_v60  ;;  %v579_v19 = vpop.f32.mrb[39].mxu0  ;;  %2334 = vmatprep.mubr.bf16.mxu1 %v1907_v10  ;;  %vm1158_vm7 = vcmp.gt.f32.partialorder %v574_v7, 0.0 }
 0x129   :  { %v1415_v22 = vmul.f32 0.2, %v576_v12  ;;  %v580_v23 = vadd.f32 %v579_v19, %v6293_v61  ;;  %2335 = vmatmul.mubr.bf16.gmra.mrb[20].mxu1 %v1906_v6  ;;  %vm1159_vm8 = vcmp.gt.f32.partialorder %v576_v12, 0.0 }
 0x12a   :  { %vm1160_vm9 = vcmp.gt.f32.partialorder %v578_v15, 0.0  ;;  %v1416_v24 = vmul.f32 0.2, %v578_v15  ;;  %5258 = vmatmul.mubr.msk.bf16.gmra.mrb[144].mxu0 %vm256_vm0, %v192_v11  ;;  %v1670_v29 = vsel %vm1158_vm7, %v574_v7, %v1414_v14 }
 0x12b   :  { %vm1161_vm10 = vcmp.gt.f32.partialorder %v580_v23, 0.0  ;;  %v1417_v26 = vmul.f32 0.2, %v580_v23  ;;  %851 = vmatprep.mubr.bf16.mxu0 %v5917_v1  ;;  %v1671_v32 = vsel %vm1159_vm8, %v576_v12, %v1415_v22  ;;  %v194_v12 = vpack.c.bf16 %v105_v55, %v104_v54  ;;  %v108_v55 = vld [vmem:[%s10802_s0 + $0x280] sm:$0xff] }
 0x12c   :  { %v1672_v30 = vsel %vm1160_vm9, %v578_v15, %v1416_v24 }
 0x12d   :  { %v583_v31 = vpop.f32.mrb[40].mxu0  ;;  %v1673_v33 = vsel %vm1161_vm10, %v580_v23, %v1417_v26  ;;  %v1908_v34 = vpack.c.bf16 %v1672_v30, %v1670_v29  ;;  %v107_v29 = vld [vmem:[%s10802_s0 + $0x278] sm:$0xff] }
 0x12e   :  { %v584_v35 = vadd.f32 %v583_v31, %v6290_v60  ;;  %v585_v36 = vpop.f32.mrb[41].mxu0  ;;  %v1909_v40 = vpack.c.bf16 %v1673_v33, %v1671_v32 }
 0x12f   :  { %v586_v44 = vadd.f32 %v585_v36, %v6293_v61  ;;  %v587_v45 = vpop.f32.mrb[42].mxu0 }
 0x130   :  { %v1418_v47 = vmul.f32 0.2, %v584_v35  ;;  %v588_v48 = vadd.f32 %v587_v45, %v6290_v60  ;;  %v589_v49 = vpop.f32.mrb[43].mxu0  ;;  %2344 = vmatprep.mubr.bf16.mxu1 %v1909_v40  ;;  %vm1162_vm11 = vcmp.gt.f32.partialorder %v584_v35, 0.0 }
 0x131   :  { %v1419_v50 = vmul.f32 0.2, %v586_v44  ;;  %v590_v51 = vadd.f32 %v589_v49, %v6293_v61  ;;  %2345 = vmatmul.mubr.bf16.gmra.mrb[24].mxu1 %v1908_v34  ;;  %vm1163_vm12 = vcmp.gt.f32.partialorder %v586_v44, 0.0 }
 0x132   :  { %vm1164_vm13 = vcmp.gt.f32.partialorder %v588_v48, 0.0  ;;  %v1420_v52 = vmul.f32 0.2, %v588_v48  ;;  %5259 = vmatmul.mubr.msk.bf16.gmra.mrb[148].mxu0 %vm256_vm0, %v193_v43  ;;  %v1674_v56 = vsel %vm1162_vm11, %v584_v35, %v1418_v47 }
 0x133   :  { %vm1165_vm14 = vcmp.gt.f32.partialorder %v590_v51, 0.0  ;;  %v1421_v53 = vmul.f32 0.2, %v590_v51  ;;  %861 = vmatprep.mubr.bf16.mxu0 %v5917_v1  ;;  %v1675_v5 = vsel %vm1163_vm12, %v586_v44, %v1419_v50  ;;  %v195_v44 = vpack.c.bf16 %v107_v29, %v106_v28  ;;  %v110_v29 = vld [vmem:[%s10802_s0 + $0x290] sm:$0xff] }
 0x134   :  { %v1676_v58 = vsel %vm1164_vm13, %v588_v48, %v1420_v52 }
 0x135   :  { %v593_v2 = vpop.f32.mrb[44].mxu0  ;;  %v1677_v6 = vsel %vm1165_vm14, %v590_v51, %v1421_v53  ;;  %v1910_v7 = vpack.c.bf16 %v1676_v58, %v1674_v56  ;;  %v109_v56 = vld [vmem:[%s10802_s0 + $0x288] sm:$0xff] }
 0x136   :  { %v594_v9 = vadd.f32 %v593_v2, %v6290_v60  ;;  %v595_v10 = vpop.f32.mrb[45].mxu0  ;;  %v1911_v11 = vpack.c.bf16 %v1677_v6, %v1675_v5 }
 0x137   :  { %v596_v13 = vadd.f32 %v595_v10, %v6293_v61  ;;  %v597_v14 = vpop.f32.mrb[46].mxu0 }
 0x138   :  { %v1422_v15 = vmul.f32 0.2, %v594_v9  ;;  %v598_v19 = vadd.f32 %v597_v14, %v6290_v60  ;;  %v599_v22 = vpop.f32.mrb[47].mxu0  ;;  %2354 = vmatprep.mubr.bf16.mxu1 %v1911_v11  ;;  %vm1166_vm15 = vcmp.gt.f32.partialorder %v594_v9, 0.0 }
 0x139   :  { %v1423_v23 = vmul.f32 0.2, %v596_v13  ;;  %v600_v24 = vadd.f32 %v599_v22, %v6293_v61  ;;  %2355 = vmatmul.mubr.bf16.gmra.mrb[28].mxu1 %v1910_v7  ;;  %vm1167_vm1 = vcmp.gt.f32.partialorder %v596_v13, 0.0 }
 0x13a   :  { %vm1168_vm2 = vcmp.gt.f32.partialorder %v598_v19, 0.0  ;;  %v1424_v26 = vmul.f32 0.2, %v598_v19  ;;  %5260 = vmatmul.mubr.msk.bf16.gmra.mrb[152].mxu0 %vm256_vm0, %v194_v12  ;;  %v1678_v30 = vsel %vm1166_vm15, %v594_v9, %v1422_v15 }
 0x13b   :  { %vm1169_vm3 = vcmp.gt.f32.partialorder %v600_v24, 0.0  ;;  %v1425_v27 = vmul.f32 0.2, %v600_v24  ;;  %871 = vmatprep.mubr.bf16.mxu0 %v5917_v1  ;;  %v1679_v33 = vsel %vm1167_vm1, %v596_v13, %v1423_v23  ;;  %v196_v13 = vpack.c.bf16 %v109_v56, %v108_v55  ;;  %v112_v56 = vld [vmem:[%s10802_s0 + $0x2a0] sm:$0xff] }
 0x13c   :  { %v1680_v31 = vsel %vm1168_vm2, %v598_v19, %v1424_v26 }
 0x13d   :  { %v603_v32 = vpop.f32.mrb[48].mxu0  ;;  %v1681_v34 = vsel %vm1169_vm3, %v600_v24, %v1425_v27  ;;  %v1912_v35 = vpack.c.bf16 %v1680_v31, %v1678_v30  ;;  %v111_v30 = vld [vmem:[%s10802_s0 + $0x298] sm:$0xff] }
 0x13e   :  { %v604_v36 = vadd.f32 %v603_v32, %v6290_v60  ;;  %v605_v40 = vpop.f32.mrb[49].mxu0  ;;  %v1913_v43 = vpack.c.bf16 %v1681_v34, %v1679_v33 }
 0x13f   :  { %v606_v45 = vadd.f32 %v605_v40, %v6293_v61  ;;  %v607_v47 = vpop.f32.mrb[50].mxu0 }
 0x140   :  { %v1426_v48 = vmul.f32 0.2, %v604_v36  ;;  %v608_v49 = vadd.f32 %v607_v47, %v6290_v60  ;;  %v609_v50 = vpop.f32.mrb[51].mxu0  ;;  %2364 = vmatprep.mubr.bf16.mxu1 %v1913_v43  ;;  %vm1170_vm4 = vcmp.gt.f32.partialorder %v604_v36, 0.0 }
 0x141   :  { %v1427_v51 = vmul.f32 0.2, %v606_v45  ;;  %v610_v52 = vadd.f32 %v609_v50, %v6293_v61  ;;  %2365 = vmatmul.mubr.bf16.gmra.mrb[32].mxu1 %v1912_v35  ;;  %vm1171_vm5 = vcmp.gt.f32.partialorder %v606_v45, 0.0 }
 0x142   :  { %vm1172_vm6 = vcmp.gt.f32.partialorder %v608_v49, 0.0  ;;  %v1428_v53 = vmul.f32 0.2, %v608_v49  ;;  %5261 = vmatmul.mubr.msk.bf16.gmra.mrb[156].mxu0 %vm256_vm0, %v195_v44  ;;  %v1682_v58 = vsel %vm1170_vm4, %v604_v36, %v1426_v48 }
 0x143   :  { %vm1173_vm7 = vcmp.gt.f32.partialorder %v610_v52, 0.0  ;;  %v1429_v54 = vmul.f32 0.2, %v610_v52  ;;  %881 = vmatprep.mubr.bf16.mxu0 %v5917_v1  ;;  %v1683_v6 = vsel %vm1171_vm5, %v606_v45, %v1427_v51  ;;  %v197_v45 = vpack.c.bf16 %v111_v30, %v110_v29  ;;  %v114_v30 = vld [vmem:[%s10802_s0 + $0x2b0] sm:$0xff] }
 0x144   :  { %v1684_v2 = vsel %vm1172_vm6, %v608_v49, %v1428_v53 }
 0x145   :  { %v613_v5 = vpop.f32.mrb[52].mxu0  ;;  %v1685_v7 = vsel %vm1173_vm7, %v610_v52, %v1429_v54  ;;  %v1914_v9 = vpack.c.bf16 %v1684_v2, %v1682_v58  ;;  %v113_v58 = vld [vmem:[%s10802_s0 + $0x2a8] sm:$0xff] }
 0x146   :  { %v614_v10 = vadd.f32 %v613_v5, %v6290_v60  ;;  %v615_v11 = vpop.f32.mrb[53].mxu0  ;;  %v1915_v12 = vpack.c.bf16 %v1685_v7, %v1683_v6 }
 0x147   :  { %v616_v14 = vadd.f32 %v615_v11, %v6293_v61  ;;  %v617_v15 = vpop.f32.mrb[54].mxu0 }
 0x148   :  { %v1430_v19 = vmul.f32 0.2, %v614_v10  ;;  %v618_v22 = vadd.f32 %v617_v15, %v6290_v60  ;;  %v619_v23 = vpop.f32.mrb[55].mxu0  ;;  %2374 = vmatprep.mubr.bf16.mxu1 %v1915_v12  ;;  %vm1174_vm8 = vcmp.gt.f32.partialorder %v614_v10, 0.0 }
 0x149   :  { %v1431_v24 = vmul.f32 0.2, %v616_v14  ;;  %v620_v26 = vadd.f32 %v619_v23, %v6293_v61  ;;  %2375 = vmatmul.mubr.bf16.gmra.mrb[36].mxu1 %v1914_v9  ;;  %vm1175_vm9 = vcmp.gt.f32.partialorder %v616_v14, 0.0 }
 0x14a   :  { %vm1176_vm10 = vcmp.gt.f32.partialorder %v618_v22, 0.0  ;;  %v1432_v27 = vmul.f32 0.2, %v618_v22  ;;  %5262 = vmatmul.mubr.msk.bf16.gmra.mrb[160].mxu0 %vm256_vm0, %v196_v13  ;;  %v1686_v31 = vsel %vm1174_vm8, %v614_v10, %v1430_v19 }
 0x14b   :  { %vm1177_vm11 = vcmp.gt.f32.partialorder %v620_v26, 0.0  ;;  %v1433_v28 = vmul.f32 0.2, %v620_v26  ;;  %891 = vmatprep.mubr.bf16.mxu0 %v5917_v1  ;;  %v1687_v34 = vsel %vm1175_vm9, %v616_v14, %v1431_v24  ;;  %v198_v14 = vpack.c.bf16 %v113_v58, %v112_v56  ;;  %v116_v58 = vld [vmem:[%s10802_s0 + $0x2c0] sm:$0xff] }
 0x14c   :  { %v1688_v32 = vsel %vm1176_vm10, %v618_v22, %v1432_v27 }
 0x14d   :  { %v623_v33 = vpop.f32.mrb[56].mxu0  ;;  %v1689_v35 = vsel %vm1177_vm11, %v620_v26, %v1433_v28  ;;  %v1916_v36 = vpack.c.bf16 %v1688_v32, %v1686_v31  ;;  %v115_v31 = vld [vmem:[%s10802_s0 + $0x2b8] sm:$0xff] }
 0x14e   :  { %v624_v40 = vadd.f32 %v623_v33, %v6290_v60  ;;  %v625_v43 = vpop.f32.mrb[57].mxu0  ;;  %v1917_v44 = vpack.c.bf16 %v1689_v35, %v1687_v34 }
 0x14f   :  { %v626_v47 = vadd.f32 %v625_v43, %v6293_v61  ;;  %v627_v48 = vpop.f32.mrb[58].mxu0 }
 0x150   :  { %v1434_v49 = vmul.f32 0.2, %v624_v40  ;;  %v628_v50 = vadd.f32 %v627_v48, %v6290_v60  ;;  %v629_v51 = vpop.f32.mrb[59].mxu0  ;;  %2384 = vmatprep.mubr.bf16.mxu1 %v1917_v44  ;;  %vm1178_vm12 = vcmp.gt.f32.partialorder %v624_v40, 0.0 }
 0x151   :  { %v1435_v52 = vmul.f32 0.2, %v626_v47  ;;  %v630_v53 = vadd.f32 %v629_v51, %v6293_v61  ;;  %2385 = vmatmul.mubr.bf16.gmra.mrb[40].mxu1 %v1916_v36  ;;  %vm1179_vm13 = vcmp.gt.f32.partialorder %v626_v47, 0.0 }
 0x152   :  { %vm1180_vm14 = vcmp.gt.f32.partialorder %v628_v50, 0.0  ;;  %v1436_v54 = vmul.f32 0.2, %v628_v50  ;;  %5263 = vmatmul.mubr.msk.bf16.gmra.mrb[164].mxu0 %vm256_vm0, %v197_v45  ;;  %v1690_v2 = vsel %vm1178_vm12, %v624_v40, %v1434_v49 }
 0x153   :  { %vm1181_vm15 = vcmp.gt.f32.partialorder %v630_v53, 0.0  ;;  %v1437_v55 = vmul.f32 0.2, %v630_v53  ;;  %901 = vmatprep.mubr.bf16.mxu0 %v5917_v1  ;;  %v1691_v7 = vsel %vm1179_vm13, %v626_v47, %v1435_v52  ;;  %v199_v47 = vpack.c.bf16 %v115_v31, %v114_v30  ;;  %v118_v31 = vld [vmem:[%s10802_s0 + $0x2d0] sm:$0xff] }
 0x154   :  { %v1692_v5 = vsel %vm1180_vm14, %v628_v50, %v1436_v54 }
 0x155   :  { %v633_v6 = vpop.f32.mrb[60].mxu0  ;;  %v1693_v9 = vsel %vm1181_vm15, %v630_v53, %v1437_v55  ;;  %v1918_v10 = vpack.c.bf16 %v1692_v5, %v1690_v2  ;;  %v117_v2 = vld [vmem:[%s10802_s0 + $0x2c8] sm:$0xff] }
 0x156   :  { %v634_v11 = vadd.f32 %v633_v6, %v6290_v60  ;;  %v635_v12 = vpop.f32.mrb[61].mxu0  ;;  %v1919_v13 = vpack.c.bf16 %v1693_v9, %v1691_v7 }
 0x157   :  { %v636_v15 = vadd.f32 %v635_v12, %v6293_v61  ;;  %v637_v19 = vpop.f32.mrb[62].mxu0 }
 0x158   :  { %v1438_v22 = vmul.f32 0.2, %v634_v11  ;;  %v638_v23 = vadd.f32 %v637_v19, %v6290_v60  ;;  %v639_v24 = vpop.f32.mrb[63].mxu0  ;;  %2394 = vmatprep.mubr.bf16.mxu1 %v1919_v13  ;;  %vm1182_vm1 = vcmp.gt.f32.partialorder %v634_v11, 0.0 }
 0x159   :  { %v1439_v26 = vmul.f32 0.2, %v636_v15  ;;  %v640_v27 = vadd.f32 %v639_v24, %v6293_v61  ;;  %2395 = vmatmul.mubr.bf16.gmra.mrb[44].mxu1 %v1918_v10  ;;  %vm1183_vm2 = vcmp.gt.f32.partialorder %v636_v15, 0.0 }
 0x15a   :  { %vm1184_vm3 = vcmp.gt.f32.partialorder %v638_v23, 0.0  ;;  %v1440_v28 = vmul.f32 0.2, %v638_v23  ;;  %5264 = vmatmul.mubr.msk.bf16.gmra.mrb[168].mxu0 %vm256_vm0, %v198_v14  ;;  %v1694_v32 = vsel %vm1182_vm1, %v634_v11, %v1438_v22 }
 0x15b   :  { %vm1185_vm4 = vcmp.gt.f32.partialorder %v640_v27, 0.0  ;;  %v1441_v29 = vmul.f32 0.2, %v640_v27  ;;  %911 = vmatprep.mubr.bf16.mxu0 %v5917_v1  ;;  %v1695_v35 = vsel %vm1183_vm2, %v636_v15, %v1439_v26  ;;  %v200_v15 = vpack.c.bf16 %v117_v2, %v116_v58  ;;  %v120_v2 = vld [vmem:[%s10802_s0 + $0x2e0] sm:$0xff] }
 0x15c   :  { %v1696_v33 = vsel %vm1184_vm3, %v638_v23, %v1440_v28 }
 0x15d   :  { %v643_v34 = vpop.f32.mrb[64].mxu0  ;;  %v1697_v36 = vsel %vm1185_vm4, %v640_v27, %v1441_v29  ;;  %v1920_v40 = vpack.c.bf16 %v1696_v33, %v1694_v32  ;;  %v119_v32 = vld [vmem:[%s10802_s0 + $0x2d8] sm:$0xff] }
 0x15e   :  { %v644_v43 = vadd.f32 %v643_v34, %v6290_v60  ;;  %v645_v44 = vpop.f32.mrb[65].mxu0  ;;  %v1921_v45 = vpack.c.bf16 %v1697_v36, %v1695_v35 }
 0x15f   :  { %v646_v48 = vadd.f32 %v645_v44, %v6293_v61  ;;  %v647_v49 = vpop.f32.mrb[66].mxu0 }
 0x160   :  { %v1442_v50 = vmul.f32 0.2, %v644_v43  ;;  %v648_v51 = vadd.f32 %v647_v49, %v6290_v60  ;;  %v649_v52 = vpop.f32.mrb[67].mxu0  ;;  %2404 = vmatprep.mubr.bf16.mxu1 %v1921_v45  ;;  %vm1186_vm5 = vcmp.gt.f32.partialorder %v644_v43, 0.0 }
 0x161   :  { %v1443_v53 = vmul.f32 0.2, %v646_v48  ;;  %v650_v54 = vadd.f32 %v649_v52, %v6293_v61  ;;  %2405 = vmatmul.mubr.bf16.gmra.mrb[48].mxu1 %v1920_v40  ;;  %vm1187_vm6 = vcmp.gt.f32.partialorder %v646_v48, 0.0 }
 0x162   :  { %vm1188_vm7 = vcmp.gt.f32.partialorder %v648_v51, 0.0  ;;  %v1444_v55 = vmul.f32 0.2, %v648_v51  ;;  %5265 = vmatmul.mubr.msk.bf16.gmra.mrb[172].mxu0 %vm256_vm0, %v199_v47  ;;  %v1698_v5 = vsel %vm1186_vm5, %v644_v43, %v1442_v50 }
 0x163   :  { %vm1189_vm8 = vcmp.gt.f32.partialorder %v650_v54, 0.0  ;;  %v1445_v56 = vmul.f32 0.2, %v650_v54  ;;  %921 = vmatprep.mubr.bf16.mxu0 %v5917_v1  ;;  %v1699_v9 = vsel %vm1187_vm6, %v646_v48, %v1443_v53  ;;  %v201_v48 = vpack.c.bf16 %v119_v32, %v118_v31  ;;  %v122_v32 = vld [vmem:[%s10802_s0 + $0x2f0] sm:$0xff] }
 0x164   :  { %v1700_v6 = vsel %vm1188_vm7, %v648_v51, %v1444_v55 }
 0x165   :  { %v653_v7 = vpop.f32.mrb[68].mxu0  ;;  %v1701_v10 = vsel %vm1189_vm8, %v650_v54, %v1445_v56  ;;  %v1922_v11 = vpack.c.bf16 %v1700_v6, %v1698_v5  ;;  %v121_v5 = vld [vmem:[%s10802_s0 + $0x2e8] sm:$0xff] }
 0x166   :  { %v654_v12 = vadd.f32 %v653_v7, %v6290_v60  ;;  %v655_v13 = vpop.f32.mrb[69].mxu0  ;;  %v1923_v14 = vpack.c.bf16 %v1701_v10, %v1699_v9 }
 0x167   :  { %v656_v19 = vadd.f32 %v655_v13, %v6293_v61  ;;  %v657_v22 = vpop.f32.mrb[70].mxu0 }
 0x168   :  { %v1446_v23 = vmul.f32 0.2, %v654_v12  ;;  %v658_v24 = vadd.f32 %v657_v22, %v6290_v60  ;;  %v659_v26 = vpop.f32.mrb[71].mxu0  ;;  %2414 = vmatprep.mubr.bf16.mxu1 %v1923_v14  ;;  %vm1190_vm9 = vcmp.gt.f32.partialorder %v654_v12, 0.0 }
 0x169   :  { %v1447_v27 = vmul.f32 0.2, %v656_v19  ;;  %v660_v28 = vadd.f32 %v659_v26, %v6293_v61  ;;  %2415 = vmatmul.mubr.bf16.gmra.mrb[52].mxu1 %v1922_v11  ;;  %vm1191_vm10 = vcmp.gt.f32.partialorder %v656_v19, 0.0 }
 0x16a   :  { %vm1192_vm11 = vcmp.gt.f32.partialorder %v658_v24, 0.0  ;;  %v1448_v29 = vmul.f32 0.2, %v658_v24  ;;  %5266 = vmatmul.mubr.msk.bf16.gmra.mrb[176].mxu0 %vm256_vm0, %v200_v15  ;;  %v1702_v33 = vsel %vm1190_vm9, %v654_v12, %v1446_v23 }
 0x16b   :  { %vm1193_vm12 = vcmp.gt.f32.partialorder %v660_v28, 0.0  ;;  %v1449_v30 = vmul.f32 0.2, %v660_v28  ;;  %931 = vmatprep.mubr.bf16.mxu0 %v5917_v1  ;;  %v1703_v36 = vsel %vm1191_vm10, %v656_v19, %v1447_v27  ;;  %v202_v19 = vpack.c.bf16 %v121_v5, %v120_v2  ;;  %v124_v5 = vld [vmem:[%s10802_s0 + $0x300] sm:$0xff] }
 0x16c   :  { %v1704_v34 = vsel %vm1192_vm11, %v658_v24, %v1448_v29 }
 0x16d   :  { %v663_v35 = vpop.f32.mrb[72].mxu0  ;;  %v1705_v40 = vsel %vm1193_vm12, %v660_v28, %v1449_v30  ;;  %v1924_v43 = vpack.c.bf16 %v1704_v34, %v1702_v33  ;;  %v123_v33 = vld [vmem:[%s10802_s0 + $0x2f8] sm:$0xff] }
 0x16e   :  { %v664_v44 = vadd.f32 %v663_v35, %v6290_v60  ;;  %v665_v45 = vpop.f32.mrb[73].mxu0  ;;  %v1925_v47 = vpack.c.bf16 %v1705_v40, %v1703_v36 }
 0x16f   :  { %v666_v49 = vadd.f32 %v665_v45, %v6293_v61  ;;  %v667_v50 = vpop.f32.mrb[74].mxu0 }
 0x170   :  { %v1450_v51 = vmul.f32 0.2, %v664_v44  ;;  %v668_v52 = vadd.f32 %v667_v50, %v6290_v60  ;;  %v669_v53 = vpop.f32.mrb[75].mxu0  ;;  %2424 = vmatprep.mubr.bf16.mxu1 %v1925_v47  ;;  %vm1194_vm13 = vcmp.gt.f32.partialorder %v664_v44, 0.0 }
 0x171   :  { %v1451_v54 = vmul.f32 0.2, %v666_v49  ;;  %v670_v55 = vadd.f32 %v669_v53, %v6293_v61  ;;  %2425 = vmatmul.mubr.bf16.gmra.mrb[56].mxu1 %v1924_v43  ;;  %vm1195_vm14 = vcmp.gt.f32.partialorder %v666_v49, 0.0 }
 0x172   :  { %vm1196_vm15 = vcmp.gt.f32.partialorder %v668_v52, 0.0  ;;  %v1452_v56 = vmul.f32 0.2, %v668_v52  ;;  %5267 = vmatmul.mubr.msk.bf16.gmra.mrb[180].mxu0 %vm256_vm0, %v201_v48  ;;  %v1706_v6 = vsel %vm1194_vm13, %v664_v44, %v1450_v51 }
 0x173   :  { %vm1197_vm1 = vcmp.gt.f32.partialorder %v670_v55, 0.0  ;;  %v1453_v58 = vmul.f32 0.2, %v670_v55  ;;  %941 = vmatprep.mubr.bf16.mxu0 %v5917_v1  ;;  %v1707_v10 = vsel %vm1195_vm14, %v666_v49, %v1451_v54  ;;  %v203_v49 = vpack.c.bf16 %v123_v33, %v122_v32  ;;  %v126_v33 = vld [vmem:[%s10802_s0 + $0x310] sm:$0xff] }
 0x174   :  { %v1708_v7 = vsel %vm1196_vm15, %v668_v52, %v1452_v56 }
 0x175   :  { %v673_v9 = vpop.f32.mrb[76].mxu0  ;;  %v1709_v11 = vsel %vm1197_vm1, %v670_v55, %v1453_v58  ;;  %v1926_v12 = vpack.c.bf16 %v1708_v7, %v1706_v6  ;;  %v125_v6 = vld [vmem:[%s10802_s0 + $0x308] sm:$0xff] }
 0x176   :  { %v674_v13 = vadd.f32 %v673_v9, %v6290_v60  ;;  %v675_v14 = vpop.f32.mrb[77].mxu0  ;;  %v1927_v15 = vpack.c.bf16 %v1709_v11, %v1707_v10 }
 0x177   :  { %v676_v22 = vadd.f32 %v675_v14, %v6293_v61  ;;  %v677_v23 = vpop.f32.mrb[78].mxu0 }
 0x178   :  { %v1454_v24 = vmul.f32 0.2, %v674_v13  ;;  %v678_v26 = vadd.f32 %v677_v23, %v6290_v60  ;;  %v679_v27 = vpop.f32.mrb[79].mxu0  ;;  %2434 = vmatprep.mubr.bf16.mxu1 %v1927_v15  ;;  %vm1198_vm2 = vcmp.gt.f32.partialorder %v674_v13, 0.0 }
 0x179   :  { %v1455_v28 = vmul.f32 0.2, %v676_v22  ;;  %v680_v29 = vadd.f32 %v679_v27, %v6293_v61  ;;  %2435 = vmatmul.mubr.bf16.gmra.mrb[60].mxu1 %v1926_v12  ;;  %vm1199_vm3 = vcmp.gt.f32.partialorder %v676_v22, 0.0 }
 0x17a   :  { %vm1200_vm4 = vcmp.gt.f32.partialorder %v678_v26, 0.0  ;;  %v1456_v30 = vmul.f32 0.2, %v678_v26  ;;  %5268 = vmatmul.mubr.msk.bf16.gmra.mrb[184].mxu0 %vm256_vm0, %v202_v19  ;;  %v1710_v34 = vsel %vm1198_vm2, %v674_v13, %v1454_v24 }
 0x17b   :  { %vm1201_vm5 = vcmp.gt.f32.partialorder %v680_v29, 0.0  ;;  %v1457_v31 = vmul.f32 0.2, %v680_v29  ;;  %951 = vmatprep.mubr.bf16.mxu0 %v5917_v1  ;;  %v1711_v40 = vsel %vm1199_vm3, %v676_v22, %v1455_v28  ;;  %v204_v22 = vpack.c.bf16 %v125_v6, %v124_v5  ;;  %v128_v6 = vld [vmem:[%s10802_s0 + $0x320] sm:$0xff] }
 0x17c   :  { %v1712_v35 = vsel %vm1200_vm4, %v678_v26, %v1456_v30 }
 0x17d   :  { %v683_v36 = vpop.f32.mrb[80].mxu0  ;;  %v1713_v43 = vsel %vm1201_vm5, %v680_v29, %v1457_v31  ;;  %v1928_v44 = vpack.c.bf16 %v1712_v35, %v1710_v34  ;;  %v127_v34 = vld [vmem:[%s10802_s0 + $0x318] sm:$0xff] }
 0x17e   :  { %v684_v45 = vadd.f32 %v683_v36, %v6290_v60  ;;  %v685_v47 = vpop.f32.mrb[81].mxu0  ;;  %v1929_v48 = vpack.c.bf16 %v1713_v43, %v1711_v40 }
 0x17f   :  { %v686_v50 = vadd.f32 %v685_v47, %v6293_v61  ;;  %v687_v51 = vpop.f32.mrb[82].mxu0 }
 0x180   :  { %v1458_v52 = vmul.f32 0.2, %v684_v45  ;;  %v688_v53 = vadd.f32 %v687_v51, %v6290_v60  ;;  %v689_v54 = vpop.f32.mrb[83].mxu0  ;;  %2444 = vmatprep.mubr.bf16.mxu1 %v1929_v48  ;;  %vm1202_vm6 = vcmp.gt.f32.partialorder %v684_v45, 0.0 }
 0x181   :  { %v1459_v55 = vmul.f32 0.2, %v686_v50  ;;  %v690_v56 = vadd.f32 %v689_v54, %v6293_v61  ;;  %2445 = vmatmul.mubr.bf16.gmra.mrb[64].mxu1 %v1928_v44  ;;  %vm1203_vm7 = vcmp.gt.f32.partialorder %v686_v50, 0.0 }
 0x182   :  { %vm1204_vm8 = vcmp.gt.f32.partialorder %v688_v53, 0.0  ;;  %v1460_v58 = vmul.f32 0.2, %v688_v53  ;;  %5269 = vmatmul.mubr.msk.bf16.gmra.mrb[188].mxu0 %vm256_vm0, %v203_v49  ;;  %v1714_v7 = vsel %vm1202_vm6, %v684_v45, %v1458_v52 }
 0x183   :  { %vm1205_vm9 = vcmp.gt.f32.partialorder %v690_v56, 0.0  ;;  %v1461_v2 = vmul.f32 0.2, %v690_v56  ;;  %961 = vmatprep.mubr.bf16.mxu0 %v5917_v1  ;;  %v1715_v11 = vsel %vm1203_vm7, %v686_v50, %v1459_v55  ;;  %v205_v50 = vpack.c.bf16 %v127_v34, %v126_v33  ;;  %v130_v34 = vld [vmem:[%s10802_s0 + $0x330] sm:$0xff] }
 0x184   :  { %v1716_v9 = vsel %vm1204_vm8, %v688_v53, %v1460_v58 }
 0x185   :  { %v693_v10 = vpop.f32.mrb[84].mxu0  ;;  %v1717_v12 = vsel %vm1205_vm9, %v690_v56, %v1461_v2  ;;  %v1930_v13 = vpack.c.bf16 %v1716_v9, %v1714_v7  ;;  %v129_v7 = vld [vmem:[%s10802_s0 + $0x328] sm:$0xff] }
 0x186   :  { %v694_v14 = vadd.f32 %v693_v10, %v6290_v60  ;;  %v695_v15 = vpop.f32.mrb[85].mxu0  ;;  %v1931_v19 = vpack.c.bf16 %v1717_v12, %v1715_v11 }
 0x187   :  { %v696_v23 = vadd.f32 %v695_v15, %v6293_v61  ;;  %v697_v24 = vpop.f32.mrb[86].mxu0 }
 0x188   :  { %v1462_v26 = vmul.f32 0.2, %v694_v14  ;;  %v698_v27 = vadd.f32 %v697_v24, %v6290_v60  ;;  %v699_v28 = vpop.f32.mrb[87].mxu0  ;;  %2454 = vmatprep.mubr.bf16.mxu1 %v1931_v19  ;;  %vm1206_vm10 = vcmp.gt.f32.partialorder %v694_v14, 0.0 }
 0x189   :  { %v1463_v29 = vmul.f32 0.2, %v696_v23  ;;  %v700_v30 = vadd.f32 %v699_v28, %v6293_v61  ;;  %2455 = vmatmul.mubr.bf16.gmra.mrb[68].mxu1 %v1930_v13  ;;  %vm1207_vm11 = vcmp.gt.f32.partialorder %v696_v23, 0.0 }
 0x18a   :  { %vm1208_vm12 = vcmp.gt.f32.partialorder %v698_v27, 0.0  ;;  %v1464_v31 = vmul.f32 0.2, %v698_v27  ;;  %5270 = vmatmul.mubr.msk.bf16.gmra.mrb[192].mxu0 %vm256_vm0, %v204_v22  ;;  %v1718_v35 = vsel %vm1206_vm10, %v694_v14, %v1462_v26 }
 0x18b   :  { %vm1209_vm13 = vcmp.gt.f32.partialorder %v700_v30, 0.0  ;;  %v1465_v32 = vmul.f32 0.2, %v700_v30  ;;  %971 = vmatprep.mubr.bf16.mxu0 %v5917_v1  ;;  %v1719_v43 = vsel %vm1207_vm11, %v696_v23, %v1463_v29  ;;  %v206_v23 = vpack.c.bf16 %v129_v7, %v128_v6  ;;  %v132_v7 = vld [vmem:[%s10802_s0 + $0x340] sm:$0xff] }
 0x18c   :  { %v1720_v36 = vsel %vm1208_vm12, %v698_v27, %v1464_v31 }
 0x18d   :  { %v703_v40 = vpop.f32.mrb[88].mxu0  ;;  %v1721_v44 = vsel %vm1209_vm13, %v700_v30, %v1465_v32  ;;  %v1932_v45 = vpack.c.bf16 %v1720_v36, %v1718_v35  ;;  %v131_v35 = vld [vmem:[%s10802_s0 + $0x338] sm:$0xff] }
 0x18e   :  { %v704_v47 = vadd.f32 %v703_v40, %v6290_v60  ;;  %v705_v48 = vpop.f32.mrb[89].mxu0  ;;  %v1933_v49 = vpack.c.bf16 %v1721_v44, %v1719_v43 }
 0x18f   :  { %v706_v51 = vadd.f32 %v705_v48, %v6293_v61  ;;  %v707_v52 = vpop.f32.mrb[90].mxu0 }
 0x190   :  { %v1466_v53 = vmul.f32 0.2, %v704_v47  ;;  %v708_v54 = vadd.f32 %v707_v52, %v6290_v60  ;;  %v709_v55 = vpop.f32.mrb[91].mxu0  ;;  %2464 = vmatprep.mubr.bf16.mxu1 %v1933_v49  ;;  %vm1210_vm14 = vcmp.gt.f32.partialorder %v704_v47, 0.0 }
 0x191   :  { %v1467_v56 = vmul.f32 0.2, %v706_v51  ;;  %v710_v58 = vadd.f32 %v709_v55, %v6293_v61  ;;  %2465 = vmatmul.mubr.bf16.gmra.mrb[72].mxu1 %v1932_v45  ;;  %vm1211_vm15 = vcmp.gt.f32.partialorder %v706_v51, 0.0 }
 0x192   :  { %vm1212_vm1 = vcmp.gt.f32.partialorder %v708_v54, 0.0  ;;  %v1468_v2 = vmul.f32 0.2, %v708_v54  ;;  %5271 = vmatmul.mubr.msk.bf16.gmra.mrb[196].mxu0 %vm256_vm0, %v205_v50  ;;  %v1722_v9 = vsel %vm1210_vm14, %v704_v47, %v1466_v53 }
 0x193   :  { %vm1213_vm2 = vcmp.gt.f32.partialorder %v710_v58, 0.0  ;;  %v1469_v5 = vmul.f32 0.2, %v710_v58  ;;  %981 = vmatprep.mubr.bf16.mxu0 %v5917_v1  ;;  %v1723_v12 = vsel %vm1211_vm15, %v706_v51, %v1467_v56  ;;  %v207_v51 = vpack.c.bf16 %v131_v35, %v130_v34  ;;  %v134_v35 = vld [vmem:[%s10802_s0 + $0x350] sm:$0xff] }
 0x194   :  { %v1724_v10 = vsel %vm1212_vm1, %v708_v54, %v1468_v2 }
 0x195   :  { %v713_v11 = vpop.f32.mrb[92].mxu0  ;;  %v1725_v13 = vsel %vm1213_vm2, %v710_v58, %v1469_v5  ;;  %v1934_v14 = vpack.c.bf16 %v1724_v10, %v1722_v9  ;;  %v133_v9 = vld [vmem:[%s10802_s0 + $0x348] sm:$0xff] }
 0x196   :  { %v714_v15 = vadd.f32 %v713_v11, %v6290_v60  ;;  %v715_v19 = vpop.f32.mrb[93].mxu0  ;;  %v1935_v22 = vpack.c.bf16 %v1725_v13, %v1723_v12 }
 0x197   :  { %v716_v24 = vadd.f32 %v715_v19, %v6293_v61  ;;  %v717_v26 = vpop.f32.mrb[94].mxu0 }
 0x198   :  { %v1470_v27 = vmul.f32 0.2, %v714_v15  ;;  %v718_v28 = vadd.f32 %v717_v26, %v6290_v60  ;;  %v719_v29 = vpop.f32.mrb[95].mxu0  ;;  %2474 = vmatprep.mubr.bf16.mxu1 %v1935_v22  ;;  %vm1214_vm3 = vcmp.gt.f32.partialorder %v714_v15, 0.0 }
 0x199   :  { %v1471_v30 = vmul.f32 0.2, %v716_v24  ;;  %v720_v31 = vadd.f32 %v719_v29, %v6293_v61  ;;  %2475 = vmatmul.mubr.bf16.gmra.mrb[76].mxu1 %v1934_v14  ;;  %vm1215_vm4 = vcmp.gt.f32.partialorder %v716_v24, 0.0 }
 0x19a   :  { %vm1216_vm5 = vcmp.gt.f32.partialorder %v718_v28, 0.0  ;;  %v1472_v32 = vmul.f32 0.2, %v718_v28  ;;  %5272 = vmatmul.mubr.msk.bf16.gmra.mrb[200].mxu0 %vm256_vm0, %v206_v23  ;;  %v1726_v36 = vsel %vm1214_vm3, %v714_v15, %v1470_v27 }
 0x19b   :  { %vm1217_vm6 = vcmp.gt.f32.partialorder %v720_v31, 0.0  ;;  %v1473_v33 = vmul.f32 0.2, %v720_v31  ;;  %991 = vmatprep.mubr.bf16.mxu0 %v5917_v1  ;;  %v1727_v44 = vsel %vm1215_vm4, %v716_v24, %v1471_v30  ;;  %v208_v24 = vpack.c.bf16 %v133_v9, %v132_v7  ;;  %v136_v9 = vld [vmem:[%s10802_s0 + $0x360] sm:$0xff] }
 0x19c   :  { %v1728_v40 = vsel %vm1216_vm5, %v718_v28, %v1472_v32 }
 0x19d   :  { %v723_v43 = vpop.f32.mrb[96].mxu0  ;;  %v1729_v45 = vsel %vm1217_vm6, %v720_v31, %v1473_v33  ;;  %v1936_v47 = vpack.c.bf16 %v1728_v40, %v1726_v36  ;;  %v135_v36 = vld [vmem:[%s10802_s0 + $0x358] sm:$0xff] }
 0x19e   :  { %v724_v48 = vadd.f32 %v723_v43, %v6290_v60  ;;  %v725_v49 = vpop.f32.mrb[97].mxu0  ;;  %v1937_v50 = vpack.c.bf16 %v1729_v45, %v1727_v44 }
 0x19f   :  { %v726_v52 = vadd.f32 %v725_v49, %v6293_v61  ;;  %v727_v53 = vpop.f32.mrb[98].mxu0 }
 0x1a0   :  { %v1474_v54 = vmul.f32 0.2, %v724_v48  ;;  %v728_v55 = vadd.f32 %v727_v53, %v6290_v60  ;;  %v729_v56 = vpop.f32.mrb[99].mxu0  ;;  %2484 = vmatprep.mubr.bf16.mxu1 %v1937_v50  ;;  %vm1218_vm7 = vcmp.gt.f32.partialorder %v724_v48, 0.0 }
 0x1a1   :  { %v1475_v58 = vmul.f32 0.2, %v726_v52  ;;  %v730_v2 = vadd.f32 %v729_v56, %v6293_v61  ;;  %2485 = vmatmul.mubr.bf16.gmra.mrb[80].mxu1 %v1936_v47  ;;  %vm1219_vm8 = vcmp.gt.f32.partialorder %v726_v52, 0.0 }
 0x1a2   :  { %vm1220_vm9 = vcmp.gt.f32.partialorder %v728_v55, 0.0  ;;  %v1476_v5 = vmul.f32 0.2, %v728_v55  ;;  %5273 = vmatmul.mubr.msk.bf16.gmra.mrb[204].mxu0 %vm256_vm0, %v207_v51  ;;  %v1730_v10 = vsel %vm1218_vm7, %v724_v48, %v1474_v54 }
 0x1a3   :  { %vm1221_vm10 = vcmp.gt.f32.partialorder %v730_v2, 0.0  ;;  %v1477_v6 = vmul.f32 0.2, %v730_v2  ;;  %1001 = vmatprep.mubr.bf16.mxu0 %v5917_v1  ;;  %v1731_v13 = vsel %vm1219_vm8, %v726_v52, %v1475_v58  ;;  %v209_v52 = vpack.c.bf16 %v135_v36, %v134_v35  ;;  %v138_v36 = vld [vmem:[%s10802_s0 + $0x370] sm:$0xff] }
 0x1a4   :  { %v1732_v11 = vsel %vm1220_vm9, %v728_v55, %v1476_v5 }
 0x1a5   :  { %v733_v12 = vpop.f32.mrb[100].mxu0  ;;  %v1733_v14 = vsel %vm1221_vm10, %v730_v2, %v1477_v6  ;;  %v1938_v15 = vpack.c.bf16 %v1732_v11, %v1730_v10  ;;  %v137_v10 = vld [vmem:[%s10802_s0 + $0x368] sm:$0xff] }
 0x1a6   :  { %v734_v19 = vadd.f32 %v733_v12, %v6290_v60  ;;  %v735_v22 = vpop.f32.mrb[101].mxu0  ;;  %v1939_v23 = vpack.c.bf16 %v1733_v14, %v1731_v13 }
 0x1a7   :  { %v736_v26 = vadd.f32 %v735_v22, %v6293_v61  ;;  %v737_v27 = vpop.f32.mrb[102].mxu0 }
 0x1a8   :  { %v1478_v28 = vmul.f32 0.2, %v734_v19  ;;  %v738_v29 = vadd.f32 %v737_v27, %v6290_v60  ;;  %v739_v30 = vpop.f32.mrb[103].mxu0  ;;  %2494 = vmatprep.mubr.bf16.mxu1 %v1939_v23  ;;  %vm1222_vm11 = vcmp.gt.f32.partialorder %v734_v19, 0.0 }
 0x1a9   :  { %v1479_v31 = vmul.f32 0.2, %v736_v26  ;;  %v740_v32 = vadd.f32 %v739_v30, %v6293_v61  ;;  %2495 = vmatmul.mubr.bf16.gmra.mrb[84].mxu1 %v1938_v15  ;;  %vm1223_vm12 = vcmp.gt.f32.partialorder %v736_v26, 0.0 }
 0x1aa   :  { %vm1224_vm13 = vcmp.gt.f32.partialorder %v738_v29, 0.0  ;;  %v1480_v33 = vmul.f32 0.2, %v738_v29  ;;  %5274 = vmatmul.mubr.msk.bf16.gmra.mrb[208].mxu0 %vm256_vm0, %v208_v24  ;;  %v1734_v40 = vsel %vm1222_vm11, %v734_v19, %v1478_v28 }
 0x1ab   :  { %vm1225_vm14 = vcmp.gt.f32.partialorder %v740_v32, 0.0  ;;  %v1481_v34 = vmul.f32 0.2, %v740_v32  ;;  %1011 = vmatprep.mubr.bf16.mxu0 %v5917_v1  ;;  %v1735_v45 = vsel %vm1223_vm12, %v736_v26, %v1479_v31  ;;  %v210_v26 = vpack.c.bf16 %v137_v10, %v136_v9  ;;  %v140_v10 = vld [vmem:[%s10802_s0 + $0x380] sm:$0xff] }
 0x1ac   :  { %v1736_v43 = vsel %vm1224_vm13, %v738_v29, %v1480_v33 }
 0x1ad   :  { %v743_v44 = vpop.f32.mrb[104].mxu0  ;;  %v1737_v47 = vsel %vm1225_vm14, %v740_v32, %v1481_v34  ;;  %v1940_v48 = vpack.c.bf16 %v1736_v43, %v1734_v40  ;;  %v139_v40 = vld [vmem:[%s10802_s0 + $0x378] sm:$0xff] }
 0x1ae   :  { %v744_v49 = vadd.f32 %v743_v44, %v6290_v60  ;;  %v745_v50 = vpop.f32.mrb[105].mxu0  ;;  %v1941_v51 = vpack.c.bf16 %v1737_v47, %v1735_v45 }
 0x1af   :  { %v746_v53 = vadd.f32 %v745_v50, %v6293_v61  ;;  %v747_v54 = vpop.f32.mrb[106].mxu0 }
 0x1b0   :  { %v1482_v55 = vmul.f32 0.2, %v744_v49  ;;  %v748_v56 = vadd.f32 %v747_v54, %v6290_v60  ;;  %v749_v58 = vpop.f32.mrb[107].mxu0  ;;  %2504 = vmatprep.mubr.bf16.mxu1 %v1941_v51  ;;  %vm1226_vm15 = vcmp.gt.f32.partialorder %v744_v49, 0.0 }
 0x1b1   :  { %v1483_v2 = vmul.f32 0.2, %v746_v53  ;;  %v750_v5 = vadd.f32 %v749_v58, %v6293_v61  ;;  %2505 = vmatmul.mubr.bf16.gmra.mrb[88].mxu1 %v1940_v48  ;;  %vm1227_vm1 = vcmp.gt.f32.partialorder %v746_v53, 0.0 }
 0x1b2   :  { %vm1228_vm2 = vcmp.gt.f32.partialorder %v748_v56, 0.0  ;;  %v1484_v6 = vmul.f32 0.2, %v748_v56  ;;  %5275 = vmatmul.mubr.msk.bf16.gmra.mrb[212].mxu0 %vm256_vm0, %v209_v52  ;;  %v1738_v11 = vsel %vm1226_vm15, %v744_v49, %v1482_v55 }
 0x1b3   :  { %vm1229_vm3 = vcmp.gt.f32.partialorder %v750_v5, 0.0  ;;  %v1485_v7 = vmul.f32 0.2, %v750_v5  ;;  %1021 = vmatprep.mubr.bf16.mxu0 %v5917_v1  ;;  %v1739_v14 = vsel %vm1227_vm1, %v746_v53, %v1483_v2  ;;  %v211_v53 = vpack.c.bf16 %v139_v40, %v138_v36  ;;  %v142_v40 = vld [vmem:[%s10802_s0 + $0x390] sm:$0xff] }
 0x1b4   :  { %v1740_v12 = vsel %vm1228_vm2, %v748_v56, %v1484_v6 }
 0x1b5   :  { %v753_v13 = vpop.f32.mrb[108].mxu0  ;;  %v1741_v15 = vsel %vm1229_vm3, %v750_v5, %v1485_v7  ;;  %v1942_v19 = vpack.c.bf16 %v1740_v12, %v1738_v11  ;;  %v141_v11 = vld [vmem:[%s10802_s0 + $0x388] sm:$0xff] }
 0x1b6   :  { %v754_v22 = vadd.f32 %v753_v13, %v6290_v60  ;;  %v755_v23 = vpop.f32.mrb[109].mxu0  ;;  %v1943_v24 = vpack.c.bf16 %v1741_v15, %v1739_v14 }
 0x1b7   :  { %v756_v27 = vadd.f32 %v755_v23, %v6293_v61  ;;  %v757_v28 = vpop.f32.mrb[110].mxu0 }
 0x1b8   :  { %v1486_v29 = vmul.f32 0.2, %v754_v22  ;;  %v758_v30 = vadd.f32 %v757_v28, %v6290_v60  ;;  %v759_v31 = vpop.f32.mrb[111].mxu0  ;;  %2514 = vmatprep.mubr.bf16.mxu1 %v1943_v24  ;;  %vm1230_vm4 = vcmp.gt.f32.partialorder %v754_v22, 0.0 }
 0x1b9   :  { %v1487_v32 = vmul.f32 0.2, %v756_v27  ;;  %v760_v33 = vadd.f32 %v759_v31, %v6293_v61  ;;  %2515 = vmatmul.mubr.bf16.gmra.mrb[92].mxu1 %v1942_v19  ;;  %vm1231_vm5 = vcmp.gt.f32.partialorder %v756_v27, 0.0 }
 0x1ba   :  { %vm1232_vm6 = vcmp.gt.f32.partialorder %v758_v30, 0.0  ;;  %v1488_v34 = vmul.f32 0.2, %v758_v30  ;;  %5276 = vmatmul.mubr.msk.bf16.gmra.mrb[216].mxu0 %vm256_vm0, %v210_v26  ;;  %v1742_v43 = vsel %vm1230_vm4, %v754_v22, %v1486_v29 }
 0x1bb   :  { %vm1233_vm7 = vcmp.gt.f32.partialorder %v760_v33, 0.0  ;;  %v1489_v35 = vmul.f32 0.2, %v760_v33  ;;  %1031 = vmatprep.mubr.bf16.mxu0 %v5917_v1  ;;  %v1743_v47 = vsel %vm1231_vm5, %v756_v27, %v1487_v32  ;;  %v212_v27 = vpack.c.bf16 %v141_v11, %v140_v10  ;;  %v144_v11 = vld [vmem:[%s10802_s0 + $0x3a0] sm:$0xff] }
 0x1bc   :  { %v1744_v44 = vsel %vm1232_vm6, %v758_v30, %v1488_v34 }
 0x1bd   :  { %v763_v45 = vpop.f32.mrb[112].mxu0  ;;  %v1745_v48 = vsel %vm1233_vm7, %v760_v33, %v1489_v35  ;;  %v1944_v49 = vpack.c.bf16 %v1744_v44, %v1742_v43  ;;  %v143_v43 = vld [vmem:[%s10802_s0 + $0x398] sm:$0xff] }
 0x1be   :  { %v764_v50 = vadd.f32 %v763_v45, %v6290_v60  ;;  %v765_v51 = vpop.f32.mrb[113].mxu0  ;;  %v1945_v52 = vpack.c.bf16 %v1745_v48, %v1743_v47 }
 0x1bf   :  { %v766_v54 = vadd.f32 %v765_v51, %v6293_v61  ;;  %v767_v55 = vpop.f32.mrb[114].mxu0 }
 0x1c0   :  { %v1490_v56 = vmul.f32 0.2, %v764_v50  ;;  %v768_v58 = vadd.f32 %v767_v55, %v6290_v60  ;;  %v769_v2 = vpop.f32.mrb[115].mxu0  ;;  %2524 = vmatprep.mubr.bf16.mxu1 %v1945_v52  ;;  %vm1234_vm8 = vcmp.gt.f32.partialorder %v764_v50, 0.0  ;;  %v2050_v55 = vld [vmem:[%s10805_s4] sm:$0x3] }
 0x1c1   :  { %v1491_v5 = vmul.f32 0.2, %v766_v54  ;;  %v770_v6 = vadd.f32 %v769_v2, %v6293_v61  ;;  %2525 = vmatmul.mubr.bf16.gmra.mrb[96].mxu1 %v1944_v49  ;;  %vm1235_vm9 = vcmp.gt.f32.partialorder %v766_v54, 0.0  ;;  %v6706_v10 = vrot.slane %v2050_v55, %v6281_v57 }
 0x1c2   :  { %vm1236_vm10 = vcmp.gt.f32.partialorder %v768_v58, 0.0  ;;  %v1492_v7 = vmul.f32 0.2, %v768_v58  ;;  %5277 = vmatmul.mubr.msk.bf16.gmra.mrb[220].mxu0 %vm256_vm0, %v211_v53  ;;  %v1746_v12 = vsel %vm1234_vm8, %v764_v50, %v1490_v56 }
 0x1c3   :  { %vm1237_vm11 = vcmp.gt.f32.partialorder %v770_v6, 0.0  ;;  %v1493_v9 = vmul.f32 0.2, %v770_v6  ;;  %1041 = vmatprep.mubr.bf16.mxu0 %v5917_v1  ;;  %v1747_v15 = vsel %vm1235_vm9, %v766_v54, %v1491_v5  ;;  %v213_v54 = vpack.c.bf16 %v143_v43, %v142_v40 }
 0x1c4   :  { %v1748_v13 = vsel %vm1236_vm10, %v768_v58, %v1492_v7 }
 0x1c5   :  { %v773_v14 = vpop.f32.mrb[116].mxu0  ;;  %v1749_v19 = vsel %vm1237_vm11, %v770_v6, %v1493_v9  ;;  %v1946_v22 = vpack.c.bf16 %v1748_v13, %v1746_v12  ;;  %v145_v12 = vld [vmem:[%s10802_s0 + $0x3a8] sm:$0xff] }
 0x1c6   :  { %v774_v23 = vadd.f32 %v773_v14, %v6290_v60  ;;  %v775_v24 = vpop.f32.mrb[117].mxu0  ;;  %v1947_v26 = vpack.c.bf16 %v1749_v19, %v1747_v15  ;;  %v6716_v14 = vrot.slane %v2050_v55, %v6286_v59  ;;  %v3663_v19 = vld [vmem:[%s10806_s5] sm:$0x3] }
 0x1c7   :  { %v776_v28 = vadd.f32 %v775_v24, %v6293_v61  ;;  %v777_v29 = vpop.f32.mrb[118].mxu0  ;;  %v6728_v43 = vrot.slane %v3663_v19, %v6281_v57 }
 0x1c8   :  { %v1494_v30 = vmul.f32 0.2, %v774_v23  ;;  %v778_v31 = vadd.f32 %v777_v29, %v6290_v60  ;;  %v779_v32 = vpop.f32.mrb[119].mxu0  ;;  %2534 = vmatprep.mubr.bf16.mxu1 %v1947_v26  ;;  %vm1238_vm12 = vcmp.gt.f32.partialorder %v774_v23, 0.0  ;;  %v214_v26 = vpack.c.bf16 %v145_v12, %v144_v11 }
 0x1c9   :  { %v1495_v33 = vmul.f32 0.2, %v776_v28  ;;  %v780_v34 = vadd.f32 %v779_v32, %v6293_v61  ;;  %2535 = vmatmul.mubr.bf16.gmra.mrb[100].mxu1 %v1946_v22  ;;  %vm1239_vm13 = vcmp.gt.f32.partialorder %v776_v28, 0.0 }
 0x1ca   :  { %vm1240_vm14 = vcmp.gt.f32.partialorder %v778_v31, 0.0  ;;  %v1496_v35 = vmul.f32 0.2, %v778_v31  ;;  %5278 = vmatmul.mubr.msk.bf16.gmra.mrb[224].mxu0 %vm256_vm0, %v212_v27  ;;  %v1750_v44 = vsel %vm1238_vm12, %v774_v23, %v1494_v30 }
 0x1cb   :  { %vm1241_vm15 = vcmp.gt.f32.partialorder %v780_v34, 0.0  ;;  %v1497_v36 = vmul.f32 0.2, %v780_v34  ;;  %1051 = vmatprep.mubr.bf16.mxu0 %v5917_v1  ;;  %v1751_v48 = vsel %vm1239_vm13, %v776_v28, %v1495_v33 }
 0x1cc   :  { %v1752_v45 = vsel %vm1240_vm14, %v778_v31, %v1496_v35 }
 0x1cd   :  { %v783_v47 = vpop.f32.mrb[120].mxu0  ;;  %v1753_v49 = vsel %vm1241_vm15, %v780_v34, %v1497_v36  ;;  %v1948_v50 = vpack.c.bf16 %v1752_v45, %v1750_v44  ;;  %v6733_v44 = vld [vmem:[%s10802_s0 + $0x3b0] sm:$0xff]  ;;  %v147_v45 = vld [vmem:[%s10802_s0 + $0x3b8] sm:$0xff] }
 0x1ce   :  { %v784_v51 = vadd.f32 %v783_v47, %v6290_v60  ;;  %v785_v52 = vpop.f32.mrb[121].mxu0  ;;  %v1949_v53 = vpack.c.bf16 %v1753_v49, %v1751_v48 }
 0x1cf   :  { %v786_v56 = vadd.f32 %v785_v52, %v6293_v61  ;;  %v787_v58 = vpop.f32.mrb[122].mxu0 }
 0x1d0   :  { %v1498_v2 = vmul.f32 0.2, %v784_v51  ;;  %v788_v5 = vadd.f32 %v787_v58, %v6290_v60  ;;  %v789_v6 = vpop.f32.mrb[123].mxu0  ;;  %2544 = vmatprep.mubr.bf16.mxu1 %v1949_v53  ;;  %vm1242_vm1 = vcmp.gt.f32.partialorder %v784_v51, 0.0 }
 0x1d1   :  { %v1499_v7 = vmul.f32 0.2, %v786_v56  ;;  %v790_v9 = vadd.f32 %v789_v6, %v6293_v61  ;;  %2545 = vmatmul.mubr.bf16.gmra.mrb[104].mxu1 %v1948_v50  ;;  %vm1243_vm2 = vcmp.gt.f32.partialorder %v786_v56, 0.0 }
 0x1d2   :  { %vm1244_vm3 = vcmp.gt.f32.partialorder %v788_v5, 0.0  ;;  %v1500_v13 = vmul.f32 0.2, %v788_v5  ;;  %5279 = vmatmul.mubr.msk.bf16.gmra.mrb[228].mxu0 %vm256_vm0, %v213_v54  ;;  %v1754_v23 = vsel %vm1242_vm1, %v784_v51, %v1498_v2  ;;  %v6740_v51 = vrot.slane %v3663_v19, %v6286_v59 }
 0x1d3   :  { %vm1245_vm4 = vcmp.gt.f32.partialorder %v790_v9, 0.0  ;;  %v1501_v15 = vmul.f32 0.2, %v790_v9  ;;  %1061 = vmatprep.mubr.bf16.mxu0 %v5917_v1  ;;  %v1755_v30 = vsel %vm1243_vm2, %v786_v56, %v1499_v7  ;;  %v215_v54 = vpack.c.bf16 %v147_v45, %v6733_v44  ;;  %v149_v45 = vld [vmem:[%s10802_s0 + $0x3c8] sm:$0xff] }
 0x1d4   :  { %v2286_v22 = vpop.f32.mrb[0].mxu1  ;;  %v1756_v24 = vsel %vm1244_vm3, %v788_v5, %v1500_v13 }
 0x1d5   :  { %v2287_v27 = vadd.f32 %v2286_v22, %v6706_v10  ;;  %v793_v28 = vpop.f32.mrb[124].mxu0  ;;  %v2288_v29 = vpop.f32.mrb[1].mxu1  ;;  %v1757_v31 = vsel %vm1245_vm4, %v790_v9, %v1501_v15  ;;  %v1950_v32 = vpack.c.bf16 %v1756_v24, %v1754_v23 }
 0x1d6   :  { %v794_v33 = vadd.f32 %v793_v28, %v6290_v60  ;;  %v2289_v34 = vadd.f32 %v2288_v29, %v6716_v14  ;;  %v795_v35 = vpop.f32.mrb[125].mxu0  ;;  %v2290_v36 = vpop.f32.mrb[2].mxu1  ;;  %v1951_v40 = vpack.c.bf16 %v1757_v31, %v1755_v30 }
 0x1d7   :  { %vm2907_vm5 = vcmp.gt.f32.partialorder %v2287_v27, 0.0  ;;  %v3163_v47 = vmul.f32 0.2, %v2287_v27  ;;  %v796_v48 = vadd.f32 %v795_v35, %v6293_v61  ;;  %v797_v49 = vpop.f32.mrb[126].mxu0  ;;  %v2292_v50 = vpop.f32.mrb[3].mxu1  ;;  %v2291_v52 = vadd.f32 %v2290_v36, %v6706_v10 }
 0x1d8   :  { %vm2908_vm6 = vcmp.gt.f32.partialorder %v2289_v34, 0.0  ;;  %v3164_v57 = vmul.f32 0.2, %v2289_v34  ;;  %2554 = vmatprep.mubr.bf16.mxu1 %v1951_v40  ;;  %vm1246_vm7 = vcmp.gt.f32.partialorder %v794_v33, 0.0  ;;  %v1502_v53 = vmul.f32 0.2, %v794_v33 }
 0x1d9   :  { %2555 = vmatmul.mubr.bf16.gmra.mrb[108].mxu1 %v1950_v32  ;;  %v798_v55 = vadd.f32 %v797_v49, %v6290_v60  ;;  %v2293_v56 = vadd.f32 %v2292_v50, %v6716_v14  ;;  %v799_v58 = vpop.f32.mrb[127].mxu0  ;;  %v3419_v59 = vsel %vm2907_vm5, %v2287_v27, %v3163_v47  ;;  %v1503_v5 = vmul.f32 0.2, %v796_v48 }
 0x1da   :  { %5280 = vmatmul.mubr.msk.bf16.gmra.mrb[232].mxu0 %vm256_vm0, %v214_v26  ;;  %v3420_v2 = vsel %vm2908_vm6, %v2289_v34, %v3164_v57  ;;  %v800_v6 = vadd.f32 %v799_v58, %v6293_v61  ;;  %v3687_v7 = vmul.f32 %v6728_v43, %v3419_v59  ;;  %vm1247_vm8 = vcmp.gt.f32.partialorder %v796_v48, 0.0 }
 0x1db   :  { %v3688_v9 = vmul.f32 %v6740_v51, %v3420_v2  ;;  %1071 = vmatprep.mubr.bf16.mxu0 %v5917_v1  ;;  %v3165_v11 = vmul.f32 0.2, %v2291_v52  ;;  %vm1248_vm9 = vcmp.gt.f32.partialorder %v798_v55, 0.0  ;;  %v1504_v12 = vmul.f32 0.2, %v798_v55 }
 0x1dc   :  { %vm2909_vm10 = vcmp.gt.f32.partialorder %v2291_v52, 0.0  ;;  %vm1249_vm11 = vcmp.gt.f32.partialorder %v800_v6, 0.0  ;;  %v1505_v13 = vmul.f32 0.2, %v800_v6  ;;  %v2296_v15 = vpop.f32.mrb[4].mxu1  ;;  %v1758_v28 = vsel %vm1246_vm7, %v794_v33, %v1502_v53  ;;  %v148_v33 = vld [vmem:[%s10802_s0 + $0x3c0] sm:$0xff] }
 0x1dd   :  { %v803_v19 = vpop.f32.mrb[128].mxu0  ;;  %v3949_v22 = vadd.f32 %v3688_v9, %v3687_v7  ;;  %v3166_v23 = vmul.f32 0.2, %v2293_v56  ;;  %v2297_v24 = vadd.f32 %v2296_v15, %v6706_v10  ;;  %v2298_v26 = vpop.f32.mrb[5].mxu1  ;;  %v1760_v29 = vsel %vm1248_vm9, %v798_v55, %v1504_v12  ;;  %v6779_v15 = vld [vmem:[%s10802_s0 + $0x3d0] sm:$0xff] }
 0x1de   :  { %v805_v27 = vpop.f32.mrb[129].mxu0  ;;  %vm2910_vm12 = vcmp.gt.f32.partialorder %v2293_v56, 0.0  ;;  %v2299_v30 = vadd.f32 %v2298_v26, %v6716_v14  ;;  %v2300_v31 = vpop.f32.mrb[6].mxu1  ;;  %v1761_v34 = vsel %vm1249_vm11, %v800_v6, %v1505_v13  ;;  %v1952_v35 = vpack.c.bf16 %v1760_v29, %v1758_v28  ;;  %v6792_v28 = vld [vmem:[%s10802_s0 + $0x3e0] sm:$0xff]  ;;  %v6797_v29 = vld [vmem:[%s10802_s0 + $0x3e8] sm:$0xff] }
 0x1df   :  { %v807_v32 = vpop.f32.mrb[130].mxu0  ;;  %3950 = vadd.xlane.f32.xlu0 %v3949_v22  ;;  %v3421_v36 = vsel %vm2909_vm10, %v2291_v52, %v3165_v11  ;;  %vm2911_vm13 = vcmp.gt.f32.partialorder %v2297_v24, 0.0  ;;  %v806_v40 = vadd.f32 %v805_v27, %v6293_v61  ;;  %v1759_v44 = vsel %vm1247_vm8, %v796_v48, %v1503_v5  ;;  %v2302_v50 = vpop.f32.mrb[7].mxu1 }
 0x1e0   :  { %v3167_v47 = vmul.f32 0.2, %v2297_v24  ;;  %v3168_v49 = vmul.f32 0.2, %v2299_v30  ;;  %v809_v57 = vpop.f32.mrb[131].mxu0  ;;  %v1953_v53 = vpack.c.bf16 %v1761_v34, %v1759_v44  ;;  %v3422_v52 = vsel %vm2910_vm12, %v2293_v56, %v3166_v23 }
 0x1e1   :  { %vm2912_vm14 = vcmp.gt.f32.partialorder %v2299_v30, 0.0  ;;  %v810_v48 = vadd.f32 %v809_v57, %v6293_v61  ;;  %v3689_v55 = vmul.f32 %v6728_v43, %v3421_v36  ;;  %v3690_v58 = vmul.f32 %v6740_v51, %v3422_v52 }
 0x1e2   :  { %5281 = vmatmul.mubr.msk.bf16.gmra.mrb[236].mxu0 %vm256_vm0, %v215_v54  ;;  %v2301_v59 = vadd.f32 %v2300_v31, %v6706_v10  ;;  %v808_v2 = vadd.f32 %v807_v32, %v6290_v60  ;;  %2564 = vmatprep.mubr.bf16.mxu1 %v1953_v53  ;;  %v804_v5 = vadd.f32 %v803_v19, %v6290_v60  ;;  %v1507_v6 = vmul.f32 0.2, %v806_v40 }
 0x1e3   :  { %1081 = vmatprep.mubr.bf16.mxu0 %v5917_v1  ;;  %vm1253_vm15 = vcmp.gt.f32.partialorder %v810_v48, 0.0  ;;  %v1509_v56 = vmul.f32 0.2, %v810_v48  ;;  %2565 = vmatmul.mubr.bf16.gmra.mrb[112].mxu1 %v1952_v35  ;;  %v216_v54 = vpack.c.bf16 %v149_v45, %v148_v33  ;;  %v3952_v7 = vadd.f32 %v3690_v58, %v3689_v55 }
 0x1e4   :  { %v2306_v9 = vpop.f32.mrb[8].mxu1  ;;  %v3423_v12 = vsel %vm2911_vm13, %v2297_v24, %v3167_v47  ;;  %v3424_v13 = vsel %vm2912_vm14, %v2299_v30, %v3168_v49  ;;  %vm1251_vm1 = vcmp.gt.f32.partialorder %v806_v40, 0.0  ;;  %v2303_v19 = vadd.f32 %v2302_v50, %v6716_v14  ;;  %v6787_v24 = vld [vmem:[%s10802_s0 + $0x3d8] sm:$0xff] }
 0x1e5   :  { %v813_v11 = vpop.f32.mrb[132].mxu0  ;;  %v2308_v22 = vpop.f32.mrb[9].mxu1  ;;  %v3691_v26 = vmul.f32 %v6728_v43, %v3423_v12  ;;  %v3692_v27 = vmul.f32 %v6740_v51, %v3424_v13  ;;  %v3169_v30 = vmul.f32 0.2, %v2301_v59  ;;  %v1508_v31 = vmul.f32 0.2, %v808_v2  ;;  %3953 = vadd.xlane.f32.xlu1 %v3952_v7 }
 0x1e6   :  { %v815_v23 = vpop.f32.mrb[133].mxu0  ;;  %v2310_v32 = vpop.f32.mrb[10].mxu1  ;;  %v1765_v35 = vsel %vm1253_vm15, %v810_v48, %v1509_v56  ;;  %v1506_v36 = vmul.f32 0.2, %v804_v5  ;;  %vm2913_vm2 = vcmp.gt.f32.partialorder %v2301_v59, 0.0  ;;  %vm1252_vm3 = vcmp.gt.f32.partialorder %v808_v2, 0.0 }
 0x1e7   :  { %v817_v34 = vpop.f32.mrb[134].mxu0  ;;  %v2307_v44 = vadd.f32 %v2306_v9, %v6706_v10  ;;  %vm1250_vm4 = vcmp.gt.f32.partialorder %v804_v5, 0.0  ;;  %v6802_v33 = vadd.f32 %v813_v11, %v6290_v60  ;;  %v1763_v45 = vsel %vm1251_vm1, %v806_v40, %v1507_v6  ;;  %v2312_v50 = vpop.f32.mrb[11].mxu1  ;;  %v6819_v9 = vld [vmem:[%s10802_s0 + $0x3f0] sm:$0xff] }
 0x1e8   :  { %v217_v47 = vpack.c.bf16 %v6787_v24, %v6779_v15  ;;  %v3170_v49 = vmul.f32 0.2, %v2303_v19  ;;  %v3955_v57 = vadd.f32 %v3692_v27, %v3691_v26  ;;  %v819_v53 = vpop.f32.mrb[135].mxu0  ;;  %v1955_v52 = vpack.c.bf16 %v1765_v35, %v1763_v45 }
 0x1e9   :  { %v218_v48 = vpack.c.bf16 %v6797_v29, %v6792_v28  ;;  %vm2914_vm5 = vcmp.gt.f32.partialorder %v2303_v19, 0.0  ;;  %v2309_v55 = vadd.f32 %v2308_v22, %v6716_v14  ;;  %v1764_v40 = vsel %vm1252_vm3, %v808_v2, %v1508_v31  ;;  %v6824_v2 = vld [vmem:[%s10802_s0 + $0x3f8] sm:$0xff] }
 0x1ea   :  { %5282 = vmatmul.mubr.msk.bf16.gmra.mrb[240].mxu0 %vm256_vm0, %v216_v54  ;;  %v3425_v58 = vsel %vm2913_vm2, %v2301_v59, %v3169_v30  ;;  %vm2915_vm6 = vcmp.gt.f32.partialorder %v2307_v44, 0.0  ;;  %v3171_v54 = vmul.f32 0.2, %v2307_v44  ;;  %v816_v6 = vadd.f32 %v815_v23, %v6293_v61  ;;  %3956 = vadd.xlane.f32.xlu0 %v3955_v57 }
 0x1eb   :  { %1091 = vmatprep.mubr.bf16.mxu0 %v5917_v1  ;;  %2574 = vmatprep.mubr.bf16.mxu1 %v1955_v52  ;;  %v1762_v7 = vsel %vm1250_vm4, %v804_v5, %v1506_v36  ;;  %vm1254_vm7 = vcmp.gt.f32.partialorder %v6802_v33, 0.0  ;;  %v2311_v59 = vadd.f32 %v2310_v32, %v6706_v10  ;;  %v818_v11 = vadd.f32 %v817_v34, %v6290_v60 }
 0x1ec   :  { %v2316_v56 = vpop.f32.mrb[12].mxu1  ;;  %v6830_v12 = vadd.f32 %v2312_v50, %v6716_v14  ;;  %v820_v5 = vadd.f32 %v819_v53, %v6293_v61  ;;  %v1954_v13 = vpack.c.bf16 %v1764_v40, %v1762_v7  ;;  %v3426_v15 = vsel %vm2914_vm5, %v2303_v19, %v3170_v49 }
 0x1ed   :  { %v3693_v22 = vmul.f32 %v6728_v43, %v3425_v58  ;;  %v823_v23 = vpop.f32.mrb[136].mxu0  ;;  %v2318_v26 = vpop.f32.mrb[13].mxu1  ;;  %v1510_v27 = vmul.f32 0.2, %v6802_v33  ;;  %v3172_v24 = vmul.f32 0.2, %v2309_v55  ;;  %v3694_v30 = vmul.f32 %v6740_v51, %v3426_v15 }
 0x1ee   :  { %v825_v31 = vpop.f32.mrb[137].mxu0  ;;  %v2320_v32 = vpop.f32.mrb[14].mxu1  ;;  %v219_v34 = vpack.c.bf16 %v6824_v2, %v6819_v9  ;;  %vm2916_vm8 = vcmp.gt.f32.partialorder %v2309_v55, 0.0  ;;  %vm1255_vm9 = vcmp.gt.f32.partialorder %v816_v6, 0.0  ;;  %v1511_v35 = vmul.f32 0.2, %v816_v6  ;;  %2575 = vmatmul.mubr.bf16.gmra.mrb[116].mxu1 %v1954_v13 }
 0x1ef   :  { %v6840_v19 = vadd.f32 %v2316_v56, %v6706_v10  ;;  %v827_v36 = vpop.f32.mrb[138].mxu0  ;;  %v2322_v45 = vpop.f32.mrb[15].mxu1  ;;  %vm2917_vm10 = vcmp.gt.f32.partialorder %v2311_v59, 0.0  ;;  %v3173_v49 = vmul.f32 0.2, %v2311_v59  ;;  %v3958_v50 = vadd.f32 %v3694_v30, %v3693_v22 }
 0x1f0   :  { %v3427_v57 = vsel %vm2915_vm6, %v2307_v44, %v3171_v54  ;;  %v829_v53 = vpop.f32.mrb[139].mxu0  ;;  %vm1256_vm11 = vcmp.gt.f32.partialorder %v818_v11, 0.0  ;;  %v1512_v52 = vmul.f32 0.2, %v818_v11  ;;  %vm2918_vm12 = vcmp.gt.f32.partialorder %v6830_v12, 0.0 }
 0x1f1   :  { %v1513_v40 = vmul.f32 0.2, %v820_v5  ;;  %v3174_v58 = vmul.f32 0.2, %v6830_v12  ;;  %vm1257_vm13 = vcmp.gt.f32.partialorder %v820_v5, 0.0  ;;  %3959 = vadd.xlane.f32.xlu1 %v3958_v50  ;;  %v6848_v56 = vadd.f32 %v823_v23, %v6290_v60 }
 0x1f2   :  { %5283 = vmatmul.mubr.msk.bf16.gmra.mrb[244].mxu0 %vm256_vm0, %v217_v47  ;;  %v3428_v7 = vsel %vm2916_vm8, %v2309_v55, %v3172_v24  ;;  %vm2919_vm14 = vcmp.gt.f32.partialorder %v6840_v19, 0.0  ;;  %v2319_v47 = vadd.f32 %v2318_v26, %v6716_v14  ;;  %v3695_v54 = vmul.f32 %v6728_v43, %v3427_v57 }
 0x1f3   :  { %1101 = vmatprep.mubr.bf16.mxu0 %v5917_v1  ;;  %v3696_v13 = vmul.f32 %v6740_v51, %v3428_v7  ;;  %v3175_v30 = vmul.f32 0.2, %v6840_v19  ;;  %v826_v50 = vadd.f32 %v825_v31, %v6293_v61  ;;  %v6858_v23 = vadd.f32 %v2320_v32, %v6706_v10 }
 0x1f4   :  { %v2326_v44 = vpop.f32.mrb[16].mxu1  ;;  %v6861_v55 = vadd.f32 %v827_v36, %v6290_v60  ;;  %v6864_v24 = vadd.f32 %v2322_v45, %v6716_v14  ;;  %v1767_v57 = vsel %vm1255_vm9, %v816_v6, %v1511_v35  ;;  %v1769_v7 = vsel %vm1257_vm13, %v820_v5, %v1513_v40 }
 0x1f5   :  { %v833_v15 = vpop.f32.mrb[140].mxu0  ;;  %v2328_v22 = vpop.f32.mrb[17].mxu1  ;;  %v3961_v26 = vadd.f32 %v3696_v13, %v3695_v54  ;;  %v1957_v39 = vpack.c.bf16 %v1769_v7, %v1767_v57  ;;  %v1766_v31 = vsel %vm1254_vm7, %v6802_v33, %v1510_v27  ;;  %v1768_v32 = vsel %vm1256_vm11, %v818_v11, %v1512_v52 }
 0x1f6   :  { %v835_v0 = vpop.f32.mrb[141].mxu0  ;;  %v2330_v8 = vpop.f32.mrb[18].mxu1  ;;  %v3429_v36 = vsel %vm2917_vm10, %v2311_v59, %v3173_v49  ;;  %v830_v45 = vadd.f32 %v829_v53, %v6293_v61  ;;  %v1956_v54 = vpack.c.bf16 %v1768_v32, %v1766_v31  ;;  %v3430_v6 = vsel %vm2918_vm12, %v6830_v12, %v3174_v58 }
 0x1f7   :  { %v837_v46 = vpop.f32.mrb[142].mxu0  ;;  %v2332_v18 = vpop.f32.mrb[19].mxu1  ;;  %3962 = vadd.xlane.f32.xlu0 %v3961_v26  ;;  %v3697_v5 = vmul.f32 %v6728_v43, %v3429_v36  ;;  %vm1258_vm15 = vcmp.gt.f32.partialorder %v6848_v56, 0.0  ;;  %v1514_v33 = vmul.f32 0.2, %v6848_v56  ;;  %vm2920_vm1 = vcmp.gt.f32.partialorder %v2319_v47, 0.0  ;;  %2584 = vmatprep.mubr.bf16.mxu1 %v1957_v39 }
 0x1f8   :  { %v839_v35 = vpop.f32.mrb[143].mxu0  ;;  %v3698_v59 = vmul.f32 %v6740_v51, %v3430_v6  ;;  %v3176_v11 = vmul.f32 0.2, %v2319_v47  ;;  %vm1259_vm2 = vcmp.gt.f32.partialorder %v826_v50, 0.0  ;;  %v1515_v27 = vmul.f32 0.2, %v826_v50  ;;  %2585 = vmatmul.mubr.bf16.gmra.mrb[120].mxu1 %v1956_v54 }
 0x1f9   :  { %v6882_v49 = vadd.f32 %v2326_v44, %v6706_v10  ;;  %vm2921_vm3 = vcmp.gt.f32.partialorder %v6858_v23, 0.0  ;;  %v3177_v12 = vmul.f32 0.2, %v6858_v23  ;;  %v1516_v39 = vmul.f32 0.2, %v6861_v55 }
 0x1fa   :  { %5284 = vmatmul.mubr.msk.bf16.gmra.mrb[248].mxu0 %vm256_vm0, %v218_v48  ;;  %v3964_v53 = vadd.f32 %v3698_v59, %v3697_v5  ;;  %vm1260_vm4 = vcmp.gt.f32.partialorder %v6861_v55, 0.0  ;;  %vm2922_vm5 = vcmp.gt.f32.partialorder %v6864_v24, 0.0  ;;  %v3178_v40 = vmul.f32 0.2, %v6864_v24 }
 0x1fb   :  { %1111 = vmatprep.mubr.bf16.mxu0 %v5917_v1  ;;  %v1517_v58 = vmul.f32 0.2, %v830_v45  ;;  %vm1261_vm6 = vcmp.gt.f32.partialorder %v830_v45, 0.0  ;;  %v6896_v28 = vadd.f32 %v833_v15, %v6290_v60  ;;  %v6899_v29 = vadd.f32 %v2328_v22, %v6716_v14 }
 0x1fc   :  { %v2336_v52 = vpop.f32.mrb[20].mxu1  ;;  %3965 = vadd.xlane.f32.xlu1 %v3964_v53  ;;  %v6902_v48 = vadd.f32 %v835_v0, %v6293_v61  ;;  %vm2923_vm7 = vcmp.gt.f32.partialorder %v6882_v49, 0.0  ;;  %v3179_v1 = vmul.f32 0.2, %v6882_v49  ;;  %v3431_v13 = vsel %vm2919_vm14, %v6840_v19, %v3175_v30 }
 0x1fd   :  { %v843_v44 = vpop.f32.mrb[144].mxu0  ;;  %v3432_v26 = vsel %vm2920_vm1, %v2319_v47, %v3176_v11  ;;  %v2338_v57 = vpop.f32.mrb[21].mxu1  ;;  %v6911_v7 = vadd.f32 %v2330_v8, %v6706_v10  ;;  %v6914_v22 = vadd.f32 %v837_v46, %v6290_v60  ;;  %v3699_v0 = vmul.f32 %v6728_v43, %v3431_v13 }
 0x1fe   :  { %v845_v15 = vpop.f32.mrb[145].mxu0  ;;  %v3700_v31 = vmul.f32 %v6740_v51, %v3432_v26  ;;  %v2340_v32 = vpop.f32.mrb[22].mxu1  ;;  %v6919_v54 = vadd.f32 %v2332_v18, %v6716_v14  ;;  %v1771_v19 = vsel %vm1259_vm2, %v826_v50, %v1515_v27  ;;  %v1773_v47 = vsel %vm1261_vm6, %v830_v45, %v1517_v58 }
 0x1ff   :  { %v847_v36 = vpop.f32.mrb[146].mxu0  ;;  %v1770_v8 = vsel %vm1258_vm15, %v6848_v56, %v1514_v33  ;;  %v6926_v30 = vpop.f32.mrb[23].mxu1  ;;  %v1959_v5 = vpack.c.bf16 %v1773_v47, %v1771_v19  ;;  %v1772_v59 = vsel %vm1260_vm4, %v6861_v55, %v1516_v39  ;;  %v3433_v18 = vsel %vm2921_vm3, %v6858_v23, %v3177_v12 }
 0x200   :  { %v849_v46 = vpop.f32.mrb[147].mxu0  ;;  %v3967_v6 = vadd.f32 %v3700_v31, %v3699_v0  ;;  %v840_v50 = vadd.f32 %v839_v35, %v6293_v61  ;;  %v1958_v45 = vpack.c.bf16 %v1772_v59, %v1770_v8  ;;  %v3434_v56 = vsel %vm2922_vm5, %v6864_v24, %v3178_v40 }
 0x201   :  { %v3701_v33 = vmul.f32 %v6728_v43, %v3433_v18  ;;  %vm1262_vm8 = vcmp.gt.f32.partialorder %v6896_v28, 0.0  ;;  %v1518_v55 = vmul.f32 0.2, %v6896_v28  ;;  %vm2924_vm9 = vcmp.gt.f32.partialorder %v6899_v29, 0.0  ;;  %2594 = vmatprep.mubr.bf16.mxu1 %v1959_v5 }
 0x202   :  { %5285 = vmatmul.mubr.msk.bf16.gmra.mrb[252].mxu0 %vm256_vm0, %v219_v34  ;;  %3968 = vadd.xlane.f32.xlu0 %v3967_v6  ;;  %v3702_v23 = vmul.f32 %v6740_v51, %v3434_v56  ;;  %v3180_v24 = vmul.f32 0.2, %v6899_v29  ;;  %v1519_v11 = vmul.f32 0.2, %v6902_v48  ;;  %v6952_v9 = vadd.f32 %v2336_v52, %v6706_v10 }
 0x203   :  { %2595 = vmatmul.mubr.bf16.gmra.mrb[124].mxu1 %v1958_v45  ;;  %2254 = vmatprep.mubr.bf16.mxu0 %v1891_v25  ;;  %vm1263_vm0 = vcmp.gt.f32.partialorder %v6902_v48, 0.0  ;;  %vm2925_vm10 = vcmp.gt.f32.partialorder %v6911_v7, 0.0  ;;  %v3181_v27 = vmul.f32 0.2, %v6911_v7  ;;  %vm1264_vm11 = vcmp.gt.f32.partialorder %v6914_v22, 0.0 }
 0x204   :  { %v6947_v35 = vpop.f32.mrb[24].mxu1  ;;  %v3970_v12 = vadd.f32 %v3702_v23, %v3701_v33  ;;  %v1520_v20 = vmul.f32 0.2, %v6914_v22  ;;  %vm2926_vm12 = vcmp.gt.f32.partialorder %v6919_v54, 0.0  ;;  %v1521_v21 = vmul.f32 0.2, %v840_v50 }
 0x205   :  { %v6957_v2 = vpop.f32.mrb[148].mxu0  ;;  %v6959_v34 = vpop.f32.mrb[25].mxu1  ;;  %v3182_v25 = vmul.f32 0.2, %v6919_v54  ;;  %vm1265_vm13 = vcmp.gt.f32.partialorder %v840_v50, 0.0  ;;  %v6973_v52 = vadd.f32 %v843_v44, %v6290_v60  ;;  %v3435_v40 = vsel %vm2923_vm7, %v6882_v49, %v3179_v1 }
 0x206   :  { %v6964_v39 = vpop.f32.mrb[149].mxu0  ;;  %v6966_v53 = vpop.f32.mrb[26].mxu1  ;;  %3971 = vadd.xlane.f32.xlu1 %v3970_v12  ;;  %vm2927_vm14 = vcmp.gt.f32.partialorder %v6952_v9, 0.0  ;;  %v2339_v26 = vadd.f32 %v2338_v57, %v6716_v14  ;;  %v3436_v0 = vsel %vm2924_vm9, %v6899_v29, %v3180_v24  ;;  %v3703_v31 = vmul.f32 %v6728_v43, %v3435_v40 }
 0x207   :  { %v857_v58 = vpop.f32.mrb[150].mxu0  ;;  %v6978_v13 = vpop.f32.mrb[27].mxu1  ;;  %v3183_v44 = vmul.f32 0.2, %v6952_v9  ;;  %v846_v47 = vadd.f32 %v845_v15, %v6293_v61  ;;  %v6991_v49 = vadd.f32 %v2340_v32, %v6706_v10  ;;  %v6994_v1 = vadd.f32 %v847_v36, %v6290_v60 }
 0x208   :  { %v6986_v19 = vpop.f32.mrb[151].mxu0  ;;  %v3704_v57 = vmul.f32 %v6740_v51, %v3436_v0  ;;  %v850_v8 = vadd.f32 %v849_v46, %v6293_v61  ;;  %v1775_v29 = vsel %vm1263_vm0, %v6902_v48, %v1519_v11  ;;  %v1777_v6 = vsel %vm1265_vm13, %v840_v50, %v1521_v21 }
 0x209   :  { %v10809_v5 = vpack.c.bf16 %v6316_v17, %v6314_v16  ;;  %v1961_v15 = vpack.c.bf16 %v1777_v6, %v1775_v29  ;;  %v1774_v32 = vsel %vm1262_vm8, %v6896_v28, %v1518_v55  ;;  %v1776_v36 = vsel %vm1264_vm11, %v6914_v22, %v1520_v20 }
 0x20a   :  { %v3437_v46 = vsel %vm2925_vm10, %v6911_v7, %v3181_v27  ;;  %v10810_v48 = vpack.c.bf16 %v6346_v42, %v6344_v41  ;;  %v3973_v16 = vadd.f32 %v3704_v57, %v3703_v31  ;;  %v1960_v17 = vpack.c.bf16 %v1776_v36, %v1774_v32 }
 0x20b   :  { %2255 = vmatmul.mubr.bf16.vlgmr.msra.gmra.mrb[0].mxu0 %v10809_v5  ;;  %v3438_v28 = vsel %vm2926_vm12, %v6919_v54, %v3182_v25  ;;  %v3705_v18 = vmul.f32 %v6728_v43, %v3437_v46  ;;  %vm1266_vm15 = vcmp.gt.f32.partialorder %v6973_v52, 0.0  ;;  %v1522_v7 = vmul.f32 0.2, %v6973_v52  ;;  %2604 = vmatprep.mubr.bf16.mxu1 %v1961_v15 }
 0x20c   :  { %2264 = vmatprep.mubr.bf16.mxu0 %v10810_v48  ;;  %v7017_v59 = vpop.f32.mrb[28].mxu1  ;;  %v2343_v41 = vadd.f32 %v6926_v30, %v6716_v14  ;;  %v3706_v42 = vmul.f32 %v6740_v51, %v3438_v28  ;;  %vm2928_vm1 = vcmp.gt.f32.partialorder %v2339_v26, 0.0  ;;  %v3184_v54 = vmul.f32 0.2, %v2339_v26  ;;  %3974 = vadd.xlane.f32.xlu0 %v3973_v16 }
 0x20d   :  { %v7023_v50 = vpop.f32.mrb[152].mxu0  ;;  %v7025_v22 = vpop.f32.mrb[29].mxu1  ;;  %vm1267_vm2 = vcmp.gt.f32.partialorder %v846_v47, 0.0  ;;  %2605 = vmatmul.mubr.bf16.gmra.mrb[128].mxu1 %v1960_v17  ;;  %v1523_v23 = vmul.f32 0.2, %v846_v47  ;;  %vm2929_vm3 = vcmp.gt.f32.partialorder %v6991_v49, 0.0  ;;  %v7048_v20 = vadd.f32 %v6947_v35, %v6706_v10 }
 0x20e   :  { %v7032_v45 = vpop.f32.mrb[153].mxu0  ;;  %v7034_v56 = vpop.f32.mrb[30].mxu1  ;;  %v3185_v30 = vmul.f32 0.2, %v6991_v49  ;;  %v3976_v24 = vadd.f32 %v3706_v42, %v3705_v18  ;;  %vm1268_vm4 = vcmp.gt.f32.partialorder %v6994_v1, 0.0  ;;  %vm2930_vm5 = vcmp.gt.f32.partialorder %v2343_v41, 0.0 }
 0x20f   :  { %v7036_v33 = vpop.f32.mrb[154].mxu0  ;;  %v7038_v55 = vpop.f32.mrb[31].mxu1  ;;  %v1524_v27 = vmul.f32 0.2, %v6994_v1  ;;  %v1525_v12 = vmul.f32 0.2, %v850_v8  ;;  %v7052_v25 = vadd.f32 %v6957_v2, %v6290_v60  ;;  %v7056_v40 = vadd.f32 %v6959_v34, %v6716_v14 }
 0x210   :  { %v7042_v11 = vpop.f32.mrb[155].mxu0  ;;  %v3186_v21 = vmul.f32 0.2, %v2343_v41  ;;  %vm1269_vm6 = vcmp.gt.f32.partialorder %v850_v8, 0.0  ;;  %3977 = vadd.xlane.f32.xlu1 %v3976_v24  ;;  %v7060_v0 = vadd.f32 %v6964_v39, %v6293_v61  ;;  %v3439_v35 = vsel %vm2927_vm14, %v6952_v9, %v3183_v44 }
 0x211   :  { %v3440_v31 = vsel %vm2928_vm1, %v2339_v26, %v3184_v54  ;;  %v10811_v57 = vpack.c.bf16 %v6340_v38, %v6338_v37  ;;  %v7071_v2 = vadd.f32 %v6966_v53, %v6706_v10  ;;  %v7074_v34 = vadd.f32 %v857_v58, %v6290_v60 }
 0x212   :  { %v3707_v39 = vmul.f32 %v6728_v43, %v3439_v35  ;;  %v3708_v29 = vmul.f32 %v6740_v51, %v3440_v31  ;;  %v10812_v9 = vpack.c.bf16 %v6370_v4, %v6368_v3  ;;  %vm2931_vm7 = vcmp.gt.f32.partialorder %v7048_v20, 0.0 }
 0x213   :  { %2265 = vmatmul.mubr.bf16.gmra.mrb[4].mxu0 %v10811_v57  ;;  %v3187_v37 = vmul.f32 0.2, %v7048_v20  ;;  %v1779_v38 = vsel %vm1267_vm2, %v846_v47, %v1523_v23  ;;  %v1781_v53 = vsel %vm1269_vm6, %v850_v8, %v1525_v12  ;;  %v7093_v6 = vadd.f32 %v6978_v13, %v6716_v14 }
 0x214   :  { %2274 = vmatprep.mubr.bf16.mxu0 %v10812_v9  ;;  %v7081_v26 = vpop.f32.mrb[32].mxu1  ;;  %v3979_v3 = vadd.f32 %v3708_v29, %v3707_v39  ;;  %v860_v4 = vadd.f32 %v6986_v19, %v6293_v61  ;;  %v1963_v5 = vpack.c.bf16 %v1781_v53, %v1779_v38  ;;  %v1778_v47 = vsel %vm1266_vm15, %v6973_v52, %v1522_v7 }
 0x215   :  { %v7087_v58 = vpop.f32.mrb[156].mxu0  ;;  %v7089_v44 = vpop.f32.mrb[33].mxu1  ;;  %v1780_v8 = vsel %vm1268_vm4, %v6994_v1, %v1524_v27  ;;  %v3441_v13 = vsel %vm2929_vm3, %v6991_v49, %v3185_v30  ;;  %v3442_v36 = vsel %vm2930_vm5, %v2343_v41, %v3186_v21  ;;  %vm1270_vm8 = vcmp.gt.f32.partialorder %v7052_v25, 0.0 }
 0x216   :  { %v7097_v15 = vpop.f32.mrb[157].mxu0  ;;  %v7099_v32 = vpop.f32.mrb[34].mxu1  ;;  %3980 = vadd.xlane.f32.xlu0 %v3979_v3  ;;  %2614 = vmatprep.mubr.bf16.mxu1 %v1963_v5  ;;  %v1962_v48 = vpack.c.bf16 %v1780_v8, %v1778_v47  ;;  %v3709_v52 = vmul.f32 %v6728_v43, %v3441_v13  ;;  %v3710_v16 = vmul.f32 %v6740_v51, %v3442_v36  ;;  %v1526_v17 = vmul.f32 0.2, %v7052_v25 }
 0x217   :  { %v7111_v19 = vpop.f32.mrb[158].mxu0  ;;  %v7113_v46 = vpop.f32.mrb[35].mxu1  ;;  %vm2932_vm9 = vcmp.gt.f32.partialorder %v7056_v40, 0.0  ;;  %v3188_v49 = vmul.f32 0.2, %v7056_v40  ;;  %v7125_v28 = vadd.f32 %v7017_v59, %v6706_v10  ;;  %vm1271_vm0 = vcmp.gt.f32.partialorder %v7060_v0, 0.0 }
 0x218   :  { %v7118_v1 = vpop.f32.mrb[159].mxu0  ;;  %v1527_v18 = vmul.f32 0.2, %v7060_v0  ;;  %v3189_v7 = vmul.f32 0.2, %v7071_v2  ;;  %2615 = vmatmul.mubr.bf16.gmra.mrb[132].mxu1 %v1962_v48  ;;  %v3982_v41 = vadd.f32 %v3710_v16, %v3709_v52  ;;  %vm2933_vm10 = vcmp.gt.f32.partialorder %v7071_v2, 0.0 }
 0x219   :  { %vm1272_vm11 = vcmp.gt.f32.partialorder %v7074_v34, 0.0  ;;  %v1528_v42 = vmul.f32 0.2, %v7074_v34  ;;  %v1529_v54 = vmul.f32 0.2, %v860_v4  ;;  %v10813_v23 = vpack.c.bf16 %v6364_v63, %v6362_v62 }
 0x21a   :  { %vm2934_vm12 = vcmp.gt.f32.partialorder %v7093_v6, 0.0  ;;  %v3190_v59 = vmul.f32 0.2, %v7093_v6  ;;  %vm1273_vm13 = vcmp.gt.f32.partialorder %v860_v4, 0.0  ;;  %3983 = vadd.xlane.f32.xlu1 %v3982_v41  ;;  %v7140_v30 = vadd.f32 %v7023_v50, %v6290_v60 }
 0x21b   :  { %2275 = vmatmul.mubr.bf16.gmra.mrb[8].mxu0 %v10813_v23  ;;  %vm2935_vm14 = vcmp.gt.f32.partialorder %v7125_v28, 0.0  ;;  %v3191_v24 = vmul.f32 0.2, %v7125_v28  ;;  %v2359_v27 = vadd.f32 %v7025_v22, %v6716_v14  ;;  %v3443_v62 = vsel %vm2931_vm7, %v7048_v20, %v3187_v37 }
 0x21c   :  { %v7149_v63 = vpop.f32.mrb[36].mxu1  ;;  %v866_v21 = vadd.f32 %v7032_v45, %v6293_v61  ;;  %v7157_v50 = vadd.f32 %v7034_v56, %v6706_v10  ;;  %v3444_v35 = vsel %vm2932_vm9, %v7056_v40, %v3188_v49  ;;  %v3711_v22 = vmul.f32 %v6728_v43, %v3443_v62 }
 0x21d   :  { %v7151_v12 = vpop.f32.mrb[160].mxu0  ;;  %v7163_v31 = vpop.f32.mrb[37].mxu1  ;;  %v7169_v57 = vadd.f32 %v7036_v33, %v6290_v60  ;;  %v3712_v45 = vmul.f32 %v6740_v51, %v3444_v35  ;;  %v1783_v56 = vsel %vm1271_vm0, %v7060_v0, %v1527_v18  ;;  %v1785_v39 = vsel %vm1273_vm13, %v860_v4, %v1529_v54 }
 0x21e   :  { %v7165_v20 = vpop.f32.mrb[161].mxu0  ;;  %v7176_v29 = vpop.f32.mrb[38].mxu1  ;;  %vm1274_vm15 = vcmp.gt.f32.partialorder %v7140_v30, 0.0  ;;  %v870_v9 = vadd.f32 %v7042_v11, %v6293_v61  ;;  %v1965_v37 = vpack.c.bf16 %v1785_v39, %v1783_v56  ;;  %v1782_v33 = vsel %vm1270_vm8, %v7052_v25, %v1526_v17 }
 0x21f   :  { %v7178_v40 = vpop.f32.mrb[162].mxu0  ;;  %v7186_v38 = vpop.f32.mrb[39].mxu1  ;;  %v3985_v0 = vadd.f32 %v3712_v45, %v3711_v22  ;;  %v1784_v3 = vsel %vm1272_vm11, %v7074_v34, %v1528_v42  ;;  %v3445_v4 = vsel %vm2933_vm10, %v7071_v2, %v3189_v7  ;;  %v3446_v11 = vsel %vm2934_vm12, %v7093_v6, %v3190_v59 }
 0x220   :  { %v7188_v53 = vpop.f32.mrb[163].mxu0  ;;  %v2363_v25 = vadd.f32 %v7038_v55, %v6716_v14  ;;  %2624 = vmatprep.mubr.bf16.mxu1 %v1965_v37  ;;  %v1964_v5 = vpack.c.bf16 %v1784_v3, %v1782_v33  ;;  %v3713_v47 = vmul.f32 %v6728_v43, %v3445_v4  ;;  %v3714_v8 = vmul.f32 %v6740_v51, %v3446_v11 }
 0x221   :  { %v1530_v13 = vmul.f32 0.2, %v7140_v30  ;;  %vm2936_vm1 = vcmp.gt.f32.partialorder %v2359_v27, 0.0  ;;  %v3192_v34 = vmul.f32 0.2, %v2359_v27  ;;  %vm1275_vm2 = vcmp.gt.f32.partialorder %v866_v21, 0.0  ;;  %3986 = vadd.xlane.f32.xlu0 %v3985_v0 }
 0x222   :  { %v1531_v2 = vmul.f32 0.2, %v866_v21  ;;  %v3193_v36 = vmul.f32 0.2, %v7157_v50  ;;  %2625 = vmatmul.mubr.bf16.gmra.mrb[136].mxu1 %v1964_v5  ;;  %v3988_v6 = vadd.f32 %v3714_v8, %v3713_v47  ;;  %v7207_v55 = vadd.f32 %v7081_v26, %v6706_v10 }
 0x223   :  { %vm2937_vm3 = vcmp.gt.f32.partialorder %v7157_v50, 0.0  ;;  %vm1276_vm4 = vcmp.gt.f32.partialorder %v7169_v57, 0.0  ;;  %v1532_v52 = vmul.f32 0.2, %v7169_v57  ;;  %v1533_v16 = vmul.f32 0.2, %v870_v9 }
 0x224   :  { %v7209_v48 = vpop.f32.mrb[40].mxu1  ;;  %vm2938_vm5 = vcmp.gt.f32.partialorder %v2363_v25, 0.0  ;;  %v3194_v17 = vmul.f32 0.2, %v2363_v25  ;;  %vm1277_vm6 = vcmp.gt.f32.partialorder %v870_v9, 0.0  ;;  %3989 = vadd.xlane.f32.xlu1 %v3988_v6  ;;  %v7216_v49 = vadd.f32 %v7087_v58, %v6290_v60 }
 0x225   :  { %v7220_v26 = vadd.f32 %v7089_v44, %v6716_v14  ;;  %v7224_v18 = vadd.f32 %v7097_v15, %v6293_v61  ;;  %v7228_v7 = vadd.f32 %v7099_v32, %v6706_v10  ;;  %v3447_v41 = vsel %vm2935_vm14, %v7125_v28, %v3191_v24  ;;  %v7233_v42 = vpop.f32.mrb[164].mxu0  ;;  %v7235_v58 = vpop.f32.mrb[41].mxu1 }
 0x226   :  { %vm2939_vm7 = vcmp.gt.f32.partialorder %v7207_v55, 0.0  ;;  %v3195_v44 = vmul.f32 0.2, %v7207_v55  ;;  %v3448_v54 = vsel %vm2936_vm1, %v2359_v27, %v3192_v34  ;;  %v3715_v15 = vmul.f32 %v6728_v43, %v3447_v41  ;;  %v7241_v23 = vpop.f32.mrb[165].mxu0  ;;  %v7243_v32 = vpop.f32.mrb[42].mxu1 }
 0x227   :  { %v7247_v59 = vadd.f32 %v7111_v19, %v6290_v60  ;;  %v3716_v28 = vmul.f32 %v6740_v51, %v3448_v54  ;;  %v1787_v24 = vsel %vm1275_vm2, %v866_v21, %v1531_v2  ;;  %v1789_v62 = vsel %vm1277_vm6, %v870_v9, %v1533_v16  ;;  %v7252_v35 = vpop.f32.mrb[166].mxu0  ;;  %v7254_v22 = vpop.f32.mrb[43].mxu1 }
 0x228   :  { %v1534_v27 = vmul.f32 0.2, %v7216_v49  ;;  %v880_v45 = vadd.f32 %v7118_v1, %v6293_v61  ;;  %v1967_v56 = vpack.c.bf16 %v1789_v62, %v1787_v24  ;;  %v1786_v19 = vsel %vm1274_vm15, %v7140_v30, %v1530_v13  ;;  %v7262_v39 = vpop.f32.mrb[167].mxu0 }
 0x229   :  { %v3991_v37 = vadd.f32 %v3716_v28, %v3715_v15  ;;  %v1788_v21 = vsel %vm1276_vm4, %v7169_v57, %v1532_v52  ;;  %v3449_v9 = vsel %vm2937_vm3, %v7157_v50, %v3193_v36  ;;  %v3450_v33 = vsel %vm2938_vm5, %v2363_v25, %v3194_v17 }
 0x22a   :  { %v2373_v1 = vadd.f32 %v7113_v46, %v6716_v14  ;;  %2634 = vmatprep.mubr.bf16.mxu1 %v1967_v56  ;;  %v1966_v0 = vpack.c.bf16 %v1788_v21, %v1786_v19  ;;  %v3717_v30 = vmul.f32 %v6728_v43, %v3449_v9  ;;  %v3718_v3 = vmul.f32 %v6740_v51, %v3450_v33 }
 0x22b   :  { %vm1278_vm8 = vcmp.gt.f32.partialorder %v7216_v49, 0.0  ;;  %vm2940_vm9 = vcmp.gt.f32.partialorder %v7220_v26, 0.0  ;;  %v3196_v57 = vmul.f32 0.2, %v7220_v26  ;;  %3992 = vadd.xlane.f32.xlu0 %v3991_v37  ;;  %vm1279_vm0 = vcmp.gt.f32.partialorder %v7224_v18, 0.0 }
 0x22c   :  { %v7275_v4 = vpop.f32.mrb[44].mxu1  ;;  %v1535_v46 = vmul.f32 0.2, %v7224_v18  ;;  %2635 = vmatmul.mubr.bf16.gmra.mrb[140].mxu1 %v1966_v0  ;;  %v3994_v25 = vadd.f32 %v3718_v3, %v3717_v30  ;;  %v7288_v5 = vadd.f32 %v7149_v63, %v6706_v10  ;;  %vm2941_vm10 = vcmp.gt.f32.partialorder %v7228_v7, 0.0 }
 0x22d   :  { %v7280_v50 = vpop.f32.mrb[168].mxu0  ;;  %v7282_v11 = vpop.f32.mrb[45].mxu1  ;;  %v3197_v13 = vmul.f32 0.2, %v7228_v7  ;;  %vm1280_vm11 = vcmp.gt.f32.partialorder %v7247_v59, 0.0  ;;  %vm2942_vm12 = vcmp.gt.f32.partialorder %v2373_v1, 0.0  ;;  %v7300_v63 = vadd.f32 %v7151_v12, %v6290_v60 }
 0x22e   :  { %v7290_v47 = vpop.f32.mrb[169].mxu0  ;;  %v7292_v8 = vpop.f32.mrb[46].mxu1  ;;  %v1537_v34 = vmul.f32 0.2, %v880_v45  ;;  %v1536_v2 = vmul.f32 0.2, %v7247_v59  ;;  %3995 = vadd.xlane.f32.xlu1 %v3994_v25  ;;  %v2379_v6 = vadd.f32 %v7163_v31, %v6716_v14  ;;  %v7306_v52 = vadd.f32 %v7165_v20, %v6293_v61 }
 0x22f   :  { %v3198_v36 = vmul.f32 0.2, %v2373_v1  ;;  %vm1281_vm13 = vcmp.gt.f32.partialorder %v880_v45, 0.0  ;;  %v3451_v16 = vsel %vm2939_vm7, %v7207_v55, %v3195_v44  ;;  %v7311_v17 = vpop.f32.mrb[170].mxu0  ;;  %v7313_v41 = vpop.f32.mrb[47].mxu1  ;;  %vm2943_vm14 = vcmp.gt.f32.partialorder %v7288_v5, 0.0 }
 0x230   :  { %v7318_v12 = vadd.f32 %v7176_v29, %v6706_v10  ;;  %v3452_v31 = vsel %vm2940_vm9, %v7220_v26, %v3196_v57  ;;  %v3719_v20 = vmul.f32 %v6728_v43, %v3451_v16  ;;  %v7324_v54 = vpop.f32.mrb[171].mxu0  ;;  %v3199_v55 = vmul.f32 0.2, %v7288_v5 }
 0x231   :  { %v3720_v44 = vmul.f32 %v6740_v51, %v3452_v31  ;;  %v1791_v15 = vsel %vm1279_vm0, %v7224_v18, %v1535_v46  ;;  %v1793_v28 = vsel %vm1281_vm13, %v880_v45, %v1537_v34  ;;  %v888_v29 = vadd.f32 %v7178_v40, %v6290_v60 }
 0x232   :  { %v890_v26 = vadd.f32 %v7188_v53, %v6293_v61  ;;  %v1969_v24 = vpack.c.bf16 %v1793_v28, %v1791_v15  ;;  %v1790_v62 = vsel %vm1278_vm8, %v7216_v49, %v1534_v27  ;;  %v1792_v18 = vsel %vm1280_vm11, %v7247_v59, %v1536_v2 }
 0x233   :  { %v3997_v19 = vadd.f32 %v3720_v44, %v3719_v20  ;;  %v3453_v45 = vsel %vm2941_vm10, %v7228_v7, %v3197_v13  ;;  %v3454_v40 = vsel %vm2942_vm12, %v2373_v1, %v3198_v36  ;;  %v2383_v49 = vadd.f32 %v7186_v38, %v6716_v14 }
 0x234   :  { %v7339_v56 = vpop.f32.mrb[48].mxu1  ;;  %2644 = vmatprep.mubr.bf16.mxu1 %v1969_v24  ;;  %v1968_v27 = vpack.c.bf16 %v1792_v18, %v1790_v62  ;;  %v3721_v21 = vmul.f32 %v6728_v43, %v3453_v45  ;;  %v3722_v9 = vmul.f32 %v6740_v51, %v3454_v40  ;;  %vm1282_vm15 = vcmp.gt.f32.partialorder %v7300_v63, 0.0 }
 0x235   :  { %v7348_v37 = vpop.f32.mrb[172].mxu0  ;;  %v7350_v53 = vpop.f32.mrb[49].mxu1  ;;  %v1538_v7 = vmul.f32 0.2, %v7300_v63  ;;  %vm2944_vm1 = vcmp.gt.f32.partialorder %v2379_v6, 0.0  ;;  %3998 = vadd.xlane.f32.xlu0 %v3997_v19  ;;  %vm1283_vm2 = vcmp.gt.f32.partialorder %v7306_v52, 0.0  ;;  %v2387_v13 = vadd.f32 %v7209_v48, %v6706_v10 }
 0x236   :  { %v7356_v59 = vpop.f32.mrb[173].mxu0  ;;  %v7358_v33 = vpop.f32.mrb[50].mxu1  ;;  %v3200_v38 = vmul.f32 0.2, %v2379_v6  ;;  %v1539_v30 = vmul.f32 0.2, %v7306_v52  ;;  %2645 = vmatmul.mubr.bf16.gmra.mrb[144].mxu1 %v1968_v27  ;;  %v4000_v3 = vadd.f32 %v3722_v9, %v3721_v21  ;;  %v7376_v36 = vadd.f32 %v7233_v42, %v6290_v60 }
 0x237   :  { %v7362_v1 = vpop.f32.mrb[174].mxu0  ;;  %v7364_v0 = vpop.f32.mrb[51].mxu1  ;;  %vm2945_vm3 = vcmp.gt.f32.partialorder %v7318_v12, 0.0  ;;  %v3201_v46 = vmul.f32 0.2, %v7318_v12  ;;  %vm1284_vm4 = vcmp.gt.f32.partialorder %v888_v29, 0.0  ;;  %v2389_v16 = vadd.f32 %v7235_v58, %v6716_v14 }
 0x238   :  { %v7368_v57 = vpop.f32.mrb[175].mxu0  ;;  %v1541_v25 = vmul.f32 0.2, %v890_v26  ;;  %v1540_v34 = vmul.f32 0.2, %v888_v29  ;;  %vm2946_vm5 = vcmp.gt.f32.partialorder %v2383_v49, 0.0  ;;  %4001 = vadd.xlane.f32.xlu1 %v4000_v3  ;;  %v3455_v31 = vsel %vm2943_vm14, %v7288_v5, %v3199_v55 }
 0x239   :  { %vm1285_vm6 = vcmp.gt.f32.partialorder %v890_v26, 0.0  ;;  %v3202_v2 = vmul.f32 0.2, %v2383_v49  ;;  %v7385_v48 = vadd.f32 %v7241_v23, %v6293_v61  ;;  %v7389_v20 = vadd.f32 %v7243_v32, %v6706_v10 }
 0x23a   :  { %v3456_v44 = vsel %vm2944_vm1, %v2379_v6, %v3200_v38  ;;  %v3723_v42 = vmul.f32 %v6728_v43, %v3455_v31  ;;  %vm2947_vm7 = vcmp.gt.f32.partialorder %v2387_v13, 0.0  ;;  %v1795_v5 = vsel %vm1283_vm2, %v7306_v52, %v1539_v30 }
 0x23b   :  { %v3724_v58 = vmul.f32 %v6740_v51, %v3456_v44  ;;  %v1797_v55 = vsel %vm1285_vm6, %v890_v26, %v1541_v25  ;;  %v7405_v32 = vadd.f32 %v7252_v35, %v6290_v60  ;;  %v900_v6 = vadd.f32 %v7262_v39, %v6293_v61 }
 0x23c   :  { %v7393_v15 = vpop.f32.mrb[52].mxu1  ;;  %v1971_v24 = vpack.c.bf16 %v1797_v55, %v1795_v5  ;;  %v1794_v62 = vsel %vm1282_vm15, %v7300_v63, %v1538_v7  ;;  %v1796_v18 = vsel %vm1284_vm4, %v888_v29, %v1540_v34  ;;  %v3457_v35 = vsel %vm2945_vm3, %v7318_v12, %v3201_v46 }
 0x23d   :  { %v7399_v23 = vpop.f32.mrb[176].mxu0  ;;  %v7401_v28 = vpop.f32.mrb[53].mxu1  ;;  %v4003_v26 = vadd.f32 %v3724_v58, %v3723_v42  ;;  %v3458_v45 = vsel %vm2946_vm5, %v2383_v49, %v3202_v2  ;;  %v2393_v63 = vadd.f32 %v7254_v22, %v6716_v14  ;;  %v1970_v27 = vpack.c.bf16 %v1796_v18, %v1794_v62 }
 0x23e   :  { %v7412_v19 = vpop.f32.mrb[177].mxu0  ;;  %v7414_v52 = vpop.f32.mrb[54].mxu1  ;;  %2654 = vmatprep.mubr.bf16.mxu1 %v1971_v24  ;;  %v3725_v21 = vmul.f32 %v6728_v43, %v3457_v35  ;;  %v3726_v9 = vmul.f32 %v6740_v51, %v3458_v45  ;;  %v3203_v7 = vmul.f32 0.2, %v2387_v13  ;;  %vm1286_vm8 = vcmp.gt.f32.partialorder %v7376_v36, 0.0 }
 0x23f   :  { %v7421_v40 = vpop.f32.mrb[178].mxu0  ;;  %v7423_v39 = vpop.f32.mrb[55].mxu1  ;;  %v1542_v12 = vmul.f32 0.2, %v7376_v36  ;;  %vm2948_vm9 = vcmp.gt.f32.partialorder %v2389_v16, 0.0  ;;  %4004 = vadd.xlane.f32.xlu0 %v4003_v26  ;;  %vm1287_vm0 = vcmp.gt.f32.partialorder %v7385_v48, 0.0  ;;  %2655 = vmatmul.mubr.bf16.gmra.mrb[148].mxu1 %v1970_v27  ;;  %v7439_v46 = vadd.f32 %v7275_v4, %v6706_v10 }
 0x240   :  { %v7429_v29 = vpop.f32.mrb[179].mxu0  ;;  %v3204_v49 = vmul.f32 0.2, %v2389_v16  ;;  %v1543_v22 = vmul.f32 0.2, %v7385_v48  ;;  %v4006_v38 = vadd.f32 %v3726_v9, %v3725_v21  ;;  %vm2949_vm10 = vcmp.gt.f32.partialorder %v7389_v20, 0.0 }
 0x241   :  { %v3205_v30 = vmul.f32 0.2, %v7389_v20  ;;  %v1545_v3 = vmul.f32 0.2, %v900_v6  ;;  %vm1288_vm11 = vcmp.gt.f32.partialorder %v7405_v32, 0.0  ;;  %vm2950_vm12 = vcmp.gt.f32.partialorder %v2393_v63, 0.0 }
 0x242   :  { %v1544_v25 = vmul.f32 0.2, %v7405_v32  ;;  %vm1289_vm13 = vcmp.gt.f32.partialorder %v900_v6, 0.0  ;;  %4007 = vadd.xlane.f32.xlu1 %v4006_v38  ;;  %v3206_v34 = vmul.f32 0.2, %v2393_v63  ;;  %v7445_v2 = vadd.f32 %v7280_v50, %v6290_v60 }
 0x243   :  { %v2399_v31 = vadd.f32 %v7282_v11, %v6716_v14  ;;  %v3459_v44 = vsel %vm2947_vm7, %v2387_v13, %v3203_v7  ;;  %v906_v58 = vadd.f32 %v7290_v47, %v6293_v61  ;;  %v7458_v5 = vadd.f32 %v7292_v8, %v6706_v10 }
 0x244   :  { %v7450_v42 = vpop.f32.mrb[56].mxu1  ;;  %v3460_v55 = vsel %vm2948_vm9, %v2389_v16, %v3204_v49  ;;  %v3727_v50 = vmul.f32 %v6728_v43, %v3459_v44  ;;  %vm2951_vm14 = vcmp.gt.f32.partialorder %v7439_v46, 0.0  ;;  %v1799_v47 = vsel %vm1287_vm0, %v7385_v48, %v1543_v22 }
 0x245   :  { %v7452_v4 = vpop.f32.mrb[180].mxu0  ;;  %v7462_v24 = vpop.f32.mrb[57].mxu1  ;;  %v3728_v13 = vmul.f32 %v6740_v51, %v3460_v55  ;;  %v1801_v62 = vsel %vm1289_vm13, %v900_v6, %v1545_v3  ;;  %v908_v16 = vadd.f32 %v7311_v17, %v6290_v60  ;;  %v910_v18 = vadd.f32 %v7324_v54, %v6293_v61 }
 0x246   :  { %v7464_v11 = vpop.f32.mrb[181].mxu0  ;;  %v7472_v8 = vpop.f32.mrb[58].mxu1  ;;  %v1973_v35 = vpack.c.bf16 %v1801_v62, %v1799_v47  ;;  %v1798_v45 = vsel %vm1286_vm8, %v7376_v36, %v1542_v12  ;;  %v1800_v21 = vsel %vm1288_vm11, %v7405_v32, %v1544_v25  ;;  %v3461_v17 = vsel %vm2949_vm10, %v7389_v20, %v3205_v30 }
 0x247   :  { %v7474_v26 = vpop.f32.mrb[182].mxu0  ;;  %v7483_v27 = vpop.f32.mrb[59].mxu1  ;;  %v4009_v6 = vadd.f32 %v3728_v13, %v3727_v50  ;;  %v3462_v54 = vsel %vm2950_vm12, %v2393_v63, %v3206_v34  ;;  %v2403_v9 = vadd.f32 %v7313_v41, %v6716_v14  ;;  %v1972_v36 = vpack.c.bf16 %v1800_v21, %v1798_v45 }
 0x248   :  { %v7485_v48 = vpop.f32.mrb[183].mxu0  ;;  %2664 = vmatprep.mubr.bf16.mxu1 %v1973_v35  ;;  %v3729_v7 = vmul.f32 %v6728_v43, %v3461_v17  ;;  %v3730_v12 = vmul.f32 %v6740_v51, %v3462_v54  ;;  %v3207_v49 = vmul.f32 0.2, %v7439_v46  ;;  %vm1290_vm15 = vcmp.gt.f32.partialorder %v7445_v2, 0.0 }
 0x249   :  { %v1546_v32 = vmul.f32 0.2, %v7445_v2  ;;  %vm2952_vm1 = vcmp.gt.f32.partialorder %v2399_v31, 0.0  ;;  %4010 = vadd.xlane.f32.xlu0 %v4009_v6  ;;  %v3208_v20 = vmul.f32 0.2, %v2399_v31  ;;  %vm1291_vm2 = vcmp.gt.f32.partialorder %v906_v58, 0.0  ;;  %2665 = vmatmul.mubr.bf16.gmra.mrb[152].mxu1 %v1972_v36 }
 0x24a   :  { %v1547_v63 = vmul.f32 0.2, %v906_v58  ;;  %v4012_v22 = vadd.f32 %v3730_v12, %v3729_v7  ;;  %vm2953_vm3 = vcmp.gt.f32.partialorder %v7458_v5, 0.0  ;;  %v3209_v38 = vmul.f32 0.2, %v7458_v5 }
 0x24b   :  { %v1549_v30 = vmul.f32 0.2, %v910_v18  ;;  %v7507_v3 = vadd.f32 %v7339_v56, %v6706_v10  ;;  %vm1292_vm4 = vcmp.gt.f32.partialorder %v908_v16, 0.0  ;;  %v1548_v25 = vmul.f32 0.2, %v908_v16 }
 0x24c   :  { %v7501_v41 = vpop.f32.mrb[60].mxu1  ;;  %vm2954_vm5 = vcmp.gt.f32.partialorder %v2403_v9, 0.0  ;;  %vm1293_vm6 = vcmp.gt.f32.partialorder %v910_v18, 0.0  ;;  %4013 = vadd.xlane.f32.xlu1 %v4012_v22  ;;  %v3210_v34 = vmul.f32 0.2, %v2403_v9  ;;  %v7511_v44 = vadd.f32 %v7348_v37, %v6290_v60 }
 0x24d   :  { %v2409_v55 = vadd.f32 %v7350_v53, %v6716_v14  ;;  %v3463_v50 = vsel %vm2951_vm14, %v7439_v46, %v3207_v49  ;;  %v7518_v13 = vpop.f32.mrb[184].mxu0  ;;  %v7520_v56 = vpop.f32.mrb[61].mxu1  ;;  %v7524_v47 = vadd.f32 %v7356_v59, %v6293_v61  ;;  %v7528_v62 = vadd.f32 %v7358_v33, %v6706_v10 }
 0x24e   :  { %v3464_v37 = vsel %vm2952_vm1, %v2399_v31, %v3208_v20  ;;  %v3731_v53 = vmul.f32 %v6728_v43, %v3463_v50  ;;  %v7532_v35 = vpop.f32.mrb[185].mxu0  ;;  %v7534_v45 = vpop.f32.mrb[62].mxu1  ;;  %vm2955_vm7 = vcmp.gt.f32.partialorder %v7507_v3, 0.0  ;;  %v1803_v6 = vsel %vm1291_vm2, %v906_v58, %v1547_v63 }
 0x24f   :  { %v3732_v46 = vmul.f32 %v6740_v51, %v3464_v37  ;;  %v1805_v59 = vsel %vm1293_vm6, %v910_v18, %v1549_v30  ;;  %v7540_v21 = vpop.f32.mrb[186].mxu0  ;;  %v7542_v33 = vpop.f32.mrb[63].mxu1  ;;  %v3211_v31 = vmul.f32 0.2, %v7507_v3  ;;  %v920_v17 = vadd.f32 %v7368_v57, %v6293_v61 }
 0x250   :  { %v1975_v54 = vpack.c.bf16 %v1805_v59, %v1803_v6  ;;  %v1802_v36 = vsel %vm1290_vm15, %v7445_v2, %v1546_v32  ;;  %v7550_v7 = vpop.f32.mrb[187].mxu0  ;;  %v1804_v58 = vsel %vm1292_vm4, %v908_v16, %v1548_v25  ;;  %v3465_v18 = vsel %vm2953_vm3, %v7458_v5, %v3209_v38 }
 0x251   :  { %v4015_v12 = vadd.f32 %v3732_v46, %v3731_v53  ;;  %v3466_v49 = vsel %vm2954_vm5, %v2403_v9, %v3210_v34  ;;  %v918_v20 = vadd.f32 %v7362_v1, %v6290_v60  ;;  %v1974_v57 = vpack.c.bf16 %v1804_v58, %v1802_v36 }
 0x252   :  { %2674 = vmatprep.mubr.bf16.mxu1 %v1975_v54  ;;  %v3733_v63 = vmul.f32 %v6728_v43, %v3465_v18  ;;  %v3734_v2 = vmul.f32 %v6740_v51, %v3466_v49  ;;  %vm1294_vm8 = vcmp.gt.f32.partialorder %v7511_v44, 0.0  ;;  %v1550_v16 = vmul.f32 0.2, %v7511_v44 }
 0x253   :  { %vm2956_vm9 = vcmp.gt.f32.partialorder %v2409_v55, 0.0  ;;  %v2413_v5 = vadd.f32 %v7364_v0, %v6716_v14  ;;  %4016 = vadd.xlane.f32.xlu0 %v4015_v12  ;;  %v3212_v22 = vmul.f32 0.2, %v2409_v55  ;;  %v1551_v38 = vmul.f32 0.2, %v7524_v47  ;;  %2675 = vmatmul.mubr.bf16.gmra.mrb[156].mxu1 %v1974_v57 }
 0x254   :  { %v7561_v32 = vpop.f32.mrb[64].mxu1  ;;  %v4018_v30 = vadd.f32 %v3734_v2, %v3733_v63  ;;  %vm1295_vm0 = vcmp.gt.f32.partialorder %v7524_v47, 0.0  ;;  %vm2957_vm10 = vcmp.gt.f32.partialorder %v7528_v62, 0.0  ;;  %v3213_v0 = vmul.f32 0.2, %v7528_v62 }
 0x255   :  { %v7567_v9 = vpop.f32.mrb[188].mxu0  ;;  %v7569_v1 = vpop.f32.mrb[65].mxu1  ;;  %v1553_v50 = vmul.f32 0.2, %v920_v17  ;;  %vm1296_vm11 = vcmp.gt.f32.partialorder %v918_v20, 0.0  ;;  %vm1297_vm12 = vcmp.gt.f32.partialorder %v920_v17, 0.0  ;;  %v2417_v53 = vadd.f32 %v7393_v15, %v6706_v10 }
 0x256   :  { %v7572_v25 = vpop.f32.mrb[189].mxu0  ;;  %v7574_v34 = vpop.f32.mrb[66].mxu1  ;;  %v1552_v37 = vmul.f32 0.2, %v918_v20  ;;  %4019 = vadd.xlane.f32.xlu1 %v4018_v30  ;;  %vm2958_vm13 = vcmp.gt.f32.partialorder %v2413_v5, 0.0  ;;  %v7583_v6 = vadd.f32 %v7399_v23, %v6290_v60  ;;  %v3467_v59 = vsel %vm2955_vm7, %v7507_v3, %v3211_v31 }
 0x257   :  { %v3214_v46 = vmul.f32 0.2, %v2413_v5  ;;  %v7588_v54 = vpop.f32.mrb[190].mxu0  ;;  %v7590_v36 = vpop.f32.mrb[67].mxu1  ;;  %v2419_v12 = vadd.f32 %v7401_v28, %v6716_v14  ;;  %v926_v15 = vadd.f32 %v7412_v19, %v6293_v61  ;;  %v3468_v58 = vsel %vm2956_vm9, %v2409_v55, %v3212_v22 }
 0x258   :  { %v3735_v18 = vmul.f32 %v6728_v43, %v3467_v59  ;;  %v7598_v23 = vpop.f32.mrb[191].mxu0  ;;  %v7602_v49 = vadd.f32 %v7414_v52, %v6706_v10  ;;  %v3736_v3 = vmul.f32 %v6740_v51, %v3468_v58  ;;  %v1807_v31 = vsel %vm1295_vm0, %v7524_v47, %v1551_v38 }
 0x259   :  { %v1809_v28 = vsel %vm1297_vm12, %v920_v17, %v1553_v50  ;;  %v3215_v57 = vmul.f32 0.2, %v2417_v53  ;;  %v930_v19 = vadd.f32 %v7429_v29, %v6293_v61  ;;  %v1806_v63 = vsel %vm1294_vm8, %v7511_v44, %v1550_v16 }
 0x25a   :  { %v1977_v55 = vpack.c.bf16 %v1809_v28, %v1807_v31  ;;  %v4021_v52 = vadd.f32 %v3736_v3, %v3735_v18  ;;  %v1808_v22 = vsel %vm1296_vm11, %v918_v20, %v1552_v37  ;;  %v3469_v47 = vsel %vm2957_vm10, %v7528_v62, %v3213_v0 }
 0x25b   :  { %v3470_v17 = vsel %vm2958_vm13, %v2413_v5, %v3214_v46  ;;  %v928_v29 = vadd.f32 %v7421_v40, %v6290_v60  ;;  %v1976_v44 = vpack.c.bf16 %v1808_v22, %v1806_v63  ;;  %v3737_v16 = vmul.f32 %v6728_v43, %v3469_v47 }
 0x25c   :  { %v7614_v2 = vpop.f32.mrb[68].mxu1  ;;  %2684 = vmatprep.mubr.bf16.mxu1 %v1977_v55  ;;  %v3738_v50 = vmul.f32 %v6740_v51, %v3470_v17  ;;  %vm2959_vm14 = vcmp.gt.f32.partialorder %v2417_v53, 0.0  ;;  %vm1298_vm15 = vcmp.gt.f32.partialorder %v7583_v6, 0.0  ;;  %v1554_v62 = vmul.f32 0.2, %v7583_v6  ;;  %4022 = vadd.xlane.f32.xlu0 %v4021_v52 }
 0x25d   :  { %v7621_v38 = vpop.f32.mrb[192].mxu0  ;;  %v7623_v30 = vpop.f32.mrb[69].mxu1  ;;  %v2423_v5 = vadd.f32 %v7423_v39, %v6716_v14  ;;  %vm2960_vm1 = vcmp.gt.f32.partialorder %v2419_v12, 0.0  ;;  %v3216_v46 = vmul.f32 0.2, %v2419_v12  ;;  %2685 = vmatmul.mubr.bf16.gmra.mrb[160].mxu1 %v1976_v44  ;;  %vm1299_vm2 = vcmp.gt.f32.partialorder %v926_v15, 0.0 }
 0x25e   :  { %v7629_v20 = vpop.f32.mrb[193].mxu0  ;;  %v7631_v37 = vpop.f32.mrb[70].mxu1  ;;  %v1555_v59 = vmul.f32 0.2, %v926_v15  ;;  %v4024_v58 = vadd.f32 %v3738_v50, %v3737_v16  ;;  %vm2961_vm3 = vcmp.gt.f32.partialorder %v7602_v49, 0.0  ;;  %vm1300_vm4 = vcmp.gt.f32.partialorder %v928_v29, 0.0 }
 0x25f   :  { %v7637_v40 = vpop.f32.mrb[194].mxu0  ;;  %v7639_v0 = vpop.f32.mrb[71].mxu1  ;;  %v3217_v3 = vmul.f32 0.2, %v7602_v49  ;;  %v1557_v31 = vmul.f32 0.2, %v930_v19  ;;  %v2427_v28 = vadd.f32 %v7450_v42, %v6706_v10  ;;  %v7649_v63 = vadd.f32 %v7452_v4, %v6290_v60 }
 0x260   :  { %v7641_v18 = vpop.f32.mrb[195].mxu0  ;;  %v1556_v39 = vmul.f32 0.2, %v928_v29  ;;  %vm1301_vm5 = vcmp.gt.f32.partialorder %v930_v19, 0.0  ;;  %4025 = vadd.xlane.f32.xlu1 %v4024_v58  ;;  %vm2962_vm6 = vcmp.gt.f32.partialorder %v2423_v5, 0.0  ;;  %v3471_v52 = vsel %vm2959_vm14, %v2417_v53, %v3215_v57 }
 0x261   :  { %v3218_v55 = vmul.f32 0.2, %v2423_v5  ;;  %v2429_v22 = vadd.f32 %v7462_v24, %v6716_v14  ;;  %v936_v47 = vadd.f32 %v7464_v11, %v6293_v61  ;;  %v3472_v17 = vsel %vm2960_vm1, %v2419_v12, %v3216_v46 }
 0x262   :  { %v3739_v44 = vmul.f32 %v6728_v43, %v3471_v52  ;;  %v7662_v42 = vadd.f32 %v7472_v8, %v6706_v10  ;;  %v3740_v4 = vmul.f32 %v6740_v51, %v3472_v17  ;;  %v1811_v53 = vsel %vm1299_vm2, %v926_v15, %v1555_v59 }
 0x263   :  { %v1813_v57 = vsel %vm1301_vm5, %v930_v19, %v1557_v31  ;;  %vm2963_vm7 = vcmp.gt.f32.partialorder %v2427_v28, 0.0  ;;  %v940_v11 = vadd.f32 %v7485_v48, %v6293_v61  ;;  %v1810_v46 = vsel %vm1298_vm15, %v7583_v6, %v1554_v62 }
 0x264   :  { %v7658_v16 = vpop.f32.mrb[72].mxu1  ;;  %v1979_v12 = vpack.c.bf16 %v1813_v57, %v1811_v53  ;;  %v4027_v52 = vadd.f32 %v3740_v4, %v3739_v44  ;;  %v1812_v15 = vsel %vm1300_vm4, %v928_v29, %v1556_v39  ;;  %v3473_v19 = vsel %vm2961_vm3, %v7602_v49, %v3217_v3 }
 0x265   :  { %v7666_v50 = vpop.f32.mrb[196].mxu0  ;;  %v7668_v24 = vpop.f32.mrb[73].mxu1  ;;  %v3474_v59 = vsel %vm2962_vm6, %v2423_v5, %v3218_v55  ;;  %v938_v6 = vadd.f32 %v7474_v26, %v6290_v60  ;;  %v1978_v62 = vpack.c.bf16 %v1812_v15, %v1810_v46  ;;  %v3741_v17 = vmul.f32 %v6728_v43, %v3473_v19 }
 0x266   :  { %v7675_v8 = vpop.f32.mrb[197].mxu0  ;;  %v7677_v58 = vpop.f32.mrb[74].mxu1  ;;  %2694 = vmatprep.mubr.bf16.mxu1 %v1979_v12  ;;  %v3742_v44 = vmul.f32 %v6740_v51, %v3474_v59  ;;  %v3219_v39 = vmul.f32 0.2, %v2427_v28  ;;  %vm1302_vm8 = vcmp.gt.f32.partialorder %v7649_v63, 0.0  ;;  %v2433_v5 = vadd.f32 %v7483_v27, %v6716_v14  ;;  %4028 = vadd.xlane.f32.xlu0 %v4027_v52 }
 0x267   :  { %v7684_v31 = vpop.f32.mrb[198].mxu0  ;;  %v7686_v48 = vpop.f32.mrb[75].mxu1  ;;  %v1558_v49 = vmul.f32 0.2, %v7649_v63  ;;  %vm2964_vm9 = vcmp.gt.f32.partialorder %v2429_v22, 0.0  ;;  %2695 = vmatmul.mubr.bf16.gmra.mrb[164].mxu1 %v1978_v62  ;;  %vm1303_vm0 = vcmp.gt.f32.partialorder %v936_v47, 0.0  ;;  %v2437_v12 = vadd.f32 %v7501_v41, %v6706_v10 }
 0x268   :  { %v7692_v29 = vpop.f32.mrb[199].mxu0  ;;  %v3220_v3 = vmul.f32 0.2, %v2429_v22  ;;  %v1559_v26 = vmul.f32 0.2, %v936_v47  ;;  %v4030_v55 = vadd.f32 %v3742_v44, %v3741_v17  ;;  %vm2965_vm10 = vcmp.gt.f32.partialorder %v7662_v42, 0.0 }
 0x269   :  { %v3221_v4 = vmul.f32 0.2, %v7662_v42  ;;  %v1561_v53 = vmul.f32 0.2, %v940_v11  ;;  %vm1304_vm11 = vcmp.gt.f32.partialorder %v938_v6, 0.0  ;;  %vm1305_vm12 = vcmp.gt.f32.partialorder %v940_v11, 0.0 }
 0x26a   :  { %v1560_v57 = vmul.f32 0.2, %v938_v6  ;;  %4031 = vadd.xlane.f32.xlu1 %v4030_v55  ;;  %vm2966_vm13 = vcmp.gt.f32.partialorder %v2433_v5, 0.0  ;;  %v3222_v27 = vmul.f32 0.2, %v2433_v5  ;;  %v7704_v46 = vadd.f32 %v7518_v13, %v6290_v60 }
 0x26b   :  { %v3475_v52 = vsel %vm2963_vm7, %v2427_v28, %v3219_v39  ;;  %v2439_v59 = vadd.f32 %v7520_v56, %v6716_v14  ;;  %v946_v62 = vadd.f32 %v7532_v35, %v6293_v61  ;;  %v3476_v41 = vsel %vm2964_vm9, %v2429_v22, %v3220_v3 }
 0x26c   :  { %v7707_v15 = vpop.f32.mrb[76].mxu1  ;;  %v3743_v17 = vmul.f32 %v6728_v43, %v3475_v52  ;;  %v7723_v28 = vadd.f32 %v7534_v45, %v6706_v10  ;;  %v3744_v39 = vmul.f32 %v6740_v51, %v3476_v41  ;;  %v1815_v55 = vsel %vm1303_vm0, %v936_v47, %v1559_v26 }
 0x26d   :  { %v7709_v19 = vpop.f32.mrb[200].mxu0  ;;  %v7717_v44 = vpop.f32.mrb[77].mxu1  ;;  %v1817_v56 = vsel %vm1305_vm12, %v940_v11, %v1561_v53  ;;  %vm2967_vm14 = vcmp.gt.f32.partialorder %v2437_v12, 0.0  ;;  %v950_v22 = vadd.f32 %v7550_v7, %v6293_v61  ;;  %v1814_v45 = vsel %vm1302_vm8, %v7649_v63, %v1558_v49 }
 0x26e   :  { %10814 = vst [vmem:[#allocation3_spill] sm:$0xff] %v7709_v19  ;;  %v7719_v13 = vpop.f32.mrb[201].mxu0  ;;  %v7728_v19 = vpop.f32.mrb[78].mxu1  ;;  %v1981_v3 = vpack.c.bf16 %v1817_v56, %v1815_v55  ;;  %v4033_v47 = vadd.f32 %v3744_v39, %v3743_v17  ;;  %v1816_v11 = vsel %vm1304_vm11, %v938_v6, %v1560_v57  ;;  %v3477_v26 = vsel %vm2965_vm10, %v7662_v42, %v3221_v4 }
 0x26f   :  { %v7730_v35 = vpop.f32.mrb[202].mxu0  ;;  %v7737_v52 = vpop.f32.mrb[79].mxu1  ;;  %v3478_v53 = vsel %vm2966_vm13, %v2433_v5, %v3222_v27  ;;  %v948_v7 = vadd.f32 %v7540_v21, %v6290_v60  ;;  %v1980_v55 = vpack.c.bf16 %v1816_v11, %v1814_v45  ;;  %v3745_v63 = vmul.f32 %v6728_v43, %v3477_v26 }
 0x270   :  { %v7739_v41 = vpop.f32.mrb[203].mxu0  ;;  %2704 = vmatprep.mubr.bf16.mxu1 %v1981_v3  ;;  %v3746_v49 = vmul.f32 %v6740_v51, %v3478_v53  ;;  %v3223_v56 = vmul.f32 0.2, %v2437_v12  ;;  %vm1306_vm15 = vcmp.gt.f32.partialorder %v7704_v46, 0.0  ;;  %v1562_v6 = vmul.f32 0.2, %v7704_v46  ;;  %4034 = vadd.xlane.f32.xlu0 %v4033_v47 }
 0x271   :  { %v2443_v57 = vadd.f32 %v7542_v33, %v6716_v14  ;;  %vm2968_vm1 = vcmp.gt.f32.partialorder %v2439_v59, 0.0  ;;  %v3224_v42 = vmul.f32 0.2, %v2439_v59  ;;  %v1563_v5 = vmul.f32 0.2, %v946_v62  ;;  %2705 = vmatmul.mubr.bf16.gmra.mrb[168].mxu1 %v1980_v55 }
 0x272   :  { %v4036_v21 = vadd.f32 %v3746_v49, %v3745_v63  ;;  %vm1307_vm2 = vcmp.gt.f32.partialorder %v946_v62, 0.0  ;;  %vm2969_vm3 = vcmp.gt.f32.partialorder %v7723_v28, 0.0  ;;  %v3225_v27 = vmul.f32 0.2, %v7723_v28 }
 0x273   :  { %v1565_v17 = vmul.f32 0.2, %v950_v22  ;;  %vm1308_vm4 = vcmp.gt.f32.partialorder %v948_v7, 0.0  ;;  %v1564_v39 = vmul.f32 0.2, %v948_v7  ;;  %vm1309_vm5 = vcmp.gt.f32.partialorder %v950_v22, 0.0 }
 0x274   :  { %v7754_v4 = vpop.f32.mrb[80].mxu1  ;;  %4037 = vadd.xlane.f32.xlu1 %v4036_v21  ;;  %v2447_v33 = vadd.f32 %v7561_v32, %v6706_v10  ;;  %vm2970_vm6 = vcmp.gt.f32.partialorder %v2443_v57, 0.0  ;;  %v3226_v3 = vmul.f32 0.2, %v2443_v57  ;;  %v7762_v45 = vadd.f32 %v7567_v9, %v6290_v60 }
 0x275   :  { %v3479_v47 = vsel %vm2967_vm14, %v2437_v12, %v3223_v56  ;;  %v7765_v11 = vpop.f32.mrb[204].mxu0  ;;  %v7767_v26 = vpop.f32.mrb[81].mxu1  ;;  %v2449_v53 = vadd.f32 %v7569_v1, %v6716_v14  ;;  %v956_v55 = vadd.f32 %v7572_v25, %v6293_v61  ;;  %v3480_v32 = vsel %vm2968_vm1, %v2439_v59, %v3224_v42 }
 0x276   :  { %10815 = vst [vmem:[#allocation4_spill] sm:$0xff] %v7767_v26  ;;  %v3747_v63 = vmul.f32 %v6728_v43, %v3479_v47  ;;  %v7775_v49 = vpop.f32.mrb[205].mxu0  ;;  %v7777_v9 = vpop.f32.mrb[82].mxu1  ;;  %v7781_v12 = vadd.f32 %v7574_v34, %v6706_v10  ;;  %v3748_v56 = vmul.f32 %v6740_v51, %v3480_v32  ;;  %v1819_v21 = vsel %vm1307_vm2, %v946_v62, %v1563_v5 }
 0x277   :  { %v1821_v1 = vsel %vm1309_vm5, %v950_v22, %v1565_v17  ;;  %v7786_v26 = vpop.f32.mrb[206].mxu0  ;;  %v7788_v25 = vpop.f32.mrb[83].mxu1  ;;  %vm2971_vm7 = vcmp.gt.f32.partialorder %v2447_v33, 0.0  ;;  %v960_v59 = vadd.f32 %v7598_v23, %v6293_v61  ;;  %v1818_v34 = vsel %vm1306_vm15, %v7704_v46, %v1562_v6 }
 0x278   :  { %v1983_v42 = vpack.c.bf16 %v1821_v1, %v1819_v21  ;;  %v7795_v47 = vpop.f32.mrb[207].mxu0  ;;  %v4039_v32 = vadd.f32 %v3748_v56, %v3747_v63  ;;  %v1820_v62 = vsel %vm1308_vm4, %v948_v7, %v1564_v39  ;;  %v3481_v22 = vsel %vm2969_vm3, %v7723_v28, %v3225_v27 }
 0x279   :  { %v3482_v5 = vsel %vm2970_vm6, %v2443_v57, %v3226_v3  ;;  %v958_v17 = vadd.f32 %v7588_v54, %v6290_v60  ;;  %v1982_v23 = vpack.c.bf16 %v1820_v62, %v1818_v34  ;;  %v3749_v21 = vmul.f32 %v6728_v43, %v3481_v22 }
 0x27a   :  { %2714 = vmatprep.mubr.bf16.mxu1 %v1983_v42  ;;  %v3750_v46 = vmul.f32 %v6740_v51, %v3482_v5  ;;  %v3227_v63 = vmul.f32 0.2, %v2447_v33  ;;  %v1566_v7 = vmul.f32 0.2, %v7762_v45  ;;  %v2453_v39 = vadd.f32 %v7590_v36, %v6716_v14  ;;  %4040 = vadd.xlane.f32.xlu0 %v4039_v32 }
 0x27b   :  { %vm1310_vm8 = vcmp.gt.f32.partialorder %v7762_v45, 0.0  ;;  %vm2972_vm9 = vcmp.gt.f32.partialorder %v2449_v53, 0.0  ;;  %v3228_v54 = vmul.f32 0.2, %v2449_v53  ;;  %2715 = vmatmul.mubr.bf16.gmra.mrb[172].mxu1 %v1982_v23  ;;  %vm1311_vm0 = vcmp.gt.f32.partialorder %v956_v55, 0.0 }
 0x27c   :  { %v7806_v6 = vpop.f32.mrb[84].mxu1  ;;  %v4042_v27 = vadd.f32 %v3750_v46, %v3749_v21  ;;  %v1567_v1 = vmul.f32 0.2, %v956_v55  ;;  %vm2973_vm10 = vcmp.gt.f32.partialorder %v7781_v12, 0.0  ;;  %v1569_v36 = vmul.f32 0.2, %v960_v59 }
 0x27d   :  { %v7811_v28 = vpop.f32.mrb[208].mxu0  ;;  %v7813_v57 = vpop.f32.mrb[85].mxu1  ;;  %v3229_v42 = vmul.f32 0.2, %v7781_v12  ;;  %vm1312_vm11 = vcmp.gt.f32.partialorder %v958_v17, 0.0  ;;  %vm1313_vm12 = vcmp.gt.f32.partialorder %v960_v59, 0.0  ;;  %v2457_v62 = vadd.f32 %v7614_v2, %v6706_v10 }
 0x27e   :  { %v7816_v3 = vpop.f32.mrb[209].mxu0  ;;  %v7818_v56 = vpop.f32.mrb[86].mxu1  ;;  %v1568_v34 = vmul.f32 0.2, %v958_v17  ;;  %4043 = vadd.xlane.f32.xlu1 %v4042_v27  ;;  %vm2974_vm13 = vcmp.gt.f32.partialorder %v2453_v39, 0.0  ;;  %v3483_v22 = vsel %vm2971_vm7, %v2447_v33, %v3227_v63  ;;  %v7829_v23 = vadd.f32 %v7621_v38, %v6290_v60 }
 0x27f   :  { %10816 = vst [vmem:[#allocation5_spill] sm:$0xff] %v7816_v3  ;;  %10817 = vst [vmem:[#allocation6_spill] sm:$0xff] %v7818_v56  ;;  %v3230_v32 = vmul.f32 0.2, %v2453_v39  ;;  %v7825_v5 = vpop.f32.mrb[210].mxu0  ;;  %v2459_v21 = vadd.f32 %v7623_v30, %v6716_v14  ;;  %v3484_v46 = vsel %vm2972_vm9, %v2449_v53, %v3228_v54  ;;  %v3751_v27 = vmul.f32 %v6728_v43, %v3483_v22  ;;  %v7835_v56 = vpop.f32.mrb[87].mxu1 }
 0x280   :  { %v7837_v3 = vpop.f32.mrb[211].mxu0  ;;  %v966_v2 = vadd.f32 %v7629_v20, %v6293_v61  ;;  %v3752_v33 = vmul.f32 %v6740_v51, %v3484_v46  ;;  %v1823_v63 = vsel %vm1311_vm0, %v956_v55, %v1567_v1  ;;  %v1825_v38 = vsel %vm1313_vm12, %v960_v59, %v1569_v36 }
 0x281   :  { %10818 = vst [vmem:[#allocation7_spill] sm:$0xff] %v7837_v3  ;;  %v7846_v30 = vadd.f32 %v7631_v37, %v6706_v10  ;;  %v970_v53 = vadd.f32 %v7641_v18, %v6293_v61  ;;  %v1985_v54 = vpack.c.bf16 %v1825_v38, %v1823_v63  ;;  %v1822_v22 = vsel %vm1310_vm8, %v7762_v45, %v1566_v7 }
 0x282   :  { %v4045_v20 = vadd.f32 %v3752_v33, %v3751_v27  ;;  %v1824_v46 = vsel %vm1312_vm11, %v958_v17, %v1568_v34  ;;  %v3485_v55 = vsel %vm2973_vm10, %v7781_v12, %v3229_v42  ;;  %v3486_v37 = vsel %vm2974_vm13, %v2453_v39, %v3230_v32 }
 0x283   :  { %v968_v18 = vadd.f32 %v7637_v40, %v6290_v60  ;;  %2724 = vmatprep.mubr.bf16.mxu1 %v1985_v54  ;;  %v1984_v45 = vpack.c.bf16 %v1824_v46, %v1822_v22  ;;  %v3753_v7 = vmul.f32 %v6728_v43, %v3485_v55  ;;  %v3754_v36 = vmul.f32 %v6740_v51, %v3486_v37 }
 0x284   :  { %v7853_v3 = vpop.f32.mrb[88].mxu1  ;;  %vm2975_vm14 = vcmp.gt.f32.partialorder %v2457_v62, 0.0  ;;  %v3231_v34 = vmul.f32 0.2, %v2457_v62  ;;  %vm1314_vm15 = vcmp.gt.f32.partialorder %v7829_v23, 0.0  ;;  %v2463_v12 = vadd.f32 %v7639_v0, %v6716_v14  ;;  %4046 = vadd.xlane.f32.xlu0 %v4045_v20 }
 0x285   :  { %v7860_v59 = vpop.f32.mrb[212].mxu0  ;;  %v7862_v1 = vpop.f32.mrb[89].mxu1  ;;  %v1570_v40 = vmul.f32 0.2, %v7829_v23  ;;  %v3232_v32 = vmul.f32 0.2, %v2459_v21  ;;  %2725 = vmatmul.mubr.bf16.gmra.mrb[176].mxu1 %v1984_v45  ;;  %v4048_v27 = vadd.f32 %v3754_v36, %v3753_v7  ;;  %v7881_v33 = vstv %s10807_s6 }
 0x286   :  { %v7868_v17 = vpop.f32.mrb[213].mxu0  ;;  %v7873_v39 = vpop.f32.mrb[90].mxu1  ;;  %vm2976_vm1 = vcmp.gt.f32.partialorder %v2459_v21, 0.0  ;;  %vm1315_vm2 = vcmp.gt.f32.partialorder %v966_v2, 0.0  ;;  %v1571_v0 = vmul.f32 0.2, %v966_v2  ;;  %v3487_v55 = vsel %vm2975_vm14, %v2457_v62, %v3231_v34 }
 0x287   :  { %10819 = vst [vmem:[#allocation8_spill] sm:$0xff] %v7873_v39  ;;  %v7875_v42 = vpop.f32.mrb[214].mxu0  ;;  %v7883_v63 = vpop.f32.mrb[91].mxu1  ;;  %v1573_v54 = vmul.f32 0.2, %v970_v53  ;;  %vm2977_vm3 = vcmp.gt.f32.partialorder %v7846_v30, 0.0  ;;  %4049 = vadd.xlane.f32.xlu1 %v4048_v27  ;;  %v2467_v37 = vadd.f32 %v7658_v16, %v6706_v10  ;;  %v7894_v45 = vadd.f32 %v7666_v50, %v6290_v60 }
 0x288   :  { %10820 = vst [vmem:[#allocation9_spill] sm:$0xff] %v7875_v42  ;;  %10821 = vst [vmem:[#allocation10_spill] sm:$0xff] %v7883_v63  ;;  %v7885_v38 = vpop.f32.mrb[215].mxu0  ;;  %v3233_v22 = vmul.f32 0.2, %v7846_v30  ;;  %vm1316_vm4 = vcmp.gt.f32.partialorder %v968_v18, 0.0  ;;  %v3488_v7 = vsel %vm2976_vm1, %v2459_v21, %v3232_v32  ;;  %v3755_v36 = vmul.f32 %v6728_v43, %v3487_v55 }
 0x289   :  { %10822 = vst [vmem:[#allocation11_spill] sm:$0xff] %v7885_v38  ;;  %vm1317_vm5 = vcmp.gt.f32.partialorder %v970_v53, 0.0  ;;  %v1572_v20 = vmul.f32 0.2, %v968_v18  ;;  %vm2978_vm6 = vcmp.gt.f32.partialorder %v2463_v12, 0.0  ;;  %v3951_v38 = vpop.xlane.xlu0 %3950  ;;  %v2469_v27 = vadd.f32 %v7668_v24, %v6716_v14 }
 0x28a   :  { %v3234_v46 = vmul.f32 0.2, %v2463_v12  ;;  %v3756_v42 = vmul.f32 %v6740_v51, %v3488_v7  ;;  %v1827_v62 = vsel %vm1315_vm2, %v966_v2, %v1571_v0  ;;  %v1829_v34 = vsel %vm1317_vm5, %v970_v53, %v1573_v54 }
 0x28b   :  { %v7909_v50 = vadd.f32 %v7675_v8, %v6293_v61  ;;  %v7913_v21 = vadd.f32 %v7677_v58, %v6706_v10  ;;  %v1987_v32 = vpack.c.bf16 %v1829_v34, %v1827_v62  ;;  %v1826_v24 = vsel %vm1314_vm15, %v7829_v23, %v1570_v40  ;;  %v3954_v34 = vpop.xlane.xlu1 %3953 }
 0x28c   :  { %v7897_v63 = vpop.f32.mrb[92].mxu1  ;;  %v4051_v53 = vadd.f32 %v3756_v42, %v3755_v36  ;;  %v1828_v0 = vsel %vm1316_vm4, %v968_v18, %v1572_v20  ;;  %v3489_v8 = vsel %vm2977_vm3, %v7846_v30, %v3233_v22  ;;  %v3490_v54 = vsel %vm2978_vm6, %v2463_v12, %v3234_v46 }
 0x28d   :  { %v7903_v39 = vpop.f32.mrb[216].mxu0  ;;  %v7905_v16 = vpop.f32.mrb[93].mxu1  ;;  %vm2979_vm7 = vcmp.gt.f32.partialorder %v2467_v37, 0.0  ;;  %2734 = vmatprep.mubr.bf16.mxu1 %v1987_v32  ;;  %v1986_v23 = vpack.c.bf16 %v1828_v0, %v1826_v24  ;;  %v3757_v40 = vmul.f32 %v6728_v43, %v3489_v8  ;;  %v3758_v62 = vmul.f32 %v6740_v51, %v3490_v54 }
 0x28e   :  { %v7918_v55 = vpop.f32.mrb[217].mxu0  ;;  %v7920_v2 = vpop.f32.mrb[94].mxu1  ;;  %v3235_v18 = vmul.f32 0.2, %v2467_v37  ;;  %v978_v20 = vadd.f32 %v7684_v31, %v6290_v60  ;;  %4052 = vadd.xlane.f32.xlu0 %v4051_v53  ;;  %v980_v30 = vadd.f32 %v7692_v29, %v6293_v61  ;;  %v4323_v12 = vadd.f32 %v7881_v33, %v3951_v38 }
 0x28f   :  { %v7927_v58 = vpop.f32.mrb[218].mxu0  ;;  %v7929_v7 = vpop.f32.mrb[95].mxu1  ;;  %vm1318_vm8 = vcmp.gt.f32.partialorder %v7894_v45, 0.0  ;;  %v1574_v22 = vmul.f32 0.2, %v7894_v45  ;;  %2735 = vmatmul.mubr.bf16.gmra.mrb[180].mxu1 %v1986_v23  ;;  %v4054_v36 = vadd.f32 %v3758_v62, %v3757_v40  ;;  %vm2980_vm9 = vcmp.gt.f32.partialorder %v2469_v27, 0.0 }
 0x290   :  { %v7933_v42 = vpop.f32.mrb[219].mxu0  ;;  %v3236_v46 = vmul.f32 0.2, %v2469_v27  ;;  %vm1319_vm0 = vcmp.gt.f32.partialorder %v7909_v50, 0.0  ;;  %v2473_v31 = vadd.f32 %v7686_v48, %v6716_v14  ;;  %v4451_v32 = vsub.f32 0.0, %v4323_v12 }
 0x291   :  { %v1575_v24 = vmul.f32 0.2, %v7909_v50  ;;  %vm2981_vm10 = vcmp.gt.f32.partialorder %v7913_v21, 0.0  ;;  %v3237_v29 = vmul.f32 0.2, %v7913_v21  ;;  %4055 = vadd.xlane.f32.xlu1 %v4054_v36  ;;  %vm1320_vm11 = vcmp.gt.f32.partialorder %v978_v20, 0.0 }
 0x292   :  { %v1577_v53 = vmul.f32 0.2, %v980_v30  ;;  %v4585_v0 = vmul.f32 1.442695, %v4451_v32  ;;  %v4324_v8 = vadd.f32 %v7881_v33, %v3954_v34  ;;  %v1576_v23 = vmul.f32 0.2, %v978_v20 }
 0x293   :  { %vm1321_vm12 = vcmp.gt.f32.partialorder %v980_v30, 0.0  ;;  %v3491_v48 = vsel %vm2979_vm7, %v2467_v37, %v3235_v18  ;;  %v3492_v40 = vsel %vm2980_vm9, %v2469_v27, %v3236_v46  ;;  %vm2982_vm13 = vcmp.gt.f32.partialorder %v2473_v31, 0.0  ;;  %v10829_v37 = vld [vmem:[#allocation3_spill] sm:$0xff] }
 0x294   :  { %v7948_v38 = vpop.f32.mrb[96].mxu1  ;;  %v7961_v36 = vadd.f32 %v7707_v15, %v6706_v10  ;;  %5405 = vpow2.f32 %v4585_v0  ;;  %v4452_v32 = vsub.f32 0.0, %v4324_v8  ;;  %v7969_v18 = vadd.f32 %v10829_v37, %v6290_v60 }
 0x295   :  { %10823 = vst [vmem:[#allocation12_spill] sm:$0xff] %v7948_v38  ;;  %v7951_v54 = vpop.f32.mrb[220].mxu0  ;;  %v7955_v62 = vpop.f32.mrb[97].mxu1  ;;  %v3238_v38 = vmul.f32 0.2, %v2473_v31  ;;  %v3759_v27 = vmul.f32 %v6728_v43, %v3491_v48  ;;  %v3760_v46 = vmul.f32 %v6740_v51, %v3492_v40  ;;  %v2479_v15 = vadd.f32 %v7717_v44, %v6716_v14 }
 0x296   :  { %10824 = vst [vmem:[#allocation13_spill] sm:$0xff] %v7951_v54  ;;  %10825 = vst [vmem:[#allocation14_spill] sm:$0xff] %v7955_v62  ;;  %v7957_v12 = vpop.f32.mrb[221].mxu0  ;;  %v7963_v34 = vpop.f32.mrb[98].mxu1  ;;  %v4587_v0 = vmul.f32 1.442695, %v4452_v32  ;;  %v1831_v8 = vsel %vm1319_vm0, %v7909_v50, %v1575_v24  ;;  %v1830_v48 = vsel %vm1318_vm8, %v7894_v45, %v1574_v22  ;;  %v1832_v40 = vsel %vm1320_vm11, %v978_v20, %v1576_v23 }
 0x297   :  { %10826 = vst [vmem:[#allocation15_spill] sm:$0xff] %v7957_v12  ;;  %10827 = vst [vmem:[#allocation16_spill] sm:$0xff] %v7963_v34  ;;  %v7965_v54 = vpop.f32.mrb[222].mxu0  ;;  %v7973_v12 = vpop.f32.mrb[99].mxu1  ;;  %v4057_v37 = vadd.f32 %v3760_v46, %v3759_v27  ;;  %vm2983_vm14 = vcmp.gt.f32.partialorder %v7961_v36, 0.0  ;;  %v7990_v44 = vadd.f32 %v7719_v13, %v6293_v61  ;;  %v1988_v32 = vpack.c.bf16 %v1832_v40, %v1830_v48 }
 0x298   :  { %10828 = vst [vmem:[#allocation17_spill] sm:$0xff] %v7965_v54  ;;  %10830 = vst [vmem:[#allocation3_spill] sm:$0xff] %v7973_v12  ;;  %v7975_v62 = vpop.f32.mrb[223].mxu0  ;;  %v1833_v54 = vsel %vm1321_vm12, %v980_v30, %v1577_v53  ;;  %v3957_v12 = vpop.xlane.xlu0 %3956  ;;  %5407 = vpow2.f32 %v4587_v0  ;;  %v3239_v50 = vmul.f32 0.2, %v7961_v36  ;;  %v7995_v30 = vadd.f32 %v7728_v19, %v6706_v10 }
 0x299   :  { %v1989_v34 = vpack.c.bf16 %v1833_v54, %v1831_v8  ;;  %4058 = vadd.xlane.f32.xlu0 %v4057_v37  ;;  %v3493_v45 = vsel %vm2981_vm10, %v7913_v21, %v3237_v29  ;;  %v3494_v20 = vsel %vm2982_vm13, %v2473_v31, %v3238_v38  ;;  %v3960_v22 = vpop.xlane.xlu1 %3959  ;;  %vm1322_vm15 = vcmp.gt.f32.partialorder %v7969_v18, 0.0 }
 0x29a   :  { %v8006_v13 = vadd.f32 %v7730_v35, %v6290_v60  ;;  %v3761_v19 = vmul.f32 %v6728_v43, %v3493_v45  ;;  %v3762_v53 = vmul.f32 %v6740_v51, %v3494_v20  ;;  %v4325_v54 = vadd.f32 %v7881_v33, %v3957_v12 }
 0x29b   :  { %2744 = vmatprep.mubr.bf16.mxu1 %v1989_v34  ;;  %v1578_v31 = vmul.f32 0.2, %v7969_v18  ;;  %v3240_v29 = vmul.f32 0.2, %v2479_v15  ;;  %v990_v38 = vadd.f32 %v7739_v41, %v6293_v61  ;;  %vm2984_vm1 = vcmp.gt.f32.partialorder %v2479_v15, 0.0 }
 0x29c   :  { %v8001_v24 = vpop.f32.mrb[100].mxu1  ;;  %2745 = vmatmul.mubr.bf16.gmra.mrb[184].mxu1 %v1988_v32  ;;  %vm1323_vm2 = vcmp.gt.f32.partialorder %v7990_v44, 0.0  ;;  %v4060_v27 = vadd.f32 %v3762_v53, %v3761_v19  ;;  %v4453_v46 = vsub.f32 0.0, %v4325_v54  ;;  %v1579_v0 = vmul.f32 0.2, %v7990_v44 }
 0x29d   :  { %v8011_v23 = vpop.f32.mrb[224].mxu0  ;;  %v8013_v21 = vpop.f32.mrb[101].mxu1  ;;  %vm2985_vm3 = vcmp.gt.f32.partialorder %v7995_v30, 0.0  ;;  %v3241_v8 = vmul.f32 0.2, %v7995_v30  ;;  %v2483_v41 = vadd.f32 %v7737_v52, %v6716_v14  ;;  %vm1324_vm4 = vcmp.gt.f32.partialorder %v8006_v13, 0.0 }
 0x29e   :  { %v8018_v34 = vpop.f32.mrb[225].mxu0  ;;  %v8020_v35 = vpop.f32.mrb[102].mxu1  ;;  %4061 = vadd.xlane.f32.xlu1 %v4060_v27  ;;  %v8033_v48 = vadd.f32 %v7754_v4, %v6706_v10  ;;  %v4589_v40 = vmul.f32 1.442695, %v4453_v46  ;;  %v4326_v32 = vadd.f32 %v7881_v33, %v3960_v22  ;;  %v1581_v53 = vmul.f32 0.2, %v990_v38 }
 0x29f   :  { %v8023_v12 = vpop.f32.mrb[226].mxu0  ;;  %v5406_v37 = vpop.eup %5405  ;;  %v3495_v52 = vsel %vm2983_vm14, %v7961_v36, %v3239_v50  ;;  %v3496_v54 = vsel %vm2984_vm1, %v2479_v15, %v3240_v29  ;;  %v1580_v27 = vmul.f32 0.2, %v8006_v13  ;;  %vm1325_vm5 = vcmp.gt.f32.partialorder %v990_v38, 0.0  ;;  %v10835_v36 = vld [vmem:[#allocation4_spill] sm:$0xff] }
 0x2a0   :  { %10831 = vst [vmem:[#allocation18_spill] sm:$0xff] %v8023_v12  ;;  %v8036_v45 = vpop.f32.mrb[103].mxu1  ;;  %v8038_v20 = vpop.f32.mrb[227].mxu0  ;;  %v4835_v19 = vadd.f32 1.0, %v5406_v37  ;;  %5409 = vpow2.f32 %v4589_v40  ;;  %v4454_v4 = vsub.f32 0.0, %v4326_v32  ;;  %vm5085_vm6 = vcmask 7168  }
 0x2a1   :  { %10832 = vst [vmem:[#allocation19_spill] sm:$0xff] %v8036_v45  ;;  %10833 = vst [vmem:[#allocation20_spill] sm:$0xff] %v8038_v20  ;;  %vm2986_vm7 = vcmp.gt.f32.partialorder %v2483_v41, 0.0  ;;  %v3242_v22 = vmul.f32 0.2, %v2483_v41  ;;  %v8047_v46 = vadd.f32 %v7765_v11, %v6290_v60  ;;  %vm2987_vm8 = vcmp.gt.f32.partialorder %v8033_v48, 0.0  ;;  %v3963_v32 = vpop.xlane.xlu0 %3962 }
 0x2a2   :  { %5411 = vrcp.f32 %v4835_v19  ;;  %v5408_v20 = vpop.eup %5407  ;;  %v8054_v15 = vadd.f32 %v10835_v36, %v6716_v14  ;;  %v4591_v50 = vmul.f32 1.442695, %v4454_v4  ;;  %v3763_v29 = vmul.f32 %v6728_v43, %v3495_v52 }
 0x2a3   :  { %v3764_v40 = vmul.f32 %v6740_v51, %v3496_v54  ;;  %v4836_v45 = vadd.f32 1.0, %v5408_v20  ;;  %v8062_v11 = vadd.f32 %v7775_v49, %v6293_v61  ;;  %v1837_v36 = vsel %vm1325_vm5, %v990_v38, %v1581_v53 }
 0x2a4   :  { %v8049_v37 = vpop.f32.mrb[104].mxu1  ;;  %v8074_v52 = vadd.f32 %v7777_v9, %v6706_v10  ;;  %5413 = vpow2.f32 %v4591_v50  ;;  %v1834_v38 = vsel %vm1322_vm15, %v7969_v18, %v1578_v31  ;;  %v1836_v9 = vsel %vm1324_vm4, %v8006_v13, %v1580_v27 }
 0x2a5   :  { %10834 = vst [vmem:[#allocation21_spill] sm:$0xff] %v8049_v37  ;;  %v8058_v19 = vpop.f32.mrb[228].mxu0  ;;  %v1835_v37 = vsel %vm1323_vm2, %v7990_v44, %v1579_v0  ;;  %v8068_v12 = vpop.f32.mrb[105].mxu1  ;;  %v4063_v20 = vadd.f32 %v3764_v40, %v3763_v29  ;;  %5415 = vrcp.f32 %v4836_v45  ;;  %v8082_v44 = vadd.f32 %v7786_v26, %v6290_v60 }
 0x2a6   :  { %10836 = vst [vmem:[#allocation4_spill] sm:$0xff] %v8058_v19  ;;  %v8070_v4 = vpop.f32.mrb[229].mxu0  ;;  %v1991_v54 = vpack.c.bf16 %v1837_v36, %v1835_v37  ;;  %v8076_v19 = vpop.f32.mrb[106].mxu1  ;;  %v3243_v37 = vmul.f32 0.2, %v8033_v48  ;;  %v1990_v45 = vpack.c.bf16 %v1836_v9, %v1834_v38  ;;  %v3497_v26 = vsel %vm2985_vm3, %v7995_v30, %v3241_v8 }
 0x2a7   :  { %v8078_v49 = vpop.f32.mrb[230].mxu0  ;;  %v8090_v0 = vpop.f32.mrb[107].mxu1  ;;  %4064 = vadd.xlane.f32.xlu0 %v4063_v20  ;;  %v3498_v50 = vsel %vm2986_vm7, %v2483_v41, %v3242_v22  ;;  %v8101_v18 = vadd.f32 %v7788_v25, %v6716_v14  ;;  %v3765_v13 = vmul.f32 %v6728_v43, %v3497_v26  ;;  %v4327_v27 = vadd.f32 %v7881_v33, %v3963_v32 }
 0x2a8   :  { %v8092_v53 = vpop.f32.mrb[231].mxu0  ;;  %2754 = vmatprep.mubr.bf16.mxu1 %v1991_v54  ;;  %v3766_v31 = vmul.f32 %v6740_v51, %v3498_v50  ;;  %vm1326_vm9 = vcmp.gt.f32.partialorder %v8047_v46, 0.0  ;;  %v1582_v29 = vmul.f32 0.2, %v8047_v46  ;;  %vm2988_vm0 = vcmp.gt.f32.partialorder %v8054_v15, 0.0  ;;  %v3966_v22 = vpop.xlane.xlu1 %3965 }
 0x2a9   :  { %v1000_v30 = vadd.f32 %v7795_v47, %v6293_v61  ;;  %2755 = vmatmul.mubr.bf16.gmra.mrb[188].mxu1 %v1990_v45  ;;  %v3244_v8 = vmul.f32 0.2, %v8054_v15  ;;  %vm1327_vm10 = vcmp.gt.f32.partialorder %v8062_v11, 0.0  ;;  %v4455_v41 = vsub.f32 0.0, %v4327_v27 }
 0x2aa   :  { %v4066_v25 = vadd.f32 %v3766_v31, %v3765_v13  ;;  %v5410_v32 = vpop.eup %5409  ;;  %v1583_v36 = vmul.f32 0.2, %v8062_v11  ;;  %vm2989_vm11 = vcmp.gt.f32.partialorder %v8074_v52, 0.0  ;;  %v3245_v20 = vmul.f32 0.2, %v8074_v52 }
 0x2ab   :  { %vm1328_vm12 = vcmp.gt.f32.partialorder %v8082_v44, 0.0  ;;  %v4837_v54 = vadd.f32 1.0, %v5410_v32  ;;  %v1584_v38 = vmul.f32 0.2, %v8082_v44  ;;  %vm2990_vm13 = vcmp.gt.f32.partialorder %v8101_v18, 0.0 }
 0x2ac   :  { %v8113_v40 = vpop.f32.mrb[108].mxu1  ;;  %v5412_v47 = vpop.eup %5411  ;;  %4067 = vadd.xlane.f32.xlu1 %v4066_v25  ;;  %v4593_v9 = vmul.f32 1.442695, %v4455_v41  ;;  %v3246_v45 = vmul.f32 0.2, %v8101_v18  ;;  %vm1329_vm14 = vcmp.gt.f32.partialorder %v1000_v30, 0.0  ;;  %v8128_v26 = vadd.f32 %v7806_v6, %v6706_v10 }
 0x2ad   :  { %10837 = vst [vmem:[#allocation22_spill] sm:$0xff] %v8113_v40  ;;  %5092 = vst.msk [vmem:[%s10808_s7 + $0x30] sm:$0xff] %vm5085_vm6, %v5412_v47  ;;  %v4328_v50 = vadd.f32 %v7881_v33, %v3966_v22  ;;  %v8131_v13 = vpop.f32.mrb[232].mxu0  ;;  %v8133_v31 = vpop.f32.mrb[109].mxu1  ;;  %5417 = vrcp.f32 %v4837_v54  ;;  %v1585_v27 = vmul.f32 0.2, %v1000_v30  ;;  %v3499_v25 = vsel %vm2987_vm8, %v8033_v48, %v3243_v37 }
 0x2ae   :  { %10838 = vst [vmem:[#allocation23_spill] sm:$0xff] %v8131_v13  ;;  %10839 = vst [vmem:[#allocation24_spill] sm:$0xff] %v8133_v31  ;;  %v3500_v41 = vsel %vm2988_vm0, %v8054_v15, %v3244_v8  ;;  %v8141_v32 = vpop.f32.mrb[233].mxu0  ;;  %v5414_v6 = vpop.eup %5413  ;;  %5419 = vpow2.f32 %v4593_v9  ;;  %v8145_v22 = vadd.f32 %v7811_v28, %v6290_v60  ;;  %v8149_v47 = vadd.f32 %v7813_v57, %v6716_v14  ;;  %v10842_v15 = vld [vmem:[#allocation5_spill] sm:$0xff]  ;;  %v10843_v9 = vld [vmem:[#allocation6_spill] sm:$0xff] }
 0x2af   :  { %10840 = vst [vmem:[#allocation25_spill] sm:$0xff] %v8141_v32  ;;  %v4456_v54 = vsub.f32 0.0, %v4328_v50  ;;  %v8151_v31 = vpop.f32.mrb[110].mxu1  ;;  %v8153_v48 = vpop.f32.mrb[234].mxu0  ;;  %v4838_v13 = vadd.f32 1.0, %v5414_v6  ;;  %v8157_v8 = vadd.f32 %v10842_v15, %v6293_v61  ;;  %v8161_v32 = vadd.f32 %v10843_v9, %v6706_v10 }
 0x2b0   :  { %10841 = vst [vmem:[#allocation26_spill] sm:$0xff] %v8153_v48  ;;  %v5416_v37 = vpop.eup %5415  ;;  %v3767_v28 = vmul.f32 %v6728_v43, %v3499_v25  ;;  %v8164_v40 = vpop.f32.mrb[111].mxu1  ;;  %vm2991_vm15 = vcmp.gt.f32.partialorder %v8128_v26, 0.0  ;;  %v3247_v50 = vmul.f32 0.2, %v8128_v26  ;;  %v3768_v15 = vmul.f32 %v6740_v51, %v3500_v41 }
 0x2b1   :  { %10844 = vst [vmem:[#allocation5_spill] sm:$0xff] %v8164_v40  ;;  %v8166_v57 = vpop.f32.mrb[235].mxu0  ;;  %5093 = vst.msk [vmem:[%s10808_s7 + $0x38] sm:$0xff] %vm5085_vm6, %v5416_v37  ;;  %v4595_v6 = vmul.f32 1.442695, %v4456_v54  ;;  %5421 = vrcp.f32 %v4838_v13  ;;  %v8177_v25 = vadd.f32 %v7825_v5, %v6290_v60  ;;  %v1841_v9 = vsel %vm1329_vm14, %v1000_v30, %v1585_v27  ;;  %v3969_v40 = vpop.xlane.xlu0 %3968 }
 0x2b2   :  { %10845 = vst [vmem:[#allocation6_spill] sm:$0xff] %v8166_v57  ;;  %v1840_v57 = vsel %vm1328_vm12, %v8082_v44, %v1584_v38  ;;  %v4069_v37 = vadd.f32 %v3768_v15, %v3767_v28  ;;  %v1839_v54 = vsel %vm1327_vm10, %v8062_v11, %v1583_v36  ;;  %v1838_v13 = vsel %vm1326_vm9, %v8047_v46, %v1582_v29 }
 0x2b3   :  { %5423 = vpow2.f32 %v4595_v6  ;;  %v1993_v5 = vpack.c.bf16 %v1841_v9, %v1839_v54  ;;  %v1992_v48 = vpack.c.bf16 %v1840_v57, %v1838_v13  ;;  %v3501_v30 = vsel %vm2989_vm11, %v8074_v52, %v3245_v20  ;;  %v3972_v6 = vpop.xlane.xlu1 %3971 }
 0x2b4   :  { %v3502_v44 = vsel %vm2990_vm13, %v8101_v18, %v3246_v45  ;;  %v8201_v11 = vadd.f32 %v7835_v56, %v6716_v14  ;;  %4070 = vadd.xlane.f32.xlu0 %v4069_v37  ;;  %v3769_v46 = vmul.f32 %v6728_v43, %v3501_v30  ;;  %v4329_v36 = vadd.f32 %v7881_v33, %v3969_v40  ;;  %v10847_v45 = vld [vmem:[#allocation7_spill] sm:$0xff] }
 0x2b5   :  { %v8189_v41 = vpop.f32.mrb[236].mxu0  ;;  %v3770_v29 = vmul.f32 %v6740_v51, %v3502_v44  ;;  %vm1330_vm1 = vcmp.gt.f32.partialorder %v8145_v22, 0.0  ;;  %v1586_v52 = vmul.f32 0.2, %v8145_v22  ;;  %vm2992_vm2 = vcmp.gt.f32.partialorder %v8149_v47, 0.0  ;;  %2764 = vmatprep.mubr.bf16.mxu1 %v1993_v5 }
 0x2b6   :  { %v8197_v38 = vpop.f32.mrb[237].mxu0  ;;  %v8211_v18 = vpop.f32.mrb[112].mxu1  ;;  %v3248_v20 = vmul.f32 0.2, %v8149_v47  ;;  %v1010_v28 = vadd.f32 %v10847_v45, %v6293_v61  ;;  %2765 = vmatmul.mubr.bf16.gmra.mrb[192].mxu1 %v1992_v48  ;;  %v4457_v57 = vsub.f32 0.0, %v4329_v36  ;;  %vm1331_vm3 = vcmp.gt.f32.partialorder %v8157_v8, 0.0 }
 0x2b7   :  { %v8206_v27 = vpop.f32.mrb[238].mxu0  ;;  %v4072_v40 = vadd.f32 %v3770_v29, %v3769_v46  ;;  %v8218_v15 = vpop.f32.mrb[113].mxu1  ;;  %v1587_v37 = vmul.f32 0.2, %v8157_v8  ;;  %vm2993_vm4 = vcmp.gt.f32.partialorder %v8161_v32, 0.0  ;;  %vm1332_vm5 = vcmp.gt.f32.partialorder %v8177_v25, 0.0 }
 0x2b8   :  { %v8213_v56 = vpop.f32.mrb[239].mxu0  ;;  %v5418_v9 = vpop.eup %5417  ;;  %v3249_v54 = vmul.f32 0.2, %v8161_v32  ;;  %v1588_v48 = vmul.f32 0.2, %v8177_v25  ;;  %vm2994_vm7 = vcmp.gt.f32.partialorder %v8201_v11, 0.0  ;;  %v8234_v46 = vadd.f32 %v7853_v3, %v6706_v10 }
 0x2b9   :  { %10846 = vst [vmem:[#allocation27_spill] sm:$0xff] %v8213_v56  ;;  %v5420_v13 = vpop.eup %5419  ;;  %5094 = vst.msk [vmem:[%s10808_s7 + $0x40] sm:$0xff] %vm5085_vm6, %v5418_v9  ;;  %4073 = vadd.xlane.f32.xlu1 %v4072_v40  ;;  %v4597_v5 = vmul.f32 1.442695, %v4457_v57  ;;  %v3250_v44 = vmul.f32 0.2, %v8201_v11  ;;  %v4330_v29 = vadd.f32 %v7881_v33, %v3972_v6  ;;  %v3503_v9 = vsel %vm2991_vm15, %v8128_v26, %v3247_v50 }
 0x2ba   :  { %v4839_v30 = vadd.f32 1.0, %v5420_v13  ;;  %v8237_v36 = vpop.f32.mrb[114].mxu1  ;;  %v1589_v45 = vmul.f32 0.2, %v1010_v28  ;;  %v3504_v40 = vsel %vm2992_vm2, %v8149_v47, %v3248_v20  ;;  %vm1333_vm8 = vcmp.gt.f32.partialorder %v1010_v28, 0.0 }
 0x2bb   :  { %5425 = vpow2.f32 %v4597_v5  ;;  %v8245_v57 = vpop.f32.mrb[115].mxu1  ;;  %v5422_v13 = vpop.eup %5421  ;;  %v8249_v3 = vadd.f32 %v7860_v59, %v6290_v60  ;;  %v4458_v6 = vsub.f32 0.0, %v4330_v29  ;;  %v8259_v26 = vadd.f32 %v7862_v1, %v6716_v14  ;;  %v10851_v29 = vld [vmem:[#allocation8_spill] sm:$0xff] }
 0x2bc   :  { %10848 = vst [vmem:[#allocation7_spill] sm:$0xff] %v8245_v57  ;;  %5427 = vrcp.f32 %v4839_v30  ;;  %5095 = vst.msk [vmem:[%s10808_s7 + $0x48] sm:$0xff] %vm5085_vm6, %v5422_v13  ;;  %v8263_v47 = vadd.f32 %v7868_v17, %v6293_v61  ;;  %v3771_v59 = vmul.f32 %v6728_v43, %v3503_v9  ;;  %v3772_v50 = vmul.f32 %v6740_v51, %v3504_v40 }
 0x2bd   :  { %v8251_v56 = vpop.f32.mrb[240].mxu0  ;;  %v5424_v5 = vpop.eup %5423  ;;  %vm2995_vm9 = vcmp.gt.f32.partialorder %v8234_v46, 0.0  ;;  %v8272_v13 = vadd.f32 %v10851_v29, %v6706_v10  ;;  %v1843_v17 = vsel %vm1331_vm3, %v8157_v8, %v1587_v37  ;;  %v1845_v9 = vsel %vm1333_vm8, %v1010_v28, %v1589_v45  ;;  %v10854_v37 = vld [vmem:[#allocation9_spill] sm:$0xff] }
 0x2be   :  { %10849 = vst [vmem:[#allocation28_spill] sm:$0xff] %v8251_v56  ;;  %v8267_v20 = vpop.f32.mrb[241].mxu0  ;;  %v4840_v30 = vadd.f32 1.0, %v5424_v5  ;;  %v4599_v56 = vmul.f32 1.442695, %v4458_v6  ;;  %v4075_v57 = vadd.f32 %v3772_v50, %v3771_v59  ;;  %v1844_v40 = vsel %vm1332_vm5, %v8177_v25, %v1588_v48  ;;  %v3975_v5 = vpop.xlane.xlu0 %3974 }
 0x2bf   :  { %10850 = vst [vmem:[#allocation29_spill] sm:$0xff] %v8267_v20  ;;  %v8274_v1 = vpop.f32.mrb[242].mxu0  ;;  %v3251_v29 = vmul.f32 0.2, %v8234_v46  ;;  %v1995_v6 = vpack.c.bf16 %v1845_v9, %v1843_v17  ;;  %v1842_v59 = vsel %vm1330_vm1, %v8145_v22, %v1586_v52  ;;  %v3505_v28 = vsel %vm2993_vm4, %v8161_v32, %v3249_v54 }
 0x2c0   :  { %10852 = vst [vmem:[#allocation8_spill] sm:$0xff] %v8274_v1  ;;  %v8283_v20 = vpop.f32.mrb[243].mxu0  ;;  %5429 = vrcp.f32 %v4840_v30  ;;  %4076 = vadd.xlane.f32.xlu0 %v4075_v57  ;;  %v1994_v8 = vpack.c.bf16 %v1844_v40, %v1842_v59  ;;  %v3506_v25 = vsel %vm2994_vm7, %v8201_v11, %v3250_v44  ;;  %v8297_v48 = vadd.f32 %v10854_v37, %v6290_v60  ;;  %v10855_v11 = vld [vmem:[#allocation10_spill] sm:$0xff]  ;;  %v10856_v44 = vld [vmem:[#allocation11_spill] sm:$0xff] }
 0x2c1   :  { %10853 = vst [vmem:[#allocation30_spill] sm:$0xff] %v8283_v20  ;;  %5431 = vpow2.f32 %v4599_v56  ;;  %2774 = vmatprep.mubr.bf16.mxu1 %v1995_v6  ;;  %v3773_v45 = vmul.f32 %v6728_v43, %v3505_v28  ;;  %v3774_v22 = vmul.f32 %v6740_v51, %v3506_v25  ;;  %v4331_v52 = vadd.f32 %v7881_v33, %v3975_v5  ;;  %v3978_v56 = vpop.xlane.xlu1 %3977  ;;  %v8302_v57 = vpop.f32.mrb[116].mxu1 }
 0x2c2   :  { %vm1334_vm0 = vcmp.gt.f32.partialorder %v8249_v3, 0.0  ;;  %v1590_v32 = vmul.f32 0.2, %v8249_v3  ;;  %v8308_v54 = vadd.f32 %v10855_v11, %v6716_v14  ;;  %v1020_v50 = vadd.f32 %v10856_v44, %v6293_v61  ;;  %2775 = vmatmul.mubr.bf16.gmra.mrb[196].mxu1 %v1994_v8  ;;  %v8312_v30 = vpop.f32.mrb[117].mxu1 }
 0x2c3   :  { %vm2996_vm10 = vcmp.gt.f32.partialorder %v8259_v26, 0.0  ;;  %v3252_v9 = vmul.f32 0.2, %v8259_v26  ;;  %v4078_v40 = vadd.f32 %v3774_v22, %v3773_v45  ;;  %v4459_v5 = vsub.f32 0.0, %v4331_v52  ;;  %v8318_v6 = vpop.f32.mrb[118].mxu1 }
 0x2c4   :  { %vm1335_vm11 = vcmp.gt.f32.partialorder %v8263_v47, 0.0  ;;  %v1591_v25 = vmul.f32 0.2, %v8263_v47  ;;  %vm2997_vm12 = vcmp.gt.f32.partialorder %v8272_v13, 0.0  ;;  %v3253_v8 = vmul.f32 0.2, %v8272_v13 }
 0x2c5   :  { %v8314_v17 = vpop.f32.mrb[244].mxu0  ;;  %v5426_v28 = vpop.eup %5425  ;;  %vm1336_vm13 = vcmp.gt.f32.partialorder %v8297_v48, 0.0  ;;  %v1592_v45 = vmul.f32 0.2, %v8297_v48  ;;  %4079 = vadd.xlane.f32.xlu1 %v4078_v40  ;;  %v4601_v22 = vmul.f32 1.442695, %v4459_v5  ;;  %v4332_v44 = vadd.f32 %v7881_v33, %v3978_v56 }
 0x2c6   :  { %10857 = vst [vmem:[#allocation9_spill] sm:$0xff] %v8314_v17  ;;  %v8320_v59 = vpop.f32.mrb[245].mxu0  ;;  %v5428_v37 = vpop.eup %5427  ;;  %v4841_v11 = vadd.f32 1.0, %v5426_v28  ;;  %vm2998_vm14 = vcmp.gt.f32.partialorder %v8308_v54, 0.0  ;;  %vm1337_vm15 = vcmp.gt.f32.partialorder %v1020_v50, 0.0  ;;  %v8340_v40 = vadd.f32 %v7897_v63, %v6706_v10 }
 0x2c7   :  { %10858 = vst [vmem:[#allocation10_spill] sm:$0xff] %v8320_v59  ;;  %5096 = vst.msk [vmem:[%s10808_s7 + $0x50] sm:$0xff] %vm5085_vm6, %v5428_v37  ;;  %v1593_v52 = vmul.f32 0.2, %v1020_v50  ;;  %v8334_v59 = vpop.f32.mrb[119].mxu1  ;;  %v8336_v28 = vpop.f32.mrb[246].mxu0  ;;  %v3507_v5 = vsel %vm2995_vm9, %v8234_v46, %v3251_v29  ;;  %v3508_v37 = vsel %vm2996_vm10, %v8259_v26, %v3252_v9  ;;  %v8357_v20 = vadd.f32 %v7905_v16, %v6716_v14 }
 0x2c8   :  { %10859 = vst [vmem:[#allocation11_spill] sm:$0xff] %v8334_v59  ;;  %10860 = vst [vmem:[#allocation31_spill] sm:$0xff] %v8336_v28  ;;  %5433 = vrcp.f32 %v4841_v11  ;;  %v8348_v17 = vpop.f32.mrb[247].mxu0  ;;  %v3254_v56 = vmul.f32 0.2, %v8308_v54  ;;  %v8353_v11 = vadd.f32 %v7903_v39, %v6290_v60  ;;  %v4460_v28 = vsub.f32 0.0, %v4332_v44  ;;  %v3981_v59 = vpop.xlane.xlu0 %3980 }
 0x2c9   :  { %10861 = vst [vmem:[#allocation32_spill] sm:$0xff] %v8348_v17  ;;  %5435 = vpow2.f32 %v4601_v22  ;;  %v8361_v46 = vadd.f32 %v7918_v55, %v6293_v61  ;;  %v3775_v26 = vmul.f32 %v6728_v43, %v3507_v5  ;;  %v3776_v29 = vmul.f32 %v6740_v51, %v3508_v37 }
 0x2ca   :  { %v5430_v63 = vpop.eup %5429  ;;  %v8371_v39 = vadd.f32 %v7920_v2, %v6706_v10  ;;  %v4603_v16 = vmul.f32 1.442695, %v4460_v28  ;;  %v1847_v55 = vsel %vm1335_vm11, %v8263_v47, %v1591_v25  ;;  %v1849_v22 = vsel %vm1337_vm15, %v1020_v50, %v1593_v52 }
 0x2cb   :  { %v5432_v9 = vpop.eup %5431  ;;  %5097 = vst.msk [vmem:[%s10808_s7 + $0x58] sm:$0xff] %vm5085_vm6, %v5430_v63  ;;  %v3255_v5 = vmul.f32 0.2, %v8340_v40  ;;  %v4081_v37 = vadd.f32 %v3776_v29, %v3775_v26  ;;  %v1997_v17 = vpack.c.bf16 %v1849_v22, %v1847_v55  ;;  %v8378_v1 = vpop.f32.mrb[120].mxu1  ;;  %v8382_v2 = vadd.f32 %v7927_v58, %v6290_v60 }
 0x2cc   :  { %v4842_v44 = vadd.f32 1.0, %v5432_v9  ;;  %5437 = vpow2.f32 %v4603_v16  ;;  %v1846_v28 = vsel %vm1334_vm0, %v8249_v3, %v1590_v32  ;;  %v1848_v47 = vsel %vm1336_vm13, %v8297_v48, %v1592_v45  ;;  %v8390_v50 = vpop.f32.mrb[121].mxu1  ;;  %v3984_v9 = vpop.xlane.xlu1 %3983 }
 0x2cd   :  { %v8392_v25 = vpop.f32.mrb[248].mxu0  ;;  %4082 = vadd.xlane.f32.xlu0 %v4081_v37  ;;  %2784 = vmatprep.mubr.bf16.mxu1 %v1997_v17  ;;  %v1996_v52 = vpack.c.bf16 %v1848_v47, %v1846_v28  ;;  %v3509_v58 = vsel %vm2997_vm12, %v8272_v13, %v3253_v8  ;;  %v3510_v3 = vsel %vm2998_vm14, %v8308_v54, %v3254_v56  ;;  %v8400_v32 = vpop.f32.mrb[122].mxu1  ;;  %vm2999_vm1 = vcmp.gt.f32.partialorder %v8340_v40, 0.0 }
 0x2ce   :  { %10862 = vst [vmem:[#allocation33_spill] sm:$0xff] %v8392_v25  ;;  %5439 = vrcp.f32 %v4842_v44  ;;  %v8402_v63 = vpop.f32.mrb[249].mxu0  ;;  %v8406_v48 = vadd.f32 %v7929_v7, %v6716_v14  ;;  %v3777_v45 = vmul.f32 %v6728_v43, %v3509_v58  ;;  %v3778_v17 = vmul.f32 %v6740_v51, %v3510_v3  ;;  %v8411_v29 = vpop.f32.mrb[123].mxu1  ;;  %v10866_v58 = vld [vmem:[#allocation12_spill] sm:$0xff] }
 0x2cf   :  { %10863 = vst [vmem:[#allocation34_spill] sm:$0xff] %v8402_v63  ;;  %v4333_v26 = vadd.f32 %v7881_v33, %v3981_v59  ;;  %vm1338_vm2 = vcmp.gt.f32.partialorder %v8353_v11, 0.0  ;;  %v1594_v13 = vmul.f32 0.2, %v8353_v11  ;;  %vm3000_vm3 = vcmp.gt.f32.partialorder %v8357_v20, 0.0  ;;  %2785 = vmatmul.mubr.bf16.gmra.mrb[200].mxu1 %v1996_v52  ;;  %v8417_v54 = vpop.f32.mrb[250].mxu0 }
 0x2d0   :  { %10864 = vst [vmem:[#allocation35_spill] sm:$0xff] %v8417_v54  ;;  %v3256_v7 = vmul.f32 0.2, %v8357_v20  ;;  %v1030_v8 = vadd.f32 %v7933_v42, %v6293_v61  ;;  %v4084_v56 = vadd.f32 %v3778_v17, %v3777_v45  ;;  %v8422_v16 = vpop.f32.mrb[251].mxu0  ;;  %vm1339_vm4 = vcmp.gt.f32.partialorder %v8361_v46, 0.0  ;;  %v10874_v63 = vld [vmem:[#allocation16_spill] sm:$0xff] }
 0x2d1   :  { %v4461_v59 = vsub.f32 0.0, %v4333_v26  ;;  %10865 = vst [vmem:[#allocation36_spill] sm:$0xff] %v8422_v16  ;;  %v1595_v22 = vmul.f32 0.2, %v8361_v46  ;;  %vm3001_vm5 = vcmp.gt.f32.partialorder %v8371_v39, 0.0  ;;  %vm1340_vm7 = vcmp.gt.f32.partialorder %v8382_v2, 0.0 }
 0x2d2   :  { %v5434_v55 = vpop.eup %5433  ;;  %v3257_v44 = vmul.f32 0.2, %v8371_v39  ;;  %v1596_v42 = vmul.f32 0.2, %v8382_v2  ;;  %vm3002_vm8 = vcmp.gt.f32.partialorder %v8406_v48, 0.0  ;;  %4085 = vadd.xlane.f32.xlu1 %v4084_v56  ;;  %v8438_v3 = vadd.f32 %v10866_v58, %v6706_v10  ;;  %v10871_v16 = vld [vmem:[#allocation14_spill] sm:$0xff] }
 0x2d3   :  { %v5436_v37 = vpop.eup %5435  ;;  %5098 = vst.msk [vmem:[%s10808_s7 + $0x60] sm:$0xff] %vm5085_vm6, %v5434_v55  ;;  %v4605_v28 = vmul.f32 1.442695, %v4461_v59  ;;  %v3258_v52 = vmul.f32 0.2, %v8406_v48  ;;  %v4334_v45 = vadd.f32 %v7881_v33, %v3984_v9  ;;  %v3511_v55 = vsel %vm2999_vm1, %v8340_v40, %v3255_v5  ;;  %v10872_v40 = vld [vmem:[#allocation15_spill] sm:$0xff] }
 0x2d4   :  { %v4843_v47 = vadd.f32 1.0, %v5436_v37  ;;  %v1597_v26 = vmul.f32 0.2, %v1030_v8  ;;  %v3512_v56 = vsel %vm3000_vm3, %v8357_v20, %v3256_v7  ;;  %vm1341_vm9 = vcmp.gt.f32.partialorder %v1030_v8, 0.0  ;;  %v10869_v37 = vld [vmem:[#allocation13_spill] sm:$0xff] }
 0x2d5   :  { %v8441_v17 = vpop.f32.mrb[252].mxu0  ;;  %5441 = vpow2.f32 %v4605_v28  ;;  %v8453_v58 = vadd.f32 %v10869_v37, %v6290_v60  ;;  %v4462_v9 = vsub.f32 0.0, %v4334_v45  ;;  %v8459_v54 = vadd.f32 %v10871_v16, %v6716_v14 }
 0x2d6   :  { %10867 = vst [vmem:[#allocation12_spill] sm:$0xff] %v8441_v17  ;;  %v8449_v59 = vpop.f32.mrb[253].mxu0  ;;  %5443 = vrcp.f32 %v4843_v47  ;;  %v8455_v17 = vpop.f32.mrb[124].mxu1  ;;  %v8463_v5 = vadd.f32 %v10872_v40, %v6293_v61  ;;  %v3779_v20 = vmul.f32 %v6728_v43, %v3511_v55  ;;  %v3780_v7 = vmul.f32 %v6740_v51, %v3512_v56 }
 0x2d7   :  { %10868 = vst [vmem:[#allocation37_spill] sm:$0xff] %v8449_v59  ;;  %10870 = vst [vmem:[#allocation13_spill] sm:$0xff] %v8455_v17  ;;  %v5438_v28 = vpop.eup %5437  ;;  %v8467_v47 = vpop.f32.mrb[125].mxu1  ;;  %vm3003_vm0 = vcmp.gt.f32.partialorder %v8438_v3, 0.0  ;;  %v8474_v16 = vadd.f32 %v10874_v63, %v6706_v10  ;;  %v4607_v25 = vmul.f32 1.442695, %v4462_v9  ;;  %v1851_v56 = vsel %vm1339_vm4, %v8361_v46, %v1595_v22 }
 0x2d8   :  { %v8469_v37 = vpop.f32.mrb[254].mxu0  ;;  %v5440_v45 = vpop.eup %5439  ;;  %v4844_v59 = vadd.f32 1.0, %v5438_v28  ;;  %v4087_v55 = vadd.f32 %v3780_v7, %v3779_v20  ;;  %v1853_v28 = vsel %vm1341_vm9, %v1030_v8, %v1597_v26  ;;  %v1852_v63 = vsel %vm1340_vm7, %v8382_v2, %v1596_v42  ;;  %v10877_v22 = vld [vmem:[#allocation17_spill] sm:$0xff] }
 0x2d9   :  { %10873 = vst [vmem:[#allocation14_spill] sm:$0xff] %v8469_v37  ;;  %v8476_v17 = vpop.f32.mrb[126].mxu1  ;;  %v8478_v40 = vpop.f32.mrb[255].mxu0  ;;  %5099 = vst.msk [vmem:[%s10808_s7 + $0x68] sm:$0xff] %vm5085_vm6, %v5440_v45  ;;  %v1850_v20 = vsel %vm1338_vm2, %v8353_v11, %v1594_v13  ;;  %v3513_v8 = vsel %vm3001_vm5, %v8371_v39, %v3257_v44  ;;  %v3514_v2 = vsel %vm3002_vm8, %v8406_v48, %v3258_v52  ;;  %vm1342_vm10 = vcmp.gt.f32.partialorder %v8453_v58, 0.0  ;;  %v10879_v44 = vld [vmem:[#allocation3_spill] sm:$0xff] }
 0x2da   :  { %10875 = vst [vmem:[#allocation15_spill] sm:$0xff] %v8476_v17  ;;  %10876 = vst [vmem:[#allocation16_spill] sm:$0xff] %v8478_v40  ;;  %v3987_v9 = vpop.xlane.xlu0 %3986  ;;  %v8491_v37 = vpop.f32.mrb[127].mxu1  ;;  %5445 = vrcp.f32 %v4844_v59  ;;  %v3259_v40 = vmul.f32 0.2, %v8438_v3  ;;  %v1999_v17 = vpack.c.bf16 %v1853_v28, %v1851_v56  ;;  %4088 = vadd.xlane.f32.xlu0 %v4087_v55  ;;  %v1998_v46 = vpack.c.bf16 %v1852_v63, %v1850_v20 }
 0x2db   :  { %5447 = vpow2.f32 %v4607_v25  ;;  %v8505_v42 = vadd.f32 %v10877_v22, %v6290_v60  ;;  %v3781_v26 = vmul.f32 %v6728_v43, %v3513_v8  ;;  %v3782_v11 = vmul.f32 %v6740_v51, %v3514_v2  ;;  %v3990_v55 = vpop.xlane.xlu1 %3989 }
 0x2dc   :  { %2794 = vmatprep.mubr.bf16.mxu1 %v1999_v17  ;;  %v4335_v25 = vadd.f32 %v7881_v33, %v3987_v9  ;;  %v1598_v39 = vmul.f32 0.2, %v8453_v58  ;;  %v8516_v48 = vadd.f32 %v10879_v44, %v6716_v14  ;;  %v1040_v52 = vadd.f32 %v7975_v62, %v6293_v61 }
 0x2dd   :  { %2795 = vmatmul.mubr.bf16.gmra.mrb[204].mxu1 %v1998_v46  ;;  %vm3004_vm11 = vcmp.gt.f32.partialorder %v8459_v54, 0.0  ;;  %v3260_v59 = vmul.f32 0.2, %v8459_v54  ;;  %v4090_v7 = vadd.f32 %v3782_v11, %v3781_v26  ;;  %vm1343_vm12 = vcmp.gt.f32.partialorder %v8463_v5, 0.0 }
 0x2de   :  { %v8510_v13 = vpop.f32.mrb[0].mxu0  ;;  %v4463_v45 = vsub.f32 0.0, %v4335_v25  ;;  %v1599_v63 = vmul.f32 0.2, %v8463_v5  ;;  %vm3005_vm13 = vcmp.gt.f32.partialorder %v8474_v16, 0.0  ;;  %vm1344_vm14 = vcmp.gt.f32.partialorder %v8505_v42, 0.0 }
 0x2df   :  { %10878 = vst [vmem:[#allocation17_spill] sm:$0xff] %v8510_v13  ;;  %v8520_v17 = vpop.f32.mrb[1].mxu0  ;;  %v5442_v28 = vpop.eup %5441  ;;  %v3261_v62 = vmul.f32 0.2, %v8474_v16  ;;  %v1600_v46 = vmul.f32 0.2, %v8505_v42  ;;  %4091 = vadd.xlane.f32.xlu1 %v4090_v7  ;;  %v4336_v22 = vadd.f32 %v7881_v33, %v3990_v55  ;;  %v8544_v25 = vadd.f32 %v8001_v24, %v6706_v10 }
 0x2e0   :  { %10880 = vst [vmem:[#allocation3_spill] sm:$0xff] %v8520_v17  ;;  %v8524_v56 = vpop.f32.mrb[2].mxu0  ;;  %v5444_v9 = vpop.eup %5443  ;;  %v4845_v20 = vadd.f32 1.0, %v5442_v28  ;;  %v4609_v8 = vmul.f32 1.442695, %v4463_v45  ;;  %vm3006_vm15 = vcmp.gt.f32.partialorder %v8516_v48, 0.0  ;;  %v3515_v44 = vsel %vm3003_vm0, %v8438_v3, %v3259_v40 }
 0x2e1   :  { %10881 = vst [vmem:[#allocation38_spill] sm:$0xff] %v8524_v56  ;;  %5100 = vst.msk [vmem:[%s10808_s7 + $0x70] sm:$0xff] %vm5085_vm6, %v5444_v9  ;;  %vm1345_vm1 = vcmp.gt.f32.partialorder %v1040_v52, 0.0  ;;  %v1601_v2 = vmul.f32 0.2, %v1040_v52  ;;  %v8538_v26 = vpop.f32.mrb[128].mxu1  ;;  %v3516_v7 = vsel %vm3004_vm11, %v8459_v54, %v3260_v59  ;;  %v8557_v28 = vadd.f32 %v8011_v23, %v6290_v60  ;;  %v3993_v13 = vpop.xlane.xlu0 %3992 }
 0x2e2   :  { %v8540_v11 = vpop.f32.mrb[3].mxu0  ;;  %5449 = vrcp.f32 %v4845_v20  ;;  %v8552_v45 = vpop.f32.mrb[129].mxu1  ;;  %v3262_v55 = vmul.f32 0.2, %v8516_v48  ;;  %v4464_v9 = vsub.f32 0.0, %v4336_v22  ;;  %v8563_v3 = vadd.f32 %v8013_v21, %v6716_v14 }
 0x2e3   :  { %10882 = vst [vmem:[#allocation39_spill] sm:$0xff] %v8540_v11  ;;  %5451 = vpow2.f32 %v4609_v8  ;;  %v8559_v24 = vpop.f32.mrb[130].mxu1  ;;  %v8567_v54 = vadd.f32 %v8018_v34, %v6293_v61  ;;  %v3783_v40 = vmul.f32 %v6728_v43, %v3515_v44  ;;  %v3784_v59 = vmul.f32 %v6740_v51, %v3516_v7 }
 0x2e4   :  { %v5446_v20 = vpop.eup %5445  ;;  %v8571_v8 = vpop.f32.mrb[131].mxu1  ;;  %v8581_v21 = vadd.f32 %v8020_v35, %v6706_v10  ;;  %v4611_v34 = vmul.f32 1.442695, %v4464_v9  ;;  %v1855_v44 = vsel %vm1343_vm12, %v8463_v5, %v1599_v63  ;;  %v1857_v7 = vsel %vm1345_vm1, %v1040_v52, %v1601_v2  ;;  %v10886_v35 = vld [vmem:[#allocation18_spill] sm:$0xff] }
 0x2e5   :  { %v5448_v22 = vpop.eup %5447  ;;  %5101 = vst.msk [vmem:[%s10808_s7 + $0x78] sm:$0xff] %vm5085_vm6, %v5446_v20  ;;  %vm3007_vm2 = vcmp.gt.f32.partialorder %v8544_v25, 0.0  ;;  %v4093_v56 = vadd.f32 %v3784_v59, %v3783_v40  ;;  %v2001_v17 = vpack.c.bf16 %v1857_v7, %v1855_v44  ;;  %v8594_v9 = vadd.f32 %v10886_v35, %v6290_v60 }
 0x2e6   :  { %v8573_v23 = vpop.f32.mrb[4].mxu0  ;;  %5453 = vpow2.f32 %v4611_v34  ;;  %v1854_v5 = vsel %vm1342_vm10, %v8453_v58, %v1598_v39  ;;  %v1856_v52 = vsel %vm1344_vm14, %v8505_v42, %v1600_v46  ;;  %v3517_v40 = vsel %vm3005_vm13, %v8474_v16, %v3261_v62  ;;  %v10888_v58 = vld [vmem:[#allocation19_spill] sm:$0xff]  ;;  %v10889_v62 = vld [vmem:[#allocation20_spill] sm:$0xff]  ;;  %v3996_v34 = vpop.xlane.xlu1 %3995 }
 0x2e7   :  { %10883 = vst [vmem:[#allocation40_spill] sm:$0xff] %v8573_v23  ;;  %v8587_v11 = vpop.f32.mrb[5].mxu0  ;;  %v4846_v23 = vadd.f32 1.0, %v5448_v22  ;;  %4094 = vadd.xlane.f32.xlu0 %v4093_v56  ;;  %2804 = vmatprep.mubr.bf16.mxu1 %v2001_v17  ;;  %v2000_v2 = vpack.c.bf16 %v1856_v52, %v1854_v5  ;;  %v3518_v59 = vsel %vm3006_vm15, %v8516_v48, %v3262_v55  ;;  %v3263_v17 = vmul.f32 0.2, %v8544_v25 }
 0x2e8   :  { %10884 = vst [vmem:[#allocation41_spill] sm:$0xff] %v8587_v11  ;;  %v8590_v20 = vpop.f32.mrb[6].mxu0  ;;  %v8612_v39 = vadd.f32 %v10888_v58, %v6716_v14  ;;  %v3785_v42 = vmul.f32 %v6728_v43, %v3517_v40  ;;  %v3786_v46 = vmul.f32 %v6740_v51, %v3518_v59  ;;  %v4337_v56 = vadd.f32 %v7881_v33, %v3993_v13  ;;  %v10890_v58 = vld [vmem:[#allocation21_spill] sm:$0xff] }
 0x2e9   :  { %10885 = vst [vmem:[#allocation42_spill] sm:$0xff] %v8590_v20  ;;  %v8602_v63 = vpop.f32.mrb[7].mxu0  ;;  %5455 = vrcp.f32 %v4846_v23  ;;  %vm1346_vm3 = vcmp.gt.f32.partialorder %v8557_v28, 0.0  ;;  %v1602_v16 = vmul.f32 0.2, %v8557_v28  ;;  %vm3008_vm4 = vcmp.gt.f32.partialorder %v8563_v3, 0.0  ;;  %2805 = vmatmul.mubr.bf16.gmra.mrb[208].mxu1 %v2000_v2 }
 0x2ea   :  { %10887 = vst [vmem:[#allocation18_spill] sm:$0xff] %v8602_v63  ;;  %v3264_v48 = vmul.f32 0.2, %v8563_v3  ;;  %v1050_v55 = vadd.f32 %v10889_v62, %v6293_v61  ;;  %v4096_v23 = vadd.f32 %v3786_v46, %v3785_v42  ;;  %v4465_v22 = vsub.f32 0.0, %v4337_v56 }
 0x2eb   :  { %v8624_v44 = vpop.f32.mrb[132].mxu1  ;;  %vm1347_vm5 = vcmp.gt.f32.partialorder %v8567_v54, 0.0  ;;  %v1603_v7 = vmul.f32 0.2, %v8567_v54  ;;  %vm3009_vm7 = vcmp.gt.f32.partialorder %v8581_v21, 0.0  ;;  %vm1348_vm8 = vcmp.gt.f32.partialorder %v8594_v9, 0.0 }
 0x2ec   :  { %v5450_v13 = vpop.eup %5449  ;;  %v3265_v35 = vmul.f32 0.2, %v8581_v21  ;;  %v1604_v52 = vmul.f32 0.2, %v8594_v9  ;;  %vm3010_vm9 = vcmp.gt.f32.partialorder %v8612_v39, 0.0  ;;  %4097 = vadd.xlane.f32.xlu1 %v4096_v23  ;;  %v8640_v42 = vadd.f32 %v10890_v58, %v6706_v10  ;;  %v8643_v56 = vpop.f32.mrb[133].mxu1 }
 0x2ed   :  { %v5452_v5 = vpop.eup %5451  ;;  %5102 = vst.msk [vmem:[%s10808_s7 + $0x80] sm:$0xff] %vm5085_vm6, %v5450_v13  ;;  %v4613_v2 = vmul.f32 1.442695, %v4465_v22  ;;  %v3266_v59 = vmul.f32 0.2, %v8612_v39  ;;  %v4338_v46 = vadd.f32 %v7881_v33, %v3996_v34  ;;  %v3519_v23 = vsel %vm3007_vm2, %v8544_v25, %v3263_v17  ;;  %v10893_v34 = vld [vmem:[#allocation4_spill] sm:$0xff] }
 0x2ee   :  { %v4847_v40 = vadd.f32 1.0, %v5452_v5  ;;  %v8645_v62 = vpop.f32.mrb[8].mxu0  ;;  %v1605_v13 = vmul.f32 0.2, %v1050_v55  ;;  %v3520_v22 = vsel %vm3008_vm4, %v8563_v3, %v3264_v48  ;;  %v8653_v5 = vpop.f32.mrb[134].mxu1  ;;  %vm1349_vm0 = vcmp.gt.f32.partialorder %v1050_v55, 0.0 }
 0x2ef   :  { %10891 = vst [vmem:[#allocation19_spill] sm:$0xff] %v8645_v62  ;;  %5457 = vpow2.f32 %v4613_v2  ;;  %v8655_v58 = vpop.f32.mrb[9].mxu0  ;;  %v8659_v63 = vadd.f32 %v10893_v34, %v6290_v60  ;;  %v4466_v62 = vsub.f32 0.0, %v4338_v46  ;;  %v8661_v2 = vpop.f32.mrb[135].mxu1  ;;  %v8667_v17 = vadd.f32 %v8068_v12, %v6716_v14 }
 0x2f0   :  { %10892 = vst [vmem:[#allocation20_spill] sm:$0xff] %v8655_v58  ;;  %5459 = vrcp.f32 %v4847_v40  ;;  %v8663_v20 = vpop.f32.mrb[10].mxu0  ;;  %v5454_v25 = vpop.eup %5453  ;;  %v8671_v3 = vadd.f32 %v8070_v4, %v6293_v61  ;;  %v3787_v48 = vmul.f32 %v6728_v43, %v3519_v23  ;;  %v3788_v40 = vmul.f32 %v6740_v51, %v3520_v22 }
 0x2f1   :  { %10894 = vst [vmem:[#allocation21_spill] sm:$0xff] %v8663_v20  ;;  %v4848_v58 = vadd.f32 1.0, %v5454_v25  ;;  %vm3011_vm10 = vcmp.gt.f32.partialorder %v8640_v42, 0.0  ;;  %v8678_v46 = vadd.f32 %v8076_v19, %v6706_v10  ;;  %v4615_v20 = vmul.f32 1.442695, %v4466_v62  ;;  %v8680_v11 = vpop.f32.mrb[11].mxu0  ;;  %v3999_v22 = vpop.xlane.xlu0 %3998 }
 0x2f2   :  { %10895 = vst [vmem:[#allocation4_spill] sm:$0xff] %v8680_v11  ;;  %v4099_v12 = vadd.f32 %v3788_v40, %v3787_v48  ;;  %v1859_v4 = vsel %vm1347_vm5, %v8567_v54, %v1603_v7  ;;  %v1861_v23 = vsel %vm1349_vm0, %v1050_v55, %v1605_v13  ;;  %v1860_v19 = vsel %vm1348_vm8, %v8594_v9, %v1604_v52  ;;  %v4002_v40 = vpop.xlane.xlu1 %4001 }
 0x2f3   :  { %v5456_v34 = vpop.eup %5455  ;;  %5461 = vrcp.f32 %v4848_v58  ;;  %v3267_v62 = vmul.f32 0.2, %v8640_v42  ;;  %v2003_v25 = vpack.c.bf16 %v1861_v23, %v1859_v4  ;;  %v3521_v54 = vsel %vm3009_vm7, %v8581_v21, %v3265_v35 }
 0x2f4   :  { %5103 = vst.msk [vmem:[%s10808_s7 + $0x88] sm:$0xff] %vm5085_vm6, %v5456_v34  ;;  %v1858_v34 = vsel %vm1346_vm3, %v8557_v28, %v1602_v16  ;;  %5463 = vpow2.f32 %v4615_v20  ;;  %4100 = vadd.xlane.f32.xlu0 %v4099_v12  ;;  %v3522_v9 = vsel %vm3010_vm9, %v8612_v39, %v3266_v59  ;;  %v8707_v7 = vadd.f32 %v8078_v49, %v6290_v60 }
 0x2f5   :  { %v2002_v48 = vpack.c.bf16 %v1860_v19, %v1858_v34  ;;  %v8703_v55 = vpop.f32.mrb[136].mxu1  ;;  %2814 = vmatprep.mubr.bf16.mxu1 %v2003_v25  ;;  %v3789_v28 = vmul.f32 %v6728_v43, %v3521_v54  ;;  %v3790_v20 = vmul.f32 %v6740_v51, %v3522_v9  ;;  %v4339_v16 = vadd.f32 %v7881_v33, %v3999_v22  ;;  %v10897_v54 = vld [vmem:[#allocation22_spill] sm:$0xff] }
 0x2f6   :  { %v8712_v52 = vpop.f32.mrb[137].mxu1  ;;  %vm1350_vm11 = vcmp.gt.f32.partialorder %v8659_v63, 0.0  ;;  %v1606_v21 = vmul.f32 0.2, %v8659_v63  ;;  %v8718_v39 = vadd.f32 %v8090_v0, %v6716_v14  ;;  %v1060_v49 = vadd.f32 %v8092_v53, %v6293_v61 }
 0x2f7   :  { %2815 = vmatmul.mubr.bf16.gmra.mrb[212].mxu1 %v2002_v48  ;;  %v8722_v35 = vpop.f32.mrb[138].mxu1  ;;  %vm3012_vm12 = vcmp.gt.f32.partialorder %v8667_v17, 0.0  ;;  %v3268_v59 = vmul.f32 0.2, %v8667_v17  ;;  %v4102_v13 = vadd.f32 %v3790_v20, %v3789_v28  ;;  %v4467_v58 = vsub.f32 0.0, %v4339_v16 }
 0x2f8   :  { %v8726_v12 = vpop.f32.mrb[139].mxu1  ;;  %vm1351_vm13 = vcmp.gt.f32.partialorder %v8671_v3, 0.0  ;;  %v1607_v0 = vmul.f32 0.2, %v8671_v3  ;;  %vm3013_vm14 = vcmp.gt.f32.partialorder %v8678_v46, 0.0  ;;  %vm1352_vm15 = vcmp.gt.f32.partialorder %v8707_v7, 0.0 }
 0x2f9   :  { %10896 = vst [vmem:[#allocation43_spill] sm:$0xff] %v8726_v12  ;;  %v5458_v4 = vpop.eup %5457  ;;  %v3269_v53 = vmul.f32 0.2, %v8678_v46  ;;  %v1608_v22 = vmul.f32 0.2, %v8707_v7  ;;  %4103 = vadd.xlane.f32.xlu1 %v4102_v13  ;;  %vm3014_vm1 = vcmp.gt.f32.partialorder %v8718_v39, 0.0  ;;  %v4340_v48 = vadd.f32 %v7881_v33, %v4002_v40  ;;  %v4005_v12 = vpop.xlane.xlu0 %4004 }
 0x2fa   :  { %v5460_v23 = vpop.eup %5459  ;;  %v4849_v19 = vadd.f32 1.0, %v5458_v4  ;;  %v4617_v25 = vmul.f32 1.442695, %v4467_v58  ;;  %vm1353_vm2 = vcmp.gt.f32.partialorder %v1060_v49, 0.0  ;;  %v1609_v34 = vmul.f32 0.2, %v1060_v49 }
 0x2fb   :  { %5104 = vst.msk [vmem:[%s10808_s7 + $0x90] sm:$0xff] %vm5085_vm6, %v5460_v23  ;;  %v8742_v9 = vadd.f32 %v10897_v54, %v6706_v10  ;;  %v3523_v28 = vsel %vm3011_vm10, %v8640_v42, %v3267_v62  ;;  %v3524_v20 = vsel %vm3012_vm12, %v8667_v17, %v3268_v59  ;;  %v3270_v16 = vmul.f32 0.2, %v8718_v39  ;;  %v10898_v13 = vld [vmem:[#allocation23_spill] sm:$0xff]  ;;  %v10899_v23 = vld [vmem:[#allocation24_spill] sm:$0xff]  ;;  %v10900_v54 = vld [vmem:[#allocation25_spill] sm:$0xff] }
 0x2fc   :  { %5465 = vrcp.f32 %v4849_v19  ;;  %v8753_v58 = vadd.f32 %v10898_v13, %v6290_v60  ;;  %v4468_v40 = vsub.f32 0.0, %v4340_v48  ;;  %v8757_v19 = vadd.f32 %v10899_v23, %v6716_v14 }
 0x2fd   :  { %5467 = vpow2.f32 %v4617_v25  ;;  %v5462_v4 = vpop.eup %5461  ;;  %v8761_v42 = vadd.f32 %v10900_v54, %v6293_v61  ;;  %v3791_v62 = vmul.f32 %v6728_v43, %v3523_v28  ;;  %v3792_v17 = vmul.f32 %v6740_v51, %v3524_v20 }
 0x2fe   :  { %v5464_v59 = vpop.eup %5463  ;;  %5105 = vst.msk [vmem:[%s10808_s7 + $0x98] sm:$0xff] %vm5085_vm6, %v5462_v4  ;;  %v8771_v25 = vadd.f32 %v8151_v31, %v6706_v10  ;;  %v4619_v48 = vmul.f32 1.442695, %v4468_v40  ;;  %v1863_v13 = vsel %vm1351_vm13, %v8671_v3, %v1607_v0  ;;  %v1865_v23 = vsel %vm1353_vm2, %v1060_v49, %v1609_v34  ;;  %v10901_v31 = vld [vmem:[#allocation26_spill] sm:$0xff] }
 0x2ff   :  { %v8777_v28 = vpop.f32.mrb[140].mxu1  ;;  %v4850_v20 = vadd.f32 1.0, %v5464_v59  ;;  %vm3015_vm3 = vcmp.gt.f32.partialorder %v8742_v9, 0.0  ;;  %v4105_v54 = vadd.f32 %v3792_v17, %v3791_v62  ;;  %v2005_v11 = vpack.c.bf16 %v1865_v23, %v1863_v13 }
 0x300   :  { %v8780_v4 = vpop.f32.mrb[141].mxu1  ;;  %5469 = vpow2.f32 %v4619_v48  ;;  %v8784_v40 = vadd.f32 %v10901_v31, %v6290_v60  ;;  %v1862_v3 = vsel %vm1350_vm11, %v8659_v63, %v1606_v21  ;;  %v1864_v49 = vsel %vm1352_vm15, %v8707_v7, %v1608_v22  ;;  %v10902_v63 = vld [vmem:[#allocation5_spill] sm:$0xff] }
 0x301   :  { %v8792_v0 = vpop.f32.mrb[142].mxu1  ;;  %5471 = vrcp.f32 %v4850_v20  ;;  %4106 = vadd.xlane.f32.xlu0 %v4105_v54  ;;  %2824 = vmatprep.mubr.bf16.mxu1 %v2005_v11  ;;  %v2004_v34 = vpack.c.bf16 %v1864_v49, %v1862_v3  ;;  %v3525_v62 = vsel %vm3013_vm14, %v8678_v46, %v3269_v53  ;;  %v3526_v17 = vsel %vm3014_vm1, %v8718_v39, %v3270_v16  ;;  %v10903_v53 = vld [vmem:[#allocation6_spill] sm:$0xff]  ;;  %v4008_v20 = vpop.xlane.xlu1 %4007 }
 0x302   :  { %v8800_v59 = vpop.f32.mrb[143].mxu1  ;;  %v8804_v21 = vadd.f32 %v10902_v63, %v6716_v14  ;;  %v3793_v7 = vmul.f32 %v6728_v43, %v3525_v62  ;;  %v3794_v22 = vmul.f32 %v6740_v51, %v3526_v17  ;;  %v4341_v11 = vadd.f32 %v7881_v33, %v4005_v12 }
 0x303   :  { %v3271_v48 = vmul.f32 0.2, %v8742_v9  ;;  %vm1354_vm4 = vcmp.gt.f32.partialorder %v8753_v58, 0.0  ;;  %v1610_v46 = vmul.f32 0.2, %v8753_v58  ;;  %vm3016_vm5 = vcmp.gt.f32.partialorder %v8757_v19, 0.0  ;;  %2825 = vmatmul.mubr.bf16.gmra.mrb[216].mxu1 %v2004_v34 }
 0x304   :  { %v3272_v39 = vmul.f32 0.2, %v8757_v19  ;;  %v1070_v16 = vadd.f32 %v10903_v53, %v6293_v61  ;;  %v4108_v13 = vadd.f32 %v3794_v22, %v3793_v7  ;;  %v4469_v23 = vsub.f32 0.0, %v4341_v11 }
 0x305   :  { %vm1355_vm7 = vcmp.gt.f32.partialorder %v8761_v42, 0.0  ;;  %v1611_v12 = vmul.f32 0.2, %v8761_v42  ;;  %vm3017_vm8 = vcmp.gt.f32.partialorder %v8771_v25, 0.0  ;;  %v3273_v31 = vmul.f32 0.2, %v8771_v25 }
 0x306   :  { %v5466_v54 = vpop.eup %5465  ;;  %vm1356_vm9 = vcmp.gt.f32.partialorder %v8784_v40, 0.0  ;;  %v1612_v49 = vmul.f32 0.2, %v8784_v40  ;;  %vm3018_vm0 = vcmp.gt.f32.partialorder %v8804_v21, 0.0  ;;  %4109 = vadd.xlane.f32.xlu1 %v4108_v13  ;;  %v4621_v34 = vmul.f32 1.442695, %v4469_v23 }
 0x307   :  { %v5468_v3 = vpop.eup %5467  ;;  %5106 = vst.msk [vmem:[%s10808_s7 + $0xa0] sm:$0xff] %vm5085_vm6, %v5466_v54  ;;  %v3274_v17 = vmul.f32 0.2, %v8804_v21  ;;  %v8830_v63 = vadd.f32 %v8211_v18, %v6706_v10  ;;  %v4342_v7 = vadd.f32 %v7881_v33, %v4008_v20  ;;  %v1613_v22 = vmul.f32 0.2, %v1070_v16 }
 0x308   :  { %v4851_v62 = vadd.f32 1.0, %v5468_v3  ;;  %5473 = vpow2.f32 %v4621_v34  ;;  %v3527_v11 = vsel %vm3015_vm3, %v8742_v9, %v3271_v48  ;;  %v3528_v53 = vsel %vm3016_vm5, %v8757_v19, %v3272_v39 }
 0x309   :  { %v8839_v13 = vpop.f32.mrb[144].mxu1  ;;  %vm1357_vm10 = vcmp.gt.f32.partialorder %v1070_v16, 0.0  ;;  %v8843_v18 = vadd.f32 %v8189_v41, %v6290_v60  ;;  %v4470_v23 = vsub.f32 0.0, %v4342_v7  ;;  %v2569_v3 = vadd.f32 %v8218_v15, %v6716_v14 }
 0x30a   :  { %5475 = vrcp.f32 %v4851_v62  ;;  %v8845_v20 = vpop.f32.mrb[145].mxu1  ;;  %v5470_v54 = vpop.eup %5469  ;;  %v8851_v9 = vadd.f32 %v8197_v38, %v6293_v61  ;;  %v3795_v19 = vmul.f32 %v6728_v43, %v3527_v11  ;;  %v3796_v48 = vmul.f32 %v6740_v51, %v3528_v53 }
 0x30b   :  { %v8855_v39 = vpop.f32.mrb[146].mxu1  ;;  %v5472_v34 = vpop.eup %5471  ;;  %v4852_v41 = vadd.f32 1.0, %v5470_v54  ;;  %vm3019_vm11 = vcmp.gt.f32.partialorder %v8830_v63, 0.0  ;;  %v8860_v62 = vadd.f32 %v8237_v36, %v6706_v10  ;;  %v4623_v7 = vmul.f32 1.442695, %v4470_v23 }
 0x30c   :  { %v8862_v15 = vpop.f32.mrb[147].mxu1  ;;  %5107 = vst.msk [vmem:[%s10808_s7 + $0xa8] sm:$0xff] %vm5085_vm6, %v5472_v34  ;;  %v4111_v38 = vadd.f32 %v3796_v48, %v3795_v19  ;;  %v1867_v11 = vsel %vm1355_vm7, %v8761_v42, %v1611_v12  ;;  %v1869_v53 = vsel %vm1357_vm10, %v1070_v16, %v1613_v22  ;;  %v1868_v36 = vsel %vm1356_vm9, %v8784_v40, %v1612_v49  ;;  %v4011_v54 = vpop.xlane.xlu0 %4010 }
 0x30d   :  { %10904 = vst [vmem:[#allocation22_spill] sm:$0xff] %v8862_v15  ;;  %5477 = vrcp.f32 %v4852_v41  ;;  %v3275_v23 = vmul.f32 0.2, %v8830_v63  ;;  %v2007_v15 = vpack.c.bf16 %v1869_v53, %v1867_v11  ;;  %v1866_v34 = vsel %vm1354_vm4, %v8753_v58, %v1610_v46  ;;  %v4014_v41 = vpop.xlane.xlu1 %4013 }
 0x30e   :  { %5479 = vpow2.f32 %v4623_v7  ;;  %4112 = vadd.xlane.f32.xlu0 %v4111_v38  ;;  %v2006_v19 = vpack.c.bf16 %v1868_v36, %v1866_v34  ;;  %v3529_v42 = vsel %vm3017_vm8, %v8771_v25, %v3273_v31  ;;  %v3530_v40 = vsel %vm3018_vm0, %v8804_v21, %v3274_v17  ;;  %v10905_v25 = vld [vmem:[#allocation7_spill] sm:$0xff] }
 0x30f   :  { %v8887_v16 = vadd.f32 %v8206_v27, %v6290_v60  ;;  %2834 = vmatprep.mubr.bf16.mxu1 %v2007_v15  ;;  %v3797_v12 = vmul.f32 %v6728_v43, %v3529_v42  ;;  %v3798_v58 = vmul.f32 %v6740_v51, %v3530_v40  ;;  %v4343_v46 = vadd.f32 %v7881_v33, %v4011_v54  ;;  %v10906_v21 = vld [vmem:[#allocation27_spill] sm:$0xff] }
 0x310   :  { %vm1358_vm12 = vcmp.gt.f32.partialorder %v8843_v18, 0.0  ;;  %v1614_v49 = vmul.f32 0.2, %v8843_v18  ;;  %v2573_v31 = vadd.f32 %v10905_v25, %v6716_v14  ;;  %v1080_v17 = vadd.f32 %v10906_v21, %v6293_v61  ;;  %2835 = vmatmul.mubr.bf16.gmra.mrb[220].mxu1 %v2006_v19  ;;  %v10908_v21 = vld [vmem:[#allocation28_spill] sm:$0xff] }
 0x311   :  { %vm3020_vm13 = vcmp.gt.f32.partialorder %v2569_v3, 0.0  ;;  %v3276_v27 = vmul.f32 0.2, %v2569_v3  ;;  %v4114_v22 = vadd.f32 %v3798_v58, %v3797_v12  ;;  %v4471_v48 = vsub.f32 0.0, %v4343_v46 }
 0x312   :  { %v5474_v7 = vpop.eup %5473  ;;  %vm1359_vm14 = vcmp.gt.f32.partialorder %v8851_v9, 0.0  ;;  %v1615_v15 = vmul.f32 0.2, %v8851_v9  ;;  %vm3021_vm15 = vcmp.gt.f32.partialorder %v8860_v62, 0.0  ;;  %v3277_v38 = vmul.f32 0.2, %v8860_v62 }
 0x313   :  { %v4853_v53 = vadd.f32 1.0, %v5474_v7  ;;  %vm1360_vm1 = vcmp.gt.f32.partialorder %v8887_v16, 0.0  ;;  %v1616_v36 = vmul.f32 0.2, %v8887_v16  ;;  %4115 = vadd.xlane.f32.xlu1 %v4114_v22  ;;  %v4625_v54 = vmul.f32 1.442695, %v4471_v48 }
 0x314   :  { %v5476_v11 = vpop.eup %5475  ;;  %vm3022_vm2 = vcmp.gt.f32.partialorder %v2573_v31, 0.0  ;;  %vm1361_vm3 = vcmp.gt.f32.partialorder %v1080_v17, 0.0  ;;  %v1617_v34 = vmul.f32 0.2, %v1080_v17  ;;  %v4344_v19 = vadd.f32 %v7881_v33, %v4014_v41  ;;  %v8909_v42 = vpop.f32.mrb[148].mxu1 }
 0x315   :  { %5108 = vst.msk [vmem:[%s10808_s7 + $0xb0] sm:$0xff] %vm5085_vm6, %v5476_v11  ;;  %5481 = vrcp.f32 %v4853_v53  ;;  %v8913_v40 = vadd.f32 %v8302_v57, %v6706_v10  ;;  %v3531_v12 = vsel %vm3019_vm11, %v8830_v63, %v3275_v23  ;;  %v3532_v58 = vsel %vm3020_vm13, %v2569_v3, %v3276_v27  ;;  %v8919_v46 = vpop.f32.mrb[149].mxu1  ;;  %v10910_v63 = vld [vmem:[#allocation29_spill] sm:$0xff] }
 0x316   :  { %10907 = vst [vmem:[#allocation23_spill] sm:$0xff] %v8919_v46  ;;  %v3278_v25 = vmul.f32 0.2, %v2573_v31  ;;  %5483 = vpow2.f32 %v4625_v54  ;;  %v8923_v22 = vadd.f32 %v10908_v21, %v6290_v60  ;;  %v4472_v48 = vsub.f32 0.0, %v4344_v19  ;;  %v8925_v41 = vpop.f32.mrb[150].mxu1 }
 0x317   :  { %10909 = vst [vmem:[#allocation24_spill] sm:$0xff] %v8925_v41  ;;  %v5478_v7 = vpop.eup %5477  ;;  %v8929_v57 = vadd.f32 %v8312_v30, %v6716_v14  ;;  %v8933_v23 = vadd.f32 %v10910_v63, %v6293_v61  ;;  %v3799_v3 = vmul.f32 %v6728_v43, %v3531_v12  ;;  %v3800_v27 = vmul.f32 %v6740_v51, %v3532_v58  ;;  %v8937_v11 = vpop.f32.mrb[151].mxu1 }
 0x318   :  { %10911 = vst [vmem:[#allocation25_spill] sm:$0xff] %v8937_v11  ;;  %v5480_v53 = vpop.eup %5479  ;;  %5109 = vst.msk [vmem:[%s10808_s7 + $0xb8] sm:$0xff] %vm5085_vm6, %v5478_v7  ;;  %v8945_v30 = vadd.f32 %v8318_v6, %v6706_v10  ;;  %v4627_v54 = vmul.f32 1.442695, %v4472_v48  ;;  %v1871_v19 = vsel %vm1359_vm14, %v8851_v9, %v1615_v15  ;;  %v1873_v12 = vsel %vm1361_vm3, %v1080_v17, %v1617_v34  ;;  %v4017_v41 = vpop.xlane.xlu0 %4016  ;;  %v10912_v7 = vld [vmem:[#allocation8_spill] sm:$0xff]  ;;  %v10913_v48 = vld [vmem:[#allocation11_spill] sm:$0xff] }
 0x319   :  { %v4854_v58 = vadd.f32 1.0, %v5480_v53  ;;  %v3279_v21 = vmul.f32 0.2, %v8913_v40  ;;  %v4117_v63 = vadd.f32 %v3800_v27, %v3799_v3  ;;  %v2009_v11 = vpack.c.bf16 %v1873_v12, %v1871_v19  ;;  %v4020_v53 = vpop.xlane.xlu1 %4019 }
 0x31a   :  { %5485 = vpow2.f32 %v4627_v54  ;;  %v8954_v46 = vadd.f32 %v10912_v7, %v6290_v60  ;;  %v1870_v6 = vsel %vm1358_vm12, %v8843_v18, %v1614_v49  ;;  %v1872_v9 = vsel %vm1360_vm1, %v8887_v16, %v1616_v36 }
 0x31b   :  { %5487 = vrcp.f32 %v4854_v58  ;;  %4118 = vadd.xlane.f32.xlu0 %v4117_v63  ;;  %2844 = vmatprep.mubr.bf16.mxu1 %v2009_v11  ;;  %v2008_v17 = vpack.c.bf16 %v1872_v9, %v1870_v6  ;;  %v3533_v15 = vsel %vm3021_vm15, %v8860_v62, %v3277_v38  ;;  %v3534_v34 = vsel %vm3022_vm2, %v2573_v31, %v3278_v25  ;;  %v10914_v25 = vld [vmem:[#allocation30_spill] sm:$0xff] }
 0x31c   :  { %v8968_v3 = vadd.f32 %v10913_v48, %v6716_v14  ;;  %v3801_v18 = vmul.f32 %v6728_v43, %v3533_v15  ;;  %v3802_v49 = vmul.f32 %v6740_v51, %v3534_v34  ;;  %v4345_v16 = vadd.f32 %v7881_v33, %v4017_v41  ;;  %v8973_v36 = vpop.f32.mrb[152].mxu1 }
 0x31d   :  { %vm3023_vm4 = vcmp.gt.f32.partialorder %v8913_v40, 0.0  ;;  %vm1362_vm5 = vcmp.gt.f32.partialorder %v8923_v22, 0.0  ;;  %v1618_v62 = vmul.f32 0.2, %v8923_v22  ;;  %vm3024_vm7 = vcmp.gt.f32.partialorder %v8929_v57, 0.0  ;;  %2845 = vmatmul.mubr.bf16.gmra.mrb[224].mxu1 %v2008_v17  ;;  %v8979_v31 = vpop.f32.mrb[153].mxu1 }
 0x31e   :  { %v3280_v38 = vmul.f32 0.2, %v8929_v57  ;;  %v1090_v27 = vadd.f32 %v10914_v25, %v6293_v61  ;;  %v4120_v11 = vadd.f32 %v3802_v49, %v3801_v18  ;;  %v4473_v41 = vsub.f32 0.0, %v4345_v16  ;;  %v8984_v54 = vpop.f32.mrb[154].mxu1  ;;  %v10915_v25 = vld [vmem:[#allocation9_spill] sm:$0xff] }
 0x31f   :  { %v5482_v19 = vpop.eup %5481  ;;  %vm1363_vm8 = vcmp.gt.f32.partialorder %v8933_v23, 0.0  ;;  %v1619_v12 = vmul.f32 0.2, %v8933_v23  ;;  %vm3025_vm9 = vcmp.gt.f32.partialorder %v8945_v30, 0.0  ;;  %v3281_v58 = vmul.f32 0.2, %v8945_v30 }
 0x320   :  { %v5484_v63 = vpop.eup %5483  ;;  %5110 = vst.msk [vmem:[%s10808_s7 + $0xc0] sm:$0xff] %vm5085_vm6, %v5482_v19  ;;  %vm1364_vm0 = vcmp.gt.f32.partialorder %v8954_v46, 0.0  ;;  %v1620_v7 = vmul.f32 0.2, %v8954_v46  ;;  %vm3026_vm10 = vcmp.gt.f32.partialorder %v8968_v3, 0.0  ;;  %4121 = vadd.xlane.f32.xlu1 %v4120_v11  ;;  %v9000_v15 = vadd.f32 %v8378_v1, %v6706_v10  ;;  %v9003_v48 = vpop.f32.mrb[155].mxu1 }
 0x321   :  { %v4629_v6 = vmul.f32 1.442695, %v4473_v41  ;;  %v4855_v9 = vadd.f32 1.0, %v5484_v63  ;;  %v3282_v17 = vmul.f32 0.2, %v8968_v3  ;;  %v4346_v34 = vadd.f32 %v7881_v33, %v4020_v53  ;;  %v10916_v19 = vld [vmem:[#allocation10_spill] sm:$0xff] }
 0x322   :  { %v1621_v18 = vmul.f32 0.2, %v1090_v27  ;;  %v3535_v49 = vsel %vm3023_vm4, %v8913_v40, %v3279_v21  ;;  %v3536_v16 = vsel %vm3024_vm7, %v8929_v57, %v3280_v38  ;;  %vm1365_vm11 = vcmp.gt.f32.partialorder %v1090_v27, 0.0 }
 0x323   :  { %5489 = vpow2.f32 %v4629_v6  ;;  %v9013_v1 = vadd.f32 %v10915_v25, %v6290_v60  ;;  %v4474_v11 = vsub.f32 0.0, %v4346_v34  ;;  %v9017_v53 = vadd.f32 %v8390_v50, %v6716_v14  ;;  %v4023_v25 = vpop.xlane.xlu0 %4022 }
 0x324   :  { %5491 = vrcp.f32 %v4855_v9  ;;  %v5486_v41 = vpop.eup %5485  ;;  %v9021_v63 = vadd.f32 %v10916_v19, %v6293_v61  ;;  %v3803_v40 = vmul.f32 %v6728_v43, %v3535_v49  ;;  %v3804_v57 = vmul.f32 %v6740_v51, %v3536_v16 }
 0x325   :  { %v5488_v21 = vpop.eup %5487  ;;  %v4856_v38 = vadd.f32 1.0, %v5486_v41  ;;  %vm3027_vm12 = vcmp.gt.f32.partialorder %v9000_v15, 0.0  ;;  %v9028_v6 = vadd.f32 %v8400_v32, %v6706_v10  ;;  %v4631_v9 = vmul.f32 1.442695, %v4474_v11 }
 0x326   :  { %5111 = vst.msk [vmem:[%s10808_s7 + $0xc8] sm:$0xff] %vm5085_vm6, %v5488_v21  ;;  %v4123_v50 = vadd.f32 %v3804_v57, %v3803_v40  ;;  %v1875_v34 = vsel %vm1363_vm8, %v8933_v23, %v1619_v12  ;;  %v1877_v49 = vsel %vm1365_vm11, %v1090_v27, %v1621_v18  ;;  %v1876_v16 = vsel %vm1364_vm0, %v8954_v46, %v1620_v7  ;;  %v9041_v32 = vpop.f32.mrb[156].mxu1  ;;  %v10918_v7 = vld [vmem:[#allocation31_spill] sm:$0xff] }
 0x327   :  { %5493 = vrcp.f32 %v4856_v38  ;;  %v3283_v11 = vmul.f32 0.2, %v9000_v15  ;;  %v2011_v41 = vpack.c.bf16 %v1877_v49, %v1875_v34  ;;  %v1874_v19 = vsel %vm1362_vm5, %v8923_v22, %v1618_v62  ;;  %v9047_v40 = vpop.f32.mrb[157].mxu1  ;;  %v4026_v34 = vpop.xlane.xlu1 %4025 }
 0x328   :  { %5495 = vpow2.f32 %v4631_v9  ;;  %4124 = vadd.xlane.f32.xlu0 %v4123_v50  ;;  %v2010_v23 = vpack.c.bf16 %v1876_v16, %v1874_v19  ;;  %v3537_v46 = vsel %vm3025_vm9, %v8945_v30, %v3281_v58  ;;  %v3538_v27 = vsel %vm3026_vm10, %v8968_v3, %v3282_v17  ;;  %v9055_v12 = vpop.f32.mrb[158].mxu1  ;;  %v10920_v58 = vld [vmem:[#allocation32_spill] sm:$0xff] }
 0x329   :  { %10917 = vst [vmem:[#allocation26_spill] sm:$0xff] %v9055_v12  ;;  %v9059_v18 = vadd.f32 %v10918_v7, %v6290_v60  ;;  %2854 = vmatprep.mubr.bf16.mxu1 %v2011_v41  ;;  %v3805_v22 = vmul.f32 %v6728_v43, %v3537_v46  ;;  %v3806_v62 = vmul.f32 %v6740_v51, %v3538_v27  ;;  %v9064_v21 = vpop.f32.mrb[159].mxu1  ;;  %vm1366_vm13 = vcmp.gt.f32.partialorder %v9013_v1, 0.0  ;;  %v10921_v7 = vld [vmem:[#allocation13_spill] sm:$0xff]  ;;  %v4029_v12 = vpop.xlane.xlu0 %4028 }
 0x32a   :  { %v4347_v57 = vadd.f32 %v7881_v33, %v4023_v25  ;;  %10919 = vst [vmem:[#allocation5_spill] sm:$0xff] %v9064_v21  ;;  %v1622_v30 = vmul.f32 0.2, %v9013_v1  ;;  %v2593_v3 = vadd.f32 %v8411_v29, %v6716_v14  ;;  %v1100_v17 = vadd.f32 %v10920_v58, %v6293_v61  ;;  %2855 = vmatmul.mubr.bf16.gmra.mrb[228].mxu1 %v2010_v23 }
 0x32b   :  { %vm3028_vm14 = vcmp.gt.f32.partialorder %v9017_v53, 0.0  ;;  %v3284_v38 = vmul.f32 0.2, %v9017_v53  ;;  %v4126_v9 = vadd.f32 %v3806_v62, %v3805_v22  ;;  %vm1367_vm15 = vcmp.gt.f32.partialorder %v9021_v63, 0.0 }
 0x32c   :  { %v4475_v50 = vsub.f32 0.0, %v4347_v57  ;;  %v1623_v16 = vmul.f32 0.2, %v9021_v63  ;;  %vm3029_vm1 = vcmp.gt.f32.partialorder %v9028_v6, 0.0  ;;  %v3285_v29 = vmul.f32 0.2, %v9028_v6 }
 0x32d   :  { %v5490_v49 = vpop.eup %5489  ;;  %vm1368_vm2 = vcmp.gt.f32.partialorder %v9059_v18, 0.0  ;;  %v1624_v19 = vmul.f32 0.2, %v9059_v18  ;;  %4127 = vadd.xlane.f32.xlu1 %v4126_v9  ;;  %vm3030_vm3 = vcmp.gt.f32.partialorder %v2593_v3, 0.0  ;;  %vm1369_vm4 = vcmp.gt.f32.partialorder %v1100_v17, 0.0  ;;  %v10922_v9 = vld [vmem:[#allocation33_spill] sm:$0xff] }
 0x32e   :  { %v5492_v25 = vpop.eup %5491  ;;  %v4857_v41 = vadd.f32 1.0, %v5490_v49  ;;  %v4633_v23 = vmul.f32 1.442695, %v4475_v50  ;;  %v1625_v46 = vmul.f32 0.2, %v1100_v17  ;;  %v4348_v27 = vadd.f32 %v7881_v33, %v4026_v34 }
 0x32f   :  { %5112 = vst.msk [vmem:[%s10808_s7 + $0xd0] sm:$0xff] %vm5085_vm6, %v5492_v25  ;;  %v9087_v22 = vadd.f32 %v10921_v7, %v6706_v10  ;;  %v3539_v62 = vsel %vm3027_vm12, %v9000_v15, %v3283_v11  ;;  %v3540_v57 = vsel %vm3028_vm14, %v9017_v53, %v3284_v38  ;;  %v3286_v58 = vmul.f32 0.2, %v2593_v3  ;;  %v10924_v15 = vld [vmem:[#allocation34_spill] sm:$0xff] }
 0x330   :  { %5497 = vrcp.f32 %v4857_v41  ;;  %v9097_v50 = vadd.f32 %v10922_v9, %v6290_v60  ;;  %v4476_v34 = vsub.f32 0.0, %v4348_v27  ;;  %v9099_v49 = vpop.f32.mrb[160].mxu1  ;;  %v9103_v41 = vadd.f32 %v8467_v47, %v6716_v14  ;;  %v10926_v27 = vld [vmem:[#allocation15_spill] sm:$0xff] }
 0x331   :  { %5499 = vpow2.f32 %v4633_v23  ;;  %10923 = vst [vmem:[#allocation6_spill] sm:$0xff] %v9099_v49  ;;  %v5494_v25 = vpop.eup %5493  ;;  %v9107_v11 = vadd.f32 %v10924_v15, %v6293_v61  ;;  %v3807_v53 = vmul.f32 %v6728_v43, %v3539_v62  ;;  %v3808_v38 = vmul.f32 %v6740_v51, %v3540_v57  ;;  %v9111_v23 = vpop.f32.mrb[161].mxu1 }
 0x332   :  { %10925 = vst [vmem:[#allocation7_spill] sm:$0xff] %v9111_v23  ;;  %v5496_v7 = vpop.eup %5495  ;;  %5113 = vst.msk [vmem:[%s10808_s7 + $0xd8] sm:$0xff] %vm5085_vm6, %v5494_v25  ;;  %v9119_v47 = vadd.f32 %v10926_v27, %v6706_v10  ;;  %v4635_v9 = vmul.f32 1.442695, %v4476_v34  ;;  %v1879_v15 = vsel %vm1367_vm15, %v9021_v63, %v1623_v16  ;;  %v1881_v62 = vsel %vm1369_vm4, %v1100_v17, %v1625_v46  ;;  %v9125_v57 = vpop.f32.mrb[162].mxu1  ;;  %v10927_v27 = vld [vmem:[#allocation35_spill] sm:$0xff] }
 0x333   :  { %v4858_v23 = vadd.f32 1.0, %v5496_v7  ;;  %vm3031_vm5 = vcmp.gt.f32.partialorder %v9087_v22, 0.0  ;;  %v4129_v49 = vadd.f32 %v3808_v38, %v3807_v53  ;;  %v2013_v21 = vpack.c.bf16 %v1881_v62, %v1879_v15  ;;  %v9128_v25 = vpop.f32.mrb[163].mxu1 }
 0x334   :  { %5501 = vpow2.f32 %v4635_v9  ;;  %v9132_v34 = vadd.f32 %v10927_v27, %v6290_v60  ;;  %v1878_v63 = vsel %vm1366_vm13, %v9013_v1, %v1622_v30  ;;  %v1880_v17 = vsel %vm1368_vm2, %v9059_v18, %v1624_v19 }
 0x335   :  { %5503 = vrcp.f32 %v4858_v23  ;;  %4130 = vadd.xlane.f32.xlu0 %v4129_v49  ;;  %2864 = vmatprep.mubr.bf16.mxu1 %v2013_v21  ;;  %v2012_v16 = vpack.c.bf16 %v1880_v17, %v1878_v63  ;;  %v3541_v46 = vsel %vm3029_vm1, %v9028_v6, %v3285_v29  ;;  %v3542_v53 = vsel %vm3030_vm3, %v2593_v3, %v3286_v58  ;;  %v4032_v49 = vpop.xlane.xlu1 %4031 }
 0x336   :  { %v9146_v38 = vadd.f32 %v8491_v37, %v6716_v14  ;;  %v3809_v1 = vmul.f32 %v6728_v43, %v3541_v46  ;;  %v3810_v30 = vmul.f32 %v6740_v51, %v3542_v53  ;;  %v4349_v18 = vadd.f32 %v7881_v33, %v4029_v12  ;;  %v10928_v37 = vld [vmem:[#allocation36_spill] sm:$0xff] }
 0x337   :  { %v3287_v19 = vmul.f32 0.2, %v9087_v22  ;;  %vm1370_vm7 = vcmp.gt.f32.partialorder %v9097_v50, 0.0  ;;  %v1626_v21 = vmul.f32 0.2, %v9097_v50  ;;  %vm3032_vm8 = vcmp.gt.f32.partialorder %v9103_v41, 0.0  ;;  %2865 = vmatmul.mubr.bf16.gmra.mrb[232].mxu1 %v2012_v16 }
 0x338   :  { %v3288_v6 = vmul.f32 0.2, %v9103_v41  ;;  %v1110_v3 = vadd.f32 %v10928_v37, %v6293_v61  ;;  %v4132_v29 = vadd.f32 %v3810_v30, %v3809_v1  ;;  %v4477_v58 = vsub.f32 0.0, %v4349_v18 }
 0x339   :  { %vm1371_vm9 = vcmp.gt.f32.partialorder %v9107_v11, 0.0  ;;  %v1627_v12 = vmul.f32 0.2, %v9107_v11  ;;  %vm3033_vm0 = vcmp.gt.f32.partialorder %v9119_v47, 0.0  ;;  %v3289_v7 = vmul.f32 0.2, %v9119_v47 }
 0x33a   :  { %v5498_v23 = vpop.eup %5497  ;;  %vm1372_vm10 = vcmp.gt.f32.partialorder %v9132_v34, 0.0  ;;  %v1628_v15 = vmul.f32 0.2, %v9132_v34  ;;  %vm3034_vm11 = vcmp.gt.f32.partialorder %v9146_v38, 0.0  ;;  %4133 = vadd.xlane.f32.xlu1 %v4132_v29  ;;  %v4637_v62 = vmul.f32 1.442695, %v4477_v58 }
 0x33b   :  { %v5500_v9 = vpop.eup %5499  ;;  %5114 = vst.msk [vmem:[%s10808_s7 + $0xe0] sm:$0xff] %vm5085_vm6, %v5498_v23  ;;  %v3290_v63 = vmul.f32 0.2, %v9146_v38  ;;  %v9172_v17 = vadd.f32 %v8538_v26, %v6706_v10  ;;  %v4350_v16 = vadd.f32 %v7881_v33, %v4032_v49  ;;  %v9175_v46 = vpop.f32.mrb[164].mxu1  ;;  %v1629_v53 = vmul.f32 0.2, %v1110_v3 }
 0x33c   :  { %v4859_v27 = vadd.f32 1.0, %v5500_v9  ;;  %5505 = vpow2.f32 %v4637_v62  ;;  %v3543_v1 = vsel %vm3031_vm5, %v9087_v22, %v3287_v19  ;;  %v3544_v30 = vsel %vm3032_vm8, %v9103_v41, %v3288_v6  ;;  %v9183_v18 = vpop.f32.mrb[165].mxu1  ;;  %v10929_v26 = vld [vmem:[#allocation12_spill] sm:$0xff]  ;;  %v10930_v22 = vld [vmem:[#allocation37_spill] sm:$0xff] }
 0x33d   :  { %vm1373_vm12 = vcmp.gt.f32.partialorder %v1110_v3, 0.0  ;;  %v9187_v37 = vadd.f32 %v10929_v26, %v6290_v60  ;;  %v4478_v29 = vsub.f32 0.0, %v4350_v16  ;;  %v9189_v58 = vpop.f32.mrb[166].mxu1  ;;  %v2609_v23 = vadd.f32 %v8552_v45, %v6716_v14 }
 0x33e   :  { %5507 = vrcp.f32 %v4859_v27  ;;  %v5502_v49 = vpop.eup %5501  ;;  %v9195_v19 = vadd.f32 %v10930_v22, %v6293_v61  ;;  %v3811_v41 = vmul.f32 %v6728_v43, %v3543_v1  ;;  %v3812_v6 = vmul.f32 %v6740_v51, %v3544_v30  ;;  %v9199_v9 = vpop.f32.mrb[167].mxu1 }
 0x33f   :  { %v5504_v62 = vpop.eup %5503  ;;  %v4860_v27 = vadd.f32 1.0, %v5502_v49  ;;  %vm3035_vm13 = vcmp.gt.f32.partialorder %v9172_v17, 0.0  ;;  %v9204_v16 = vadd.f32 %v8559_v24, %v6706_v10  ;;  %v4639_v26 = vmul.f32 1.442695, %v4478_v29  ;;  %v4035_v22 = vpop.xlane.xlu0 %4034 }
 0x340   :  { %5115 = vst.msk [vmem:[%s10808_s7 + $0xe8] sm:$0xff] %vm5085_vm6, %v5504_v62  ;;  %v4135_v45 = vadd.f32 %v3812_v6, %v3811_v41  ;;  %v1883_v1 = vsel %vm1371_vm9, %v9107_v11, %v1627_v12  ;;  %v1885_v30 = vsel %vm1373_vm12, %v1110_v3, %v1629_v53  ;;  %v1884_v49 = vsel %vm1372_vm10, %v9132_v34, %v1628_v15  ;;  %v4038_v41 = vpop.xlane.xlu1 %4037  ;;  %v10931_v3 = vld [vmem:[#allocation14_spill] sm:$0xff] }
 0x341   :  { %5509 = vrcp.f32 %v4860_v27  ;;  %v3291_v24 = vmul.f32 0.2, %v9172_v17  ;;  %v2015_v29 = vpack.c.bf16 %v1885_v30, %v1883_v1  ;;  %v1882_v62 = vsel %vm1370_vm7, %v9097_v50, %v1626_v21 }
 0x342   :  { %5511 = vpow2.f32 %v4639_v26  ;;  %4136 = vadd.xlane.f32.xlu0 %v4135_v45  ;;  %v2014_v6 = vpack.c.bf16 %v1884_v49, %v1882_v62  ;;  %v3545_v11 = vsel %vm3033_vm0, %v9119_v47, %v3289_v7  ;;  %v3546_v34 = vsel %vm3034_vm11, %v9146_v38, %v3290_v63 }
 0x343   :  { %v1118_v12 = vadd.f32 %v10931_v3, %v6290_v60  ;;  %2874 = vmatprep.mubr.bf16.mxu1 %v2015_v29  ;;  %v3813_v15 = vmul.f32 %v6728_v43, %v3545_v11  ;;  %v3814_v50 = vmul.f32 %v6740_v51, %v3546_v34  ;;  %v4351_v21 = vadd.f32 %v7881_v33, %v4035_v22  ;;  %v10932_v60 = vld [vmem:[#allocation16_spill] sm:$0xff] }
 0x344   :  { %vm1374_vm14 = vcmp.gt.f32.partialorder %v9187_v37, 0.0  ;;  %v1630_v53 = vmul.f32 0.2, %v9187_v37  ;;  %vm3036_vm15 = vcmp.gt.f32.partialorder %v2609_v23, 0.0  ;;  %2875 = vmatmul.mubr.bf16.gmra.mrb[236].mxu1 %v2014_v6  ;;  %v4352_v47 = vadd.f32 %v7881_v33, %v4038_v41  ;;  %v9235_v7 = vpop.f32.mrb[168].mxu1 }
 0x345   :  { %v3292_v38 = vmul.f32 0.2, %v2609_v23  ;;  %v1120_v63 = vadd.f32 %v10932_v60, %v6293_v61  ;;  %v4138_v27 = vadd.f32 %v3814_v50, %v3813_v15  ;;  %v4479_v26 = vsub.f32 0.0, %v4351_v21  ;;  %v9239_v45 = vpop.f32.mrb[169].mxu1 }
 0x346   :  { %v5506_v1 = vpop.eup %5505  ;;  %vm1375_vm1 = vcmp.gt.f32.partialorder %v9195_v19, 0.0  ;;  %v1631_v30 = vmul.f32 0.2, %v9195_v19  ;;  %vm3037_vm2 = vcmp.gt.f32.partialorder %v9204_v16, 0.0  ;;  %v2613_v49 = vadd.f32 %v8571_v8, %v6716_v14  ;;  %v9258_v34 = vpop.f32.mrb[170].mxu1 }
 0x347   :  { %v4861_v29 = vadd.f32 1.0, %v5506_v1  ;;  %v3293_v62 = vmul.f32 0.2, %v9204_v16  ;;  %vm1376_vm3 = vcmp.gt.f32.partialorder %v1118_v12, 0.0  ;;  %4139 = vadd.xlane.f32.xlu1 %v4138_v27  ;;  %v4641_v61 = vmul.f32 1.442695, %v4479_v26 }
 0x348   :  { %v5508_v22 = vpop.eup %5507  ;;  %v1632_v41 = vmul.f32 0.2, %v1118_v12  ;;  %v9253_v6 = vadd.f32 %v8624_v44, %v6706_v10  ;;  %v4480_v11 = vsub.f32 0.0, %v4352_v47  ;;  %v3547_v8 = vsel %vm3035_vm13, %v9172_v17, %v3291_v24  ;;  %v9262_v21 = vpop.f32.mrb[171].mxu1  ;;  %v10933_v27 = vld [vmem:[#allocation17_spill] sm:$0xff] }
 0x349   :  { %5116 = vst.msk [vmem:[%s10808_s7 + $0xf0] sm:$0xff] %vm5085_vm6, %v5508_v22  ;;  %5513 = vrcp.f32 %v4861_v29  ;;  %v1633_v3 = vmul.f32 0.2, %v1120_v63  ;;  %v3548_v15 = vsel %vm3036_vm15, %v2609_v23, %v3292_v38  ;;  %v3815_v50 = vmul.f32 %v6728_v43, %v3547_v8  ;;  %v10934_v8 = vld [vmem:[#allocation3_spill] sm:$0xff] }
 0x34a   :  { %vm3038_vm4 = vcmp.gt.f32.partialorder %v2613_v49, 0.0  ;;  %vm1377_vm5 = vcmp.gt.f32.partialorder %v1120_v63, 0.0  ;;  %5515 = vpow2.f32 %v4641_v61  ;;  %v4643_v44 = vmul.f32 1.442695, %v4480_v11  ;;  %v4041_v11 = vpop.xlane.xlu0 %4040 }
 0x34b   :  { %v5510_v60 = vpop.eup %5509  ;;  %v3294_v47 = vmul.f32 0.2, %v2613_v49  ;;  %v9266_v26 = vadd.f32 %v10933_v27, %v6706_v10  ;;  %v2619_v17 = vadd.f32 %v8643_v56, %v6716_v14  ;;  %v3816_v24 = vmul.f32 %v6740_v51, %v3548_v15  ;;  %v4044_v27 = vpop.xlane.xlu1 %4043 }
 0x34c   :  { %v5512_v23 = vpop.eup %5511  ;;  %5117 = vst.msk [vmem:[%s10808_s7 + $0xf8] sm:$0xff] %vm5085_vm6, %v5510_v60  ;;  %vm3039_vm7 = vcmp.gt.f32.partialorder %v9253_v6, 0.0  ;;  %v3295_v38 = vmul.f32 0.2, %v9253_v6  ;;  %v9279_v1 = vadd.f32 %v8653_v5, %v6706_v10  ;;  %5517 = vpow2.f32 %v4643_v44 }
 0x34d   :  { %v4862_v22 = vadd.f32 1.0, %v5512_v23  ;;  %v4141_v29 = vadd.f32 %v3816_v24, %v3815_v50  ;;  %v1887_v56 = vsel %vm1375_vm1, %v9195_v19, %v1631_v30  ;;  %v1889_v61 = vsel %vm1377_vm5, %v1120_v63, %v1633_v3 }
 0x34e   :  { %v9287_v15 = vadd.f32 %v10934_v8, %v6716_v14  ;;  %v2017_v60 = vpack.c.bf16 %v1889_v61, %v1887_v56  ;;  %v1886_v5 = vsel %vm1374_vm14, %v9187_v37, %v1630_v53  ;;  %v1888_v44 = vsel %vm1376_vm3, %v1118_v12, %v1632_v41  ;;  %v9293_v50 = vpop.f32.mrb[172].mxu1  ;;  %v10940_v8 = vld [vmem:[#allocation39_spill] sm:$0xff] }
 0x34f   :  { %10935 = vst [vmem:[#allocation27_spill] sm:$0xff] %v9293_v50  ;;  %5519 = vrcp.f32 %v4862_v22  ;;  %vm2895_vm8 = vcmp.gt.f32.partialorder %v9266_v26, 0.0  ;;  %4142 = vadd.xlane.f32.xlu0 %v4141_v29  ;;  %v2016_v19 = vpack.c.bf16 %v1888_v44, %v1886_v5  ;;  %v3549_v63 = vsel %vm3037_vm2, %v9204_v16, %v3293_v62  ;;  %v9300_v3 = vpop.f32.mrb[173].mxu1  ;;  %v10938_v16 = vld [vmem:[#allocation38_spill] sm:$0xff] }
 0x350   :  { %v3550_v30 = vsel %vm3038_vm4, %v2613_v49, %v3294_v47  ;;  %10936 = vst [vmem:[#allocation28_spill] sm:$0xff] %v9300_v3  ;;  %v2623_v37 = vadd.f32 %v8661_v2, %v6716_v14  ;;  %2884 = vmatprep.mubr.bf16.mxu1 %v2017_v60  ;;  %v3817_v12 = vmul.f32 %v6728_v43, %v3549_v63  ;;  %v9307_v24 = vpop.f32.mrb[174].mxu1  ;;  %v3151_v23 = vmul.f32 0.2, %v9266_v26 }
 0x351   :  { %v3818_v53 = vmul.f32 %v6740_v51, %v3550_v30  ;;  %v4353_v41 = vadd.f32 %v7881_v33, %v4041_v11  ;;  %10937 = vst [vmem:[#allocation29_spill] sm:$0xff] %v9307_v24  ;;  %vm3040_vm9 = vcmp.gt.f32.partialorder %v2619_v17, 0.0  ;;  %v9312_v49 = vadd.f32 %v10938_v16, %v6706_v10  ;;  %2885 = vmatmul.mubr.bf16.gmra.mrb[240].mxu1 %v2016_v19  ;;  %v9315_v2 = vpop.f32.mrb[175].mxu1 }
 0x352   :  { %v4354_v62 = vadd.f32 %v7881_v33, %v4044_v27  ;;  %10939 = vst [vmem:[#allocation8_spill] sm:$0xff] %v9315_v2  ;;  %v3296_v47 = vmul.f32 0.2, %v2619_v17  ;;  %vm3041_vm0 = vcmp.gt.f32.partialorder %v9279_v1, 0.0  ;;  %v3297_v61 = vmul.f32 0.2, %v9279_v1 }
 0x353   :  { %v4144_v22 = vadd.f32 %v3818_v53, %v3817_v12  ;;  %v4481_v29 = vsub.f32 0.0, %v4353_v41  ;;  %v5514_v56 = vpop.eup %5513  ;;  %vm2896_vm10 = vcmp.gt.f32.partialorder %v9287_v15, 0.0  ;;  %v3152_v11 = vmul.f32 0.2, %v9287_v15 }
 0x354   :  { %v9323_v60 = vadd.f32 %v10940_v8, %v6716_v14  ;;  %v5516_v5 = vpop.eup %5515  ;;  %5118 = vst.msk [vmem:[%s10808_s7 + $0x100] sm:$0xff] %vm5085_vm6, %v5514_v56  ;;  %vm3042_vm11 = vcmp.gt.f32.partialorder %v2623_v37, 0.0  ;;  %v3298_v44 = vmul.f32 0.2, %v2623_v37  ;;  %v4482_v19 = vsub.f32 0.0, %v4354_v62 }
 0x355   :  { %4145 = vadd.xlane.f32.xlu1 %v4144_v22  ;;  %v4645_v27 = vmul.f32 1.442695, %v4481_v29  ;;  %v4863_v63 = vadd.f32 1.0, %v5516_v5  ;;  %v9330_v30 = vmul.f32 0.2, %v9312_v49  ;;  %v9334_v12 = vadd.f32 %v8703_v55, %v6706_v10  ;;  %v10941_v55 = vld [vmem:[#allocation40_spill] sm:$0xff] }
 0x356   :  { %v3551_v53 = vsel %vm3039_vm7, %v9253_v6, %v3295_v38  ;;  %v5518_v41 = vpop.eup %5517  ;;  %v4647_v16 = vmul.f32 1.442695, %v4482_v19  ;;  %v3552_v56 = vsel %vm3040_vm9, %v2619_v17, %v3296_v47  ;;  %vm2897_vm12 = vcmp.gt.f32.partialorder %v9312_v49, 0.0  ;;  %v10943_v19 = vld [vmem:[#allocation41_spill] sm:$0xff] }
 0x357   :  { %5521 = vpow2.f32 %v4645_v27  ;;  %v3819_v22 = vmul.f32 %v6728_v43, %v3551_v53  ;;  %v4864_v62 = vadd.f32 1.0, %v5518_v41  ;;  %v9343_v29 = vmul.f32 0.2, %v9323_v60 }
 0x358   :  { %5523 = vrcp.f32 %v4863_v63  ;;  %v9347_v8 = vadd.f32 %v10941_v55, %v6706_v10  ;;  %vm2898_vm13 = vcmp.gt.f32.partialorder %v9323_v60, 0.0  ;;  %v9352_v6 = vadd.f32 %v8712_v52, %v6716_v14  ;;  %v9359_v47 = vpop.f32.mrb[176].mxu1 }
 0x359   :  { %v9356_v17 = vadd.f32 %v8722_v35, %v6706_v10  ;;  %5525 = vpow2.f32 %v4647_v16  ;;  %v3820_v38 = vmul.f32 %v6740_v51, %v3552_v56  ;;  %10942 = vst [vmem:[#allocation11_spill] sm:$0xff] %v9359_v47  ;;  %v5520_v5 = vpop.eup %5519  ;;  %v9362_v27 = vmul.f32 0.2, %v9334_v12  ;;  %v9371_v35 = vpop.f32.mrb[177].mxu1 }
 0x35a   :  { %5527 = vrcp.f32 %v4864_v62  ;;  %v9366_v63 = vadd.f32 %v10943_v19, %v6716_v14  ;;  %v3553_v52 = vsel %vm3041_vm0, %v9279_v1, %v3297_v61  ;;  %10944 = vst [vmem:[#allocation30_spill] sm:$0xff] %v9371_v35  ;;  %5119 = vst.msk [vmem:[%s10808_s7 + $0x108] sm:$0xff] %vm5085_vm6, %v5520_v5  ;;  %v3554_v41 = vsel %vm3042_vm11, %v2623_v37, %v3298_v44  ;;  %v4047_v62 = vpop.xlane.xlu0 %4046  ;;  %v9382_v55 = vpop.f32.mrb[178].mxu1  ;;  %v10946_v61 = vld [vmem:[#allocation43_spill] sm:$0xff]  ;;  %v10947_v37 = vld [vmem:[#allocation42_spill] sm:$0xff] }
 0x35b   :  { %v4147_v53 = vadd.f32 %v3820_v38, %v3819_v22  ;;  %v3821_v16 = vmul.f32 %v6728_v43, %v3553_v52  ;;  %v3407_v56 = vsel %vm2895_vm8, %v9266_v26, %v3151_v23  ;;  %10945 = vst [vmem:[#allocation9_spill] sm:$0xff] %v9382_v55  ;;  %vm2899_vm14 = vcmp.gt.f32.partialorder %v9347_v8, 0.0  ;;  %v10948_v26 = vld [vmem:[#allocation18_spill] sm:$0xff]  ;;  %v9406_v52 = vpop.f32.mrb[179].mxu1 }
 0x35c   :  { %v9386_v1 = vmul.f32 0.2, %v9347_v8  ;;  %v9390_v5 = vadd.f32 %v10946_v61, %v6716_v14  ;;  %v9394_v44 = vadd.f32 %v10947_v37, %v6706_v10  ;;  %vm3043_vm15 = vcmp.gt.f32.partialorder %v9334_v12, 0.0  ;;  %10949 = vst [vmem:[#allocation10_spill] sm:$0xff] %v9406_v52 }
 0x35d   :  { %4148 = vadd.xlane.f32.xlu0 %v4147_v53  ;;  %v9399_v23 = vadd.f32 %v10948_v26, %v6716_v14  ;;  %v3822_v22 = vmul.f32 %v6740_v51, %v3554_v41  ;;  %v3408_v38 = vsel %vm2896_vm10, %v9287_v15, %v3152_v11  ;;  %v3675_v19 = vmul.f32 %v6728_v43, %v3407_v56  ;;  %v4050_v56 = vpop.xlane.xlu1 %4049 }
 0x35e   :  { %v9409_v61 = vmul.f32 0.2, %v9352_v6  ;;  %v9412_v37 = vmul.f32 0.2, %v9356_v17  ;;  %v3676_v53 = vmul.f32 %v6740_v51, %v3408_v38  ;;  %v4355_v26 = vadd.f32 %v7881_v33, %v4047_v62 }
 0x35f   :  { %vm3044_vm1 = vcmp.gt.f32.partialorder %v9352_v6, 0.0  ;;  %vm2900_vm2 = vcmp.gt.f32.partialorder %v9366_v63, 0.0  ;;  %v3156_v15 = vmul.f32 0.2, %v9366_v63  ;;  %v4150_v11 = vadd.f32 %v3822_v22, %v3821_v16 }
 0x360   :  { %v9421_v41 = vadd.f32 %v8777_v28, %v6706_v10  ;;  %vm3045_vm3 = vcmp.gt.f32.partialorder %v9356_v17, 0.0  ;;  %vm3046_vm4 = vcmp.gt.f32.partialorder %v9390_v5, 0.0  ;;  %v9426_v38 = vmul.f32 0.2, %v9390_v5  ;;  %v10950_v28 = vld [vmem:[#allocation19_spill] sm:$0xff] }
 0x361   :  { %v3931_v62 = vadd.f32 %v3676_v53, %v3675_v19  ;;  %v4483_v52 = vsub.f32 0.0, %v4355_v26  ;;  %v5522_v55 = vpop.eup %5521  ;;  %v9429_v35 = vmul.f32 0.2, %v9394_v44  ;;  %v9432_v16 = vmul.f32 0.2, %v9399_v23  ;;  %4151 = vadd.xlane.f32.xlu1 %v4150_v11 }
 0x362   :  { %v9436_v22 = vadd.f32 %v10950_v28, %v6706_v10  ;;  %v9440_v47 = vadd.f32 %v8780_v4, %v6716_v14  ;;  %v5524_v2 = vpop.eup %5523  ;;  %v4865_v24 = vadd.f32 1.0, %v5522_v55  ;;  %v9444_v53 = vadd.f32 %v8792_v0, %v6706_v10  ;;  %v10951_v55 = vld [vmem:[#allocation20_spill] sm:$0xff]  ;;  %v9463_v11 = vpop.f32.mrb[180].mxu1 }
 0x363   :  { %3932 = vadd.xlane.f32.xlu0 %v3931_v62  ;;  %v4649_v19 = vmul.f32 1.442695, %v4483_v52  ;;  %v4356_v26 = vadd.f32 %v7881_v33, %v4050_v56  ;;  %v5526_v3 = vpop.eup %5525  ;;  %5120 = vst.msk [vmem:[%s10808_s7 + $0x110] sm:$0xff] %vm5085_vm6, %v5524_v2  ;;  %vm3047_vm5 = vcmp.gt.f32.partialorder %v9421_v41, 0.0  ;;  %v9453_v4 = vmul.f32 0.2, %v9421_v41 }
 0x364   :  { %v9457_v52 = vadd.f32 %v10951_v55, %v6716_v14  ;;  %v3409_v0 = vsel %vm2897_vm12, %v9312_v49, %v9330_v30  ;;  %v5528_v56 = vpop.eup %5527  ;;  %5529 = vrcp.f32 %v4865_v24  ;;  %v4866_v62 = vadd.f32 1.0, %v5526_v3  ;;  %v9469_v50 = vpop.f32.mrb[181].mxu1  ;;  %v10953_v3 = vld [vmem:[#allocation21_spill] sm:$0xff] }
 0x365   :  { %v4484_v2 = vsub.f32 0.0, %v4356_v26  ;;  %v3410_v28 = vsel %vm2898_vm13, %v9323_v60, %v9343_v29  ;;  %10952 = vst [vmem:[#allocation31_spill] sm:$0xff] %v9469_v50  ;;  %5121 = vst.msk [vmem:[%s10808_s7 + $0x118] sm:$0xff] %vm5085_vm6, %v5528_v56  ;;  %5531 = vpow2.f32 %v4649_v19  ;;  %v9476_v49 = vmul.f32 0.2, %v9436_v22  ;;  %v9485_v26 = vpop.f32.mrb[182].mxu1 }
 0x366   :  { %v9479_v24 = vmul.f32 0.2, %v9440_v47  ;;  %v9483_v30 = vadd.f32 %v10953_v3, %v6706_v10  ;;  %10954 = vst [vmem:[#allocation32_spill] sm:$0xff] %v9485_v26  ;;  %5533 = vrcp.f32 %v4866_v62  ;;  %vm3048_vm7 = vcmp.gt.f32.partialorder %v9440_v47, 0.0  ;;  %v9495_v55 = vpop.f32.mrb[183].mxu1  ;;  %v4053_v26 = vpop.xlane.xlu0 %4052 }
 0x367   :  { %v9489_v60 = vmul.f32 0.2, %v9444_v53  ;;  %v4651_v29 = vmul.f32 1.442695, %v4484_v2  ;;  %v9493_v19 = vadd.f32 %v8800_v59, %v6716_v14  ;;  %10955 = vst [vmem:[#allocation13_spill] sm:$0xff] %v9495_v55  ;;  %vm2901_vm8 = vcmp.gt.f32.partialorder %v9394_v44, 0.0 }
 0x368   :  { %v9499_v56 = vmul.f32 0.2, %v9457_v52  ;;  %v3677_v3 = vmul.f32 %v6728_v43, %v3409_v0  ;;  %v3678_v62 = vmul.f32 %v6740_v51, %v3410_v28  ;;  %v3411_v2 = vsel %vm2899_vm14, %v9347_v8, %v9386_v1  ;;  %v10956_v28 = vld [vmem:[#allocation4_spill] sm:$0xff] }
 0x369   :  { %vm2902_vm9 = vcmp.gt.f32.partialorder %v9399_v23, 0.0  ;;  %vm2903_vm0 = vcmp.gt.f32.partialorder %v9436_v22, 0.0  ;;  %5535 = vpow2.f32 %v4651_v29  ;;  %v3412_v59 = vsel %vm2900_vm2, %v9366_v63, %v3156_v15 }
 0x36a   :  { %v3679_v55 = vmul.f32 %v6728_v43, %v3411_v2  ;;  %v3555_v0 = vsel %vm3043_vm15, %v9334_v12, %v9362_v27  ;;  %vm2904_vm10 = vcmp.gt.f32.partialorder %v9457_v52, 0.0  ;;  %v9519_v8 = vmul.f32 0.2, %v9483_v30 }
 0x36b   :  { %v3934_v1 = vadd.f32 %v3678_v62, %v3677_v3  ;;  %v9523_v29 = vadd.f32 %v10956_v28, %v6716_v14  ;;  %v3680_v50 = vmul.f32 %v6740_v51, %v3412_v59  ;;  %v3556_v63 = vsel %vm3044_vm1, %v9352_v6, %v9409_v61 }
 0x36c   :  { %v3823_v15 = vmul.f32 %v6728_v43, %v3555_v0  ;;  %v9533_v12 = vadd.f32 %v8839_v13, %v6706_v10  ;;  %v4357_v27 = vadd.f32 %v7881_v33, %v4053_v26  ;;  %vm3049_vm11 = vcmp.gt.f32.partialorder %v9444_v53, 0.0  ;;  %v4056_v13 = vpop.xlane.xlu1 %4055 }
 0x36d   :  { %3935 = vadd.xlane.f32.xlu0 %v3934_v1  ;;  %v3937_v3 = vadd.f32 %v3680_v50, %v3679_v55  ;;  %v3824_v62 = vmul.f32 %v6740_v51, %v3556_v63  ;;  %v3557_v2 = vsel %vm3045_vm3, %v9356_v17, %v9412_v37  ;;  %v3558_v6 = vsel %vm3046_vm4, %v9390_v5, %v9426_v38 }
 0x36e   :  { %vm3050_vm12 = vcmp.gt.f32.partialorder %v9493_v19, 0.0  ;;  %v3306_v61 = vmul.f32 0.2, %v9493_v19  ;;  %v4485_v26 = vsub.f32 0.0, %v4357_v27  ;;  %v3825_v50 = vmul.f32 %v6728_v43, %v3557_v2  ;;  %v5530_v5 = vpop.eup %5529  ;;  %v10957_v27 = vld [vmem:[#allocation22_spill] sm:$0xff] }
 0x36f   :  { %3938 = vadd.xlane.f32.xlu1 %v3937_v3  ;;  %v4153_v55 = vadd.f32 %v3824_v62, %v3823_v15  ;;  %v3826_v59 = vmul.f32 %v6740_v51, %v3558_v6  ;;  %v9552_v17 = vadd.f32 %v8845_v20, %v6716_v14  ;;  %v9556_v37 = vadd.f32 %v8855_v39, %v6706_v10  ;;  %v9566_v63 = vpop.f32.mrb[184].mxu1  ;;  %v5532_v20 = vpop.eup %5531 }
 0x370   :  { %v9559_v38 = vmul.f32 0.2, %v9523_v29  ;;  %v4653_v0 = vmul.f32 1.442695, %v4485_v26  ;;  %v4358_v1 = vadd.f32 %v7881_v33, %v4056_v13  ;;  %v3559_v28 = vsel %vm3047_vm5, %v9421_v41, %v9453_v4  ;;  %5122 = vst.msk [vmem:[%s10808_s7 + $0x120] sm:$0xff] %vm5085_vm6, %v5530_v5  ;;  %v5534_v41 = vpop.eup %5533 }
 0x371   :  { %4154 = vadd.xlane.f32.xlu0 %v4153_v55  ;;  %vm3051_vm13 = vcmp.gt.f32.partialorder %v9533_v12, 0.0  ;;  %v3307_v39 = vmul.f32 0.2, %v9533_v12  ;;  %v4156_v15 = vadd.f32 %v3826_v59, %v3825_v50  ;;  %v9576_v3 = vadd.f32 %v10957_v27, %v6716_v14  ;;  %v9578_v62 = vpop.f32.mrb[185].mxu1  ;;  %5123 = vst.msk [vmem:[%s10808_s7 + $0x128] sm:$0xff] %vm5085_vm6, %v5534_v41  ;;  %v4059_v27 = vpop.xlane.xlu0 %4058 }
 0x372   :  { %v4867_v4 = vadd.f32 1.0, %v5532_v20  ;;  %5537 = vpow2.f32 %v4653_v0  ;;  %vm3052_vm14 = vcmp.gt.f32.partialorder %v9552_v17, 0.0  ;;  %v4486_v2 = vsub.f32 0.0, %v4358_v1  ;;  %v9581_v6 = vpop.f32.mrb[186].mxu1 }
 0x373   :  { %4157 = vadd.xlane.f32.xlu1 %v4156_v15  ;;  %v3308_v13 = vmul.f32 0.2, %v9552_v17  ;;  %v9589_v26 = vmul.f32 0.2, %v9556_v37  ;;  %v3560_v50 = vsel %vm3048_vm7, %v9440_v47, %v9479_v24  ;;  %v3827_v55 = vmul.f32 %v6728_v43, %v3559_v28  ;;  %v9596_v59 = vpop.f32.mrb[187].mxu1  ;;  %v5536_v5 = vpop.eup %5535 }
 0x374   :  { %5539 = vrcp.f32 %v4867_v4  ;;  %vm2905_vm15 = vcmp.gt.f32.partialorder %v9483_v30, 0.0  ;;  %v4655_v0 = vmul.f32 1.442695, %v4486_v2  ;;  %v3828_v1 = vmul.f32 %v6740_v51, %v3560_v50  ;;  %v4062_v2 = vpop.xlane.xlu1 %4061 }
 0x375   :  { %v3413_v20 = vsel %vm2901_vm8, %v9394_v44, %v9429_v35  ;;  %v4868_v15 = vadd.f32 1.0, %v5536_v5  ;;  %vm2906_vm1 = vcmp.gt.f32.partialorder %v9523_v29, 0.0  ;;  %v3414_v47 = vsel %vm2902_vm9, %v9399_v23, %v9432_v16 }
 0x376   :  { %v3681_v24 = vmul.f32 %v6728_v43, %v3413_v20  ;;  %v3415_v28 = vsel %vm2903_vm0, %v9436_v22, %v9476_v49  ;;  %5541 = vpow2.f32 %v4655_v0  ;;  %v4159_v41 = vadd.f32 %v3828_v1, %v3827_v55  ;;  %v10958_v1 = vld [vmem:[#allocation23_spill] sm:$0xff] }
 0x377   :  { %v3682_v35 = vmul.f32 %v6740_v51, %v3414_v47  ;;  %v3416_v44 = vsel %vm2904_vm10, %v9457_v52, %v9499_v56  ;;  %5543 = vrcp.f32 %v4868_v15  ;;  %vm3053_vm2 = vcmp.gt.f32.partialorder %v9556_v37, 0.0 }
 0x378   :  { %v3683_v23 = vmul.f32 %v6728_v43, %v3415_v28  ;;  %v3684_v16 = vmul.f32 %v6740_v51, %v3416_v44  ;;  %v9624_v22 = vadd.f32 %v8909_v42, %v6706_v10  ;;  %4160 = vadd.xlane.f32.xlu0 %v4159_v41  ;;  %v4359_v4 = vadd.f32 %v7881_v33, %v4059_v27  ;;  %v10960_v27 = vld [vmem:[#allocation25_spill] sm:$0xff] }
 0x379   :  { %v3940_v49 = vadd.f32 %v3682_v35, %v3681_v24  ;;  %v3561_v52 = vsel %vm3049_vm11, %v9444_v53, %v9489_v60  ;;  %v3562_v56 = vsel %vm3050_vm12, %v9493_v19, %v3306_v61  ;;  %vm3054_vm3 = vcmp.gt.f32.partialorder %v9576_v3, 0.0  ;;  %v10959_v53 = vld [vmem:[#allocation24_spill] sm:$0xff] }
 0x37a   :  { %v3310_v50 = vmul.f32 0.2, %v9576_v3  ;;  %v3943_v42 = vadd.f32 %v3684_v16, %v3683_v23  ;;  %v3829_v55 = vmul.f32 %v6728_v43, %v3561_v52  ;;  %v4487_v5 = vsub.f32 0.0, %v4359_v4 }
 0x37b   :  { %3941 = vadd.xlane.f32.xlu1 %v3940_v49  ;;  %v3830_v0 = vmul.f32 %v6740_v51, %v3562_v56  ;;  %v2659_v20 = vadd.f32 %v10958_v1, %v6716_v14  ;;  %v9642_v60 = vadd.f32 %v10959_v53, %v6706_v10  ;;  %vm3055_vm4 = vcmp.gt.f32.partialorder %v9624_v22, 0.0  ;;  %v4065_v49 = vpop.xlane.xlu0 %4064 }
 0x37c   :  { %v3311_v19 = vmul.f32 0.2, %v9624_v22  ;;  %v4360_v61 = vadd.f32 %v7881_v33, %v4062_v2  ;;  %v3563_v15 = vsel %vm3051_vm13, %v9533_v12, %v3307_v39  ;;  %v5538_v47 = vpop.eup %5537  ;;  %3944 = vadd.xlane.f32.xlu0 %v3943_v42  ;;  %v4657_v24 = vmul.f32 1.442695, %v4487_v5  ;;  %v9660_v52 = vpop.f32.mrb[188].mxu1 }
 0x37d   :  { %v4162_v28 = vadd.f32 %v3830_v0, %v3829_v55  ;;  %v9652_v41 = vadd.f32 %v10960_v27, %v6716_v14  ;;  %v3564_v35 = vsel %vm3052_vm14, %v9552_v17, %v3308_v13  ;;  %v4869_v44 = vadd.f32 1.0, %v5538_v47  ;;  %v9671_v2 = vpop.f32.mrb[189].mxu1 }
 0x37e   :  { %vm3056_vm5 = vcmp.gt.f32.partialorder %v2659_v20, 0.0  ;;  %v3312_v23 = vmul.f32 0.2, %v2659_v20  ;;  %v4488_v16 = vsub.f32 0.0, %v4360_v61  ;;  %v5540_v4 = vpop.eup %5539  ;;  %5545 = vpow2.f32 %v4657_v24  ;;  %v9683_v53 = vpop.f32.mrb[190].mxu1 }
 0x37f   :  { %4163 = vadd.xlane.f32.xlu1 %v4162_v28  ;;  %vm3057_vm7 = vcmp.gt.f32.partialorder %v9642_v60, 0.0  ;;  %v3313_v12 = vmul.f32 0.2, %v9642_v60  ;;  %v3831_v39 = vmul.f32 %v6728_v43, %v3563_v15  ;;  %5124 = vst.msk [vmem:[%s10808_s7 + $0x130] sm:$0xff] %vm5085_vm6, %v5540_v4  ;;  %5547 = vrcp.f32 %v4869_v44  ;;  %v9686_v47 = vpop.f32.mrb[191].mxu1  ;;  %v4068_v24 = vpop.xlane.xlu1 %4067 }
 0x380   :  { %v4659_v17 = vmul.f32 1.442695, %v4488_v16  ;;  %v3832_v13 = vmul.f32 %v6740_v51, %v3564_v35  ;;  %v3417_v56 = vsel %vm2905_vm15, %v9483_v30, %v9519_v8  ;;  %v5542_v42 = vpop.eup %5541  ;;  %v3418_v55 = vsel %vm2906_vm1, %v9523_v29, %v9559_v38 }
 0x381   :  { %v3685_v5 = vmul.f32 %v6728_v43, %v3417_v56  ;;  %v9680_v0 = vadd.f32 %v8973_v36, %v6706_v10  ;;  %v4361_v1 = vadd.f32 %v7881_v33, %v4065_v49  ;;  %v5544_v61 = vpop.eup %5543  ;;  %v4870_v30 = vadd.f32 1.0, %v5542_v42 }
 0x382   :  { %5549 = vpow2.f32 %v4659_v17  ;;  %v4165_v8 = vadd.f32 %v3832_v13, %v3831_v39  ;;  %v3686_v15 = vmul.f32 %v6740_v51, %v3418_v55  ;;  %5125 = vst.msk [vmem:[%s10808_s7 + $0x138] sm:$0xff] %vm5085_vm6, %v5544_v61  ;;  %vm3058_vm8 = vcmp.gt.f32.partialorder %v9652_v41, 0.0  ;;  %v4071_v13 = vpop.xlane.xlu0 %4070 }
 0x383   :  { %v3314_v36 = vmul.f32 0.2, %v9652_v41  ;;  %v4489_v29 = vsub.f32 0.0, %v4361_v1  ;;  %v3565_v38 = vsel %vm3053_vm2, %v9556_v37, %v9589_v26  ;;  %5551 = vrcp.f32 %v4870_v30 }
 0x384   :  { %4166 = vadd.xlane.f32.xlu0 %v4165_v8  ;;  %v3946_v28 = vadd.f32 %v3686_v15, %v3685_v5  ;;  %v3566_v27 = vsel %vm3054_vm3, %v9576_v3, %v3310_v50  ;;  %v3833_v35 = vmul.f32 %v6728_v43, %v3565_v38  ;;  %v2669_v49 = vadd.f32 %v8979_v31, %v6716_v14 }
 0x385   :  { %v4661_v44 = vmul.f32 1.442695, %v4489_v29  ;;  %v3834_v16 = vmul.f32 %v6740_v51, %v3566_v27  ;;  %v9707_v4 = vadd.f32 %v8984_v54, %v6706_v10  ;;  %vm3059_vm9 = vcmp.gt.f32.partialorder %v9680_v0, 0.0 }
 0x386   :  { %3947 = vadd.xlane.f32.xlu1 %v3946_v28  ;;  %v4362_v37 = vadd.f32 %v7881_v33, %v4068_v24  ;;  %v3567_v3 = vsel %vm3055_vm4, %v9624_v22, %v3311_v19  ;;  %v3568_v26 = vsel %vm3056_vm5, %v2659_v20, %v3312_v23  ;;  %v3315_v50 = vmul.f32 0.2, %v9680_v0  ;;  %v4074_v23 = vpop.xlane.xlu1 %4073 }
 0x387   :  { %5553 = vpow2.f32 %v4661_v44  ;;  %v4168_v39 = vadd.f32 %v3834_v16, %v3833_v35  ;;  %v9718_v31 = vadd.f32 %v9003_v48, %v6716_v14  ;;  %vm3060_vm0 = vcmp.gt.f32.partialorder %v2669_v49, 0.0  ;;  %v10961_v44 = vld [vmem:[#allocation26_spill] sm:$0xff] }
 0x388   :  { %v3316_v54 = vmul.f32 0.2, %v2669_v49  ;;  %vm3061_vm10 = vcmp.gt.f32.partialorder %v9707_v4, 0.0  ;;  %v4490_v17 = vsub.f32 0.0, %v4362_v37  ;;  %v5546_v56 = vpop.eup %5545  ;;  %v3317_v42 = vmul.f32 0.2, %v9707_v4 }
 0x389   :  { %v3835_v22 = vmul.f32 %v6728_v43, %v3567_v3  ;;  %v3836_v20 = vmul.f32 %v6740_v51, %v3568_v26  ;;  %v3569_v19 = vsel %vm3057_vm7, %v9642_v60, %v3313_v12  ;;  %v5548_v48 = vpop.eup %5547  ;;  %v4871_v55 = vadd.f32 1.0, %v5546_v56 }
 0x38a   :  { %4169 = vadd.xlane.f32.xlu1 %v4168_v39  ;;  %v4663_v5 = vmul.f32 1.442695, %v4490_v17  ;;  %v3570_v1 = vsel %vm3058_vm8, %v9652_v41, %v3314_v36  ;;  %v3837_v61 = vmul.f32 %v6728_v43, %v3569_v19  ;;  %5126 = vst.msk [vmem:[%s10808_s7 + $0x140] sm:$0xff] %vm5085_vm6, %v5548_v48  ;;  %v9738_v60 = vadd.f32 %v9041_v32, %v6706_v10  ;;  %v9748_v32 = vpop.f32.mrb[192].mxu1  ;;  %v10962_v39 = vld [vmem:[#allocation5_spill] sm:$0xff] }
 0x38b   :  { %v4171_v30 = vadd.f32 %v3836_v20, %v3835_v22  ;;  %v3838_v8 = vmul.f32 %v6740_v51, %v3570_v1  ;;  %v4363_v12 = vadd.f32 %v7881_v33, %v4071_v13  ;;  %5555 = vrcp.f32 %v4871_v55  ;;  %v9760_v3 = vpop.f32.mrb[193].mxu1 }
 0x38c   :  { %v5550_v15 = vpop.eup %5549  ;;  %vm3062_vm11 = vcmp.gt.f32.partialorder %v9718_v31, 0.0  ;;  %v9744_v41 = vadd.f32 %v9047_v40, %v6716_v14  ;;  %v4364_v36 = vadd.f32 %v7881_v33, %v4074_v23  ;;  %5557 = vpow2.f32 %v4663_v5  ;;  %v9768_v22 = vpop.f32.mrb[194].mxu1 }
 0x38d   :  { %v4872_v29 = vadd.f32 1.0, %v5550_v15  ;;  %v3318_v38 = vmul.f32 0.2, %v9718_v31  ;;  %4172 = vadd.xlane.f32.xlu0 %v4171_v30  ;;  %v4174_v24 = vadd.f32 %v3838_v8, %v3837_v61  ;;  %v5552_v28 = vpop.eup %5551  ;;  %vm3063_vm12 = vcmp.gt.f32.partialorder %v9738_v60, 0.0  ;;  %v4077_v5 = vpop.xlane.xlu0 %4076  ;;  %v10964_v15 = vld [vmem:[#allocation7_spill] sm:$0xff] }
 0x38e   :  { %v3319_v27 = vmul.f32 0.2, %v9738_v60  ;;  %v4491_v35 = vsub.f32 0.0, %v4363_v12  ;;  %v2681_v40 = vadd.f32 %v10961_v44, %v6706_v10  ;;  %5127 = vst.msk [vmem:[%s10808_s7 + $0x148] sm:$0xff] %vm5085_vm6, %v5552_v28  ;;  %vm3064_vm13 = vcmp.gt.f32.partialorder %v9744_v41, 0.0  ;;  %v9775_v1 = vpop.f32.mrb[195].mxu1 }
 0x38f   :  { %5559 = vrcp.f32 %v4872_v29  ;;  %4175 = vadd.xlane.f32.xlu1 %v4174_v24  ;;  %v3320_v16 = vmul.f32 0.2, %v9744_v41  ;;  %v4492_v37 = vsub.f32 0.0, %v4364_v36  ;;  %v2683_v17 = vadd.f32 %v10962_v39, %v6716_v14 }
 0x390   :  { %v4665_v26 = vmul.f32 1.442695, %v4491_v35  ;;  %v3571_v13 = vsel %vm3059_vm9, %v9680_v0, %v3315_v50  ;;  %v3572_v56 = vsel %vm3060_vm0, %v2669_v49, %v3316_v54  ;;  %v3573_v55 = vsel %vm3061_vm10, %v9707_v4, %v3317_v42  ;;  %v4080_v49 = vpop.xlane.xlu1 %4079  ;;  %v10963_v4 = vld [vmem:[#allocation6_spill] sm:$0xff] }
 0x391   :  { %v5554_v20 = vpop.eup %5553  ;;  %v4667_v19 = vmul.f32 1.442695, %v4492_v37  ;;  %v3839_v23 = vmul.f32 %v6728_v43, %v3571_v13  ;;  %v3840_v48 = vmul.f32 %v6740_v51, %v3572_v56  ;;  %vm3065_vm14 = vcmp.gt.f32.partialorder %v2681_v40, 0.0 }
 0x392   :  { %v4873_v61 = vadd.f32 1.0, %v5554_v20  ;;  %5561 = vpow2.f32 %v4665_v26  ;;  %v3321_v0 = vmul.f32 0.2, %v2681_v40  ;;  %v3574_v54 = vsel %vm3062_vm11, %v9718_v31, %v3318_v38 }
 0x393   :  { %5563 = vpow2.f32 %v4667_v19  ;;  %v4177_v50 = vadd.f32 %v3840_v48, %v3839_v23  ;;  %v3841_v30 = vmul.f32 %v6728_v43, %v3573_v55  ;;  %v3842_v8 = vmul.f32 %v6740_v51, %v3574_v54  ;;  %v4083_v55 = vpop.xlane.xlu0 %4082 }
 0x394   :  { %5565 = vrcp.f32 %v4873_v61  ;;  %v9784_v42 = vadd.f32 %v10963_v4, %v6706_v10  ;;  %v4365_v12 = vadd.f32 %v7881_v33, %v4077_v5  ;;  %vm3066_vm15 = vcmp.gt.f32.partialorder %v2683_v17, 0.0  ;;  %v4086_v4 = vpop.xlane.xlu1 %4085 }
 0x395   :  { %4178 = vadd.xlane.f32.xlu0 %v4177_v50  ;;  %v9789_v36 = vadd.f32 %v10964_v15, %v6716_v14  ;;  %v9793_v31 = vadd.f32 %v9125_v57, %v6706_v10  ;;  %v4366_v29 = vadd.f32 %v7881_v33, %v4080_v49  ;;  %v5556_v38 = vpop.eup %5555  ;;  %v3322_v24 = vmul.f32 0.2, %v2683_v17  ;;  %v9817_v5 = vpop.f32.mrb[196].mxu1 }
 0x396   :  { %v4180_v28 = vadd.f32 %v3842_v8, %v3841_v30  ;;  %v4493_v35 = vsub.f32 0.0, %v4365_v12  ;;  %v9798_v44 = vadd.f32 %v9128_v25, %v6716_v14  ;;  %v5558_v37 = vpop.eup %5557  ;;  %5128 = vst.msk [vmem:[%s10808_s7 + $0x150] sm:$0xff] %vm5085_vm6, %v5556_v38  ;;  %vm3067_vm1 = vcmp.gt.f32.partialorder %v9784_v42, 0.0 }
 0x397   :  { %v3323_v57 = vmul.f32 0.2, %v9784_v42  ;;  %vm3068_vm2 = vcmp.gt.f32.partialorder %v9789_v36, 0.0  ;;  %v3324_v26 = vmul.f32 0.2, %v9789_v36  ;;  %v4874_v39 = vadd.f32 1.0, %v5558_v37 }
 0x398   :  { %4181 = vadd.xlane.f32.xlu1 %v4180_v28  ;;  %v4669_v13 = vmul.f32 1.442695, %v4493_v35  ;;  %vm3069_vm3 = vcmp.gt.f32.partialorder %v9793_v31, 0.0  ;;  %v4494_v25 = vsub.f32 0.0, %v4366_v29  ;;  %v3325_v20 = vmul.f32 0.2, %v9793_v31 }
 0x399   :  { %v5560_v56 = vpop.eup %5559  ;;  %v3575_v19 = vsel %vm3063_vm12, %v9738_v60, %v3319_v27  ;;  %v3576_v23 = vsel %vm3064_vm13, %v9744_v41, %v3320_v16  ;;  %v3577_v48 = vsel %vm3065_vm14, %v2681_v40, %v3321_v0  ;;  %5567 = vrcp.f32 %v4874_v39  ;;  %v9825_v27 = vpop.f32.mrb[197].mxu1 }
 0x39a   :  { %5129 = vst.msk [vmem:[%s10808_s7 + $0x158] sm:$0xff] %vm5085_vm6, %v5560_v56  ;;  %v4671_v61 = vmul.f32 1.442695, %v4494_v25  ;;  %v3843_v49 = vmul.f32 %v6728_v43, %v3575_v19  ;;  %v3844_v60 = vmul.f32 %v6740_v51, %v3576_v23  ;;  %5569 = vpow2.f32 %v4669_v13  ;;  %v9833_v0 = vpop.f32.mrb[198].mxu1 }
 0x39b   :  { %v3578_v41 = vsel %vm3066_vm15, %v2683_v17, %v3322_v24  ;;  %v3845_v40 = vmul.f32 %v6728_v43, %v3577_v48  ;;  %v9831_v16 = vadd.f32 %v9175_v46, %v6706_v10  ;;  %v4367_v8 = vadd.f32 %v7881_v33, %v4083_v55  ;;  %v9837_v12 = vpop.f32.mrb[199].mxu1 }
 0x39c   :  { %v5562_v50 = vpop.eup %5561  ;;  %5571 = vpow2.f32 %v4671_v61  ;;  %v4183_v54 = vadd.f32 %v3844_v60, %v3843_v49  ;;  %v3846_v30 = vmul.f32 %v6740_v51, %v3578_v41  ;;  %vm3070_vm4 = vcmp.gt.f32.partialorder %v9798_v44, 0.0  ;;  %v4089_v49 = vpop.xlane.xlu0 %4088 }
 0x39d   :  { %v5564_v15 = vpop.eup %5563  ;;  %v4875_v17 = vadd.f32 1.0, %v5562_v50  ;;  %v3326_v29 = vmul.f32 0.2, %v9798_v44  ;;  %v9843_v46 = vadd.f32 %v9183_v18, %v6716_v14  ;;  %vm3071_vm5 = vcmp.gt.f32.partialorder %v9831_v16, 0.0 }
 0x39e   :  { %v5566_v38 = vpop.eup %5565  ;;  %v4876_v24 = vadd.f32 1.0, %v5564_v15  ;;  %4184 = vadd.xlane.f32.xlu0 %v4183_v54  ;;  %v4186_v28 = vadd.f32 %v3846_v30, %v3845_v40  ;;  %v4495_v35 = vsub.f32 0.0, %v4367_v8  ;;  %v3327_v37 = vmul.f32 0.2, %v9831_v16 }
 0x39f   :  { %5130 = vst.msk [vmem:[%s10808_s7 + $0x160] sm:$0xff] %vm5085_vm6, %v5566_v38  ;;  %5573 = vrcp.f32 %v4875_v17  ;;  %v2701_v39 = vadd.f32 %v9189_v58, %v6706_v10  ;;  %v4368_v18 = vadd.f32 %v7881_v33, %v4086_v4  ;;  %vm3072_vm7 = vcmp.gt.f32.partialorder %v9843_v46, 0.0 }
 0x3a0   :  { %5575 = vrcp.f32 %v4876_v24  ;;  %4187 = vadd.xlane.f32.xlu1 %v4186_v28  ;;  %v4673_v13 = vmul.f32 1.442695, %v4495_v35  ;;  %v3328_v25 = vmul.f32 0.2, %v9843_v46  ;;  %v9858_v19 = vadd.f32 %v9199_v9, %v6716_v14 }
 0x3a1   :  { %v4496_v56 = vsub.f32 0.0, %v4368_v18  ;;  %v3579_v23 = vsel %vm3067_vm1, %v9784_v42, %v3323_v57  ;;  %v3580_v58 = vsel %vm3068_vm2, %v9789_v36, %v3324_v26  ;;  %v3581_v61 = vsel %vm3069_vm3, %v9793_v31, %v3325_v20  ;;  %v4092_v20 = vpop.xlane.xlu1 %4091 }
 0x3a2   :  { %5577 = vpow2.f32 %v4673_v13  ;;  %v3847_v48 = vmul.f32 %v6728_v43, %v3579_v23  ;;  %v3848_v55 = vmul.f32 %v6740_v51, %v3580_v58  ;;  %vm3073_vm8 = vcmp.gt.f32.partialorder %v2701_v39, 0.0  ;;  %v9895_v15 = vpop.f32.mrb[200].mxu1 }
 0x3a3   :  { %v3329_v9 = vmul.f32 0.2, %v2701_v39  ;;  %v4675_v60 = vmul.f32 1.442695, %v4496_v56  ;;  %v3582_v42 = vsel %vm3070_vm4, %v9798_v44, %v3326_v29  ;;  %v5568_v57 = vpop.eup %5567  ;;  %v3849_v36 = vmul.f32 %v6728_v43, %v3581_v61  ;;  %v9899_v38 = vpop.f32.mrb[201].mxu1 }
 0x3a4   :  { %v4189_v41 = vadd.f32 %v3848_v55, %v3847_v48  ;;  %v3850_v26 = vmul.f32 %v6740_v51, %v3582_v42  ;;  %v9878_v40 = vadd.f32 %v9235_v7, %v6706_v10  ;;  %v5570_v50 = vpop.eup %5569  ;;  %5131 = vst.msk [vmem:[%s10808_s7 + $0x168] sm:$0xff] %vm5085_vm6, %v5568_v57  ;;  %vm3074_vm9 = vcmp.gt.f32.partialorder %v9858_v19, 0.0 }
 0x3a5   :  { %5579 = vpow2.f32 %v4675_v60  ;;  %v4369_v31 = vadd.f32 %v7881_v33, %v4089_v49  ;;  %v9888_v44 = vadd.f32 %v9239_v45, %v6716_v14  ;;  %v4877_v30 = vadd.f32 1.0, %v5570_v50  ;;  %v4095_v49 = vpop.xlane.xlu0 %4094  ;;  %v4098_v50 = vpop.xlane.xlu1 %4097 }
 0x3a6   :  { %v5572_v54 = vpop.eup %5571  ;;  %v3330_v7 = vmul.f32 0.2, %v9858_v19  ;;  %4190 = vadd.xlane.f32.xlu0 %v4189_v41  ;;  %v4192_v8 = vadd.f32 %v3850_v26, %v3849_v36  ;;  %v9893_v4 = vadd.f32 %v9258_v34, %v6706_v10  ;;  %vm3075_vm0 = vcmp.gt.f32.partialorder %v9878_v40, 0.0  ;;  %v9904_v34 = vpop.f32.mrb[202].mxu1 }
 0x3a7   :  { %v4878_v17 = vadd.f32 1.0, %v5572_v54  ;;  %v3331_v29 = vmul.f32 0.2, %v9878_v40  ;;  %v4497_v45 = vsub.f32 0.0, %v4369_v31  ;;  %5581 = vrcp.f32 %v4877_v30  ;;  %v9911_v23 = vpop.f32.mrb[203].mxu1 }
 0x3a8   :  { %4193 = vadd.xlane.f32.xlu1 %v4192_v8  ;;  %vm3076_vm10 = vcmp.gt.f32.partialorder %v9888_v44, 0.0  ;;  %v3332_v24 = vmul.f32 0.2, %v9888_v44  ;;  %v4370_v28 = vadd.f32 %v7881_v33, %v4092_v20  ;;  %v2713_v13 = vadd.f32 %v9262_v21, %v6716_v14  ;;  %v10966_v20 = vld [vmem:[#allocation28_spill] sm:$0xff]  ;;  %v10967_v8 = vld [vmem:[#allocation29_spill] sm:$0xff] }
 0x3a9   :  { %v5574_v35 = vpop.eup %5573  ;;  %5583 = vrcp.f32 %v4878_v17  ;;  %v4677_v18 = vmul.f32 1.442695, %v4497_v45  ;;  %v3583_v56 = vsel %vm3071_vm5, %v9831_v16, %v3327_v37  ;;  %v3584_v55 = vsel %vm3072_vm7, %v9843_v46, %v3328_v25  ;;  %v10965_v25 = vld [vmem:[#allocation27_spill] sm:$0xff] }
 0x3aa   :  { %v5576_v58 = vpop.eup %5575  ;;  %5132 = vst.msk [vmem:[%s10808_s7 + $0x170] sm:$0xff] %vm5085_vm6, %v5574_v35  ;;  %v4498_v48 = vsub.f32 0.0, %v4370_v28  ;;  %v3851_v61 = vmul.f32 %v6728_v43, %v3583_v56  ;;  %v3585_v21 = vsel %vm3073_vm8, %v2701_v39, %v3329_v9  ;;  %vm3077_vm11 = vcmp.gt.f32.partialorder %v9893_v4, 0.0 }
 0x3ab   :  { %5133 = vst.msk [vmem:[%s10808_s7 + $0x178] sm:$0xff] %vm5085_vm6, %v5576_v58  ;;  %5585 = vpow2.f32 %v4677_v18  ;;  %v3333_v16 = vmul.f32 0.2, %v9893_v4  ;;  %v3852_v37 = vmul.f32 %v6740_v51, %v3584_v55  ;;  %v3586_v46 = vsel %vm3074_vm9, %v9858_v19, %v3330_v7 }
 0x3ac   :  { %v5578_v60 = vpop.eup %5577  ;;  %v4679_v42 = vmul.f32 1.442695, %v4498_v48  ;;  %v3853_v39 = vmul.f32 %v6728_v43, %v3585_v21  ;;  %v9935_v9 = vadd.f32 %v10965_v25, %v6706_v10  ;;  %v3854_v36 = vmul.f32 %v6740_v51, %v3586_v46  ;;  %v4101_v21 = vpop.xlane.xlu0 %4100 }
 0x3ad   :  { %v4879_v57 = vadd.f32 1.0, %v5578_v60  ;;  %v4195_v41 = vadd.f32 %v3852_v37, %v3851_v61  ;;  %v4371_v26 = vadd.f32 %v7881_v33, %v4095_v49  ;;  %vm3078_vm12 = vcmp.gt.f32.partialorder %v2713_v13, 0.0  ;;  %v10968_v60 = vld [vmem:[#allocation8_spill] sm:$0xff] }
 0x3ae   :  { %5587 = vpow2.f32 %v4679_v42  ;;  %v3334_v31 = vmul.f32 0.2, %v2713_v13  ;;  %v9941_v54 = vadd.f32 %v10966_v20, %v6716_v14  ;;  %v4198_v30 = vadd.f32 %v3854_v36, %v3853_v39 }
 0x3af   :  { %v5580_v19 = vpop.eup %5579  ;;  %5589 = vrcp.f32 %v4879_v57  ;;  %4196 = vadd.xlane.f32.xlu0 %v4195_v41  ;;  %v4499_v7 = vsub.f32 0.0, %v4371_v26  ;;  %v9945_v17 = vadd.f32 %v10967_v8, %v6706_v10  ;;  %vm3079_vm13 = vcmp.gt.f32.partialorder %v9935_v9, 0.0  ;;  %v10969_v26 = vld [vmem:[#allocation11_spill] sm:$0xff] }
 0x3b0   :  { %v4880_v45 = vadd.f32 1.0, %v5580_v19  ;;  %v3335_v28 = vmul.f32 0.2, %v9935_v9  ;;  %v4372_v35 = vadd.f32 %v7881_v33, %v4098_v50  ;;  %4199 = vadd.xlane.f32.xlu1 %v4198_v30  ;;  %vm3080_vm14 = vcmp.gt.f32.partialorder %v9941_v54, 0.0 }
 0x3b1   :  { %v4681_v18 = vmul.f32 1.442695, %v4499_v7  ;;  %v3336_v56 = vmul.f32 0.2, %v9941_v54  ;;  %vm3081_vm15 = vcmp.gt.f32.partialorder %v9945_v17, 0.0  ;;  %v5582_v58 = vpop.eup %5581  ;;  %v3587_v55 = vsel %vm3075_vm0, %v9878_v40, %v3331_v29  ;;  %v9967_v40 = vpop.f32.mrb[204].mxu1 }
 0x3b2   :  { %5591 = vrcp.f32 %v4880_v45  ;;  %v4500_v48 = vsub.f32 0.0, %v4372_v35  ;;  %v3588_v61 = vsel %vm3076_vm10, %v9888_v44, %v3332_v24  ;;  %5134 = vst.msk [vmem:[%s10808_s7 + $0x180] sm:$0xff] %vm5085_vm6, %v5582_v58  ;;  %v3337_v37 = vmul.f32 0.2, %v9945_v17  ;;  %v9978_v25 = vpop.f32.mrb[205].mxu1 }
 0x3b3   :  { %v5584_v49 = vpop.eup %5583  ;;  %5593 = vpow2.f32 %v4681_v18  ;;  %v2723_v42 = vadd.f32 %v10968_v60, %v6716_v14  ;;  %v3855_v46 = vmul.f32 %v6728_v43, %v3587_v55  ;;  %v3856_v29 = vmul.f32 %v6740_v51, %v3588_v61  ;;  %v9987_v19 = vpop.f32.mrb[206].mxu1 }
 0x3b4   :  { %5135 = vst.msk [vmem:[%s10808_s7 + $0x188] sm:$0xff] %vm5085_vm6, %v5584_v49  ;;  %v4683_v44 = vmul.f32 1.442695, %v4500_v48  ;;  %v3589_v24 = vsel %vm3077_vm11, %v9893_v4, %v3333_v16  ;;  %v3590_v39 = vsel %vm3078_vm12, %v2713_v13, %v3334_v31  ;;  %v9984_v50 = vadd.f32 %v10969_v26, %v6706_v10  ;;  %v10970_v13 = vld [vmem:[#allocation30_spill] sm:$0xff]  ;;  %v4104_v31 = vpop.xlane.xlu1 %4103  ;;  %v9993_v7 = vpop.f32.mrb[207].mxu1  ;;  %v10971_v48 = vld [vmem:[#allocation9_spill] sm:$0xff] }
 0x3b5   :  { %v5586_v57 = vpop.eup %5585  ;;  %v3857_v41 = vmul.f32 %v6728_v43, %v3589_v24  ;;  %v3858_v36 = vmul.f32 %v6740_v51, %v3590_v39  ;;  %v4373_v20 = vadd.f32 %v7881_v33, %v4101_v21  ;;  %v4201_v4 = vadd.f32 %v3856_v29, %v3855_v46 }
 0x3b6   :  { %v4881_v30 = vadd.f32 1.0, %v5586_v57  ;;  %5595 = vpow2.f32 %v4683_v44  ;;  %v9991_v16 = vadd.f32 %v10970_v13, %v6716_v14  ;;  %vm3082_vm1 = vcmp.gt.f32.partialorder %v2723_v42, 0.0  ;;  %v10972_v44 = vld [vmem:[#allocation10_spill] sm:$0xff] }
 0x3b7   :  { %v3338_v8 = vmul.f32 0.2, %v2723_v42  ;;  %v4204_v45 = vadd.f32 %v3858_v36, %v3857_v41  ;;  %v4501_v35 = vsub.f32 0.0, %v4373_v20  ;;  %4202 = vadd.xlane.f32.xlu0 %v4201_v4  ;;  %vm3083_vm2 = vcmp.gt.f32.partialorder %v9984_v50, 0.0  ;;  %v4107_v36 = vpop.xlane.xlu0 %4106 }
 0x3b8   :  { %v5588_v18 = vpop.eup %5587  ;;  %5597 = vrcp.f32 %v4881_v30  ;;  %v9997_v58 = vmul.f32 0.2, %v9984_v50  ;;  %v10001_v55 = vadd.f32 %v10971_v48, %v6706_v10  ;;  %vm3084_vm3 = vcmp.gt.f32.partialorder %v9991_v16, 0.0 }
 0x3b9   :  { %v5590_v61 = vpop.eup %5589  ;;  %v4882_v21 = vadd.f32 1.0, %v5588_v18  ;;  %4205 = vadd.xlane.f32.xlu1 %v4204_v45  ;;  %v4685_v49 = vmul.f32 1.442695, %v4501_v35  ;;  %v4374_v60 = vadd.f32 %v7881_v33, %v4104_v31  ;;  %v3340_v46 = vmul.f32 0.2, %v9991_v16 }
 0x3ba   :  { %5136 = vst.msk [vmem:[%s10808_s7 + $0x190] sm:$0xff] %vm5085_vm6, %v5590_v61  ;;  %v10012_v29 = vadd.f32 %v10972_v44, %v6716_v14  ;;  %v3591_v24 = vsel %vm3079_vm13, %v9935_v9, %v3335_v28  ;;  %v3592_v39 = vsel %vm3080_vm14, %v9941_v54, %v3336_v56  ;;  %vm3085_vm4 = vcmp.gt.f32.partialorder %v10001_v55, 0.0 }
 0x3bb   :  { %5599 = vrcp.f32 %v4882_v21  ;;  %v3341_v57 = vmul.f32 0.2, %v10001_v55  ;;  %v4502_v41 = vsub.f32 0.0, %v4374_v60  ;;  %v3859_v20 = vmul.f32 %v6728_v43, %v3591_v24  ;;  %v10974_v21 = vld [vmem:[#allocation32_spill] sm:$0xff] }
 0x3bc   :  { %v5592_v26 = vpop.eup %5591  ;;  %5601 = vpow2.f32 %v4685_v49  ;;  %v3860_v30 = vmul.f32 %v6740_v51, %v3592_v39  ;;  %v3593_v9 = vsel %vm3081_vm15, %v9945_v17, %v3337_v37  ;;  %v3594_v56 = vsel %vm3082_vm1, %v2723_v42, %v3338_v8  ;;  %v4110_v37 = vpop.xlane.xlu1 %4109  ;;  %v10973_v42 = vld [vmem:[#allocation31_spill] sm:$0xff] }
 0x3bd   :  { %v5594_v28 = vpop.eup %5593  ;;  %5137 = vst.msk [vmem:[%s10808_s7 + $0x198] sm:$0xff] %vm5085_vm6, %v5592_v26  ;;  %v4687_v54 = vmul.f32 1.442695, %v4502_v41  ;;  %v3861_v4 = vmul.f32 %v6728_v43, %v3593_v9  ;;  %v10035_v13 = vadd.f32 %v9463_v11, %v6706_v10  ;;  %v3862_v35 = vmul.f32 %v6740_v51, %v3594_v56  ;;  %v10049_v60 = vpop.f32.mrb[208].mxu1  ;;  %v10975_v9 = vld [vmem:[#allocation13_spill] sm:$0xff] }
 0x3be   :  { %v4883_v31 = vadd.f32 1.0, %v5594_v28  ;;  %v4207_v45 = vadd.f32 %v3860_v30, %v3859_v20  ;;  %v4375_v17 = vadd.f32 %v7881_v33, %v4107_v36  ;;  %vm3086_vm5 = vcmp.gt.f32.partialorder %v10012_v29, 0.0  ;;  %v10059_v36 = vpop.f32.mrb[209].mxu1 }
 0x3bf   :  { %5603 = vpow2.f32 %v4687_v54  ;;  %v3342_v18 = vmul.f32 0.2, %v10012_v29  ;;  %v10043_v8 = vadd.f32 %v10973_v42, %v6716_v14  ;;  %v4210_v11 = vadd.f32 %v3862_v35, %v3861_v4  ;;  %v10069_v54 = vpop.f32.mrb[210].mxu1 }
 0x3c0   :  { %v5596_v48 = vpop.eup %5595  ;;  %5605 = vrcp.f32 %v4883_v31  ;;  %4208 = vadd.xlane.f32.xlu0 %v4207_v45  ;;  %v4503_v61 = vsub.f32 0.0, %v4375_v17  ;;  %v10047_v49 = vadd.f32 %v10974_v21, %v6706_v10  ;;  %vm3087_vm7 = vcmp.gt.f32.partialorder %v10035_v13, 0.0  ;;  %v4113_v45 = vpop.xlane.xlu0 %4112 }
 0x3c1   :  { %v4884_v44 = vadd.f32 1.0, %v5596_v48  ;;  %v10053_v24 = vmul.f32 0.2, %v10035_v13  ;;  %v10056_v39 = vmul.f32 0.2, %v10043_v8  ;;  %v4376_v41 = vadd.f32 %v7881_v33, %v4110_v37  ;;  %4211 = vadd.xlane.f32.xlu1 %v4210_v11  ;;  %v10083_v35 = vpop.f32.mrb[211].mxu1 }
 0x3c2   :  { %v5598_v26 = vpop.eup %5597  ;;  %v4689_v20 = vmul.f32 1.442695, %v4503_v61  ;;  %vm3088_vm8 = vcmp.gt.f32.partialorder %v10043_v8, 0.0  ;;  %v10063_v30 = vmul.f32 0.2, %v10047_v49  ;;  %v10067_v28 = vadd.f32 %v10975_v9, %v6716_v14 }
 0x3c3   :  { %5138 = vst.msk [vmem:[%s10808_s7 + $0x1a0] sm:$0xff] %vm5085_vm6, %v5598_v26  ;;  %5607 = vrcp.f32 %v4884_v44  ;;  %vm3089_vm9 = vcmp.gt.f32.partialorder %v10047_v49, 0.0  ;;  %v4504_v56 = vsub.f32 0.0, %v4376_v41  ;;  %v3595_v4 = vsel %vm3083_vm2, %v9984_v50, %v9997_v58 }
 0x3c4   :  { %v3596_v31 = vsel %vm3084_vm3, %v9991_v16, %v3340_v46  ;;  %5609 = vpow2.f32 %v4689_v20  ;;  %vm3090_vm0 = vcmp.gt.f32.partialorder %v10067_v28, 0.0  ;;  %v3346_v17 = vmul.f32 0.2, %v10067_v28 }
 0x3c5   :  { %v3863_v37 = vmul.f32 %v6728_v43, %v3595_v4  ;;  %v5600_v42 = vpop.eup %5599  ;;  %v4691_v48 = vmul.f32 1.442695, %v4504_v56  ;;  %v3864_v11 = vmul.f32 %v6740_v51, %v3596_v31  ;;  %v3597_v50 = vsel %vm3085_vm4, %v10001_v55, %v3341_v57 }
 0x3c6   :  { %v3598_v16 = vsel %vm3086_vm5, %v10012_v29, %v3342_v18  ;;  %v5602_v58 = vpop.eup %5601  ;;  %5139 = vst.msk [vmem:[%s10808_s7 + $0x1a8] sm:$0xff] %vm5085_vm6, %v5600_v42  ;;  %v3865_v46 = vmul.f32 %v6728_v43, %v3597_v50  ;;  %v2747_v21 = vadd.f32 %v9566_v63, %v6706_v10  ;;  %v4377_v44 = vadd.f32 %v7881_v33, %v4113_v45  ;;  %v4116_v18 = vpop.xlane.xlu1 %4115 }
 0x3c7   :  { %v3866_v61 = vmul.f32 %v6740_v51, %v3598_v16  ;;  %v4885_v55 = vadd.f32 1.0, %v5602_v58  ;;  %5611 = vpow2.f32 %v4691_v48  ;;  %v4213_v57 = vadd.f32 %v3864_v11, %v3863_v37 }
 0x3c8   :  { %v2749_v29 = vadd.f32 %v9578_v62, %v6716_v14  ;;  %vm3091_vm10 = vcmp.gt.f32.partialorder %v2747_v21, 0.0  ;;  %v3347_v26 = vmul.f32 0.2, %v2747_v21  ;;  %v4505_v20 = vsub.f32 0.0, %v4377_v44 }
 0x3c9   :  { %v4216_v41 = vadd.f32 %v3866_v61, %v3865_v46  ;;  %v5604_v9 = vpop.eup %5603  ;;  %5613 = vrcp.f32 %v4885_v55  ;;  %4214 = vadd.xlane.f32.xlu0 %v4213_v57  ;;  %v2751_v63 = vadd.f32 %v9581_v6, %v6706_v10  ;;  %v4378_v62 = vadd.f32 %v7881_v33, %v4116_v18 }
 0x3ca   :  { %vm3092_vm11 = vcmp.gt.f32.partialorder %v2749_v29, 0.0  ;;  %v3348_v56 = vmul.f32 0.2, %v2749_v29  ;;  %v5606_v4 = vpop.eup %5605  ;;  %v4886_v31 = vadd.f32 1.0, %v5604_v9  ;;  %v3603_v45 = vsel %vm3091_vm10, %v2747_v21, %v3347_v26  ;;  %v10123_v21 = vpop.f32.mrb[212].mxu1 }
 0x3cb   :  { %4217 = vadd.xlane.f32.xlu1 %v4216_v41  ;;  %v4693_v37 = vmul.f32 1.442695, %v4505_v20  ;;  %5140 = vst.msk [vmem:[%s10808_s7 + $0x1b0] sm:$0xff] %vm5085_vm6, %v5606_v4  ;;  %vm3093_vm12 = vcmp.gt.f32.partialorder %v2751_v63, 0.0  ;;  %v3349_v48 = vmul.f32 0.2, %v2751_v63  ;;  %v2753_v11 = vadd.f32 %v9596_v59, %v6716_v14  ;;  %v4122_v4 = vpop.xlane.xlu1 %4121 }
 0x3cc   :  { %v3604_v42 = vsel %vm3092_vm11, %v2749_v29, %v3348_v56  ;;  %5615 = vrcp.f32 %v4886_v31  ;;  %v4506_v6 = vsub.f32 0.0, %v4378_v62  ;;  %v3599_v50 = vsel %vm3087_vm7, %v10035_v13, %v10053_v24  ;;  %v10135_v55 = vpop.f32.mrb[213].mxu1 }
 0x3cd   :  { %v3600_v16 = vsel %vm3088_vm8, %v10043_v8, %v10056_v39  ;;  %v5608_v58 = vpop.eup %5607  ;;  %5617 = vpow2.f32 %v4693_v37  ;;  %v3605_v46 = vsel %vm3093_vm12, %v2751_v63, %v3349_v48  ;;  %vm3094_vm13 = vcmp.gt.f32.partialorder %v2753_v11, 0.0  ;;  %v4119_v39 = vpop.xlane.xlu0 %4118 }
 0x3ce   :  { %v3350_v61 = vmul.f32 0.2, %v2753_v11  ;;  %v5610_v59 = vpop.eup %5609  ;;  %5141 = vst.msk [vmem:[%s10808_s7 + $0x1b8] sm:$0xff] %vm5085_vm6, %v5608_v58  ;;  %v4695_v44 = vmul.f32 1.442695, %v4506_v6  ;;  %v3867_v13 = vmul.f32 %v6728_v43, %v3599_v50  ;;  %v3868_v24 = vmul.f32 %v6740_v51, %v3600_v16 }
 0x3cf   :  { %v3601_v8 = vsel %vm3089_vm9, %v10047_v49, %v10063_v30  ;;  %v4887_v57 = vadd.f32 1.0, %v5610_v59  ;;  %v3602_v18 = vsel %vm3090_vm0, %v10067_v28, %v3346_v17  ;;  %v10141_v26 = vpop.f32.mrb[214].mxu1  ;;  %v2757_v49 = vadd.f32 %v9660_v52, %v6706_v10 }
 0x3d0   :  { %v3606_v29 = vsel %vm3094_vm13, %v2753_v11, %v3350_v61  ;;  %v3869_v41 = vmul.f32 %v6728_v43, %v3601_v8  ;;  %5619 = vpow2.f32 %v4695_v44  ;;  %v4219_v20 = vadd.f32 %v3868_v24, %v3867_v13  ;;  %v10146_v30 = vpop.f32.mrb[215].mxu1 }
 0x3d1   :  { %v3870_v9 = vmul.f32 %v6740_v51, %v3602_v18  ;;  %v5612_v56 = vpop.eup %5611  ;;  %5621 = vrcp.f32 %v4887_v57  ;;  %v4379_v63 = vadd.f32 %v7881_v33, %v4119_v39  ;;  %v2759_v28 = vadd.f32 %v9671_v2, %v6716_v14  ;;  %v4125_v39 = vpop.xlane.xlu0 %4124 }
 0x3d2   :  { %v2761_v17 = vadd.f32 %v9683_v53, %v6706_v10  ;;  %v4888_v31 = vadd.f32 1.0, %v5612_v56  ;;  %4220 = vadd.xlane.f32.xlu0 %v4219_v20  ;;  %vm3095_vm14 = vcmp.gt.f32.partialorder %v2757_v49, 0.0  ;;  %v3351_v62 = vmul.f32 0.2, %v2757_v49 }
 0x3d3   :  { %v4222_v37 = vadd.f32 %v3870_v9, %v3869_v41  ;;  %v5614_v48 = vpop.eup %5613  ;;  %v4507_v52 = vsub.f32 0.0, %v4379_v63  ;;  %vm3096_vm15 = vcmp.gt.f32.partialorder %v2759_v28, 0.0  ;;  %v3352_v11 = vmul.f32 0.2, %v2759_v28 }
 0x3d4   :  { %vm3097_vm1 = vcmp.gt.f32.partialorder %v2761_v17, 0.0  ;;  %5142 = vst.msk [vmem:[%s10808_s7 + $0x1c0] sm:$0xff] %vm5085_vm6, %v5614_v48  ;;  %5623 = vrcp.f32 %v4888_v31  ;;  %v3607_v2 = vsel %vm3095_vm14, %v2757_v49, %v3351_v62  ;;  %v3353_v53 = vmul.f32 0.2, %v2761_v17 }
 0x3d5   :  { %4223 = vadd.xlane.f32.xlu1 %v4222_v37  ;;  %v4380_v6 = vadd.f32 %v7881_v33, %v4122_v4  ;;  %v4697_v50 = vmul.f32 1.442695, %v4507_v52  ;;  %v3608_v16 = vsel %vm3096_vm15, %v2759_v28, %v3352_v11  ;;  %v2763_v58 = vadd.f32 %v9686_v47, %v6716_v14 }
 0x3d6   :  { %v3871_v61 = vmul.f32 %v6728_v43, %v3603_v45  ;;  %v5616_v59 = vpop.eup %5615  ;;  %v3609_v44 = vsel %vm3097_vm1, %v2761_v17, %v3353_v53  ;;  %v3872_v24 = vmul.f32 %v6740_v51, %v3604_v42  ;;  %v3873_v8 = vmul.f32 %v6728_v43, %v3605_v46  ;;  %v4128_v17 = vpop.xlane.xlu1 %4127 }
 0x3d7   :  { %v4508_v13 = vsub.f32 0.0, %v4380_v6  ;;  %v5618_v57 = vpop.eup %5617  ;;  %5143 = vst.msk [vmem:[%s10808_s7 + $0x1c8] sm:$0xff] %vm5085_vm6, %v5616_v59  ;;  %5625 = vpow2.f32 %v4697_v50  ;;  %vm3098_vm2 = vcmp.gt.f32.partialorder %v2763_v58, 0.0  ;;  %v3354_v18 = vmul.f32 0.2, %v2763_v58  ;;  %v10175_v4 = vpop.f32.mrb[216].mxu1 }
 0x3d8   :  { %v3874_v47 = vmul.f32 %v6740_v51, %v3606_v29  ;;  %v4889_v45 = vadd.f32 1.0, %v5618_v57  ;;  %v4225_v20 = vadd.f32 %v3872_v24, %v3871_v61  ;;  %v2767_v42 = vadd.f32 %v9748_v32, %v6706_v10  ;;  %v10177_v62 = vpop.f32.mrb[217].mxu1 }
 0x3d9   :  { %v4699_v41 = vmul.f32 1.442695, %v4508_v13  ;;  %v3610_v9 = vsel %vm3098_vm2, %v2763_v58, %v3354_v18  ;;  %v4381_v49 = vadd.f32 %v7881_v33, %v4125_v39  ;;  %v2769_v56 = vadd.f32 %v9760_v3, %v6716_v14  ;;  %v10183_v52 = vpop.f32.mrb[218].mxu1 }
 0x3da   :  { %v4228_v46 = vadd.f32 %v3874_v47, %v3873_v8  ;;  %v5620_v63 = vpop.eup %5619  ;;  %5627 = vrcp.f32 %v4889_v45  ;;  %4226 = vadd.xlane.f32.xlu0 %v4225_v20  ;;  %vm3099_vm3 = vcmp.gt.f32.partialorder %v2767_v42, 0.0  ;;  %v3355_v28 = vmul.f32 0.2, %v2767_v42  ;;  %v10188_v50 = vpop.f32.mrb[219].mxu1 }
 0x3db   :  { %v2771_v29 = vadd.f32 %v9768_v22, %v6706_v10  ;;  %v5622_v31 = vpop.eup %5621  ;;  %v4890_v32 = vadd.f32 1.0, %v5620_v63  ;;  %5629 = vpow2.f32 %v4699_v41  ;;  %v4509_v37 = vsub.f32 0.0, %v4381_v49  ;;  %v4131_v8 = vpop.xlane.xlu0 %4130 }
 0x3dc   :  { %4229 = vadd.xlane.f32.xlu1 %v4228_v46  ;;  %vm3100_vm4 = vcmp.gt.f32.partialorder %v2769_v56, 0.0  ;;  %5144 = vst.msk [vmem:[%s10808_s7 + $0x1d0] sm:$0xff] %vm5085_vm6, %v5622_v31  ;;  %v3611_v3 = vsel %vm3099_vm3, %v2767_v42, %v3355_v28  ;;  %v3356_v48 = vmul.f32 0.2, %v2769_v56  ;;  %v4382_v53 = vadd.f32 %v7881_v33, %v4128_v17  ;;  %v4134_v46 = vpop.xlane.xlu1 %4133 }
 0x3dd   :  { %vm3101_vm5 = vcmp.gt.f32.partialorder %v2771_v29, 0.0  ;;  %v3357_v22 = vmul.f32 0.2, %v2771_v29  ;;  %5631 = vrcp.f32 %v4890_v32  ;;  %v4701_v11 = vmul.f32 1.442695, %v4509_v37 }
 0x3de   :  { %v2773_v6 = vadd.f32 %v9775_v1, %v6716_v14  ;;  %v5624_v58 = vpop.eup %5623  ;;  %v3612_v61 = vsel %vm3100_vm4, %v2769_v56, %v3356_v48  ;;  %v3875_v13 = vmul.f32 %v6728_v43, %v3607_v2  ;;  %v3876_v24 = vmul.f32 %v6740_v51, %v3608_v16 }
 0x3df   :  { %v3613_v59 = vsel %vm3101_vm5, %v2771_v29, %v3357_v22  ;;  %5145 = vst.msk [vmem:[%s10808_s7 + $0x1d8] sm:$0xff] %vm5085_vm6, %v5624_v58  ;;  %5633 = vpow2.f32 %v4701_v11  ;;  %v4510_v39 = vsub.f32 0.0, %v4382_v53  ;;  %v3877_v18 = vmul.f32 %v6728_v43, %v3609_v44 }
 0x3e0   :  { %vm3102_vm7 = vcmp.gt.f32.partialorder %v2773_v6, 0.0  ;;  %v3358_v57 = vmul.f32 0.2, %v2773_v6  ;;  %v4231_v1 = vadd.f32 %v3876_v24, %v3875_v13  ;;  %v3878_v47 = vmul.f32 %v6740_v51, %v3610_v9  ;;  %v4137_v13 = vpop.xlane.xlu0 %4136 }
 0x3e1   :  { %v2777_v2 = vadd.f32 %v9817_v5, %v6706_v10  ;;  %v5626_v45 = vpop.eup %5625  ;;  %v4703_v16 = vmul.f32 1.442695, %v4510_v39  ;;  %v4383_v20 = vadd.f32 %v7881_v33, %v4131_v8  ;;  %v2779_v42 = vadd.f32 %v9825_v27, %v6716_v14 }
 0x3e2   :  { %v3614_v41 = vsel %vm3102_vm7, %v2773_v6, %v3358_v57  ;;  %v4891_v49 = vadd.f32 1.0, %v5626_v45  ;;  %4232 = vadd.xlane.f32.xlu0 %v4231_v1  ;;  %v4234_v56 = vadd.f32 %v3878_v47, %v3877_v18  ;;  %v2781_v29 = vadd.f32 %v9833_v0, %v6706_v10 }
 0x3e3   :  { %vm3103_vm8 = vcmp.gt.f32.partialorder %v2777_v2, 0.0  ;;  %v3359_v63 = vmul.f32 0.2, %v2777_v2  ;;  %5635 = vpow2.f32 %v4703_v16  ;;  %v4511_v44 = vsub.f32 0.0, %v4383_v20  ;;  %v10214_v24 = vpop.f32.mrb[220].mxu1 }
 0x3e4   :  { %vm3104_vm9 = vcmp.gt.f32.partialorder %v2779_v42, 0.0  ;;  %v3360_v9 = vmul.f32 0.2, %v2779_v42  ;;  %v5628_v28 = vpop.eup %5627  ;;  %5637 = vrcp.f32 %v4891_v49  ;;  %4235 = vadd.xlane.f32.xlu1 %v4234_v56  ;;  %v4384_v17 = vadd.f32 %v7881_v33, %v4134_v46  ;;  %v10221_v39 = vpop.f32.mrb[221].mxu1 }
 0x3e5   :  { %v3615_v5 = vsel %vm3103_vm8, %v2777_v2, %v3359_v63  ;;  %v5630_v27 = vpop.eup %5629  ;;  %5146 = vst.msk [vmem:[%s10808_s7 + $0x1e0] sm:$0xff] %vm5085_vm6, %v5628_v28  ;;  %v4705_v31 = vmul.f32 1.442695, %v4511_v44  ;;  %v2783_v37 = vadd.f32 %v9837_v12, %v6716_v14  ;;  %v3879_v48 = vmul.f32 %v6728_v43, %v3611_v3  ;;  %v10226_v2 = vpop.f32.mrb[222].mxu1 }
 0x3e6   :  { %v3616_v32 = vsel %vm3104_vm9, %v2779_v42, %v3360_v9  ;;  %v4892_v22 = vadd.f32 1.0, %v5630_v27  ;;  %vm3105_vm0 = vcmp.gt.f32.partialorder %v2781_v29, 0.0  ;;  %v3361_v11 = vmul.f32 0.2, %v2781_v29  ;;  %v10231_v42 = vpop.f32.mrb[223].mxu1 }
 0x3e7   :  { %v4512_v53 = vsub.f32 0.0, %v4384_v17  ;;  %v5632_v0 = vpop.eup %5631  ;;  %5639 = vpow2.f32 %v4705_v31  ;;  %vm3106_vm10 = vcmp.gt.f32.partialorder %v2783_v37, 0.0  ;;  %v3362_v6 = vmul.f32 0.2, %v2783_v37 }
 0x3e8   :  { %v3880_v58 = vmul.f32 %v6740_v51, %v3612_v61  ;;  %5147 = vst.msk [vmem:[%s10808_s7 + $0x1e8] sm:$0xff] %vm5085_vm6, %v5632_v0  ;;  %5641 = vrcp.f32 %v4892_v22  ;;  %v3617_v12 = vsel %vm3105_vm0, %v2781_v29, %v3361_v11  ;;  %v3881_v8 = vmul.f32 %v6728_v43, %v3613_v59  ;;  %v4140_v59 = vpop.xlane.xlu1 %4139  ;;  %v4143_v11 = vpop.xlane.xlu0 %4142 }
 0x3e9   :  { %v4707_v3 = vmul.f32 1.442695, %v4512_v53  ;;  %v5634_v57 = vpop.eup %5633  ;;  %v3618_v1 = vsel %vm3106_vm10, %v2783_v37, %v3362_v6  ;;  %v3882_v61 = vmul.f32 %v6740_v51, %v3614_v41  ;;  %v2787_v47 = vadd.f32 %v9895_v15, %v6706_v10 }
 0x3ea   :  { %v4237_v18 = vadd.f32 %v3880_v58, %v3879_v48  ;;  %v4893_v45 = vadd.f32 1.0, %v5634_v57  ;;  %v4385_v16 = vadd.f32 %v7881_v33, %v4137_v13  ;;  %v2789_v20 = vadd.f32 %v9899_v38, %v6716_v14 }
 0x3eb   :  { %5643 = vpow2.f32 %v4707_v3  ;;  %v4240_v46 = vadd.f32 %v3882_v61, %v3881_v8  ;;  %vm3107_vm11 = vcmp.gt.f32.partialorder %v2787_v47, 0.0  ;;  %v3363_v49 = vmul.f32 0.2, %v2787_v47 }
 0x3ec   :  { %4238 = vadd.xlane.f32.xlu0 %v4237_v18  ;;  %v2791_v41 = vadd.f32 %v9904_v34, %v6706_v10  ;;  %5645 = vrcp.f32 %v4893_v45  ;;  %v4513_v15 = vsub.f32 0.0, %v4385_v16  ;;  %vm3108_vm12 = vcmp.gt.f32.partialorder %v2789_v20, 0.0  ;;  %v4146_v61 = vpop.xlane.xlu1 %4145 }
 0x3ed   :  { %v3364_v56 = vmul.f32 0.2, %v2789_v20  ;;  %v5636_v63 = vpop.eup %5635  ;;  %4241 = vadd.xlane.f32.xlu1 %v4240_v46  ;;  %v3619_v44 = vsel %vm3107_vm11, %v2787_v47, %v3363_v49  ;;  %v4386_v38 = vadd.f32 %v7881_v33, %v4140_v59  ;;  %v2793_v31 = vadd.f32 %v9911_v23, %v6716_v14  ;;  %v4149_v47 = vpop.xlane.xlu0 %4148 }
 0x3ee   :  { %vm3109_vm13 = vcmp.gt.f32.partialorder %v2791_v41, 0.0  ;;  %v3365_v9 = vmul.f32 0.2, %v2791_v41  ;;  %v5638_v28 = vpop.eup %5637  ;;  %v4894_v29 = vadd.f32 1.0, %v5636_v63  ;;  %v4709_v17 = vmul.f32 1.442695, %v4513_v15 }
 0x3ef   :  { %v3620_v27 = vsel %vm3108_vm12, %v2789_v20, %v3364_v56  ;;  %5148 = vst.msk [vmem:[%s10808_s7 + $0x1f0] sm:$0xff] %vm5085_vm6, %v5638_v28  ;;  %v4514_v37 = vsub.f32 0.0, %v4386_v38  ;;  %v3883_v48 = vmul.f32 %v6728_v43, %v3615_v5  ;;  %v3884_v22 = vmul.f32 %v6740_v51, %v3616_v32 }
 0x3f0   :  { %v3621_v34 = vsel %vm3109_vm13, %v2791_v41, %v3365_v9  ;;  %5647 = vrcp.f32 %v4894_v29  ;;  %vm3110_vm14 = vcmp.gt.f32.partialorder %v2793_v31, 0.0  ;;  %v3366_v53 = vmul.f32 0.2, %v2793_v31  ;;  %v10257_v20 = vpop.f32.mrb[224].mxu1 }
 0x3f1   :  { %v3885_v0 = vmul.f32 %v6728_v43, %v3617_v12  ;;  %v5640_v6 = vpop.eup %5639  ;;  %5649 = vpow2.f32 %v4709_v17  ;;  %v4711_v23 = vmul.f32 1.442695, %v4514_v37  ;;  %v4243_v58 = vadd.f32 %v3884_v22, %v3883_v48  ;;  %v10259_v49 = vpop.f32.mrb[225].mxu1 }
 0x3f2   :  { %v3886_v13 = vmul.f32 %v6740_v51, %v3618_v1  ;;  %v5642_v3 = vpop.eup %5641  ;;  %v4895_v8 = vadd.f32 1.0, %v5640_v6  ;;  %v3622_v57 = vsel %vm3110_vm14, %v2793_v31, %v3366_v53  ;;  %v2797_v5 = vadd.f32 %v9967_v40, %v6706_v10  ;;  %v10262_v63 = vpop.f32.mrb[226].mxu1 }
 0x3f3   :  { %v4387_v32 = vadd.f32 %v7881_v33, %v4143_v11  ;;  %5149 = vst.msk [vmem:[%s10808_s7 + $0x1f8] sm:$0xff] %vm5085_vm6, %v5642_v3  ;;  %5651 = vpow2.f32 %v4711_v23  ;;  %4244 = vadd.xlane.f32.xlu0 %v4243_v58  ;;  %v2799_v18 = vadd.f32 %v9978_v25, %v6716_v14  ;;  %v2801_v1 = vadd.f32 %v9987_v19, %v6706_v10  ;;  %v10271_v29 = vpop.f32.mrb[227].mxu1  ;;  %v3933_v53 = vpop.xlane.xlu0 %3932 }
 0x3f4   :  { %v4246_v12 = vadd.f32 %v3886_v13, %v3885_v0  ;;  %5653 = vrcp.f32 %v4895_v8  ;;  %vm3111_vm15 = vcmp.gt.f32.partialorder %v2797_v5, 0.0  ;;  %v3367_v40 = vmul.f32 0.2, %v2797_v5 }
 0x3f5   :  { %v5644_v45 = vpop.eup %5643  ;;  %v4515_v16 = vsub.f32 0.0, %v4387_v32  ;;  %vm3112_vm1 = vcmp.gt.f32.partialorder %v2799_v18, 0.0  ;;  %v3368_v46 = vmul.f32 0.2, %v2799_v18  ;;  %vm3113_vm2 = vcmp.gt.f32.partialorder %v2801_v1, 0.0 }
 0x3f6   :  { %v4896_v59 = vadd.f32 1.0, %v5644_v45  ;;  %4247 = vadd.xlane.f32.xlu1 %v4246_v12  ;;  %v5646_v25 = vpop.eup %5645  ;;  %v3623_v41 = vsel %vm3111_vm15, %v2797_v5, %v3367_v40  ;;  %v3369_v19 = vmul.f32 0.2, %v2801_v1  ;;  %v4388_v56 = vadd.f32 %v7881_v33, %v4146_v61 }
 0x3f7   :  { %v4713_v15 = vmul.f32 1.442695, %v4515_v16  ;;  %5150 = vst.msk [vmem:[%s10808_s7 + $0x200] sm:$0xff] %vm5085_vm6, %v5646_v25  ;;  %v3624_v9 = vsel %vm3112_vm1, %v2799_v18, %v3368_v46  ;;  %v2803_v38 = vadd.f32 %v9993_v7, %v6716_v14  ;;  %v3887_v28 = vmul.f32 %v6728_v43, %v3619_v44 }
 0x3f8   :  { %5655 = vrcp.f32 %v4896_v59  ;;  %v3625_v17 = vsel %vm3113_vm2, %v2801_v1, %v3369_v19  ;;  %v4516_v31 = vsub.f32 0.0, %v4388_v56  ;;  %v3888_v37 = vmul.f32 %v6740_v51, %v3620_v27 }
 0x3f9   :  { %5657 = vpow2.f32 %v4713_v15  ;;  %vm3114_vm3 = vcmp.gt.f32.partialorder %v2803_v38, 0.0  ;;  %v3370_v48 = vmul.f32 0.2, %v2803_v38  ;;  %v3889_v22 = vmul.f32 %v6728_v43, %v3621_v34 }
 0x3fa   :  { %v3890_v11 = vmul.f32 %v6740_v51, %v3622_v57  ;;  %v5648_v0 = vpop.eup %5647  ;;  %v4715_v6 = vmul.f32 1.442695, %v4516_v31  ;;  %v4249_v23 = vadd.f32 %v3888_v37, %v3887_v28  ;;  %v2807_v7 = vadd.f32 %v10049_v60, %v6706_v10  ;;  %v4152_v57 = vpop.xlane.xlu1 %4151 }
 0x3fb   :  { %v4389_v44 = vadd.f32 %v7881_v33, %v4149_v47  ;;  %v5650_v58 = vpop.eup %5649  ;;  %5151 = vst.msk [vmem:[%s10808_s7 + $0x208] sm:$0xff] %vm5085_vm6, %v5648_v0  ;;  %v3626_v27 = vsel %vm3114_vm3, %v2803_v38, %v3370_v48  ;;  %v2809_v34 = vadd.f32 %v10059_v36, %v6716_v14  ;;  %v2811_v3 = vadd.f32 %v10069_v54, %v6706_v10  ;;  %v3936_v16 = vpop.xlane.xlu0 %3935 }
 0x3fc   :  { %v4252_v13 = vadd.f32 %v3890_v11, %v3889_v22  ;;  %v4897_v8 = vadd.f32 1.0, %v5650_v58  ;;  %5659 = vpow2.f32 %v4715_v6  ;;  %4250 = vadd.xlane.f32.xlu0 %v4249_v23  ;;  %vm3115_vm4 = vcmp.gt.f32.partialorder %v2807_v7, 0.0 }
 0x3fd   :  { %v3371_v60 = vmul.f32 0.2, %v2807_v7  ;;  %v5652_v5 = vpop.eup %5651  ;;  %v4517_v32 = vsub.f32 0.0, %v4389_v44  ;;  %vm3116_vm5 = vcmp.gt.f32.partialorder %v2809_v34, 0.0  ;;  %v3372_v12 = vmul.f32 0.2, %v2809_v34 }
 0x3fe   :  { %4253 = vadd.xlane.f32.xlu1 %v4252_v13  ;;  %vm3117_vm7 = vcmp.gt.f32.partialorder %v2811_v3, 0.0  ;;  %v5654_v18 = vpop.eup %5653  ;;  %5661 = vrcp.f32 %v4897_v8  ;;  %v4898_v1 = vadd.f32 1.0, %v5652_v5  ;;  %v3373_v36 = vmul.f32 0.2, %v2811_v3  ;;  %v3939_v15 = vpop.xlane.xlu1 %3938 }
 0x3ff   :  { %v3627_v61 = vsel %vm3115_vm4, %v2807_v7, %v3371_v60  ;;  %5152 = vst.msk [vmem:[%s10808_s7 + $0x210] sm:$0xff] %vm5085_vm6, %v5654_v18  ;;  %v4717_v54 = vmul.f32 1.442695, %v4517_v32  ;;  %v10291_v47 = vsel %vm3116_vm5, %v2809_v34, %v3372_v12  ;;  %v4390_v45 = vadd.f32 %v7881_v33, %v4152_v57  ;;  %v10300_v28 = vpop.f32.mrb[228].mxu1  ;;  %v4155_v34 = vpop.xlane.xlu0 %4154 }
 0x400   :  { %v2813_v40 = vadd.f32 %v10083_v35, %v6716_v14  ;;  %5663 = vrcp.f32 %v4898_v1  ;;  %v10296_v59 = vsel %vm3117_vm7, %v2811_v3, %v3373_v36  ;;  %v3891_v46 = vmul.f32 %v6728_v43, %v3623_v41  ;;  %v10309_v48 = vpop.f32.mrb[229].mxu1 }
 0x401   :  { %v3892_v25 = vmul.f32 %v6740_v51, %v3624_v9  ;;  %5665 = vpow2.f32 %v4717_v54  ;;  %v4518_v56 = vsub.f32 0.0, %v4390_v45  ;;  %v4317_v37 = vadd.f32 %v7881_v33, %v3933_v53  ;;  %v10313_v23 = vpop.f32.mrb[230].mxu1 }
 0x402   :  { %v5656_v19 = vpop.eup %5655  ;;  %vm3118_vm8 = vcmp.gt.f32.partialorder %v2813_v40, 0.0  ;;  %v3374_v38 = vmul.f32 0.2, %v2813_v40  ;;  %v3893_v41 = vmul.f32 %v6728_v43, %v3625_v17  ;;  %v3894_v9 = vmul.f32 %v6740_v51, %v3626_v27  ;;  %v10318_v53 = vpop.f32.mrb[231].mxu1 }
 0x403   :  { %v5658_v31 = vpop.eup %5657  ;;  %5153 = vst.msk [vmem:[%s10808_s7 + $0x218] sm:$0xff] %vm5085_vm6, %v5656_v19  ;;  %v4255_v35 = vadd.f32 %v3892_v25, %v3891_v46  ;;  %v4719_v11 = vmul.f32 1.442695, %v4518_v56  ;;  %v2817_v6 = vadd.f32 %v10123_v21, %v6706_v10  ;;  %v4445_v7 = vsub.f32 0.0, %v4317_v37  ;;  %v4158_v60 = vpop.xlane.xlu1 %4157 }
 0x404   :  { %v4899_v22 = vadd.f32 1.0, %v5658_v31  ;;  %v3630_v0 = vsel %vm3118_vm8, %v2813_v40, %v3374_v38  ;;  %v4258_v44 = vadd.f32 %v3894_v9, %v3893_v41  ;;  %v4318_v58 = vadd.f32 %v7881_v33, %v3936_v16 }
 0x405   :  { %4256 = vadd.xlane.f32.xlu0 %v4255_v35  ;;  %v2819_v17 = vadd.f32 %v10135_v55, %v6716_v14  ;;  %vm3119_vm9 = vcmp.gt.f32.partialorder %v2817_v6, 0.0  ;;  %v3375_v27 = vmul.f32 0.2, %v2817_v6  ;;  %v4319_v13 = vadd.f32 %v7881_v33, %v3939_v15  ;;  %v4161_v19 = vpop.xlane.xlu0 %4160 }
 0x406   :  { %5667 = vrcp.f32 %v4899_v22  ;;  %v5660_v3 = vpop.eup %5659  ;;  %v4573_v21 = vmul.f32 1.442695, %v4445_v7  ;;  %4259 = vadd.xlane.f32.xlu1 %v4258_v44  ;;  %v4446_v8 = vsub.f32 0.0, %v4318_v58  ;;  %v2821_v1 = vadd.f32 %v10141_v26, %v6706_v10 }
 0x407   :  { %5669 = vpow2.f32 %v4719_v11  ;;  %vm3120_vm0 = vcmp.gt.f32.partialorder %v2819_v17, 0.0  ;;  %v4900_v57 = vadd.f32 1.0, %v5660_v3  ;;  %v10321_v5 = vsel %vm3119_vm9, %v2817_v6, %v3375_v27 }
 0x408   :  { %v3376_v32 = vmul.f32 0.2, %v2819_v17  ;;  %v4447_v55 = vsub.f32 0.0, %v4319_v13  ;;  %v5662_v12 = vpop.eup %5661  ;;  %5671 = vpow2.f32 %v4573_v21  ;;  %v4575_v18 = vmul.f32 1.442695, %v4446_v8  ;;  %v3942_v35 = vpop.xlane.xlu1 %3941 }
 0x409   :  { %v2823_v36 = vadd.f32 %v10146_v30, %v6716_v14  ;;  %5154 = vst.msk [vmem:[%s10808_s7 + $0x220] sm:$0xff] %vm5085_vm6, %v5662_v12  ;;  %5673 = vrcp.f32 %v4900_v57  ;;  %v3895_v40 = vmul.f32 %v6728_v43, %v3627_v61  ;;  %vm3121_vm10 = vcmp.gt.f32.partialorder %v2821_v1, 0.0 }
 0x40a   :  { %v10331_v54 = vsel %vm3120_vm0, %v2819_v17, %v3376_v32  ;;  %v4577_v45 = vmul.f32 1.442695, %v4447_v55  ;;  %v5664_v16 = vpop.eup %5663  ;;  %5675 = vpow2.f32 %v4575_v18  ;;  %v3377_v46 = vmul.f32 0.2, %v2821_v1  ;;  %v10352_v7 = vpop.f32.mrb[232].mxu1 }
 0x40b   :  { %vm3122_vm11 = vcmp.gt.f32.partialorder %v2823_v36, 0.0  ;;  %v5666_v26 = vpop.eup %5665  ;;  %5155 = vst.msk [vmem:[%s10808_s7 + $0x228] sm:$0xff] %vm5085_vm6, %v5664_v16  ;;  %v3378_v30 = vmul.f32 0.2, %v2823_v36  ;;  %v3896_v25 = vmul.f32 %v6740_v51, %v10291_v47  ;;  %v4391_v15 = vadd.f32 %v7881_v33, %v4155_v34  ;;  %v10357_v27 = vpop.f32.mrb[233].mxu1 }
 0x40c   :  { %5677 = vpow2.f32 %v4577_v45  ;;  %v4901_v61 = vadd.f32 1.0, %v5666_v26  ;;  %v10341_v56 = vsel %vm3121_vm10, %v2821_v1, %v3377_v46  ;;  %v3897_v38 = vmul.f32 %v6728_v43, %v10296_v59  ;;  %v10365_v21 = vpop.f32.mrb[234].mxu1 }
 0x40d   :  { %v3898_v31 = vmul.f32 %v6740_v51, %v3630_v0  ;;  %v10346_v37 = vsel %vm3122_vm11, %v2823_v36, %v3378_v30  ;;  %v4261_v41 = vadd.f32 %v3896_v25, %v3895_v40  ;;  %v4519_v9 = vsub.f32 0.0, %v4391_v15  ;;  %v10367_v57 = vpop.f32.mrb[235].mxu1  ;;  %v4164_v36 = vpop.xlane.xlu1 %4163 }
 0x40e   :  { %v4392_v22 = vadd.f32 %v7881_v33, %v4158_v60  ;;  %5679 = vrcp.f32 %v4901_v61  ;;  %v2827_v11 = vadd.f32 %v10175_v4, %v6706_v10  ;;  %v4393_v6 = vadd.f32 %v7881_v33, %v4161_v19  ;;  %v3945_v60 = vpop.xlane.xlu0 %3944 }
 0x40f   :  { %v4264_v47 = vadd.f32 %v3898_v31, %v3897_v38  ;;  %4262 = vadd.xlane.f32.xlu0 %v4261_v41  ;;  %v4721_v59 = vmul.f32 1.442695, %v4519_v9  ;;  %v2829_v58 = vadd.f32 %v10177_v62, %v6716_v14  ;;  %v4320_v17 = vadd.f32 %v7881_v33, %v3942_v35 }
 0x410   :  { %v5668_v44 = vpop.eup %5667  ;;  %v4520_v0 = vsub.f32 0.0, %v4392_v22  ;;  %vm3123_vm12 = vcmp.gt.f32.partialorder %v2827_v11, 0.0  ;;  %v3379_v4 = vmul.f32 0.2, %v2827_v11  ;;  %v4521_v34 = vsub.f32 0.0, %v4393_v6 }
 0x411   :  { %v5670_v13 = vpop.eup %5669  ;;  %5156 = vst.msk [vmem:[%s10808_s7 + $0x230] sm:$0xff] %vm5085_vm6, %v5668_v44  ;;  %4265 = vadd.xlane.f32.xlu1 %v4264_v47  ;;  %v2831_v3 = vadd.f32 %v10183_v52, %v6706_v10  ;;  %5681 = vpow2.f32 %v4721_v59  ;;  %vm3124_vm13 = vcmp.gt.f32.partialorder %v2829_v58, 0.0  ;;  %v3380_v18 = vmul.f32 0.2, %v2829_v58 }
 0x412   :  { %v4902_v62 = vadd.f32 1.0, %v5670_v13  ;;  %v4723_v8 = vmul.f32 1.442695, %v4520_v0  ;;  %v5672_v32 = vpop.eup %5671  ;;  %v10369_v55 = vsel %vm3123_vm12, %v2827_v11, %v3379_v4  ;;  %v4725_v12 = vmul.f32 1.442695, %v4521_v34  ;;  %v4167_v9 = vpop.xlane.xlu0 %4166 }
 0x413   :  { %v4448_v1 = vsub.f32 0.0, %v4320_v17  ;;  %v5674_v45 = vpop.eup %5673  ;;  %v4829_v40 = vadd.f32 1.0, %v5672_v32  ;;  %vm3125_vm14 = vcmp.gt.f32.partialorder %v2831_v3, 0.0  ;;  %v3381_v52 = vmul.f32 0.2, %v2831_v3  ;;  %v3948_v6 = vpop.xlane.xlu1 %3947 }
 0x414   :  { %5683 = vrcp.f32 %v4902_v62  ;;  %v5676_v16 = vpop.eup %5675  ;;  %5157 = vst.msk [vmem:[%s10808_s7 + $0x238] sm:$0xff] %vm5085_vm6, %v5674_v45  ;;  %v10376_v46 = vsel %vm3124_vm13, %v2829_v58, %v3380_v18  ;;  %v2833_v30 = vadd.f32 %v10188_v50, %v6716_v14  ;;  %v3899_v61 = vmul.f32 %v6728_v43, %v10321_v5 }
 0x415   :  { %5685 = vpow2.f32 %v4723_v8  ;;  %v4579_v26 = vmul.f32 1.442695, %v4448_v1  ;;  %v4830_v15 = vadd.f32 1.0, %v5676_v16  ;;  %v10380_v19 = vsel %vm3125_vm14, %v2831_v3, %v3381_v52 }
 0x416   :  { %v5678_v25 = vpop.eup %5677  ;;  %5687 = vrcp.f32 %v4829_v40  ;;  %vm3126_vm15 = vcmp.gt.f32.partialorder %v2833_v30, 0.0  ;;  %v3382_v31 = vmul.f32 0.2, %v2833_v30  ;;  %v3900_v35 = vmul.f32 %v6740_v51, %v10331_v54 }
 0x417   :  { %v4831_v38 = vadd.f32 1.0, %v5678_v25  ;;  %5689 = vpow2.f32 %v4725_v12  ;;  %v4321_v41 = vadd.f32 %v7881_v33, %v3945_v60  ;;  %v3901_v50 = vmul.f32 %v6728_v43, %v10341_v56  ;;  %v10404_v3 = vpop.f32.mrb[236].mxu1 }
 0x418   :  { %5691 = vrcp.f32 %v4830_v15  ;;  %v5680_v22 = vpop.eup %5679  ;;  %v10389_v47 = vsel %vm3126_vm15, %v2833_v30, %v3382_v31  ;;  %v3902_v5 = vmul.f32 %v6740_v51, %v10346_v37  ;;  %v4394_v11 = vadd.f32 %v7881_v33, %v4164_v36  ;;  %v10406_v60 = vpop.f32.mrb[237].mxu1 }
 0x419   :  { %5693 = vrcp.f32 %v4831_v38  ;;  %5158 = vst.msk [vmem:[%s10808_s7 + $0x240] sm:$0xff] %vm5085_vm6, %v5680_v22  ;;  %v4267_v54 = vadd.f32 %v3900_v35, %v3899_v61  ;;  %v4449_v44 = vsub.f32 0.0, %v4321_v41  ;;  %v2837_v56 = vadd.f32 %v10214_v24, %v6706_v10  ;;  %v10410_v1 = vpop.f32.mrb[238].mxu1 }
 0x41a   :  { %5695 = vpow2.f32 %v4579_v26  ;;  %v4270_v59 = vadd.f32 %v3902_v5, %v3901_v50  ;;  %v4522_v0 = vsub.f32 0.0, %v4394_v11  ;;  %v4395_v58 = vadd.f32 %v7881_v33, %v4167_v9  ;;  %v10420_v16 = vpop.f32.mrb[239].mxu1  ;;  %v4173_v50 = vpop.xlane.xlu0 %4172 }
 0x41b   :  { %v2839_v37 = vadd.f32 %v10221_v39, %v6716_v14  ;;  %v5682_v17 = vpop.eup %5681  ;;  %4268 = vadd.xlane.f32.xlu0 %v4267_v54  ;;  %v4581_v13 = vmul.f32 1.442695, %v4449_v44  ;;  %vm3127_vm1 = vcmp.gt.f32.partialorder %v2837_v56, 0.0  ;;  %v3383_v4 = vmul.f32 0.2, %v2837_v56 }
 0x41c   :  { %v4322_v34 = vadd.f32 %v7881_v33, %v3948_v6  ;;  %v4903_v62 = vadd.f32 1.0, %v5682_v17  ;;  %4271 = vadd.xlane.f32.xlu1 %v4270_v59  ;;  %v4727_v8 = vmul.f32 1.442695, %v4522_v0  ;;  %v4523_v24 = vsub.f32 0.0, %v4395_v58 }
 0x41d   :  { %vm3128_vm2 = vcmp.gt.f32.partialorder %v2839_v37, 0.0  ;;  %5697 = vpow2.f32 %v4581_v13  ;;  %v10408_v12 = vsel %vm3127_vm1, %v2837_v56, %v3383_v4  ;;  %v3384_v39 = vmul.f32 0.2, %v2839_v37 }
 0x41e   :  { %v5684_v32 = vpop.eup %5683  ;;  %v4450_v18 = vsub.f32 0.0, %v4322_v34  ;;  %5699 = vrcp.f32 %v4903_v62  ;;  %v4729_v45 = vmul.f32 1.442695, %v4523_v24  ;;  %v2841_v40 = vadd.f32 %v10226_v2, %v6706_v10 }
 0x41f   :  { %v5686_v36 = vpop.eup %5685  ;;  %5159 = vst.msk [vmem:[%s10808_s7 + $0x248] sm:$0xff] %vm5085_vm6, %v5684_v32  ;;  %v2843_v52 = vadd.f32 %v10231_v42, %v6716_v14  ;;  %5701 = vpow2.f32 %v4727_v8  ;;  %v10423_v25 = vsel %vm3128_vm2, %v2839_v37, %v3384_v39  ;;  %v4170_v42 = vpop.xlane.xlu1 %4169  ;;  %v3903_v41 = vmul.f32 %v6728_v43, %v10369_v55 }
 0x420   :  { %v5688_v26 = vpop.eup %5687  ;;  %v4904_v30 = vadd.f32 1.0, %v5686_v36  ;;  %v4583_v15 = vmul.f32 1.442695, %v4450_v18  ;;  %5703 = vpow2.f32 %v4729_v45  ;;  %vm3129_vm3 = vcmp.gt.f32.partialorder %v2841_v40, 0.0 }
 0x421   :  { %v5690_v61 = vpop.eup %5689  ;;  %5086 = vst.msk [vmem:[%s10808_s7] sm:$0xff] %vm5085_vm6, %v5688_v26  ;;  %v3385_v2 = vmul.f32 0.2, %v2841_v40  ;;  %vm3130_vm4 = vcmp.gt.f32.partialorder %v2843_v52, 0.0  ;;  %v3386_v35 = vmul.f32 0.2, %v2843_v52  ;;  %v3904_v5 = vmul.f32 %v6740_v51, %v10376_v46 }
 0x422   :  { %v5692_v38 = vpop.eup %5691  ;;  %5705 = vrcp.f32 %v4904_v30  ;;  %v4905_v31 = vadd.f32 1.0, %v5690_v61  ;;  %v3905_v11 = vmul.f32 %v6728_v43, %v10380_v19  ;;  %v3906_v54 = vmul.f32 %v6740_v51, %v10389_v47 }
 0x423   :  { %v5694_v9 = vpop.eup %5693  ;;  %5087 = vst.msk [vmem:[%s10808_s7 + $0x8] sm:$0xff] %vm5085_vm6, %v5692_v38  ;;  %5707 = vpow2.f32 %v4583_v15  ;;  %v3641_v22 = vsel %vm3129_vm3, %v2841_v40, %v3385_v2  ;;  %v3642_v55 = vsel %vm3130_vm4, %v2843_v52, %v3386_v35  ;;  %v4396_v44 = vadd.f32 %v7881_v33, %v4170_v42  ;;  %v4176_v4 = vpop.xlane.xlu1 %4175 }
 0x424   :  { %v5696_v6 = vpop.eup %5695  ;;  %5088 = vst.msk [vmem:[%s10808_s7 + $0x10] sm:$0xff] %vm5085_vm6, %v5694_v9  ;;  %5709 = vrcp.f32 %v4905_v31  ;;  %v4273_v59 = vadd.f32 %v3904_v5, %v3903_v41  ;;  %v2847_v46 = vadd.f32 %v10257_v20, %v6706_v10  ;;  %v4397_v19 = vadd.f32 %v7881_v33, %v4173_v50  ;;  %v10456_v18 = vpop.f32.mrb[240].mxu1 }
 0x425   :  { %v4832_v56 = vadd.f32 1.0, %v5696_v6  ;;  %v4276_v0 = vadd.f32 %v3906_v54, %v3905_v11  ;;  %v4524_v58 = vsub.f32 0.0, %v4396_v44  ;;  %v2849_v37 = vadd.f32 %v10259_v49, %v6716_v14  ;;  %v10465_v52 = vpop.f32.mrb[241].mxu1  ;;  %v4179_v35 = vpop.xlane.xlu0 %4178 }
 0x426   :  { %v2851_v17 = vadd.f32 %v10262_v63, %v6706_v10  ;;  %4274 = vadd.xlane.f32.xlu0 %v4273_v59  ;;  %vm3131_vm5 = vcmp.gt.f32.partialorder %v2847_v46, 0.0  ;;  %v3387_v47 = vmul.f32 0.2, %v2847_v46  ;;  %v4525_v13 = vsub.f32 0.0, %v4397_v19  ;;  %v10470_v2 = vpop.f32.mrb[242].mxu1 }
 0x427   :  { %5711 = vrcp.f32 %v4832_v56  ;;  %v5698_v34 = vpop.eup %5697  ;;  %4277 = vadd.xlane.f32.xlu1 %v4276_v0  ;;  %v4731_v62 = vmul.f32 1.442695, %v4524_v58  ;;  %vm3132_vm7 = vcmp.gt.f32.partialorder %v2849_v37, 0.0  ;;  %v3388_v20 = vmul.f32 0.2, %v2849_v37  ;;  %v10472_v41 = vpop.f32.mrb[243].mxu1 }
 0x428   :  { %vm3133_vm8 = vcmp.gt.f32.partialorder %v2851_v17, 0.0  ;;  %v5700_v8 = vpop.eup %5699  ;;  %v4833_v24 = vadd.f32 1.0, %v5698_v34  ;;  %v10454_v32 = vsel %vm3131_vm5, %v2847_v46, %v3387_v47  ;;  %v4733_v49 = vmul.f32 1.442695, %v4525_v13  ;;  %v4182_v19 = vpop.xlane.xlu1 %4181 }
 0x429   :  { %v3389_v39 = vmul.f32 0.2, %v2851_v17  ;;  %v5702_v63 = vpop.eup %5701  ;;  %5160 = vst.msk [vmem:[%s10808_s7 + $0x250] sm:$0xff] %vm5085_vm6, %v5700_v8  ;;  %5713 = vpow2.f32 %v4731_v62  ;;  %v3644_v36 = vsel %vm3132_vm7, %v2849_v37, %v3388_v20  ;;  %v4398_v45 = vadd.f32 %v7881_v33, %v4176_v4 }
 0x42a   :  { %v2853_v40 = vadd.f32 %v10271_v29, %v6716_v14  ;;  %v5704_v26 = vpop.eup %5703  ;;  %5715 = vrcp.f32 %v4833_v24  ;;  %v4906_v30 = vadd.f32 1.0, %v5702_v63  ;;  %v3907_v61 = vmul.f32 %v6728_v43, %v10408_v12 }
 0x42b   :  { %v3645_v15 = vsel %vm3133_vm8, %v2851_v17, %v3389_v39  ;;  %v4907_v38 = vadd.f32 1.0, %v5704_v26  ;;  %5717 = vpow2.f32 %v4733_v49  ;;  %v4526_v31 = vsub.f32 0.0, %v4398_v45  ;;  %v4185_v63 = vpop.xlane.xlu0 %4184 }
 0x42c   :  { %v5706_v42 = vpop.eup %5705  ;;  %vm3134_vm9 = vcmp.gt.f32.partialorder %v2853_v40, 0.0  ;;  %5719 = vrcp.f32 %v4906_v30  ;;  %v3390_v50 = vmul.f32 0.2, %v2853_v40  ;;  %v3908_v12 = vmul.f32 %v6740_v51, %v10423_v25 }
 0x42d   :  { %v5708_v29 = vpop.eup %5707  ;;  %5161 = vst.msk [vmem:[%s10808_s7 + $0x258] sm:$0xff] %vm5085_vm6, %v5706_v42  ;;  %v3909_v9 = vmul.f32 %v6728_v43, %v3641_v22  ;;  %5721 = vrcp.f32 %v4907_v38  ;;  %v4735_v6 = vmul.f32 1.442695, %v4526_v31  ;;  %v3910_v54 = vmul.f32 %v6740_v51, %v3642_v55 }
 0x42e   :  { %v5710_v5 = vpop.eup %5709  ;;  %v4834_v11 = vadd.f32 1.0, %v5708_v29  ;;  %v3646_v44 = vsel %vm3134_vm9, %v2853_v40, %v3390_v50  ;;  %v4279_v56 = vadd.f32 %v3908_v12, %v3907_v61  ;;  %v2857_v59 = vadd.f32 %v10300_v28, %v6706_v10  ;;  %v4188_v50 = vpop.xlane.xlu1 %4187 }
 0x42f   :  { %5162 = vst.msk [vmem:[%s10808_s7 + $0x260] sm:$0xff] %vm5085_vm6, %v5710_v5  ;;  %v4399_v25 = vadd.f32 %v7881_v33, %v4179_v35  ;;  %v4282_v22 = vadd.f32 %v3910_v54, %v3909_v9  ;;  %v2859_v46 = vadd.f32 %v10309_v48, %v6716_v14  ;;  %v2861_v55 = vadd.f32 %v10313_v23, %v6706_v10 }
 0x430   :  { %5723 = vrcp.f32 %v4834_v11  ;;  %4280 = vadd.xlane.f32.xlu0 %v4279_v56  ;;  %vm3135_vm0 = vcmp.gt.f32.partialorder %v2857_v59, 0.0  ;;  %v3391_v58 = vmul.f32 0.2, %v2857_v59  ;;  %v4400_v23 = vadd.f32 %v7881_v33, %v4182_v19 }
 0x431   :  { %v5712_v0 = vpop.eup %5711  ;;  %5725 = vpow2.f32 %v4735_v6  ;;  %v4527_v37 = vsub.f32 0.0, %v4399_v25  ;;  %4283 = vadd.xlane.f32.xlu1 %v4282_v22  ;;  %vm3136_vm10 = vcmp.gt.f32.partialorder %v2859_v46, 0.0  ;;  %v3392_v28 = vmul.f32 0.2, %v2859_v46 }
 0x432   :  { %5089 = vst.msk [vmem:[%s10808_s7 + $0x18] sm:$0xff] %vm5085_vm6, %v5712_v0  ;;  %vm3137_vm11 = vcmp.gt.f32.partialorder %v2861_v55, 0.0  ;;  %v3393_v48 = vmul.f32 0.2, %v2861_v55  ;;  %v3647_v17 = vsel %vm3135_vm0, %v2857_v59, %v3391_v58  ;;  %v2863_v13 = vadd.f32 %v10318_v53, %v6716_v14 }
 0x433   :  { %v4737_v47 = vmul.f32 1.442695, %v4527_v37  ;;  %v5714_v4 = vpop.eup %5713  ;;  %v3648_v34 = vsel %vm3136_vm10, %v2859_v46, %v3392_v28  ;;  %v3911_v20 = vmul.f32 %v6728_v43, %v10454_v32  ;;  %v3912_v8 = vmul.f32 %v6740_v51, %v3644_v36  ;;  %v4191_v0 = vpop.xlane.xlu0 %4190 }
 0x434   :  { %v3649_v62 = vsel %vm3137_vm11, %v2861_v55, %v3393_v48  ;;  %v5716_v24 = vpop.eup %5715  ;;  %v4908_v49 = vadd.f32 1.0, %v5714_v4  ;;  %v4528_v39 = vsub.f32 0.0, %v4400_v23  ;;  %vm3138_vm12 = vcmp.gt.f32.partialorder %v2863_v13, 0.0 }
 0x435   :  { %5727 = vpow2.f32 %v4737_v47  ;;  %v5718_v45 = vpop.eup %5717  ;;  %5090 = vst.msk [vmem:[%s10808_s7 + $0x20] sm:$0xff] %vm5085_vm6, %v5716_v24  ;;  %v3394_v53 = vmul.f32 0.2, %v2863_v13  ;;  %v4285_v40 = vadd.f32 %v3912_v8, %v3911_v20  ;;  %v3913_v26 = vmul.f32 %v6728_v43, %v3645_v15  ;;  %v4194_v24 = vpop.xlane.xlu1 %4193 }
 0x436   :  { %v3914_v32 = vmul.f32 %v6740_v51, %v3646_v44  ;;  %v5720_v30 = vpop.eup %5719  ;;  %5729 = vrcp.f32 %v4908_v49  ;;  %v4909_v36 = vadd.f32 1.0, %v5718_v45  ;;  %v4739_v61 = vmul.f32 1.442695, %v4528_v39 }
 0x437   :  { %v2867_v42 = vadd.f32 %v10352_v7, %v6706_v10  ;;  %v5722_v38 = vpop.eup %5721  ;;  %5163 = vst.msk [vmem:[%s10808_s7 + $0x268] sm:$0xff] %vm5085_vm6, %v5720_v30  ;;  %v3650_v31 = vsel %vm3138_vm12, %v2863_v13, %v3394_v53  ;;  %4286 = vadd.xlane.f32.xlu0 %v4285_v40  ;;  %v4401_v15 = vadd.f32 %v7881_v33, %v4185_v63 }
 0x438   :  { %v4288_v35 = vadd.f32 %v3914_v32, %v3913_v26  ;;  %v2869_v29 = vadd.f32 %v10357_v27, %v6716_v14  ;;  %5164 = vst.msk [vmem:[%s10808_s7 + $0x270] sm:$0xff] %vm5085_vm6, %v5722_v38  ;;  %5731 = vrcp.f32 %v4909_v36  ;;  %v2871_v12 = vadd.f32 %v10365_v21, %v6706_v10 }
 0x439   :  { %vm3139_vm13 = vcmp.gt.f32.partialorder %v2867_v42, 0.0  ;;  %v3395_v7 = vmul.f32 0.2, %v2867_v42  ;;  %5733 = vpow2.f32 %v4739_v61  ;;  %v4529_v5 = vsub.f32 0.0, %v4401_v15 }
 0x43a   :  { %v5724_v9 = vpop.eup %5723  ;;  %4289 = vadd.xlane.f32.xlu1 %v4288_v35  ;;  %vm3140_vm14 = vcmp.gt.f32.partialorder %v2869_v29, 0.0  ;;  %v3396_v11 = vmul.f32 0.2, %v2869_v29  ;;  %vm3141_vm15 = vcmp.gt.f32.partialorder %v2871_v12, 0.0  ;;  %v3397_v54 = vmul.f32 0.2, %v2871_v12 }
 0x43b   :  { %v5726_v6 = vpop.eup %5725  ;;  %5091 = vst.msk [vmem:[%s10808_s7 + $0x28] sm:$0xff] %vm5085_vm6, %v5724_v9  ;;  %v3651_v27 = vsel %vm3139_vm13, %v2867_v42, %v3395_v7  ;;  %v4402_v44 = vadd.f32 %v7881_v33, %v4188_v50  ;;  %v4741_v59 = vmul.f32 1.442695, %v4529_v5  ;;  %v2873_v25 = vadd.f32 %v10367_v57, %v6716_v14 }
 0x43c   :  { %v4910_v56 = vadd.f32 1.0, %v5726_v6  ;;  %v3652_v21 = vsel %vm3140_vm14, %v2869_v29, %v3396_v11  ;;  %v3653_v22 = vsel %vm3141_vm15, %v2871_v12, %v3397_v54  ;;  %v3915_v55 = vmul.f32 %v6728_v43, %v3647_v17  ;;  %v4197_v42 = vpop.xlane.xlu0 %4196 }
 0x43d   :  { %v4530_v46 = vsub.f32 0.0, %v4402_v44  ;;  %v3916_v19 = vmul.f32 %v6740_v51, %v3648_v34  ;;  %vm3142_vm1 = vcmp.gt.f32.partialorder %v2873_v25, 0.0  ;;  %v3398_v58 = vmul.f32 0.2, %v2873_v25 }
 0x43e   :  { %5735 = vrcp.f32 %v4910_v56  ;;  %v3917_v37 = vmul.f32 %v6728_v43, %v3649_v62  ;;  %v3918_v23 = vmul.f32 %v6740_v51, %v3650_v31  ;;  %v2877_v4 = vadd.f32 %v10404_v3, %v6706_v10  ;;  %v4200_v56 = vpop.xlane.xlu1 %4199 }
 0x43f   :  { %v5728_v28 = vpop.eup %5727  ;;  %5737 = vpow2.f32 %v4741_v59  ;;  %v4743_v48 = vmul.f32 1.442695, %v4530_v46  ;;  %v4291_v47 = vadd.f32 %v3916_v19, %v3915_v55  ;;  %v3654_v57 = vsel %vm3142_vm1, %v2873_v25, %v3398_v58 }
 0x440   :  { %v4911_v13 = vadd.f32 1.0, %v5728_v28  ;;  %v4403_v17 = vadd.f32 %v7881_v33, %v4191_v0  ;;  %v5730_v34 = vpop.eup %5729  ;;  %v4294_v20 = vadd.f32 %v3918_v23, %v3917_v37  ;;  %v2879_v62 = vadd.f32 %v10406_v60, %v6716_v14 }
 0x441   :  { %5739 = vpow2.f32 %v4743_v48  ;;  %4292 = vadd.xlane.f32.xlu0 %v4291_v47  ;;  %v2881_v8 = vadd.f32 %v10410_v1, %v6706_v10  ;;  %5165 = vst.msk [vmem:[%s10808_s7 + $0x278] sm:$0xff] %vm5085_vm6, %v5730_v34  ;;  %vm3143_vm2 = vcmp.gt.f32.partialorder %v2877_v4, 0.0  ;;  %v3399_v3 = vmul.f32 0.2, %v2877_v4 }
 0x442   :  { %5741 = vrcp.f32 %v4911_v13  ;;  %v4531_v49 = vsub.f32 0.0, %v4403_v17  ;;  %v5732_v39 = vpop.eup %5731  ;;  %4295 = vadd.xlane.f32.xlu1 %v4294_v20  ;;  %vm3144_vm3 = vcmp.gt.f32.partialorder %v2879_v62, 0.0  ;;  %v3400_v63 = vmul.f32 0.2, %v2879_v62 }
 0x443   :  { %vm3145_vm4 = vcmp.gt.f32.partialorder %v2881_v8, 0.0  ;;  %v3401_v45 = vmul.f32 0.2, %v2881_v8  ;;  %v5734_v60 = vpop.eup %5733  ;;  %5166 = vst.msk [vmem:[%s10808_s7 + $0x280] sm:$0xff] %vm5085_vm6, %v5732_v39  ;;  %v3655_v1 = vsel %vm3143_vm2, %v2877_v4, %v3399_v3  ;;  %v4404_v40 = vadd.f32 %v7881_v33, %v4194_v24 }
 0x444   :  { %v4745_v53 = vmul.f32 1.442695, %v4531_v49  ;;  %v2883_v26 = vadd.f32 %v10420_v16, %v6716_v14  ;;  %v4912_v32 = vadd.f32 1.0, %v5734_v60  ;;  %v3656_v30 = vsel %vm3144_vm3, %v2879_v62, %v3400_v63  ;;  %v4203_v58 = vpop.xlane.xlu0 %4202 }
 0x445   :  { %v3657_v36 = vsel %vm3145_vm4, %v2881_v8, %v3401_v45  ;;  %v3919_v61 = vmul.f32 %v6728_v43, %v3651_v27  ;;  %v4532_v38 = vsub.f32 0.0, %v4404_v40  ;;  %v3920_v35 = vmul.f32 %v6740_v51, %v3652_v21 }
 0x446   :  { %5743 = vpow2.f32 %v4745_v53  ;;  %vm3146_vm5 = vcmp.gt.f32.partialorder %v2883_v26, 0.0  ;;  %v3402_v31 = vmul.f32 0.2, %v2883_v26  ;;  %v3921_v15 = vmul.f32 %v6728_v43, %v3653_v22  ;;  %v4206_v47 = vpop.xlane.xlu1 %4205 }
 0x447   :  { %5745 = vrcp.f32 %v4912_v32  ;;  %v3922_v29 = vmul.f32 %v6740_v51, %v3654_v57  ;;  %v4747_v7 = vmul.f32 1.442695, %v4532_v38  ;;  %v2887_v12 = vadd.f32 %v10456_v18, %v6706_v10 }
 0x448   :  { %v5736_v50 = vpop.eup %5735  ;;  %v3658_v16 = vsel %vm3146_vm5, %v2883_v26, %v3402_v31  ;;  %v4405_v9 = vadd.f32 %v7881_v33, %v4197_v42  ;;  %v4297_v11 = vadd.f32 %v3920_v35, %v3919_v61  ;;  %v2889_v27 = vadd.f32 %v10465_v52, %v6716_v14 }
 0x449   :  { %v5738_v5 = vpop.eup %5737  ;;  %5167 = vst.msk [vmem:[%s10808_s7 + $0x288] sm:$0xff] %vm5085_vm6, %v5736_v50  ;;  %v4300_v6 = vadd.f32 %v3922_v29, %v3921_v15  ;;  %v2891_v54 = vadd.f32 %v10470_v2, %v6706_v10  ;;  %5747 = vpow2.f32 %v4747_v7  ;;  %vm3147_vm7 = vcmp.gt.f32.partialorder %v2887_v12, 0.0 }
 0x44a   :  { %v4913_v44 = vadd.f32 1.0, %v5738_v5  ;;  %v3403_v18 = vmul.f32 0.2, %v2887_v12  ;;  %4298 = vadd.xlane.f32.xlu0 %v4297_v11  ;;  %v4533_v21 = vsub.f32 0.0, %v4405_v9  ;;  %vm3148_vm8 = vcmp.gt.f32.partialorder %v2889_v27, 0.0 }
 0x44b   :  { %v5740_v59 = vpop.eup %5739  ;;  %4301 = vadd.xlane.f32.xlu1 %v4300_v6  ;;  %v3404_v25 = vmul.f32 0.2, %v2889_v27  ;;  %vm3149_vm9 = vcmp.gt.f32.partialorder %v2891_v54, 0.0  ;;  %v3405_v52 = vmul.f32 0.2, %v2891_v54  ;;  %v4406_v19 = vadd.f32 %v7881_v33, %v4200_v56 }
 0x44c   :  { %v5742_v22 = vpop.eup %5741  ;;  %5749 = vrcp.f32 %v4913_v44  ;;  %v4914_v46 = vadd.f32 1.0, %v5740_v59  ;;  %v3659_v55 = vsel %vm3147_vm7, %v2887_v12, %v3403_v18  ;;  %v4749_v10 = vmul.f32 1.442695, %v4533_v21 }
 0x44d   :  { %5168 = vst.msk [vmem:[%s10808_s7 + $0x290] sm:$0xff] %vm5085_vm6, %v5742_v22  ;;  %v3660_v2 = vsel %vm3148_vm8, %v2889_v27, %v3404_v25  ;;  %v2893_v0 = vadd.f32 %v10472_v41, %v6716_v14  ;;  %v3661_v37 = vsel %vm3149_vm9, %v2891_v54, %v3405_v52  ;;  %v3923_v28 = vmul.f32 %v6728_v43, %v3655_v1  ;;  %v4209_v3 = vpop.xlane.xlu0 %4208 }
 0x44e   :  { %5751 = vrcp.f32 %v4914_v46  ;;  %v3924_v48 = vmul.f32 %v6740_v51, %v3656_v30  ;;  %v4534_v23 = vsub.f32 0.0, %v4406_v19  ;;  %v3925_v17 = vmul.f32 %v6728_v43, %v3657_v36  ;;  %v4212_v60 = vpop.xlane.xlu1 %4211 }
 0x44f   :  { %5753 = vpow2.f32 %v4749_v10  ;;  %vm3150_vm0 = vcmp.gt.f32.partialorder %v2893_v0, 0.0  ;;  %v3406_v13 = vmul.f32 0.2, %v2893_v0  ;;  %v3926_v34 = vmul.f32 %v6740_v51, %v3658_v16 }
 0x450   :  { %v5744_v57 = vpop.eup %5743  ;;  %v4303_v4 = vadd.f32 %v3924_v48, %v3923_v28  ;;  %v4407_v14 = vadd.f32 %v7881_v33, %v4203_v58  ;;  %v4751_v62 = vmul.f32 1.442695, %v4534_v23  ;;  %v4408_v24 = vadd.f32 %v7881_v33, %v4206_v47 }
 0x451   :  { %v5746_v41 = vpop.eup %5745  ;;  %v4915_v20 = vadd.f32 1.0, %v5744_v57  ;;  %v3662_v8 = vsel %vm3150_vm0, %v2893_v0, %v3406_v13  ;;  %v4306_v49 = vadd.f32 %v3926_v34, %v3925_v17  ;;  %v3927_v63 = vmul.f32 %v6728_v43, %v3659_v55 }
 0x452   :  { %5169 = vst.msk [vmem:[%s10808_s7 + $0x298] sm:$0xff] %vm5085_vm6, %v5746_v41  ;;  %4304 = vadd.xlane.f32.xlu0 %v4303_v4  ;;  %v4535_v39 = vsub.f32 0.0, %v4407_v14  ;;  %v3928_v45 = vmul.f32 %v6740_v51, %v3660_v2  ;;  %v4536_v1 = vsub.f32 0.0, %v4408_v24  ;;  %v3929_v53 = vmul.f32 %v6728_v43, %v3661_v37 }
 0x453   :  { %5755 = vrcp.f32 %v4915_v20  ;;  %v3930_v40 = vmul.f32 %v6740_v51, %v3662_v8  ;;  %v5748_v26 = vpop.eup %5747  ;;  %4307 = vadd.xlane.f32.xlu1 %v4306_v49  ;;  %v4409_v36 = vadd.f32 %v7881_v33, %v4209_v3  ;;  %v4410_v31 = vadd.f32 %v7881_v33, %v4212_v60 }
 0x454   :  { %5757 = vpow2.f32 %v4751_v62  ;;  %v4753_v32 = vmul.f32 1.442695, %v4535_v39  ;;  %v4309_v30 = vadd.f32 %v3928_v45, %v3927_v63  ;;  %v4916_v61 = vadd.f32 1.0, %v5748_v26 }
 0x455   :  { %v4755_v42 = vmul.f32 1.442695, %v4536_v1  ;;  %v4312_v38 = vadd.f32 %v3930_v40, %v3929_v53  ;;  %v4537_v15 = vsub.f32 0.0, %v4409_v36  ;;  %v4538_v43 = vsub.f32 0.0, %v4410_v31 }
 0x456   :  { %v5750_v35 = vpop.eup %5749  ;;  %5759 = vpow2.f32 %v4753_v32  ;;  %4310 = vadd.xlane.f32.xlu0 %v4309_v30  ;;  %v4215_v51 = vpop.xlane.xlu0 %4214 }
 0x457   :  { %5170 = vst.msk [vmem:[%s10808_s7 + $0x2a0] sm:$0xff] %vm5085_vm6, %v5750_v35  ;;  %5761 = vrcp.f32 %v4916_v61  ;;  %4313 = vadd.xlane.f32.xlu1 %v4312_v38  ;;  %v4757_v50 = vmul.f32 1.442695, %v4537_v15  ;;  %v4411_v7 = vadd.f32 %v7881_v33, %v4215_v51  ;;  %v4759_v9 = vmul.f32 1.442695, %v4538_v43 }
 0x458   :  { %v5752_v29 = vpop.eup %5751  ;;  %5763 = vpow2.f32 %v4755_v42  ;;  %v4218_v16 = vpop.xlane.xlu1 %4217 }
 0x459   :  { %v5754_v12 = vpop.eup %5753  ;;  %5171 = vst.msk [vmem:[%s10808_s7 + $0x2a8] sm:$0xff] %vm5085_vm6, %v5752_v29  ;;  %v4412_v5 = vadd.f32 %v7881_v33, %v4218_v16  ;;  %5765 = vpow2.f32 %v4757_v50  ;;  %v4539_v6 = vsub.f32 0.0, %v4411_v7 }
 0x45a   :  { %v4917_v11 = vadd.f32 1.0, %v5754_v12  ;;  %5767 = vpow2.f32 %v4759_v9 }
 0x45b   :  { %v4540_v27 = vsub.f32 0.0, %v4412_v5  ;;  %v4761_v54 = vmul.f32 1.442695, %v4539_v6 }
 0x45c   :  { %5769 = vrcp.f32 %v4917_v11 }
 0x45d   :  { %v5756_v44 = vpop.eup %5755  ;;  %v4763_v18 = vmul.f32 1.442695, %v4540_v27  ;;  %5771 = vpow2.f32 %v4761_v54 }
 0x45e   :  { %v5758_v56 = vpop.eup %5757  ;;  %5172 = vst.msk [vmem:[%s10808_s7 + $0x2b0] sm:$0xff] %vm5085_vm6, %v5756_v44 }
 0x45f   :  { %v4918_v59 = vadd.f32 1.0, %v5758_v56  ;;  %5773 = vpow2.f32 %v4763_v18  ;;  %v4221_v25 = vpop.xlane.xlu0 %4220 }
 0x460   :  { %v5760_v21 = vpop.eup %5759  ;;  %v4413_v55 = vadd.f32 %v7881_v33, %v4221_v25 }
 0x461   :  { %v5762_v22 = vpop.eup %5761  ;;  %5775 = vrcp.f32 %v4918_v59  ;;  %v4919_v46 = vadd.f32 1.0, %v5760_v21 }
 0x462   :  { %v5764_v52 = vpop.eup %5763  ;;  %5173 = vst.msk [vmem:[%s10808_s7 + $0x2b8] sm:$0xff] %vm5085_vm6, %v5762_v22  ;;  %v4224_v10 = vpop.xlane.xlu1 %4223  ;;  %v4541_v19 = vsub.f32 0.0, %v4413_v55 }
 0x463   :  { %5777 = vrcp.f32 %v4919_v46  ;;  %v4920_v2 = vadd.f32 1.0, %v5764_v52  ;;  %v4414_v0 = vadd.f32 %v7881_v33, %v4224_v10  ;;  %v5766_v58 = vpop.eup %5765 }
 0x464   :  { %v5768_v37 = vpop.eup %5767  ;;  %v4921_v28 = vadd.f32 1.0, %v5766_v58  ;;  %v4765_v48 = vmul.f32 1.442695, %v4541_v19 }
 0x465   :  { %5779 = vrcp.f32 %v4920_v2  ;;  %v4542_v47 = vsub.f32 0.0, %v4414_v0  ;;  %v4922_v13 = vadd.f32 1.0, %v5768_v37 }
 0x466   :  { %v5770_v23 = vpop.eup %5769  ;;  %5781 = vrcp.f32 %v4921_v28 }
 0x467   :  { %5174 = vst.msk [vmem:[%s10808_s7 + $0x2c0] sm:$0xff] %vm5085_vm6, %v5770_v23  ;;  %v4767_v57 = vmul.f32 1.442695, %v4542_v47  ;;  %v5772_v4 = vpop.eup %5771  ;;  %5783 = vrcp.f32 %v4922_v13  ;;  %v4227_v17 = vpop.xlane.xlu0 %4226 }
 0x468   :  { %v4923_v14 = vadd.f32 1.0, %v5772_v4  ;;  %5785 = vpow2.f32 %v4765_v48  ;;  %v4415_v41 = vadd.f32 %v7881_v33, %v4227_v17 }
 0x469   :  { %v5774_v34 = vpop.eup %5773  ;;  %v4230_v20 = vpop.xlane.xlu1 %4229  ;;  %5787 = vpow2.f32 %v4767_v57 }
 0x46a   :  { %v4924_v62 = vadd.f32 1.0, %v5774_v34  ;;  %v4416_v8 = vadd.f32 %v7881_v33, %v4230_v20  ;;  %5789 = vrcp.f32 %v4923_v14  ;;  %v4543_v3 = vsub.f32 0.0, %v4415_v41 }
 0x46b   :  { %v5776_v24 = vpop.eup %5775 }
 0x46c   :  { %5175 = vst.msk [vmem:[%s10808_s7 + $0x2c8] sm:$0xff] %vm5085_vm6, %v5776_v24  ;;  %5791 = vrcp.f32 %v4924_v62  ;;  %v4544_v49 = vsub.f32 0.0, %v4416_v8  ;;  %v4769_v63 = vmul.f32 1.442695, %v4543_v3 }
 0x46d   :  { %v5778_v39 = vpop.eup %5777 }
 0x46e   :  { %5176 = vst.msk [vmem:[%s10808_s7 + $0x2d0] sm:$0xff] %vm5085_vm6, %v5778_v39  ;;  %v4771_v45 = vmul.f32 1.442695, %v4544_v49  ;;  %5793 = vpow2.f32 %v4769_v63 }
 0x46f   :  { %v5780_v60 = vpop.eup %5779  ;;  %v4233_v1 = vpop.xlane.xlu0 %4232 }
 0x470   :  { %5177 = vst.msk [vmem:[%s10808_s7 + $0x2d8] sm:$0xff] %vm5085_vm6, %v5780_v60  ;;  %5795 = vpow2.f32 %v4771_v45  ;;  %v5782_v53 = vpop.eup %5781  ;;  %v4417_v40 = vadd.f32 %v7881_v33, %v4233_v1 }
 0x471   :  { %v5784_v26 = vpop.eup %5783  ;;  %5178 = vst.msk [vmem:[%s10808_s7 + $0x2e0] sm:$0xff] %vm5085_vm6, %v5782_v53  ;;  %v4236_v32 = vpop.xlane.xlu1 %4235 }
 0x472   :  { %v5786_v30 = vpop.eup %5785  ;;  %5179 = vst.msk [vmem:[%s10808_s7 + $0x2e8] sm:$0xff] %vm5085_vm6, %v5784_v26  ;;  %v4545_v36 = vsub.f32 0.0, %v4417_v40  ;;  %v4418_v61 = vadd.f32 %v7881_v33, %v4236_v32 }
 0x473   :  { %v5788_v42 = vpop.eup %5787  ;;  %v4925_v38 = vadd.f32 1.0, %v5786_v30 }
 0x474   :  { %v5790_v31 = vpop.eup %5789  ;;  %v4926_v35 = vadd.f32 1.0, %v5788_v42  ;;  %v4773_v15 = vmul.f32 1.442695, %v4545_v36  ;;  %v4546_v43 = vsub.f32 0.0, %v4418_v61 }
 0x475   :  { %5180 = vst.msk [vmem:[%s10808_s7 + $0x2f0] sm:$0xff] %vm5085_vm6, %v5790_v31  ;;  %5797 = vrcp.f32 %v4925_v38 }
 0x476   :  { %v5792_v51 = vpop.eup %5791  ;;  %5799 = vrcp.f32 %v4926_v35  ;;  %v4775_v29 = vmul.f32 1.442695, %v4546_v43 }
 0x477   :  { %5181 = vst.msk [vmem:[%s10808_s7 + $0x2f8] sm:$0xff] %vm5085_vm6, %v5792_v51  ;;  %5801 = vpow2.f32 %v4773_v15 }
 0x478   :  { %v5794_v50 = vpop.eup %5793  ;;  %5803 = vpow2.f32 %v4775_v29 }
 0x479   :  { %v4239_v7 = vpop.xlane.xlu0 %4238  ;;  %v4927_v12 = vadd.f32 1.0, %v5794_v50 }
 0x47a   :  { %v5796_v16 = vpop.eup %5795  ;;  %v4419_v9 = vadd.f32 %v7881_v33, %v4239_v7  ;;  %v4242_v11 = vpop.xlane.xlu1 %4241 }
 0x47b   :  { %v4928_v5 = vadd.f32 1.0, %v5796_v16  ;;  %5805 = vrcp.f32 %v4927_v12  ;;  %v4420_v27 = vadd.f32 %v7881_v33, %v4242_v11 }
 0x47c   :  { %v4547_v6 = vsub.f32 0.0, %v4419_v9 }
 0x47d   :  { %5807 = vrcp.f32 %v4928_v5  ;;  %v4548_v44 = vsub.f32 0.0, %v4420_v27 }
 0x47e   :  { %v4777_v54 = vmul.f32 1.442695, %v4547_v6 }
 0x47f   :  { %v5798_v18 = vpop.eup %5797  ;;  %v4779_v56 = vmul.f32 1.442695, %v4548_v44 }
 0x480   :  { %5809 = vpow2.f32 %v4777_v54  ;;  %v5800_v59 = vpop.eup %5799  ;;  %5182 = vst.msk [vmem:[%s10808_s7 + $0x300] sm:$0xff] %vm5085_vm6, %v5798_v18  ;;  %v4245_v21 = vpop.xlane.xlu0 %4244 }
 0x481   :  { %v5802_v25 = vpop.eup %5801  ;;  %5183 = vst.msk [vmem:[%s10808_s7 + $0x308] sm:$0xff] %vm5085_vm6, %v5800_v59  ;;  %5811 = vpow2.f32 %v4779_v56  ;;  %v4421_v22 = vadd.f32 %v7881_v33, %v4245_v21 }
 0x482   :  { %v5804_v46 = vpop.eup %5803  ;;  %v4929_v55 = vadd.f32 1.0, %v5802_v25 }
 0x483   :  { %v4248_v52 = vpop.xlane.xlu1 %4247  ;;  %v4930_v10 = vadd.f32 1.0, %v5804_v46  ;;  %v4549_v2 = vsub.f32 0.0, %v4421_v22 }
 0x484   :  { %v4422_v19 = vadd.f32 %v7881_v33, %v4248_v52  ;;  %5813 = vrcp.f32 %v4929_v55 }
 0x485   :  { %v5806_v0 = vpop.eup %5805  ;;  %5815 = vrcp.f32 %v4930_v10  ;;  %v4781_v58 = vmul.f32 1.442695, %v4549_v2 }
 0x486   :  { %v4550_v37 = vsub.f32 0.0, %v4422_v19  ;;  %5184 = vst.msk [vmem:[%s10808_s7 + $0x310] sm:$0xff] %vm5085_vm6, %v5806_v0 }
 0x487   :  { %v5808_v28 = vpop.eup %5807  ;;  %5817 = vpow2.f32 %v4781_v58 }
 0x488   :  { %5185 = vst.msk [vmem:[%s10808_s7 + $0x318] sm:$0xff] %vm5085_vm6, %v5808_v28  ;;  %v4783_v48 = vmul.f32 1.442695, %v4550_v37 }
 0x489   :  { %v4251_v23 = vpop.xlane.xlu0 %4250 }
 0x48a   :  { %v5810_v47 = vpop.eup %5809  ;;  %5819 = vpow2.f32 %v4783_v48  ;;  %v4423_v57 = vadd.f32 %v7881_v33, %v4251_v23 }
 0x48b   :  { %v4931_v13 = vadd.f32 1.0, %v5810_v47  ;;  %v4254_v4 = vpop.xlane.xlu1 %4253  ;;  %v5812_v17 = vpop.eup %5811 }
 0x48c   :  { %v4424_v34 = vadd.f32 %v7881_v33, %v4254_v4  ;;  %v4932_v14 = vadd.f32 1.0, %v5812_v17  ;;  %v4551_v41 = vsub.f32 0.0, %v4423_v57 }
 0x48d   :  { %5821 = vrcp.f32 %v4931_v13 }
 0x48e   :  { %v4552_v20 = vsub.f32 0.0, %v4424_v34  ;;  %v5814_v62 = vpop.eup %5813  ;;  %5823 = vrcp.f32 %v4932_v14  ;;  %v4785_v8 = vmul.f32 1.442695, %v4551_v41 }
 0x48f   :  { %v5816_v24 = vpop.eup %5815  ;;  %5186 = vst.msk [vmem:[%s10808_s7 + $0x320] sm:$0xff] %vm5085_vm6, %v5814_v62 }
 0x490   :  { %v4787_v3 = vmul.f32 1.442695, %v4552_v20  ;;  %5187 = vst.msk [vmem:[%s10808_s7 + $0x328] sm:$0xff] %vm5085_vm6, %v5816_v24  ;;  %5825 = vpow2.f32 %v4785_v8 }
 0x491   :  { %v5818_v49 = vpop.eup %5817 }
 0x492   :  { %5827 = vpow2.f32 %v4787_v3  ;;  %v4257_v39 = vpop.xlane.xlu0 %4256  ;;  %v4933_v63 = vadd.f32 1.0, %v5818_v49 }
 0x493   :  { %v4425_v45 = vadd.f32 %v7881_v33, %v4257_v39  ;;  %v4260_v1 = vpop.xlane.xlu1 %4259 }
 0x494   :  { %v5820_v60 = vpop.eup %5819  ;;  %5829 = vrcp.f32 %v4933_v63  ;;  %v4426_v26 = vadd.f32 %v7881_v33, %v4260_v1 }
 0x495   :  { %v4934_v53 = vadd.f32 1.0, %v5820_v60  ;;  %v4553_v40 = vsub.f32 0.0, %v4425_v45 }
 0x496   :  { %v4554_v36 = vsub.f32 0.0, %v4426_v26 }
 0x497   :  { %v5822_v32 = vpop.eup %5821  ;;  %5831 = vrcp.f32 %v4934_v53  ;;  %v4789_v30 = vmul.f32 1.442695, %v4553_v40 }
 0x498   :  { %5188 = vst.msk [vmem:[%s10808_s7 + $0x330] sm:$0xff] %vm5085_vm6, %v5822_v32  ;;  %v5824_v61 = vpop.eup %5823  ;;  %v4791_v42 = vmul.f32 1.442695, %v4554_v36 }
 0x499   :  { %5833 = vpow2.f32 %v4789_v30  ;;  %5189 = vst.msk [vmem:[%s10808_s7 + $0x338] sm:$0xff] %vm5085_vm6, %v5824_v61 }
 0x49a   :  { %v5826_v38 = vpop.eup %5825  ;;  %5835 = vpow2.f32 %v4791_v42 }
 0x49b   :  { %v4935_v35 = vadd.f32 1.0, %v5826_v38 }
 0x49c   :  { %v5828_v31 = vpop.eup %5827  ;;  %v4263_v43 = vpop.xlane.xlu0 %4262 }
 0x49d   :  { %v4936_v15 = vadd.f32 1.0, %v5828_v31  ;;  %5837 = vrcp.f32 %v4935_v35  ;;  %v4427_v51 = vadd.f32 %v7881_v33, %v4263_v43 }
 0x49e   :  { %v4266_v29 = vpop.xlane.xlu1 %4265  ;;  %v5830_v50 = vpop.eup %5829 }
 0x49f   :  { %5839 = vrcp.f32 %v4936_v15  ;;  %v4428_v7 = vadd.f32 %v7881_v33, %v4266_v29  ;;  %5190 = vst.msk [vmem:[%s10808_s7 + $0x340] sm:$0xff] %vm5085_vm6, %v5830_v50  ;;  %v4555_v16 = vsub.f32 0.0, %v4427_v51 }
 0x4a1   :  { %v5832_v12 = vpop.eup %5831  ;;  %v4556_v9 = vsub.f32 0.0, %v4428_v7  ;;  %v4793_v5 = vmul.f32 1.442695, %v4555_v16 }
 0x4a2   :  { %5191 = vst.msk [vmem:[%s10808_s7 + $0x348] sm:$0xff] %vm5085_vm6, %v5832_v12 }
 0x4a3   :  { %v5834_v11 = vpop.eup %5833  ;;  %v4795_v6 = vmul.f32 1.442695, %v4556_v9  ;;  %5841 = vpow2.f32 %v4793_v5 }
 0x4a4   :  { %v4937_v27 = vadd.f32 1.0, %v5834_v11  ;;  %v5836_v54 = vpop.eup %5835 }
 0x4a5   :  { %5843 = vpow2.f32 %v4795_v6  ;;  %v4938_v44 = vadd.f32 1.0, %v5836_v54 }
 0x4a6   :  { %5845 = vrcp.f32 %v4937_v27 }
 0x4a7   :  { %v5838_v18 = vpop.eup %5837  ;;  %5847 = vrcp.f32 %v4938_v44 }
 0x4a8   :  { %5192 = vst.msk [vmem:[%s10808_s7 + $0x350] sm:$0xff] %vm5085_vm6, %v5838_v18  ;;  %v4269_v59 = vpop.xlane.xlu0 %4268 }
 0x4a9   :  { %v5840_v56 = vpop.eup %5839  ;;  %v4429_v21 = vadd.f32 %v7881_v33, %v4269_v59  ;;  %v4272_v25 = vpop.xlane.xlu1 %4271 }
 0x4aa   :  { %5193 = vst.msk [vmem:[%s10808_s7 + $0x358] sm:$0xff] %vm5085_vm6, %v5840_v56  ;;  %v4430_v22 = vadd.f32 %v7881_v33, %v4272_v25 }
 0x4ab   :  { %v4557_v46 = vsub.f32 0.0, %v4429_v21 }
 0x4ac   :  { %v4558_v55 = vsub.f32 0.0, %v4430_v22 }
 0x4ad   :  { %v5842_v52 = vpop.eup %5841  ;;  %v4797_v10 = vmul.f32 1.442695, %v4557_v46 }
 0x4ae   :  { %v4939_v19 = vadd.f32 1.0, %v5842_v52  ;;  %v4799_v0 = vmul.f32 1.442695, %v4558_v55 }
 0x4af   :  { %v5844_v2 = vpop.eup %5843  ;;  %5849 = vpow2.f32 %v4797_v10 }
 0x4b0   :  { %v5846_v58 = vpop.eup %5845  ;;  %v4940_v37 = vadd.f32 1.0, %v5844_v2  ;;  %5851 = vrcp.f32 %v4939_v19 }
 0x4b1   :  { %5194 = vst.msk [vmem:[%s10808_s7 + $0x360] sm:$0xff] %vm5085_vm6, %v5846_v58  ;;  %v5848_v28 = vpop.eup %5847 }
 0x4b2   :  { %5853 = vrcp.f32 %v4940_v37  ;;  %5195 = vst.msk [vmem:[%s10808_s7 + $0x368] sm:$0xff] %vm5085_vm6, %v5848_v28 }
 0x4b3   :  { %5855 = vpow2.f32 %v4799_v0  ;;  %v4275_v48 = vpop.xlane.xlu0 %4274 }
 0x4b4   :  { %v4431_v47 = vadd.f32 %v7881_v33, %v4275_v48  ;;  %v4278_v23 = vpop.xlane.xlu1 %4277 }
 0x4b5   :  { %v4432_v13 = vadd.f32 %v7881_v33, %v4278_v23 }
 0x4b6   :  { %v4559_v57 = vsub.f32 0.0, %v4431_v47 }
 0x4b7   :  { %v4560_v4 = vsub.f32 0.0, %v4432_v13 }
 0x4b8   :  { %v4801_v17 = vmul.f32 1.442695, %v4559_v57 }
 0x4b9   :  { %v5850_v34 = vpop.eup %5849  ;;  %v4803_v14 = vmul.f32 1.442695, %v4560_v4 }
 0x4ba   :  { %v5852_v41 = vpop.eup %5851  ;;  %v4941_v20 = vadd.f32 1.0, %v5850_v34  ;;  %5857 = vpow2.f32 %v4801_v17 }
 0x4bb   :  { %5196 = vst.msk [vmem:[%s10808_s7 + $0x370] sm:$0xff] %vm5085_vm6, %v5852_v41  ;;  %5859 = vpow2.f32 %v4803_v14 }
 0x4bc   :  { %v5854_v62 = vpop.eup %5853  ;;  %5861 = vrcp.f32 %v4941_v20 }
 0x4bd   :  { %v5856_v8 = vpop.eup %5855  ;;  %5197 = vst.msk [vmem:[%s10808_s7 + $0x378] sm:$0xff] %vm5085_vm6, %v5854_v62  ;;  %v4281_v3 = vpop.xlane.xlu0 %4280 }
 0x4be   :  { %v4942_v24 = vadd.f32 1.0, %v5856_v8  ;;  %v4433_v49 = vadd.f32 %v7881_v33, %v4281_v3  ;;  %v4284_v39 = vpop.xlane.xlu1 %4283 }
 0x4bf   :  { %v4434_v63 = vadd.f32 %v7881_v33, %v4284_v39 }
 0x4c0   :  { %5863 = vrcp.f32 %v4942_v24  ;;  %v4561_v45 = vsub.f32 0.0, %v4433_v49 }
 0x4c1   :  { %v4562_v60 = vsub.f32 0.0, %v4434_v63 }
 0x4c2   :  { %v4805_v1 = vmul.f32 1.442695, %v4561_v45 }
 0x4c3   :  { %v4807_v53 = vmul.f32 1.442695, %v4562_v60 }
 0x4c4   :  { %v5858_v40 = vpop.eup %5857  ;;  %5865 = vpow2.f32 %v4805_v1  ;;  %v4287_v26 = vpop.xlane.xlu0 %4286 }
 0x4c5   :  { %v5860_v32 = vpop.eup %5859  ;;  %v4943_v30 = vadd.f32 1.0, %v5858_v40  ;;  %5867 = vpow2.f32 %v4807_v53  ;;  %v4435_v36 = vadd.f32 %v7881_v33, %v4287_v26 }
 0x4c6   :  { %v5862_v61 = vpop.eup %5861  ;;  %v4944_v42 = vadd.f32 1.0, %v5860_v32 }
 0x4c7   :  { %v4290_v38 = vpop.xlane.xlu1 %4289  ;;  %5198 = vst.msk [vmem:[%s10808_s7 + $0x380] sm:$0xff] %vm5085_vm6, %v5862_v61  ;;  %5869 = vrcp.f32 %v4943_v30  ;;  %v4563_v31 = vsub.f32 0.0, %v4435_v36 }
 0x4c8   :  { %v4436_v35 = vadd.f32 %v7881_v33, %v4290_v38  ;;  %5871 = vrcp.f32 %v4944_v42 }
 0x4c9   :  { %v4809_v43 = vmul.f32 1.442695, %v4563_v31 }
 0x4ca   :  { %v5864_v15 = vpop.eup %5863  ;;  %v4564_v51 = vsub.f32 0.0, %v4436_v35 }
 0x4cb   :  { %5199 = vst.msk [vmem:[%s10808_s7 + $0x388] sm:$0xff] %vm5085_vm6, %v5864_v15  ;;  %5873 = vpow2.f32 %v4809_v43 }
 0x4cc   :  { %v4811_v29 = vmul.f32 1.442695, %v4564_v51 }
 0x4ce   :  { %5875 = vpow2.f32 %v4811_v29  ;;  %v4293_v50 = vpop.xlane.xlu0 %4292  ;;  %v5866_v7 = vpop.eup %5865 }
 0x4cf   :  { %v4437_v16 = vadd.f32 %v7881_v33, %v4293_v50  ;;  %v5868_v12 = vpop.eup %5867  ;;  %v4945_v9 = vadd.f32 1.0, %v5866_v7  ;;  %v4296_v5 = vpop.xlane.xlu1 %4295 }
 0x4d0   :  { %v4946_v11 = vadd.f32 1.0, %v5868_v12  ;;  %v4438_v27 = vadd.f32 %v7881_v33, %v4296_v5 }
 0x4d1   :  { %v4565_v6 = vsub.f32 0.0, %v4437_v16  ;;  %v5870_v54 = vpop.eup %5869  ;;  %5877 = vrcp.f32 %v4945_v9 }
 0x4d2   :  { %v5872_v44 = vpop.eup %5871  ;;  %5200 = vst.msk [vmem:[%s10808_s7 + $0x390] sm:$0xff] %vm5085_vm6, %v5870_v54  ;;  %5879 = vrcp.f32 %v4946_v11  ;;  %v4566_v56 = vsub.f32 0.0, %v4438_v27 }
 0x4d3   :  { %v4813_v18 = vmul.f32 1.442695, %v4565_v6  ;;  %5201 = vst.msk [vmem:[%s10808_s7 + $0x398] sm:$0xff] %vm5085_vm6, %v5872_v44 }
 0x4d4   :  { %v4815_v59 = vmul.f32 1.442695, %v4566_v56 }
 0x4d5   :  { %5881 = vpow2.f32 %v4813_v18  ;;  %v5874_v21 = vpop.eup %5873 }
 0x4d6   :  { %v4947_v25 = vadd.f32 1.0, %v5874_v21  ;;  %5883 = vpow2.f32 %v4815_v59 }
 0x4d7   :  { %v4299_v46 = vpop.xlane.xlu0 %4298 }
 0x4d8   :  { %v5876_v22 = vpop.eup %5875  ;;  %v4302_v55 = vpop.xlane.xlu1 %4301  ;;  %5885 = vrcp.f32 %v4947_v25  ;;  %v4439_v10 = vadd.f32 %v7881_v33, %v4299_v46 }
 0x4d9   :  { %v4948_v52 = vadd.f32 1.0, %v5876_v22  ;;  %v4440_v2 = vadd.f32 %v7881_v33, %v4302_v55 }
 0x4da   :  { %v4567_v19 = vsub.f32 0.0, %v4439_v10 }
 0x4db   :  { %5887 = vrcp.f32 %v4948_v52  ;;  %v4568_v0 = vsub.f32 0.0, %v4440_v2  ;;  %v5878_v58 = vpop.eup %5877 }
 0x4dc   :  { %v5880_v37 = vpop.eup %5879  ;;  %5202 = vst.msk [vmem:[%s10808_s7 + $0x3a0] sm:$0xff] %vm5085_vm6, %v5878_v58  ;;  %v4817_v28 = vmul.f32 1.442695, %v4567_v19 }
 0x4dd   :  { %v4819_v48 = vmul.f32 1.442695, %v4568_v0  ;;  %5203 = vst.msk [vmem:[%s10808_s7 + $0x3a8] sm:$0xff] %vm5085_vm6, %v5880_v37 }
 0x4de   :  { %5889 = vpow2.f32 %v4817_v28 }
 0x4df   :  { %v5882_v47 = vpop.eup %5881  ;;  %v4305_v23 = vpop.xlane.xlu0 %4304  ;;  %5891 = vpow2.f32 %v4819_v48 }
 0x4e0   :  { %v4949_v13 = vadd.f32 1.0, %v5882_v47  ;;  %v4441_v57 = vadd.f32 %v7881_v33, %v4305_v23  ;;  %v5884_v4 = vpop.eup %5883  ;;  %v4308_v17 = vpop.xlane.xlu1 %4307 }
 0x4e1   :  { %v4950_v34 = vadd.f32 1.0, %v5884_v4  ;;  %v4442_v41 = vadd.f32 %v7881_v33, %v4308_v17 }
 0x4e2   :  { %5893 = vrcp.f32 %v4949_v13  ;;  %v4569_v14 = vsub.f32 0.0, %v4441_v57  ;;  %v5886_v20 = vpop.eup %5885 }
 0x4e3   :  { %v4311_v62 = vpop.xlane.xlu0 %4310  ;;  %5204 = vst.msk [vmem:[%s10808_s7 + $0x3b0] sm:$0xff] %vm5085_vm6, %v5886_v20  ;;  %5895 = vrcp.f32 %v4950_v34  ;;  %v4570_v24 = vsub.f32 0.0, %v4442_v41 }
 0x4e4   :  { %v4821_v8 = vmul.f32 1.442695, %v4569_v14  ;;  %v4443_v3 = vadd.f32 %v7881_v33, %v4311_v62  ;;  %v4314_v39 = vpop.xlane.xlu1 %4313 }
 0x4e5   :  { %v5888_v49 = vpop.eup %5887  ;;  %v4823_v63 = vmul.f32 1.442695, %v4570_v24  ;;  %v4444_v60 = vadd.f32 %v7881_v33, %v4314_v39 }
 0x4e6   :  { %5205 = vst.msk [vmem:[%s10808_s7 + $0x3b8] sm:$0xff] %vm5085_vm6, %v5888_v49  ;;  %5897 = vpow2.f32 %v4821_v8  ;;  %v4571_v45 = vsub.f32 0.0, %v4443_v3 }
 0x4e7   :  { %5899 = vpow2.f32 %v4823_v63  ;;  %v4572_v53 = vsub.f32 0.0, %v4444_v60 }
 0x4e8   :  { %v4825_v1 = vmul.f32 1.442695, %v4571_v45  ;;  %v5890_v40 = vpop.eup %5889 }
 0x4e9   :  { %v5892_v26 = vpop.eup %5891  ;;  %v4951_v32 = vadd.f32 1.0, %v5890_v40  ;;  %v4827_v30 = vmul.f32 1.442695, %v4572_v53 }
 0x4ea   :  { %5901 = vpow2.f32 %v4825_v1  ;;  %v4952_v36 = vadd.f32 1.0, %v5892_v26 }
 0x4eb   :  { %5903 = vrcp.f32 %v4951_v32 }
 0x4ec   :  { %v5894_v61 = vpop.eup %5893  ;;  %5905 = vrcp.f32 %v4952_v36 }
 0x4ed   :  { %5206 = vst.msk [vmem:[%s10808_s7 + $0x3c0] sm:$0xff] %vm5085_vm6, %v5894_v61  ;;  %v5896_v42 = vpop.eup %5895  ;;  %5907 = vpow2.f32 %v4827_v30 }
 0x4ee   :  { %5207 = vst.msk [vmem:[%s10808_s7 + $0x3c8] sm:$0xff] %vm5085_vm6, %v5896_v42 }
 0x4f0   :  { %v5898_v33 = vpop.eup %5897 }
 0x4f1   :  { %v4953_v38 = vadd.f32 1.0, %v5898_v33  ;;  %v5900_v31 = vpop.eup %5899 }
 0x4f2   :  { %v4954_v35 = vadd.f32 1.0, %v5900_v31 }
 0x4f3   :  { %5909 = vrcp.f32 %v4953_v38 }
 0x4f4   :  { %v5902_v15 = vpop.eup %5901  ;;  %5911 = vrcp.f32 %v4954_v35 }
 0x4f5   :  { %v4955_v43 = vadd.f32 1.0, %v5902_v15  ;;  %v5904_v51 = vpop.eup %5903 }
 0x4f6   :  { %v5906_v29 = vpop.eup %5905  ;;  %5208 = vst.msk [vmem:[%s10808_s7 + $0x3d0] sm:$0xff] %vm5085_vm6, %v5904_v51 }
 0x4f7   :  { %5913 = vrcp.f32 %v4955_v43  ;;  %v5908_v50 = vpop.eup %5907  ;;  %5209 = vst.msk [vmem:[%s10808_s7 + $0x3d8] sm:$0xff] %vm5085_vm6, %v5906_v29 }
 0x4f8   :  { %v4956_v7 = vadd.f32 1.0, %v5908_v50 }
 0x4fa   :  { %5915 = vrcp.f32 %v4956_v7 }
 0x4fd   :  { %v5910_v16 = vpop.eup %5909 }
 0x4fe   :  { %5210 = vst.msk [vmem:[%s10808_s7 + $0x3e0] sm:$0xff] %vm5085_vm6, %v5910_v16  ;;  %v5912_v12 = vpop.eup %5911 }
 0x4ff   :  { %5211 = vst.msk [vmem:[%s10808_s7 + $0x3e8] sm:$0xff] %vm5085_vm6, %v5912_v12 }
 0x501   :  { %v5914_v9 = vpop.eup %5913 }
 0x502   :  { %5212 = vst.msk [vmem:[%s10808_s7 + $0x3f0] sm:$0xff] %vm5085_vm6, %v5914_v9 }
 0x504   :  { %v5916_v5 = vpop.eup %5915 }
 0x505   :  { %5213 = vst.msk [vmem:[%s10808_s7 + $0x3f8] sm:$0xff] %vm5085_vm6, %v5916_v5 }

</bundles_post_ra>
